<compile_context>
chip_gen: v6e
topology: v6e:2x2x1
jax: 0.10.0
libtpu: 0.0.40
codegen_flags: <defaults>
</compile_context>

<pallas_src>
import jax
import jax.numpy as jnp
from jax.experimental import pallas as pl
from jax.experimental.pallas import tpu as pltpu


# ----------------------------- Pallas kernel --------------------------------
def gnet_kernel(z_ref, we_ref, be_ref, w1_ref, b1_ref, w2_ref, b2_ref,
                w3_ref, b3_ref, o_ref):
    bf16 = jnp.bfloat16
    # Embedding (EmbedNet): block-diagonal linear, no activation.
    z = z_ref[...]                                                   # bf16 [tb, P*D_in]
    e = jnp.dot(z, we_ref[...], preferred_element_type=jnp.float32) + be_ref[...]
    # MLP: Linear -> ReLU -> Linear -> ReLU -> Linear (bias/ReLU in f32, MXU in bf16).
    h1 = jnp.dot(e.astype(bf16), w1_ref[...],
                 preferred_element_type=jnp.float32) + b1_ref[...]
    h1 = jnp.maximum(h1, 0.0)
    h2 = jnp.dot(h1.astype(bf16), w2_ref[...],
                 preferred_element_type=jnp.float32) + b2_ref[...]
    h2 = jnp.maximum(h2, 0.0)
    out = jnp.dot(h2.astype(bf16), w3_ref[...],
                  preferred_element_type=jnp.float32) + b3_ref[...]
    o_ref[...] = out.astype(o_ref.dtype)


# ------------------------------- wrapper -------------------------------------
def choose_pack(d_in, d_emb, hid, nb_Y, max_weight_bytes=10 * 1024 * 1024):
    """Pick row-pack factor P: smallest power of two with P*nb_Y >= 128 (lane-dense
    output stores), then halve until the block-diagonal bf16 weights (x2 for the
    pipeline's double buffers) fit inside a conservative VMEM budget."""
    pack = 128
    while pack > 1 and (pack // 2) * nb_Y >= 128:
        pack //= 2
    dims = ((d_in, d_emb), (d_emb, hid), (hid, hid), (hid, nb_Y))
    while pack > 1:
        wbytes = sum((pack * a) * (pack * b) * 2 for a, b in dims) * 2  # bf16, dbl-buf
        if wbytes <= max_weight_bytes:
            break
        pack //= 2
    return pack


def pack_gnet_params(params, pack):
    """Build block-diagonal (kron(I_P, W)) bf16 weights + tiled f32 biases."""
    we, be, w1, b1, w2, b2, w3, b3 = params
    eye = jnp.eye(pack, dtype=jnp.float32)

    def pk_w(w):
        return jnp.kron(eye, w).astype(jnp.bfloat16)

    def pk_b(b):
        return jnp.tile(b, (1, pack)).astype(jnp.float32)

    return (pk_w(we), pk_b(be), pk_w(w1), pk_b(b1),
            pk_w(w2), pk_b(b2), pk_w(w3), pk_b(b3))


def gnet_forward(Z, params, *, pack=None, tb_rows=1024):
    """GNet forward. Z: [B, D_in] float32. Returns [B, nb_Y] float32.

    pack:    number of consecutive batch rows fused into one wide row (P).
             Default (None) auto-selects for lane-dense output under a VMEM budget.
    tb_rows: target real batch rows per grid step (512-4096 recommended).
    """
    we, be, w1, b1, w2, b2, w3, b3 = params
    B, d_in = Z.shape
    d_emb = we.shape[1]
    hid = w1.shape[1]
    nb_Y = w3.shape[1]
    P = pack if pack is not None else choose_pack(d_in, d_emb, hid, nb_Y)

    # --- tiling over the packed-row axis --------------------------------------
    rows_p = pl.cdiv(B, P)                       # packed rows before tile padding
    tb_p = max(8, (tb_rows // P) // 8 * 8)       # packed rows / step, multiple of 8
    tb_p = min(tb_p, pl.cdiv(rows_p, 8) * 8)     # don't over-tile tiny batches
    grid = pl.cdiv(rows_p, tb_p)
    rows_pad = grid * tb_p
    B_pad = rows_pad * P

    # --- pad (ragged batch), pack rows, cast stream to bf16 -------------------
    Zp = jnp.pad(Z, ((0, B_pad - B), (0, 0))) if B_pad != B else Z
    Zp = Zp.reshape(rows_pad, P * d_in).astype(jnp.bfloat16)

    packed = pack_gnet_params(params, P)
    we_p, be_p, w1_p, b1_p, w2_p, b2_p, w3_p, b3_p = packed

    # Weights/biases are small relative to VMEM: replicate the full block at every
    # grid step (constant index_map -> no re-DMA across steps); only the packed batch
    # rows of Z / out are tiled.
    def rep(arr):
        return pl.BlockSpec(arr.shape, lambda i: (0, 0))

    out_packed = pl.pallas_call(
        gnet_kernel,
        out_shape=jax.ShapeDtypeStruct((rows_pad, P * nb_Y), jnp.float32),
        grid_spec=pltpu.PrefetchScalarGridSpec(
            num_scalar_prefetch=0,
            grid=(grid,),
            in_specs=[
                pl.BlockSpec((tb_p, P * d_in), lambda i: (i, 0)),   # packed Z
                rep(we_p), rep(be_p),
                rep(w1_p), rep(b1_p),
                rep(w2_p), rep(b2_p),
                rep(w3_p), rep(b3_p),
            ],
            out_specs=pl.BlockSpec((tb_p, P * nb_Y), lambda i: (i, 0)),
        ),
        compiler_params=pltpu.CompilerParams(
            dimension_semantics=("parallel",)),   # megacore-shardable on v7x
    )(Zp, we_p, be_p, w1_p, b1_p, w2_p, b2_p, w3_p, b3_p)

    # Unpack [rows_pad, P*nb_Y] -> [B_pad, nb_Y] and drop padded rows.
    return out_packed.reshape(B_pad, nb_Y)[:B]


# --------------------------- parameter construction --------------------------
def init_gnet_params(key, Zs, nb_Y, hid_size, emb_dim):
    """Deterministic init mimicking PyTorch's default Linear init (U(+-1/sqrt(fan_in))).
    EmbedNet = per-variable Linear(Zs[i], emb_dim), packed block-diagonally."""
    d_in = int(sum(Zs))
    d_emb = emb_dim * len(Zs)
    keys = jax.random.split(key, 3 + len(Zs))

    def linear(k, fan_in, fan_out):
        kw, kb = jax.random.split(k)
        bound = 1.0 / jnp.sqrt(float(fan_in))
        w = jax.random.uniform(kw, (fan_in, fan_out), jnp.float32, -bound, bound)
        b = jax.random.uniform(kb, (1, fan_out), jnp.float32, -bound, bound)
        return w, b

    we = jnp.zeros((d_in, d_emb), jnp.float32)
    be = jnp.zeros((1, d_emb), jnp.float32)
    row = 0
    for i, z in enumerate(Zs):
        w_i, b_i = linear(keys[i], z, emb_dim)
        we = we.at[row:row + z, i * emb_dim:(i + 1) * emb_dim].set(w_i)
        be = be.at[:, i * emb_dim:(i + 1) * emb_dim].set(b_i)
        row += z

    w1, b1 = linear(keys[len(Zs) + 0], d_emb, hid_size)
    w2, b2 = linear(keys[len(Zs) + 1], d_emb if False else hid_size, hid_size)
    w3, b3 = linear(keys[len(Zs) + 2], hid_size, nb_Y)
    return (we, be, w1, b1, w2, b2, w3, b3)


# pure-JAX references for correctness sanity checks
def gnet_ref_f32(Z, params):
    we, be, w1, b1, w2, b2, w3, b3 = params
    e = Z @ we + be
    h1 = jnp.maximum(e @ w1 + b1, 0.0)
    h2 = jnp.maximum(h1 @ w2 + b2, 0.0)
    return h2 @ w3 + b3


def gnet_ref_bf16(Z, params):
    we, be, w1, b1, w2, b2, w3, b3 = params
    bf = jnp.bfloat16
    d = lambda a, b: jnp.dot(a.astype(bf), b.astype(bf),
                             preferred_element_type=jnp.float32)
    e = d(Z, we) + be
    h1 = jnp.maximum(d(e, w1) + b1, 0.0)
    h2 = jnp.maximum(d(h1, w2) + b2, 0.0)
    return d(h2, w3) + b3


if __name__ == "__main__":
    # Small, module-consistent shapes.
    Zs = (3, 4, 5)          # per-variable cardinalities / block widths
    nb_Y = 4
    hid_size = 32
    emb_dim = 8             # per-variable embedding dim -> emb.dim() = 24
    batch = 2000            # not a multiple of pack or tile -> exercises padding

    key = jax.random.PRNGKey(0)
    k_param, k_z = jax.random.split(key)
    params = init_gnet_params(k_param, Zs, nb_Y, hid_size, emb_dim)

    # Z: [batch, sum(Zs)] float input (e.g. concatenated one-hot blocks).
    Z = jax.random.uniform(k_z, (batch, int(sum(Zs))), jnp.float32)

    # pack auto-selects to 32 here (P*nb_Y = 128 lanes); grid = 2 steps.
    out = gnet_forward(Z, params, tb_rows=1024)
    out = jax.block_until_ready(out)
    assert out.shape == (batch, nb_Y)

    # Tight check vs. a reference doing the same bf16 matmuls / f32 accumulation.
    ref16 = gnet_ref_bf16(Z, params)
    assert jnp.allclose(out, ref16, atol=1e-2, rtol=1e-2)
    # Loose semantic check vs. the pure-f32 module math (bf16 stream rounding only).
    ref32 = gnet_ref_f32(Z, params)
    assert jnp.allclose(out, ref32, atol=1e-1, rtol=1e-1)

    print("KERNEL_OK")
</pallas_src>

<mosaic_0001>
module attributes {stable_mosaic.version = 11 : i64} {
  func.func @gnet_kernel(%arg0: i32, %arg1: memref<32x384xbf16, #tpu.memory_space<vmem>>, %arg2: memref<384x768xbf16, #tpu.memory_space<vmem>>, %arg3: memref<1x768xf32, #tpu.memory_space<vmem>>, %arg4: memref<768x1024xbf16, #tpu.memory_space<vmem>>, %arg5: memref<1x1024xf32, #tpu.memory_space<vmem>>, %arg6: memref<1024x1024xbf16, #tpu.memory_space<vmem>>, %arg7: memref<1x1024xf32, #tpu.memory_space<vmem>>, %arg8: memref<1024x128xbf16, #tpu.memory_space<vmem>>, %arg9: memref<1x128xf32, #tpu.memory_space<vmem>>, %arg10: memref<32x128xf32, #tpu.memory_space<vmem>>) attributes {dimension_semantics = [#tpu.dimension_semantics<parallel>], iteration_bounds = array<i64: 2>, scalar_prefetch = 0 : i64, scratch_operands = 0 : i64, tpu.core_type = #tpu.core_type<tc>, window_params = [{transform_indices = @transform_0, window_bounds = array<i64: 32, 384>}, {pipeline_mode = #tpu.pipeline_mode<synchronous>, transform_indices = @transform_1, window_bounds = array<i64: 384, 768>}, {pipeline_mode = #tpu.pipeline_mode<synchronous>, transform_indices = @transform_2, window_bounds = array<i64: 1, 768>}, {pipeline_mode = #tpu.pipeline_mode<synchronous>, transform_indices = @transform_3, window_bounds = array<i64: 768, 1024>}, {pipeline_mode = #tpu.pipeline_mode<synchronous>, transform_indices = @transform_4, window_bounds = array<i64: 1, 1024>}, {pipeline_mode = #tpu.pipeline_mode<synchronous>, transform_indices = @transform_5, window_bounds = array<i64: 1024, 1024>}, {pipeline_mode = #tpu.pipeline_mode<synchronous>, transform_indices = @transform_6, window_bounds = array<i64: 1, 1024>}, {pipeline_mode = #tpu.pipeline_mode<synchronous>, transform_indices = @transform_7, window_bounds = array<i64: 1024, 128>}, {pipeline_mode = #tpu.pipeline_mode<synchronous>, transform_indices = @transform_8, window_bounds = array<i64: 1, 128>}, {transform_indices = @transform_9, window_bounds = array<i64: 32, 128>}]} {
    %c0 = arith.constant 0 : index
    %c0_0 = arith.constant 0 : index
    %0 = vector.load %arg1[%c0, %c0_0] : memref<32x384xbf16, #tpu.memory_space<vmem>>, vector<32x384xbf16>
    %c0_1 = arith.constant 0 : index
    %c0_2 = arith.constant 0 : index
    %1 = vector.load %arg2[%c0_1, %c0_2] : memref<384x768xbf16, #tpu.memory_space<vmem>>, vector<384x768xbf16>
    %cst = arith.constant dense<0.000000e+00> : vector<32x768xf32>
    %2 = tpu.matmul %0, %1, %cst {dimension_numbers = #tpu.dot_dimension_numbers<[1], [0], [0], [1], [0, 0, 1, 1], [], []>} : vector<32x384xbf16>, vector<384x768xbf16>, vector<32x768xf32> -> vector<32x768xf32>
    %c0_3 = arith.constant 0 : index
    %c0_4 = arith.constant 0 : index
    %3 = vector.load %arg3[%c0_3, %c0_4] : memref<1x768xf32, #tpu.memory_space<vmem>>, vector<1x768xf32>
    %4 = vector.broadcast %3 : vector<1x768xf32> to vector<32x768xf32>
    %5 = arith.addf %2, %4 : vector<32x768xf32>
    %6 = arith.truncf %5 : vector<32x768xf32> to vector<32x768xbf16>
    %c0_5 = arith.constant 0 : index
    %c0_6 = arith.constant 0 : index
    %7 = vector.load %arg4[%c0_5, %c0_6] : memref<768x1024xbf16, #tpu.memory_space<vmem>>, vector<768x1024xbf16>
    %cst_7 = arith.constant dense<0.000000e+00> : vector<32x1024xf32>
    %8 = tpu.matmul %6, %7, %cst_7 {dimension_numbers = #tpu.dot_dimension_numbers<[1], [0], [0], [1], [0, 0, 1, 1], [], []>} : vector<32x768xbf16>, vector<768x1024xbf16>, vector<32x1024xf32> -> vector<32x1024xf32>
    %c0_8 = arith.constant 0 : index
    %c0_9 = arith.constant 0 : index
    %9 = vector.load %arg5[%c0_8, %c0_9] : memref<1x1024xf32, #tpu.memory_space<vmem>>, vector<1x1024xf32>
    %10 = vector.broadcast %9 : vector<1x1024xf32> to vector<32x1024xf32>
    %11 = arith.addf %8, %10 : vector<32x1024xf32>
    %cst_10 = arith.constant 0.000000e+00 : f32
    %12 = vector.broadcast %cst_10 : f32 to vector<32x1024xf32>
    %13 = arith.maximumf %11, %12 : vector<32x1024xf32>
    %14 = arith.truncf %13 : vector<32x1024xf32> to vector<32x1024xbf16>
    %c0_11 = arith.constant 0 : index
    %c0_12 = arith.constant 0 : index
    %15 = vector.load %arg6[%c0_11, %c0_12] : memref<1024x1024xbf16, #tpu.memory_space<vmem>>, vector<1024x1024xbf16>
    %cst_13 = arith.constant dense<0.000000e+00> : vector<32x1024xf32>
    %16 = tpu.matmul %14, %15, %cst_13 {dimension_numbers = #tpu.dot_dimension_numbers<[1], [0], [0], [1], [0, 0, 1, 1], [], []>} : vector<32x1024xbf16>, vector<1024x1024xbf16>, vector<32x1024xf32> -> vector<32x1024xf32>
    %c0_14 = arith.constant 0 : index
    %c0_15 = arith.constant 0 : index
    %17 = vector.load %arg7[%c0_14, %c0_15] : memref<1x1024xf32, #tpu.memory_space<vmem>>, vector<1x1024xf32>
    %18 = vector.broadcast %17 : vector<1x1024xf32> to vector<32x1024xf32>
    %19 = arith.addf %16, %18 : vector<32x1024xf32>
    %cst_16 = arith.constant 0.000000e+00 : f32
    %20 = vector.broadcast %cst_16 : f32 to vector<32x1024xf32>
    %21 = arith.maximumf %19, %20 : vector<32x1024xf32>
    %22 = arith.truncf %21 : vector<32x1024xf32> to vector<32x1024xbf16>
    %c0_17 = arith.constant 0 : index
    %c0_18 = arith.constant 0 : index
    %23 = vector.load %arg8[%c0_17, %c0_18] : memref<1024x128xbf16, #tpu.memory_space<vmem>>, vector<1024x128xbf16>
    %cst_19 = arith.constant dense<0.000000e+00> : vector<32x128xf32>
    %24 = tpu.matmul %22, %23, %cst_19 {dimension_numbers = #tpu.dot_dimension_numbers<[1], [0], [0], [1], [0, 0, 1, 1], [], []>} : vector<32x1024xbf16>, vector<1024x128xbf16>, vector<32x128xf32> -> vector<32x128xf32>
    %c0_20 = arith.constant 0 : index
    %c0_21 = arith.constant 0 : index
    %25 = vector.load %arg9[%c0_20, %c0_21] : memref<1x128xf32, #tpu.memory_space<vmem>>, vector<1x128xf32>
    %26 = vector.broadcast %25 : vector<1x128xf32> to vector<32x128xf32>
    %27 = arith.addf %24, %26 : vector<32x128xf32>
    %c0_22 = arith.constant 0 : index
    %c0_23 = arith.constant 0 : index
    %28 = vector.load %arg10[%c0_22, %c0_23] : memref<32x128xf32, #tpu.memory_space<vmem>>, vector<32x128xf32>
    tpu.vector_store %arg10[%c0_22, %c0_23], %27 {strides = array<i32>} : memref<32x128xf32, #tpu.memory_space<vmem>>, vector<32x128xf32>,
    return
  }
  func.func @transform_0(%arg0: i32) -> (i32, i32) {
    %c0_i32 = arith.constant 0 : i32
    %c0_i32_0 = arith.constant 0 : i32
    return %arg0, %c0_i32 : i32, i32
  }
  func.func @transform_1(%arg0: i32) -> (i32, i32) {
    %c0_i32 = arith.constant 0 : i32
    %c0_i32_0 = arith.constant 0 : i32
    %c0_i32_1 = arith.constant 0 : i32
    return %c0_i32, %c0_i32_0 : i32, i32
  }
  func.func @transform_2(%arg0: i32) -> (i32, i32) {
    %c0_i32 = arith.constant 0 : i32
    %c0_i32_0 = arith.constant 0 : i32
    %c0_i32_1 = arith.constant 0 : i32
    return %c0_i32, %c0_i32_0 : i32, i32
  }
  func.func @transform_3(%arg0: i32) -> (i32, i32) {
    %c0_i32 = arith.constant 0 : i32
    %c0_i32_0 = arith.constant 0 : i32
    %c0_i32_1 = arith.constant 0 : i32
    return %c0_i32, %c0_i32_0 : i32, i32
  }
  func.func @transform_4(%arg0: i32) -> (i32, i32) {
    %c0_i32 = arith.constant 0 : i32
    %c0_i32_0 = arith.constant 0 : i32
    %c0_i32_1 = arith.constant 0 : i32
    return %c0_i32, %c0_i32_0 : i32, i32
  }
  func.func @transform_5(%arg0: i32) -> (i32, i32) {
    %c0_i32 = arith.constant 0 : i32
    %c0_i32_0 = arith.constant 0 : i32
    %c0_i32_1 = arith.constant 0 : i32
    return %c0_i32, %c0_i32_0 : i32, i32
  }
  func.func @transform_6(%arg0: i32) -> (i32, i32) {
    %c0_i32 = arith.constant 0 : i32
    %c0_i32_0 = arith.constant 0 : i32
    %c0_i32_1 = arith.constant 0 : i32
    return %c0_i32, %c0_i32_0 : i32, i32
  }
  func.func @transform_7(%arg0: i32) -> (i32, i32) {
    %c0_i32 = arith.constant 0 : i32
    %c0_i32_0 = arith.constant 0 : i32
    %c0_i32_1 = arith.constant 0 : i32
    return %c0_i32, %c0_i32_0 : i32, i32
  }
  func.func @transform_8(%arg0: i32) -> (i32, i32) {
    %c0_i32 = arith.constant 0 : i32
    %c0_i32_0 = arith.constant 0 : i32
    %c0_i32_1 = arith.constant 0 : i32
    return %c0_i32, %c0_i32_0 : i32, i32
  }
  func.func @transform_9(%arg0: i32) -> (i32, i32) {
    %c0_i32 = arith.constant 0 : i32
    %c0_i32_0 = arith.constant 0 : i32
    return %arg0, %c0_i32 : i32, i32
  }
}

</mosaic_0001>

<bundles_post_ra>
// kernel: tpu_custom_call.1
= control target key start
LH: loop header
LB: loop body
LE: loop exit
PB: predicated region body
PF: predicated region fallthrough
CT: control target
= control target key end

     0   :  { %s12676_s0 = inlined_call_operand.hbm [shape: bf16[64,384], index: 0, kind: input, shape index: {}]   ;;  %s12677_s1 = inlined_call_operand.hbm [shape: bf16[384,768], index: 1, kind: input, shape index: {}]   ;;  %s12678_s2 = inlined_call_operand.hbm [shape: f32[1,768], index: 2, kind: input, shape index: {}]   ;;  %s12679_s3 = inlined_call_operand.hbm [shape: bf16[768,1024], index: 3, kind: input, shape index: {}]   ;;  %s12680_s4 = inlined_call_operand.hbm [shape: f32[1,1024], index: 4, kind: input, shape index: {}]   ;;  %s12681_s5 = inlined_call_operand.hbm [shape: bf16[1024,1024], index: 5, kind: input, shape index: {}]   ;;  %s12682_s6 = inlined_call_operand.hbm [shape: f32[1,1024], index: 6, kind: input, shape index: {}]   ;;  %s12683_s7 = inlined_call_operand.hbm [shape: bf16[1024,128], index: 7, kind: input, shape index: {}]   ;;  %s12684_s8 = inlined_call_operand.hbm [shape: f32[1,128], index: 8, kind: input, shape index: {}]   ;;  %s12685_s9 = inlined_call_operand.hbm [shape: f32[64,128], index: 9, kind: output, shape index: {}]  }
   0x1   :  { %12690 = sst [smem:[#allocation24_spill]] %s12677_s1 }
   0x2   :  { %12691 = sst [smem:[#allocation25_spill]] %s12678_s2 }
   0x3   :  { %12692 = sst [smem:[#allocation26_spill]] %s12679_s3 }
   0x4   :  { %14 = vsyncpa [#allocation3], 0 }
   0x5   :  { %16 = vsyncpa [#allocation3 + $0x1], 0 }
   0x6   :  { %17 = vsyncpa [#allocation6], 0 }
   0x7   :  { %18 = vsyncpa [#allocation9], 0 }
   0x8   :  { %19 = vsyncpa [#allocation12], 0 }
   0x9   :  { %20 = vsyncpa [#allocation15], 0 }
   0xa   :  { %21 = vsyncpa [#allocation4], 0 }
   0xb   :  { %23 = vsyncpa [#allocation4 + $0x1], 0  ;;  %s11740_s30 = smov 0   ;;  %s11742_s10 = smov 0  }
   0xc   :  { %s11744_s11 = smov 0   ;;  %s11746_s12 = smov 0  }
   0xd LB: > { %s11669_s13 = smov [#allocation5]   ;;  %s11761_s15 = sadd.s32 4294967295, %s11667_s12   ;;  %s11667_s12 = sphi %s11746_s12, %s12720_s12   ;;  %s11663_s11 = sphi %s11744_s11, %s12719_s11   ;;  %s11659_s10 = sphi %s11742_s10, %s12718_s10   ;;  %s11655_s30 = sphi %s11740_s30, %s12717_s30  }
   0xe   : > { %s266_s14 = sshll.u32 %s11669_s13, 4  ;;  %p9652_p0 = scmp.ge.s32.totalorder %s11667_s12, 1  ;;  %s267_s14 = int_to_ptr.vmem [resolvable:$true] %s266_s14 }
   0xf   : > { %p12686_p1 = scmp.eq.s32.totalorder %s11761_s15, 0  ;;  %p254_p2 = scmp.lt.s32.totalorder %s11667_s12, 3 }
  0x10   : > { %s11670_s17 = smov [#allocation8]   ;;  %s11671_s20 = smov [#allocation11]  }
  0x11   : > { %p11766_p3 = pnand %p9652_p0, %p254_p2  ;;  %s290_s18 = sshll.u32 %s11670_s17, 4  ;;  %s11779_s18 = int_to_ptr.vmem [resolvable:$true] %s290_s18 }
  0x12   : > { %s11781_s21 = sshll.u32 %s11671_s20, 4  ;;  %s11362_s23 = scalar_lea.vmem %s267_s14, 18432  ;;  %s315_s21 = int_to_ptr.vmem [resolvable:$true] %s11781_s21 }
  0x13   : > { %s12693_s16 = scalar_select %p11766_p3, 1, 0 }
  0x14   : > { %p10959_p5 = pneg %p11766_p3  ;;  %p11363_p8 = scmp.ne.s32.totalorder %s267_s14, %s11362_s23 }
  0x15   : > { %p11370_p11 = scmp.lt.s32.totalorder %s267_s14, %s267_s14  ;;  %p11371_p12 = scmp.lt.s32.totalorder %s11362_s23, %s11362_s23 }
  0x16   : > { %p11775_p6 = pnand %p10959_p5, %p12686_p1 }
  0x17   : > { %p11372_p13 = por %p11371_p12, %p11370_p11 }
  0x18   : > { %p11785_p7 = pneg %p11775_p6 }
  0x1a   : > { %p11365_p9 = pnand %p11363_p8, %p11785_p7 }
  0x1c   : > { %p11366_p10 = pneg %p11365_p9 }
  0x1e   : > { %p11373_p0 = pnand %p11372_p13, %p11366_p10 }
  0x20   : > { %11376 = shalt.err (!%p11373_p0)
}
  0x21   : > { %s11672_s24 = smov 384   ;;  %s11673_s25 = smov 24  }
  0x22   : > { %s12696_s1 = sld [smem:[#allocation24_spill]]  ;;  %s11388_s28 = scalar_lea.vmem %s11779_s18, 49152 }
  0x23   : > { %p11389_p2 = scmp.ne.s32.totalorder %s11779_s18, %s11388_s28  ;;  %p11396_p9 = scmp.lt.s32.totalorder %s11779_s18, %s11779_s18 }
  0x24   : > { %p11397_p10 = scmp.lt.s32.totalorder %s11388_s28, %s11388_s28 }
  0x25   : > { %p11391_p5 = pnand %p11389_p2, %p11785_p7 }
  0x26   : > { %p11398_p11 = por %p11397_p10, %p11396_p9 }
  0x27   : > { %p11392_p8 = pneg %p11391_p5 }
  0x28   : > { %10962 = dma.hbm_to_vmem [thread:$0]  (!%p11775_p6), %s12696_s1, 18432, %s267_s14, [#allocation6], %s11672_s24, %s11672_s24, %s11673_s25  }
  0x29   : > { %p11399_p12 = pnand %p11398_p11, %p11392_p8 }
  0x2b   : > { %11402 = shalt.err (!%p11399_p12)
}
  0x2c   : > { %s11674_s29 = smov 512   ;;  %s11675_s13 = smov 32  }
  0x2d   : > { %s12697_s3 = sld [smem:[#allocation26_spill]]  ;;  %s11414_s20 = scalar_lea.vmem %s315_s21, 65536 }
  0x2e   : > { %p11415_p13 = scmp.ne.s32.totalorder %s315_s21, %s11414_s20  ;;  %p11422_p5 = scmp.lt.s32.totalorder %s315_s21, %s315_s21 }
  0x2f   : > { %p11423_p8 = scmp.lt.s32.totalorder %s11414_s20, %s11414_s20 }
  0x30   : > { %p11417_p0 = pnand %p11415_p13, %p11785_p7 }
  0x31   : > { %p11424_p9 = por %p11423_p8, %p11422_p5 }
  0x32   : > { %p11418_p2 = pneg %p11417_p0 }
  0x33   : > { %10968 = dma.hbm_to_vmem [thread:$0]  (!%p11775_p6), %s12697_s3, 49152, %s11779_s18, [#allocation9], %s11674_s29, %s11674_s29, %s11675_s13  }
  0x34   : > { %p11425_p10 = pnand %p11424_p9, %p11418_p2 }
  0x36   : > { %11428 = shalt.err (!%p11425_p10)
}
  0x37   : > { %10974 = dma.hbm_to_vmem [thread:$0]  (!%p11775_p6), %s12681_s5, 65536, %s315_s21, [#allocation12], %s11674_s29, %s11674_s29, %s11675_s13  }
  0x38   : > { %s11676_s25 = smov [#allocation14]  }
  0x39   : > { %s338_s18 = sshll.u32 %s11676_s25, 4  ;;  %s339_s18 = int_to_ptr.vmem [resolvable:$true] %s338_s18 }
  0x3a   : > { %s11440_s26 = scalar_lea.vmem %s339_s18, 8192  ;;  %p11448_p0 = scmp.lt.s32.totalorder %s339_s18, %s339_s18 }
  0x3b   : > { %p11441_p11 = scmp.ne.s32.totalorder %s339_s18, %s11440_s26  ;;  %p11449_p4 = scmp.lt.s32.totalorder %s11440_s26, %s11440_s26 }
  0x3d   : > { %p11443_p12 = pnand %p11441_p11, %p11785_p7  ;;  %p11450_p5 = por %p11449_p4, %p11448_p0 }
  0x3f   : > { %p11444_p13 = pneg %p11443_p12 }
  0x41   : > { %p11451_p2 = pnand %p11450_p5, %p11444_p13 }
  0x43   : > { %11454 = shalt.err (!%p11451_p2)
}
  0x44   : > { %s11677_s27 = smov 64   ;;  %s11678_s28 = smov 4  }
  0x45   : > { %10980 = dma.hbm_to_vmem [thread:$0]  (!%p11775_p6), %s12683_s7, 8192, %s339_s18, [#allocation15], %s11677_s27, %s11677_s27, %s11678_s28  }
  0x46   : > { %s11679_s29 = smov [#allocation7]   ;;  %s11680_s14 = smov [#allocation10]  }
  0x47   : > { %s280_s13 = sshll.u32 %s11679_s29, 4  ;;  %s304_s20 = sshll.u32 %s11680_s14, 4  ;;  %s281_s13 = int_to_ptr.vmem [resolvable:$true] %s280_s13  ;;  %s305_s20 = int_to_ptr.vmem [resolvable:$true] %s304_s20 }
  0x48   : > { %s11466_s23 = scalar_lea.vmem %s281_s13, 96  ;;  %p11474_p10 = scmp.lt.s32.totalorder %s281_s13, %s281_s13 }
  0x49   : > { %p11467_p8 = scmp.ne.s32.totalorder %s281_s13, %s11466_s23  ;;  %p11475_p11 = scmp.lt.s32.totalorder %s11466_s23, %s11466_s23 }
  0x4b   : > { %p11469_p4 = pnand %p11467_p8, %p11785_p7  ;;  %p11476_p12 = por %p11475_p11, %p11474_p10 }
  0x4d   : > { %p11470_p9 = pneg %p11469_p4 }
  0x4f   : > { %p11477_p13 = pnand %p11476_p12, %p11470_p9 }
  0x51   : > { %11480 = shalt.err (!%p11477_p13)
}
  0x52   : > { %s12698_s2 = sld [smem:[#allocation25_spill]]  ;;  %s11492_s18 = scalar_lea.vmem %s305_s20, 128 }
  0x53   : > { %p11493_p0 = scmp.ne.s32.totalorder %s305_s20, %s11492_s18  ;;  %p11500_p1 = scmp.lt.s32.totalorder %s305_s20, %s305_s20 }
  0x54   : > { %p11501_p8 = scmp.lt.s32.totalorder %s11492_s18, %s11492_s18 }
  0x55   : > { %p11495_p5 = pnand %p11493_p0, %p11785_p7 }
  0x56   : > { %p11502_p4 = por %p11501_p8, %p11500_p1 }
  0x57   : > { %p11496_p2 = pneg %p11495_p5 }
  0x58   : > { %10965 = dma.hbm_to_vmem [thread:$0]  (!%p11775_p6), %s12698_s2, 96, %s281_s13, [#allocation6]  }
  0x59   : > { %p11503_p3 = pnand %p11502_p4, %p11496_p2 }
  0x5b   : > { %11506 = shalt.err (!%p11503_p3)
}
  0x5c   : > { %10971 = dma.hbm_to_vmem [thread:$0]  (!%p11775_p6), %s12680_s4, 128, %s305_s20, [#allocation9]  }
  0x5d   : > { %s11681_s28 = smov [#allocation13]   ;;  %s11682_s21 = smov [#allocation16]  }
  0x5e   : > { %s328_s17 = sshll.u32 %s11681_s28, 4  ;;  %s352_s29 = sshll.u32 %s11682_s21, 4  ;;  %s329_s17 = int_to_ptr.vmem [resolvable:$true] %s328_s17  ;;  %s353_s29 = int_to_ptr.vmem [resolvable:$true] %s352_s29 }
  0x5f   : > { %s11518_s13 = scalar_lea.vmem %s329_s17, 128  ;;  %p11526_p11 = scmp.lt.s32.totalorder %s329_s17, %s329_s17 }
  0x60   : > { %p11519_p9 = scmp.ne.s32.totalorder %s329_s17, %s11518_s13  ;;  %p11527_p3 = scmp.lt.s32.totalorder %s11518_s13, %s11518_s13 }
  0x62   : > { %p11521_p10 = pnand %p11519_p9, %p11785_p7  ;;  %p11528_p12 = por %p11527_p3, %p11526_p11 }
  0x64   : > { %p11522_p1 = pneg %p11521_p10 }
  0x66   : > { %p11529_p13 = pnand %p11528_p12, %p11522_p1 }
  0x68   : > { %11532 = shalt.err (!%p11529_p13)
}
  0x69   : > { %10977 = dma.hbm_to_vmem [thread:$0]  (!%p11775_p6), %s12682_s6, 128, %s329_s17, [#allocation12]  }
  0x6a   : > { %s11544_s23 = scalar_lea.vmem %s353_s29, 16  ;;  %s11551_s24 = scalar_lea.vmem %s353_s29, 32 }
  0x6b   : > { %p11545_p0 = scmp.ne.s32.totalorder %s353_s29, %s11544_s23  ;;  %p11552_p8 = scmp.lt.s32.totalorder %s353_s29, %s353_s29 }
  0x6c   : > { %p11553_p4 = scmp.lt.s32.totalorder %s11551_s24, %s11544_s23 }
  0x6d   : > { %p11547_p5 = pnand %p11545_p0, %p11785_p7 }
  0x6e   : > { %p11554_p9 = por %p11553_p4, %p11552_p8 }
  0x6f   : > { %p11548_p2 = pneg %p11547_p5 }
  0x71   : > { %p11555_p10 = pnand %p11554_p9, %p11548_p2 }
  0x73   : > { %11558 = shalt.err (!%p11555_p10)
}
  0x74   : > { %10983 = dma.hbm_to_vmem [thread:$0]  (!%p11775_p6), %s12684_s8, 16, %s353_s29, [#allocation15]  }
  0x75   : > { %s9651_s22 = sadd.s32 4294967294, %s11667_s12   ;;  %s11853_s19 = sadd.s32 1, %s11667_s12  }
  0x76   : > { %s33_s26 = ssub.s32 %s11667_s12, %s11853_s19  ;;  %s36_s27 = sadd.s32 1, %s11663_s11 }
  0x77   : > { %p34_p7 = scmp.eq.s32.totalorder %s33_s26, 0  ;;  %p43_p1 = scmp.ne.s32.totalorder %s11663_s11, %s11659_s10 }
  0x78   : > { %p44_p11 = scmp.eq.s32.totalorder %s11667_s12, 0  ;;  %p49_p3 = scmp.ne.s32.totalorder %s11659_s10, %s11655_s30 }
  0x79   : > { %s11864_s28 = scalar_select %p34_p7, %s11663_s11, %s36_s27  }
  0x7a   : > { %p45_p12 = por %p44_p11, %p43_p1  ;;  %p12699_p13 = scmp.eq.s32.totalorder %s11761_s15, 0 }
  0x7b   : > { %p241_p6 = scmp.eq.s32.totalorder %s11761_s15, 1  ;;  %p247_p5 = scmp.eq.s32.totalorder %s9651_s22, 1 }
  0x7c   : > { %p11868_p0 = por %p12699_p13, %p49_p3  ;;  %p11000_p2 = scmp.lt.s32.totalorder %s11667_s12, 2 }
  0x7d   : > { %s363_s21 = sand.u32 1, %s11663_s11   ;;  %p11875_p8 = por %p241_p6, %p43_p1 }
  0x7e   : > { %s12700_s17 = scalar_select %p11868_p0, 1, 0 }
  0x7f   : > { %s12701_s29 = scalar_select %p11875_p8, 1, 0 }
  0x80   : > { %p11879_p4 = por %p247_p5, %p49_p3  ;;  %s10920_s14 = smul.u32 48, %s363_s21 }
  0x81   : > { %s10921_s20 = smul.u32 768, %s11667_s12  ;;  %p11884_p9 = pnand %p11000_p2, %p45_p12 }
  0x82   : > { %s12702_s13 = scalar_select %p11879_p4, 1, 0 }
  0x83   : > { %s11891_s18 = scalar_lea.hbm %s12676_s0, %s10921_s20  ;;  %s367_s22 = scalar_lea.vmem [#allocation2], %s10920_s14 }
  0x84   : > { %s375_s26 = sshll.u32 %s367_s22, 4  ;;  %s11895_s27 = scalar_lea.sflag [#allocation3], %s363_s21  ;;  %s11893_s26 = int_to_ptr.vmem [resolvable:$true] %s375_s26 }
  0x85   : > { %s11559_s1 = scalar_lea.hbm %s11891_s18, 768  ;;  %p11561_p7 = pneg %p11884_p9 }
  0x86   : > { %p11560_p10 = scmp.ne.s32.totalorder %s11891_s18, %s11559_s1  ;;  %s11564_s20 = scalar_lea.hbm %s12676_s0, 1536 }
  0x87   : > { %p11565_p3 = scmp.lt.s32.totalorder %s11891_s18, %s12676_s0  ;;  %p11566_p12 = scmp.lt.s32.totalorder %s11564_s20, %s11559_s1 }
  0x88   : > { %p11562_p1 = pnand %p11561_p7, %p11560_p10 }
  0x89   : > { %p11567_p13 = por %p11566_p12, %p11565_p3 }
  0x8a   : > { %p11563_p11 = pneg %p11562_p1 }
  0x8c   : > { %p11568_p6 = pnand %p11567_p13, %p11563_p11 }
  0x8e   : > { %11571 = shalt.err (!%p11568_p6)
}
  0x8f   : > { %s11572_s21 = scalar_lea.vmem %s11893_s26, 768  ;;  %s11683_s14 = smov [#allocation2]  }
  0x90   : > { %p11573_p5 = scmp.ne.s32.totalorder %s11893_s26, %s11572_s21  ;;  %s11577_s22 = sshll.u32 %s11683_s14, 4  ;;  %s11578_s22 = int_to_ptr.vmem [resolvable:$false] %s11577_s22 }
  0x91   : > { %s11579_s2 = scalar_lea.vmem %s11578_s22, 1536  ;;  %p11580_p1 = scmp.lt.s32.totalorder %s11893_s26, %s11578_s22 }
  0x92   : > { %p11575_p2 = pnand %p11573_p5, %p11561_p7  ;;  %p11581_p4 = scmp.lt.s32.totalorder %s11579_s2, %s11572_s21 }
  0x94   : > { %p11576_p10 = pneg %p11575_p2  ;;  %p11582_p8 = por %p11581_p4, %p11580_p1 }
  0x96   : > { %p11583_p0 = pnand %p11582_p8, %p11576_p10 }
  0x98   : > { %11586 = shalt.err (!%p11583_p0)
}
  0x99   : > { %s11684_s1 = smov 192   ;;  %s11685_s3 = smov 12  }
  0x9a   : > { %10987 = dma.hbm_to_vmem [thread:$0]  (!%p11884_p9), %s11891_s18, 768, %s11893_s26, %s11895_s27, %s11684_s1, %s11684_s1, %s11685_s3  }
  0x9b   : > { %p12704_p7 = scmp.ne.s32.totalorder %s12693_s16, 0 }
  0x9c   : > { %s11919_s24 = sand.u32 (!%p12704_p7), 1, %s11659_s10   ;;  %p12705_p0 = scmp.ne.s32.totalorder (!%p12704_p7), %s12700_s17, 0 }
  0x9d   : > { %387 = sbr.rel (%p12704_p7) target bundleno = 1825 (0x721), region = 56  ;;  %s390_s25 = scalar_lea.sflag (!%p12704_p7), [#allocation3], %s11919_s24 }
  0x9e   : > { %s10922_s20 = smul.u32 (!%p12704_p7), 48, %s11919_s24 }
  0xa0   : > { %s11923_s21 = scalar_lea.vmem (!%p12704_p7), [#allocation2], %s10922_s20 }
  0xa2   : > { %11630 = dma.done.wait (%p12705_p0), %s390_s25, 768  }
  0xa3   : > { %11632 = vsyncadd (%p12705_p0), %s390_s25, 4294966528  ;;  %p12706_p8 = scmp.eq.s32.totalorder %s11761_s15, 0 }
  0xa5   : > { %11634 = dma.done.wait (%p12706_p8), [#allocation6], 18528   ;;  %p12707_p4 = pmov %p12706_p8 }
  0xa7   : > { %11636 = vsyncadd (%p12707_p4), [#allocation6], 4294948768  ;;  %p12708_p9 = pmov %p12707_p4 }
  0xa8   : > { %p12709_p11 = pmov %p12707_p4 }
  0xa9   : > { %11638 = dma.done.wait (%p12708_p9), [#allocation9], 49280  }
  0xaa   : > { %11640 = vsyncadd (%p12709_p11), [#allocation9], 4294918016  ;;  %p12710_p3 = pmov %p12707_p4 }
  0xac   : > { %11642 = dma.done.wait (%p12710_p3), [#allocation12], 65664   ;;  %p12711_p12 = pmov %p12710_p3 }
  0xad   : > { %p12712_p13 = pmov %p12710_p3 }
  0xae   : > { %11644 = vsyncadd (%p12711_p12), [#allocation12], 4294901632 }
  0xaf   : > { %11646 = dma.done.wait (%p12712_p13), [#allocation15], 8208   ;;  %p12713_p6 = pmov %p12710_p3 }
  0xb0   : > { %v11686_v0 = vmov 0   ;;  %v11061_v1 = vld [vmem:[#allocation5 + $0x154] ss:$24 sps:$4 sm:$0xff]   ;;  %v11065_v3 = vld [vmem:[#allocation5 + $0x150] ss:$24 sps:$4 sm:$0xff]   ;;  %s9674_s16 = sshll.u32 %s11919_s24, 5 }
  0xb1   : > { %11648 = vsyncadd (%p12713_p6), [#allocation15], 4294959088  ;;  %1484 = vmatprep.mubr.bf16.mxu1 %v11686_v0  ;;  %v11063_v2 = vld [vmem:[#allocation5 + $0x454] ss:$24 sps:$4 sm:$0xff]   ;;  %1399 = vmatprep.subr.bf16.mxu0 %v11061_v1  ;;  %v11066_v4 = vld [vmem:[#allocation5 + $0x450] ss:$24 sps:$4 sm:$0xff]  }
  0xb2   : > { %1452 = vmatprep.subr.bf16.mxu1 %v11063_v2  ;;  %v11067_v5 = vld [vmem:[#allocation5 + $0x124] ss:$24 sps:$4 sm:$0xff]   ;;  %1400 = vmatpush1.bf16.msra.mxu0 %v11065_v3  ;;  %v11071_v7 = vld [vmem:[#allocation5 + $0x120] ss:$24 sps:$4 sm:$0xff]   ;;  %v11073_v9 = vld [vmem:[#allocation5 + $0xf4] ss:$24 sps:$4 sm:$0xff]  }
  0xb3   : > { %1453 = vmatpush1.bf16.msra.mxu1 %v11066_v4  ;;  %v11069_v6 = vld [vmem:[#allocation5 + $0x424] ss:$24 sps:$4 sm:$0xff]   ;;  %1401 = vmatprep.subr.bf16.mxu0 %v11067_v5  ;;  %v11072_v8 = vld [vmem:[#allocation5 + $0x420] ss:$24 sps:$4 sm:$0xff]   ;;  %v11075_v10 = vld [vmem:[#allocation5 + $0x3f4] ss:$24 sps:$4 sm:$0xff]  }
  0xb4   : > { %1454 = vmatprep.subr.bf16.mxu1 %v11069_v6  ;;  %v11077_v11 = vld [vmem:[#allocation5 + $0xf0] ss:$24 sps:$4 sm:$0xff]   ;;  %v11079_v13 = vld [vmem:[#allocation5 + $0xc4] ss:$24 sps:$4 sm:$0xff]   ;;  %v11083_v15 = vld [vmem:[#allocation5 + $0xc0] ss:$24 sps:$4 sm:$0xff]  }
  0xb5   : > { %v11078_v12 = vld [vmem:[#allocation5 + $0x3f0] ss:$24 sps:$4 sm:$0xff]   ;;  %v11081_v14 = vld [vmem:[#allocation5 + $0x3c4] ss:$24 sps:$4 sm:$0xff]   ;;  %v11084_v16 = vld [vmem:[#allocation5 + $0x3c0] ss:$24 sps:$4 sm:$0xff]  }
  0xb6   : > { %1402 = vmatpush1.bf16.msra.mxu0 %v11071_v7  ;;  %v11085_v17 = vld [vmem:[#allocation5 + $0x94] ss:$24 sps:$4 sm:$0xff]   ;;  %v11089_v19 = vld [vmem:[#allocation5 + $0x90] ss:$24 sps:$4 sm:$0xff]   ;;  %v11091_v21 = vld [vmem:[#allocation5 + $0x64] ss:$24 sps:$4 sm:$0xff]  }
  0xb7   : > { %1455 = vmatpush1.bf16.msra.mxu1 %v11072_v8  ;;  %1403 = vmatprep.subr.bf16.mxu0 %v11073_v9  ;;  %v11087_v18 = vld [vmem:[#allocation5 + $0x394] ss:$24 sps:$4 sm:$0xff]   ;;  %v11090_v20 = vld [vmem:[#allocation5 + $0x390] ss:$24 sps:$4 sm:$0xff]   ;;  %v11093_v22 = vld [vmem:[#allocation5 + $0x364] ss:$24 sps:$4 sm:$0xff]  }
  0xb8   : > { %1456 = vmatprep.subr.bf16.mxu1 %v11075_v10  ;;  %v11095_v23 = vld [vmem:[#allocation5 + $0x60] ss:$24 sps:$4 sm:$0xff]   ;;  %v11097_v25 = vld [vmem:[#allocation5 + $0x34] ss:$24 sps:$4 sm:$0xff]   ;;  %v11101_v27 = vld [vmem:[#allocation5 + $0x30] ss:$24 sps:$4 sm:$0xff]  }
  0xb9   : > { %v11096_v24 = vld [vmem:[#allocation5 + $0x360] ss:$24 sps:$4 sm:$0xff]   ;;  %v11099_v26 = vld [vmem:[#allocation5 + $0x334] ss:$24 sps:$4 sm:$0xff]   ;;  %v11102_v28 = vld [vmem:[#allocation5 + $0x330] ss:$24 sps:$4 sm:$0xff]  }
  0xba   : > { %1404 = vmatpush1.bf16.msra.mxu0 %v11077_v11  ;;  %v11103_v29 = vld [vmem:[#allocation5 + $0x4] ss:$24 sps:$4 sm:$0xff]   ;;  %v11107_v31 = vld [vmem:[#allocation5] ss:$24 sps:$4 sm:$0xff]   ;;  %v11109_v33 = vld [vmem:[#allocation5 + $0x2d4] ss:$24 sps:$4 sm:$0xff]  }
  0xbb   : > { %1457 = vmatpush1.bf16.msra.mxu1 %v11078_v12  ;;  %1405 = vmatprep.subr.bf16.mxu0 %v11079_v13  ;;  %v11105_v30 = vld [vmem:[#allocation5 + $0x304] ss:$24 sps:$4 sm:$0xff]   ;;  %v11108_v32 = vld [vmem:[#allocation5 + $0x300] ss:$24 sps:$4 sm:$0xff]   ;;  %v11115_v37 = vld [vmem:[#allocation5 + $0x2d0] ss:$24 sps:$4 sm:$0xff]  }
  0xbc   : > { %1458 = vmatprep.subr.bf16.mxu1 %v11081_v14  ;;  %v11114_v34 = vld [vmem:[#allocation5 + $0x15c] ss:$24 sps:$4 sm:$0xff]   ;;  %v11112_v36 = vld [vmem:[#allocation5 + $0x158] ss:$24 sps:$4 sm:$0xff]   ;;  %v11120_v39 = vld [vmem:[#allocation5 + $0x12c] ss:$24 sps:$4 sm:$0xff]  }
  0xbd   : > { %v11947_v35 = vld [vmem:[%s11923_s21 + $0x8] ss:$12 sps:$4 sm:$0xff]   ;;  %v11952_v51 = vld [vmem:[%s11923_s21 + $0x4] ss:$12 sps:$4 sm:$0xff]   ;;  %v11956_v2 = vld [vmem:[%s11923_s21 + $0x20] ss:$12 sps:$4 sm:$0xff]  }
  0xbe   : > { %1406 = vmatpush1.bf16.msra.mxu0 %v11083_v15  ;;  %v11116_v38 = vld [vmem:[#allocation5 + $0x2a4] ss:$24 sps:$4 sm:$0xff]   ;;  %v11118_v40 = vld [vmem:[#allocation5 + $0x128] ss:$24 sps:$4 sm:$0xff]   ;;  %v11122_v42 = vld [vmem:[#allocation5 + $0x274] ss:$24 sps:$4 sm:$0xff]   ;;  %1431 = vmatprep.mubr.bf16.mxu0 %v11952_v51 }
  0xbf   : > { %1459 = vmatpush1.bf16.msra.mxu1 %v11084_v16  ;;  %1407 = vmatprep.subr.bf16.mxu0 %v11085_v17  ;;  %v11121_v41 = vld [vmem:[#allocation5 + $0x2a0] ss:$24 sps:$4 sm:$0xff]   ;;  %v11126_v43 = vld [vmem:[#allocation5 + $0xfc] ss:$24 sps:$4 sm:$0xff]   ;;  %v11127_v45 = vld [vmem:[#allocation5 + $0x270] ss:$24 sps:$4 sm:$0xff]  }
  0xc0   : > { %1460 = vmatprep.subr.bf16.mxu1 %v11087_v18  ;;  %v11124_v44 = vld [vmem:[#allocation5 + $0xf8] ss:$24 sps:$4 sm:$0xff]   ;;  %v11128_v46 = vld [vmem:[#allocation5 + $0x244] ss:$24 sps:$4 sm:$0xff]   ;;  %v11130_v48 = vld [vmem:[#allocation5 + $0xc8] ss:$24 sps:$4 sm:$0xff]  }
  0xc1   : > { %v11132_v47 = vld [vmem:[#allocation5 + $0xcc] ss:$24 sps:$4 sm:$0xff]   ;;  %v11133_v49 = vld [vmem:[#allocation5 + $0x240] ss:$24 sps:$4 sm:$0xff]   ;;  %v11138_v52 = vld [vmem:[#allocation5 + $0x9c] ss:$24 sps:$4 sm:$0xff]  }
  0xc2   : > { %1408 = vmatpush1.bf16.msra.mxu0 %v11089_v19  ;;  %v11134_v50 = vld [vmem:[#allocation5 + $0x214] ss:$24 sps:$4 sm:$0xff]   ;;  %v11136_v53 = vld [vmem:[#allocation5 + $0x98] ss:$24 sps:$4 sm:$0xff]   ;;  %v11140_v55 = vld [vmem:[#allocation5 + $0x1e4] ss:$24 sps:$4 sm:$0xff]  }
  0xc3   : > { %1461 = vmatpush1.bf16.msra.mxu1 %v11090_v20  ;;  %1409 = vmatprep.subr.bf16.mxu0 %v11091_v21  ;;  %v11139_v54 = vld [vmem:[#allocation5 + $0x210] ss:$24 sps:$4 sm:$0xff]   ;;  %v11144_v56 = vld [vmem:[#allocation5 + $0x6c] ss:$24 sps:$4 sm:$0xff]   ;;  %v11145_v58 = vld [vmem:[#allocation5 + $0x1e0] ss:$24 sps:$4 sm:$0xff]  }
  0xc4   : > { %1462 = vmatprep.subr.bf16.mxu1 %v11093_v22  ;;  %v11142_v57 = vld [vmem:[#allocation5 + $0x68] ss:$24 sps:$4 sm:$0xff]   ;;  %v11146_v59 = vld [vmem:[#allocation5 + $0x1b4] ss:$24 sps:$4 sm:$0xff]   ;;  %v11148_v61 = vld [vmem:[#allocation5 + $0x38] ss:$24 sps:$4 sm:$0xff]  }
  0xc5   : > { %v11150_v60 = vld [vmem:[#allocation5 + $0x3c] ss:$24 sps:$4 sm:$0xff]   ;;  %v11151_v62 = vld [vmem:[#allocation5 + $0x1b0] ss:$24 sps:$4 sm:$0xff]   ;;  %v11156_v1 = vld [vmem:[#allocation5 + $0xc] ss:$24 sps:$4 sm:$0xff]  }
  0xc6   : > { %1410 = vmatpush1.bf16.msra.mxu0 %v11095_v23  ;;  %v11152_v63 = vld [vmem:[#allocation5 + $0x184] ss:$24 sps:$4 sm:$0xff]   ;;  %v11154_v3 = vld [vmem:[#allocation5 + $0x8] ss:$24 sps:$4 sm:$0xff]   ;;  %v11161_v8 = vld [vmem:[#allocation5 + $0x2d8] ss:$24 sps:$4 sm:$0xff]  }
  0xc7   : > { %1463 = vmatpush1.bf16.msra.mxu1 %v11096_v24  ;;  %1411 = vmatprep.subr.bf16.mxu0 %v11097_v25  ;;  %v11157_v4 = vld [vmem:[#allocation5 + $0x180] ss:$24 sps:$4 sm:$0xff]   ;;  %v11163_v5 = vld [vmem:[#allocation5 + $0x2dc] ss:$24 sps:$4 sm:$0xff]   ;;  %v11169_v10 = vld [vmem:[#allocation5 + $0x2ac] ss:$24 sps:$4 sm:$0xff]  }
  0xc8   : > { %1464 = vmatprep.subr.bf16.mxu1 %v11099_v26  ;;  %v11166_v6 = vld [vmem:[#allocation5 + $0x45c] ss:$24 sps:$4 sm:$0xff]   ;;  %v11164_v9 = vld [vmem:[#allocation5 + $0x458] ss:$24 sps:$4 sm:$0xff]   ;;  %v11172_v11 = vld [vmem:[#allocation5 + $0x42c] ss:$24 sps:$4 sm:$0xff]  }
  0xc9   : > { %v11961_v7 = vld [vmem:[%s11923_s21] ss:$12 sps:$4 sm:$0xff]   ;;  %v11964_v12 = vld [vmem:[%s11923_s21 + $0x1c] ss:$12 sps:$4 sm:$0xff]   ;;  %v11969_v17 = vld [vmem:[%s11923_s21 + $0x18] ss:$12 sps:$4 sm:$0xff]  }
  0xca   : > { %1412 = vmatpush1.bf16.msra.mxu0 %v11101_v27  ;;  %v11167_v13 = vld [vmem:[#allocation5 + $0x2a8] ss:$24 sps:$4 sm:$0xff]   ;;  %v11175_v15 = vld [vmem:[#allocation5 + $0x27c] ss:$24 sps:$4 sm:$0xff]   ;;  %v11173_v18 = vld [vmem:[#allocation5 + $0x278] ss:$24 sps:$4 sm:$0xff]  }
  0xcb   : > { %1465 = vmatpush1.bf16.msra.mxu1 %v11102_v28  ;;  %1413 = vmatprep.subr.bf16.mxu0 %v11103_v29  ;;  %v11170_v14 = vld [vmem:[#allocation5 + $0x428] ss:$24 sps:$4 sm:$0xff]   ;;  %v11178_v16 = vld [vmem:[#allocation5 + $0x3fc] ss:$24 sps:$4 sm:$0xff]   ;;  %v11176_v19 = vld [vmem:[#allocation5 + $0x3f8] ss:$24 sps:$4 sm:$0xff]  }
  0xcc   : > { %1466 = vmatprep.subr.bf16.mxu1 %v11105_v30  ;;  %v11184_v20 = vld [vmem:[#allocation5 + $0x24c] ss:$24 sps:$4 sm:$0xff]   ;;  %v11182_v22 = vld [vmem:[#allocation5 + $0x248] ss:$24 sps:$4 sm:$0xff]   ;;  %v11191_v24 = vld [vmem:[#allocation5 + $0x21c] ss:$24 sps:$4 sm:$0xff]  }
  0xcd   : > { %v11187_v21 = vld [vmem:[#allocation5 + $0x3cc] ss:$24 sps:$4 sm:$0xff]   ;;  %v11185_v23 = vld [vmem:[#allocation5 + $0x3c8] ss:$24 sps:$4 sm:$0xff]   ;;  %v11194_v25 = vld [vmem:[#allocation5 + $0x39c] ss:$24 sps:$4 sm:$0xff]  }
  0xce   : > { %1414 = vmatpush1.bf16.msra.mxu0 %v11107_v31  ;;  %v11189_v26 = vld [vmem:[#allocation5 + $0x218] ss:$24 sps:$4 sm:$0xff]   ;;  %v11197_v28 = vld [vmem:[#allocation5 + $0x1ec] ss:$24 sps:$4 sm:$0xff]   ;;  %v11195_v30 = vld [vmem:[#allocation5 + $0x1e8] ss:$24 sps:$4 sm:$0xff]  }
  0xcf   : > { %1467 = vmatpush1.bf16.msra.mxu1 %v11108_v32  ;;  %1415 = vmatprep.subr.bf16.mxu0 %v11109_v33  ;;  %v11192_v27 = vld [vmem:[#allocation5 + $0x398] ss:$24 sps:$4 sm:$0xff]   ;;  %v11200_v29 = vld [vmem:[#allocation5 + $0x36c] ss:$24 sps:$4 sm:$0xff]   ;;  %v11198_v31 = vld [vmem:[#allocation5 + $0x368] ss:$24 sps:$4 sm:$0xff]  }
  0xd0   : > { %1505 = vmatprep.subr.bf16.mxu1 %v11114_v34  ;;  %v11203_v32 = vld [vmem:[#allocation5 + $0x1bc] ss:$24 sps:$4 sm:$0xff]   ;;  %v11201_v34 = vld [vmem:[#allocation5 + $0x1b8] ss:$24 sps:$4 sm:$0xff]   ;;  %s459_s17 = scalar_lea.vmem [#allocation17], %s9674_s16  ;;  %s10791_s18 = sshll.u32 %s11761_s15, 9 }
  0xd1   : > { %v11206_v33 = vld [vmem:[#allocation5 + $0x33c] ss:$24 sps:$4 sm:$0xff]   ;;  %s9502_s23 = sshll.u32 %s459_s17, 4  ;;  %s12633_s14 = scalar_lea.hbm %s12685_s9, %s10791_s18  ;;  %s12628_s23 = int_to_ptr.vmem [resolvable:$true] %s9502_s23 }
  0xd2   : > { %1485 = vmatmul.mubr.bf16.vlgmr.msra.gmra.mxu1 %v11947_v35  ;;  %1416 = vmatpush2.bf16.msra.mxu0 %v11115_v37  ;;  %v11209_v37 = vld [vmem:[#allocation5 + $0x18c] ss:$24 sps:$4 sm:$0xff]   ;;  %s9489_s22 = scalar_lea.sflag [#allocation4], %s11919_s24  ;;  %s11587_s2 = scalar_lea.vmem %s12628_s23, 512 }
  0xd3   : > { %1506 = vmatpush1.bf16.msra.mxu1 %v11112_v36  ;;  %1417 = vmatprep.subr.bf16.mxu0 %v11116_v38  ;;  %v11204_v36 = vld [vmem:[#allocation5 + $0x338] ss:$24 sps:$4 sm:$0xff]   ;;  %v11212_v38 = vld [vmem:[#allocation5 + $0x30c] ss:$24 sps:$4 sm:$0xff]   ;;  %p11588_p5 = scmp.ne.s32.totalorder %s12628_s23, %s11587_s2  ;;  %p12714_p2 = scmp.ne.s32.totalorder %s12701_s29, 0 }
  0xd4   : > { %1507 = vmatprep.subr.bf16.mxu1 %v11120_v39  ;;  %1494 = vmatprep.mubr.bf16.mxu1 %v11686_v0  ;;  %v11207_v39 = vld [vmem:[#allocation5 + $0x188] ss:$24 sps:$4 sm:$0xff]   ;;  %s11687_s15 = smov [#allocation17]  }
  0xd5   : > { %p11589_p10 = pnand %p11588_p5, %p12714_p2  ;;  %s11591_s1 = sshll.u32 %s11687_s15, 4  ;;  %s11592_s1 = int_to_ptr.vmem [resolvable:$false] %s11591_s1 }
  0xd6   : > { %1418 = vmatpush2.bf16.msra.mxu0 %v11121_v41  ;;  %v11215_v41 = vld [vmem:[#allocation5 + $0x164] ss:$24 sps:$4 sm:$0xff]   ;;  %s11593_s3 = scalar_lea.vmem %s11592_s1, 1024  ;;  %p11594_p7 = scmp.lt.s32.totalorder %s12628_s23, %s11592_s1 }
  0xd7   : > { %1508 = vmatpush1.bf16.msra.mxu1 %v11118_v40  ;;  %1419 = vmatprep.subr.bf16.mxu0 %v11122_v42  ;;  %v11210_v40 = vld [vmem:[#allocation5 + $0x308] ss:$24 sps:$4 sm:$0xff]   ;;  %v11239_v42 = vld [vmem:[#allocation5 + $0x464] ss:$24 sps:$4 sm:$0xff]   ;;  %p11590_p1 = pneg %p11589_p10  ;;  %p11595_p0 = scmp.lt.s32.totalorder %s11593_s3, %s11587_s2 }
  0xd8   : > { %1509 = vmatprep.subr.bf16.mxu1 %v11126_v43  ;;  %v11213_v43 = vld [vmem:[#allocation5 + $0x160] ss:$24 sps:$4 sm:$0xff]  }
  0xd9   : > { %p11596_p8 = por %p11595_p0, %p11594_p7 }
  0xda   : > { %1420 = vmatpush2.bf16.msra.mxu0 %v11127_v45  ;;  %1495 = vmatmul.mubr.bf16.gmra.mxu1 %v11956_v2  ;;  %v11237_v45 = vld [vmem:[#allocation5 + $0x460] ss:$24 sps:$4 sm:$0xff]  }
  0xdb   : > { %1510 = vmatpush1.bf16.msra.mxu1 %v11124_v44  ;;  %1421 = vmatprep.subr.bf16.mxu0 %v11128_v46  ;;  %v11218_v44 = vld [vmem:[#allocation5 + $0x134] ss:$24 sps:$4 sm:$0xff]   ;;  %p11597_p4 = pnand %p11596_p8, %p11590_p1 }
  0xdc   : > { %1511 = vmatprep.subr.bf16.mxu1 %v11132_v47  ;;  %1537 = vmatprep.mubr.bf16.mxu1 %v11952_v51  ;;  %v11245_v46 = vld [vmem:[#allocation5 + $0x434] ss:$24 sps:$4 sm:$0xff]   ;;  %v11216_v47 = vld [vmem:[#allocation5 + $0x130] ss:$24 sps:$4 sm:$0xff]  }
  0xde   : > { %1422 = vmatpush2.bf16.msra.mxu0 %v11133_v49  ;;  %v11243_v49 = vld [vmem:[#allocation5 + $0x430] ss:$24 sps:$4 sm:$0xff]  }
  0xdf   : > { %1512 = vmatpush1.bf16.msra.mxu1 %v11130_v48  ;;  %1423 = vmatprep.subr.bf16.mxu0 %v11134_v50  ;;  %v11221_v48 = vld [vmem:[#allocation5 + $0x104] ss:$24 sps:$4 sm:$0xff]   ;;  %v11219_v50 = vld [vmem:[#allocation5 + $0x100] ss:$24 sps:$4 sm:$0xff]  }
  0xe0   : > { %1513 = vmatprep.subr.bf16.mxu1 %v11138_v52  ;;  %v11251_v52 = vld [vmem:[#allocation5 + $0x404] ss:$24 sps:$4 sm:$0xff]  }
  0xe2   : > { %1424 = vmatpush2.bf16.msra.mxu0 %v11139_v54  ;;  %v11249_v54 = vld [vmem:[#allocation5 + $0x400] ss:$24 sps:$4 sm:$0xff]  }
  0xe3   : > { %1514 = vmatpush1.bf16.msra.mxu1 %v11136_v53  ;;  %1425 = vmatprep.subr.bf16.mxu0 %v11140_v55  ;;  %v11224_v53 = vld [vmem:[#allocation5 + $0xd4] ss:$24 sps:$4 sm:$0xff]  }
  0xe4   : > { %1515 = vmatprep.subr.bf16.mxu1 %v11144_v56  ;;  %v11257_v55 = vld [vmem:[#allocation5 + $0x3d4] ss:$24 sps:$4 sm:$0xff]   ;;  %v11222_v56 = vld [vmem:[#allocation5 + $0xd0] ss:$24 sps:$4 sm:$0xff]  }
  0xe6   : > { %1426 = vmatpush2.bf16.msra.mxu0 %v11145_v58  ;;  %v11255_v58 = vld [vmem:[#allocation5 + $0x3d0] ss:$24 sps:$4 sm:$0xff]  }
  0xe7   : > { %1516 = vmatpush1.bf16.msra.mxu1 %v11142_v57  ;;  %1427 = vmatprep.subr.bf16.mxu0 %v11146_v59  ;;  %v11227_v57 = vld [vmem:[#allocation5 + $0xa4] ss:$24 sps:$4 sm:$0xff]  }
  0xe8   : > { %1517 = vmatprep.subr.bf16.mxu1 %v11150_v60  ;;  %v11263_v59 = vld [vmem:[#allocation5 + $0x3a4] ss:$24 sps:$4 sm:$0xff]   ;;  %v11225_v60 = vld [vmem:[#allocation5 + $0xa0] ss:$24 sps:$4 sm:$0xff]  }
  0xea   : > { %1428 = vmatpush2.bf16.msra.mxu0 %v11151_v62  ;;  %v11261_v62 = vld [vmem:[#allocation5 + $0x3a0] ss:$24 sps:$4 sm:$0xff]  }
  0xeb   : > { %1518 = vmatpush1.bf16.msra.mxu1 %v11148_v61  ;;  %1429 = vmatprep.subr.bf16.mxu0 %v11152_v63  ;;  %v11230_v61 = vld [vmem:[#allocation5 + $0x74] ss:$24 sps:$4 sm:$0xff]  }
  0xec   : > { %1519 = vmatprep.subr.bf16.mxu1 %v11156_v1  ;;  %v11269_v63 = vld [vmem:[#allocation5 + $0x374] ss:$24 sps:$4 sm:$0xff]   ;;  %v11228_v1 = vld [vmem:[#allocation5 + $0x70] ss:$24 sps:$4 sm:$0xff]  }
  0xee   : > { %1430 = vmatpush2.bf16.msra.mxu0 %v11157_v4  ;;  %v11267_v4 = vld [vmem:[#allocation5 + $0x370] ss:$24 sps:$4 sm:$0xff]  }
  0xef   : > { %1520 = vmatpush1.bf16.msra.mxu1 %v11154_v3  ;;  %1558 = vmatprep.subr.bf16.mxu0 %v11166_v6  ;;  %v11233_v3 = vld [vmem:[#allocation5 + $0x44] ss:$24 sps:$4 sm:$0xff]   ;;  %v11231_v6 = vld [vmem:[#allocation5 + $0x40] ss:$24 sps:$4 sm:$0xff]  }
  0xf0   : > { %1521 = vmatprep.subr.bf16.mxu1 %v11163_v5  ;;  %v11275_v5 = vld [vmem:[#allocation5 + $0x344] ss:$24 sps:$4 sm:$0xff]  }
  0xf1   : > { %1432 = vmatmul.mubr.bf16.vlgmr.msra.gmra.mxu0 %v11961_v7 }
  0xf2   : > { %1559 = vmatpush1.bf16.msra.mxu0 %v11164_v9  ;;  %1441 = vmatprep.mubr.bf16.mxu0 %v11964_v12  ;;  %v11281_v9 = vld [vmem:[#allocation5 + $0x314] ss:$24 sps:$4 sm:$0xff]  }
  0xf3   : > { %1522 = vmatpush2.bf16.msra.mxu1 %v11161_v8  ;;  %1560 = vmatprep.subr.bf16.mxu0 %v11172_v11  ;;  %v11236_v8 = vld [vmem:[#allocation5 + $0x14] ss:$24 sps:$4 sm:$0xff]  }
  0xf4   : > { %1523 = vmatprep.subr.bf16.mxu1 %v11169_v10  ;;  %v11234_v10 = vld [vmem:[#allocation5 + $0x10] ss:$24 sps:$4 sm:$0xff]  }
  0xf5   : > { %v1785_v11 = vld [vmem:[#allocation8 + $0x1c0] sm:$0xff] }
  0xf6   : > { %1561 = vmatpush1.bf16.msra.mxu0 %v11170_v14  ;;  %v11242_v14 = vld [vmem:[#allocation5 + $0x2e4] ss:$24 sps:$4 sm:$0xff]  }
  0xf7   : > { %1524 = vmatpush2.bf16.msra.mxu1 %v11167_v13  ;;  %1562 = vmatprep.subr.bf16.mxu0 %v11178_v16  ;;  %v1789_v13 = vld [vmem:[#allocation8 + $0x1e0] sm:$0xff]  ;;  %v11240_v16 = vld [vmem:[#allocation5 + $0x2e0] ss:$24 sps:$4 sm:$0xff]  }
  0xf8   : > { %1525 = vmatprep.subr.bf16.mxu1 %v11175_v15  ;;  %v11279_v15 = vld [vmem:[#allocation5 + $0x310] ss:$24 sps:$4 sm:$0xff]  }
  0xf9   : > { %1442 = vmatmul.mubr.bf16.gmra.mxu0 %v11969_v17 }
  0xfa   : > { %1563 = vmatpush1.bf16.msra.mxu0 %v11176_v19  ;;  %1590 = vmatprep.mubr.bf16.mxu0 %v11686_v0  ;;  %v1781_v19 = vld [vmem:[#allocation8 + $0x1a0] sm:$0xff] }
  0xfb   : > { %1526 = vmatpush2.bf16.msra.mxu1 %v11173_v18  ;;  %1564 = vmatprep.subr.bf16.mxu0 %v11187_v21  ;;  %v1777_v18 = vld [vmem:[#allocation8 + $0x180] sm:$0xff] }
  0xfc   : > { %1527 = vmatprep.subr.bf16.mxu1 %v11184_v20  ;;  %v9882_v20 = vcombine.high %v1785_v11, %v1789_v13  ;;  %v11248_v21 = vld [vmem:[#allocation5 + $0x2b4] ss:$24 sps:$4 sm:$0xff]  }
  0xfe   : > { %1565 = vmatpush1.bf16.msra.mxu0 %v11185_v23  ;;  %v9881_v23 = vcombine.low %v1785_v11, %v1789_v13  ;;  %v1897_v11 = vld [vmem:[#allocation8 + $0x540] sm:$0xff] }
  0xff   : > { %1528 = vmatpush2.bf16.msra.mxu1 %v11182_v22  ;;  %1566 = vmatprep.subr.bf16.mxu0 %v11194_v25  ;;  %v11246_v22 = vld [vmem:[#allocation5 + $0x2b0] ss:$24 sps:$4 sm:$0xff]  }
 0x100   : > { %1529 = vmatprep.subr.bf16.mxu1 %v11191_v24  ;;  %v1769_v24 = vld [vmem:[#allocation8 + $0x140] sm:$0xff] }
 0x101   : > { %v1773_v25 = vld [vmem:[#allocation8 + $0x160] sm:$0xff] }
 0x102   : > { %1567 = vmatpush1.bf16.msra.mxu0 %v11192_v27  ;;  %v11254_v27 = vld [vmem:[#allocation5 + $0x284] ss:$24 sps:$4 sm:$0xff]  }
 0x103   : > { %1530 = vmatpush2.bf16.msra.mxu1 %v11189_v26  ;;  %1568 = vmatprep.subr.bf16.mxu0 %v11200_v29  ;;  %v9874_v26 = vcombine.high %v1777_v18, %v1781_v19  ;;  %v9873_v29 = vcombine.low %v1777_v18, %v1781_v19  ;;  %v1833_v18 = vld [vmem:[#allocation8 + $0x340] sm:$0xff] }
 0x104   : > { %1531 = vmatprep.subr.bf16.mxu1 %v11197_v28  ;;  %v11252_v28 = vld [vmem:[#allocation5 + $0x280] ss:$24 sps:$4 sm:$0xff]   ;;  %v1837_v19 = vld [vmem:[#allocation8 + $0x360] sm:$0xff] }
 0x106   : > { %1569 = vmatpush1.bf16.msra.mxu0 %v11198_v31  ;;  %v1765_v31 = vld [vmem:[#allocation8 + $0x120] sm:$0xff] }
 0x107   : > { %1532 = vmatpush2.bf16.msra.mxu1 %v11195_v30  ;;  %1570 = vmatprep.subr.bf16.mxu0 %v11206_v33  ;;  %v1761_v30 = vld [vmem:[#allocation8 + $0x100] sm:$0xff] }
 0x108   : > { %1533 = vmatprep.subr.bf16.mxu1 %v11203_v32  ;;  %v9866_v32 = vcombine.high %v1769_v24, %v1773_v25  ;;  %v11260_v33 = vld [vmem:[#allocation5 + $0x254] ss:$24 sps:$4 sm:$0xff]  }
 0x10a   : > { %1571 = vmatpush1.bf16.msra.mxu0 %v11204_v36  ;;  %v9865_v36 = vcombine.low %v1769_v24, %v1773_v25  ;;  %v9930_v24 = vcombine.high %v1833_v18, %v1837_v19 }
 0x10b   : > { %1534 = vmatpush2.bf16.msra.mxu1 %v11201_v34  ;;  %1572 = vmatprep.subr.bf16.mxu0 %v11212_v38  ;;  %v11258_v34 = vld [vmem:[#allocation5 + $0x250] ss:$24 sps:$4 sm:$0xff]  }
 0x10c   : > { %1535 = vmatprep.subr.bf16.mxu1 %v11209_v37  ;;  %v1753_v37 = vld [vmem:[#allocation8 + $0xc0] sm:$0xff] }
 0x10d   : > { %v1757_v38 = vld [vmem:[#allocation8 + $0xe0] sm:$0xff] }
 0x10e   : > { %1573 = vmatpush1.bf16.msra.mxu0 %v11210_v40  ;;  %v9857_v40 = vcombine.low %v1761_v30, %v1765_v31 }
 0x10f   : > { %1536 = vmatpush2.bf16.msra.mxu1 %v11207_v39  ;;  %1611 = vmatprep.subr.bf16.mxu0 %v11215_v41  ;;  %v9858_v39 = vcombine.high %v1761_v30, %v1765_v31  ;;  %v1745_v41 = vld [vmem:[#allocation8 + $0x80] sm:$0xff] }
 0x110   : > { %1664 = vmatprep.subr.bf16.mxu1 %v11239_v42  ;;  %v1749_v42 = vld [vmem:[#allocation8 + $0xa0] sm:$0xff] }
 0x111   : > { %1591 = vmatmul.mubr.bf16.vlgmr.msra.gmra.mxu0 %v11947_v35 }
 0x112   : > { %1538 = vmatmul.mubr.bf16.vlgmr.msra.gmra.mxu1 %v11961_v7  ;;  %1612 = vmatpush1.bf16.msra.mxu0 %v11213_v43  ;;  %v9850_v43 = vcombine.high %v1753_v37, %v1757_v38 }
 0x113   : > { %1547 = vmatprep.mubr.bf16.mxu1 %v11964_v12  ;;  %1613 = vmatprep.subr.bf16.mxu0 %v11218_v44  ;;  %v11272_v44 = vld [vmem:[#allocation5 + $0x1f4] ss:$24 sps:$4 sm:$0xff]  }
 0x114   : > { %1600 = vmatprep.mubr.bf16.mxu0 %v11686_v0  ;;  %1665 = vmatpush1.bf16.msra.mxu1 %v11237_v45  ;;  %v11270_v45 = vld [vmem:[#allocation5 + $0x1f0] ss:$24 sps:$4 sm:$0xff]  }
 0x115   : > { %1666 = vmatprep.subr.bf16.mxu1 %v11245_v46  ;;  %v9849_v46 = vcombine.low %v1753_v37, %v1757_v38  ;;  %v11989_v37 = vld [vmem:[#allocation8 + $0x9e0] sm:$0xff]  ;;  %v11991_v38 = vld [vmem:[#allocation8 + $0x1c8] sm:$0xff] }
 0x116   : > { %1614 = vmatpush1.bf16.msra.mxu0 %v11216_v47  ;;  %v1737_v47 = vld [vmem:[#allocation8 + $0x40] sm:$0xff] }
 0x117   : > { %1615 = vmatprep.subr.bf16.mxu0 %v11221_v48  ;;  %v1741_v48 = vld [vmem:[#allocation8 + $0x60] sm:$0xff] }
 0x118   : > { %1667 = vmatpush1.bf16.msra.mxu1 %v11243_v49  ;;  %v9842_v49 = vcombine.high %v1745_v41, %v1749_v42 }
 0x119   : > { %1601 = vmatmul.mubr.bf16.gmra.mxu0 %v11956_v2  ;;  %1668 = vmatprep.subr.bf16.mxu1 %v11251_v52  ;;  %v9841_v52 = vcombine.low %v1745_v41, %v1749_v42 }
 0x11a   : > { %1548 = vmatmul.mubr.bf16.gmra.mxu1 %v11969_v17  ;;  %1616 = vmatpush1.bf16.msra.mxu0 %v11219_v50  ;;  %v11276_v50 = vld [vmem:[#allocation5 + $0x1c0] ss:$24 sps:$4 sm:$0xff]  }
 0x11b   : > { %1617 = vmatprep.subr.bf16.mxu0 %v11224_v53  ;;  %1696 = vmatprep.mubr.bf16.mxu1 %v11686_v0  ;;  %v1729_v53 = vld [vmem:[#allocation8] sm:$0xff] }
 0x11c   : > { %1669 = vmatpush1.bf16.msra.mxu1 %v11249_v54  ;;  %1643 = vmatprep.mubr.bf16.mxu0 %v11952_v51  ;;  %v11273_v51 = vld [vmem:[#allocation5 + $0x340] ss:$24 sps:$4 sm:$0xff]   ;;  %v1733_v54 = vld [vmem:[#allocation8 + $0x20] sm:$0xff] }
 0x11d   : > { %1670 = vmatprep.subr.bf16.mxu1 %v11257_v55  ;;  %v9834_v55 = vcombine.high %v1737_v47, %v1741_v48 }
 0x11e   : > { %1618 = vmatpush1.bf16.msra.mxu0 %v11222_v56  ;;  %v11284_v56 = vld [vmem:[#allocation5 + $0x194] ss:$24 sps:$4 sm:$0xff]  }
 0x11f   : > { %1619 = vmatprep.subr.bf16.mxu0 %v11227_v57  ;;  %v1913_v57 = vld [vmem:[#allocation8 + $0x5c0] sm:$0xff] }
 0x120   : > { %1671 = vmatpush1.bf16.msra.mxu1 %v11255_v58  ;;  %v1917_v58 = vld [vmem:[#allocation8 + $0x5e0] sm:$0xff] }
 0x121   : > { %1672 = vmatprep.subr.bf16.mxu1 %v11263_v59  ;;  %v11282_v59 = vld [vmem:[#allocation5 + $0x190] ss:$24 sps:$4 sm:$0xff]  }
 0x122   : > { %1620 = vmatpush1.bf16.msra.mxu0 %v11225_v60  ;;  %v9833_v60 = vcombine.low %v1737_v47, %v1741_v48  ;;  %v1865_v48 = vld [vmem:[#allocation8 + $0x440] sm:$0xff] }
 0x123   : > { %1621 = vmatprep.subr.bf16.mxu0 %v11230_v61  ;;  %v1849_v61 = vld [vmem:[#allocation8 + $0x3c0] sm:$0xff] }
 0x124   : > { %1673 = vmatpush1.bf16.msra.mxu1 %v11261_v62  ;;  %v1853_v62 = vld [vmem:[#allocation8 + $0x3e0] sm:$0xff] }
 0x125   : > { %1674 = vmatprep.subr.bf16.mxu1 %v11269_v63  ;;  %v9826_v63 = vcombine.high %v1729_v53, %v1733_v54  ;;  %v9945_v13 = vcombine.low %v1849_v61, %v1853_v62 }
 0x126   : > { %1622 = vmatpush1.bf16.msra.mxu0 %v11228_v1  ;;  %v1905_v1 = vld [vmem:[#allocation8 + $0x580] sm:$0xff] }
 0x127   : > { %1623 = vmatprep.subr.bf16.mxu0 %v11233_v3  ;;  %v1909_v3 = vld [vmem:[#allocation8 + $0x5a0] sm:$0xff] }
 0x128   : > { %1675 = vmatpush1.bf16.msra.mxu1 %v11267_v4  ;;  %v10010_v4 = vcombine.high %v1913_v57, %v1917_v58 }
 0x129   : > { %1676 = vmatprep.subr.bf16.mxu1 %v11275_v5  ;;  %v9825_v5 = vcombine.low %v1729_v53, %v1733_v54  ;;  %v1805_v53 = vld [vmem:[#allocation8 + $0x260] sm:$0xff] }
 0x12a   : > { %1624 = vmatpush1.bf16.msra.mxu0 %v11231_v6  ;;  %v1841_v6 = vld [vmem:[#allocation8 + $0x380] sm:$0xff] }
 0x12b   : > { %1625 = vmatprep.subr.bf16.mxu0 %v11236_v8  ;;  %v1845_v8 = vld [vmem:[#allocation8 + $0x3a0] sm:$0xff] }
 0x12c   : > { %1677 = vmatpush1.bf16.msra.mxu1 %v11273_v51  ;;  %v9946_v51 = vcombine.high %v1849_v61, %v1853_v62  ;;  %v1797_v61 = vld [vmem:[#allocation8 + $0x220] sm:$0xff] }
 0x12d   : > { %1678 = vmatprep.subr.bf16.mxu1 %v11281_v9  ;;  %v10009_v9 = vcombine.low %v1913_v57, %v1917_v58  ;;  %v1861_v57 = vld [vmem:[#allocation8 + $0x420] sm:$0xff] }
 0x12e   : > { %1626 = vmatpush1.bf16.msra.mxu0 %v11234_v10  ;;  %v10002_v10 = vcombine.high %v1905_v1, %v1909_v3 }
 0x12f   : > { %1627 = vmatprep.subr.bf16.mxu0 %v11242_v14  ;;  %v1901_v14 = vld [vmem:[#allocation8 + $0x560] sm:$0xff] }
 0x130   : > { %1679 = vmatpush1.bf16.msra.mxu1 %v11279_v15  ;;  %v9938_v15 = vcombine.high %v1841_v6, %v1845_v8  ;;  %v9993_v25 = vcombine.low %v1897_v11, %v1901_v14 }
 0x131   : > { %4075 = vmatprep.subr.bf16.mxu1 %v9882_v20  ;;  %v9994_v20 = vcombine.high %v1897_v11, %v1901_v14  ;;  %v1961_v14 = vld [vmem:[#allocation8 + $0x740] sm:$0xff] }
 0x132   : > { %1628 = vmatpush2.bf16.msra.mxu0 %v11240_v16  ;;  %v10001_v16 = vcombine.low %v1905_v1, %v1909_v3  ;;  %v1977_v1 = vld [vmem:[#allocation8 + $0x7c0] sm:$0xff] }
 0x133   : > { %1629 = vmatprep.subr.bf16.mxu0 %v11248_v21  ;;  %1697 = vmatmul.mubr.bf16.vlgmr.msra.gmra.mxu1 %v11947_v35  ;;  %v11266_v35 = vld [vmem:[#allocation5 + $0x224] ss:$24 sps:$4 sm:$0xff]   ;;  %v9937_v21 = vcombine.low %v1841_v6, %v1845_v8 }
 0x134   : > { %1706 = vmatprep.mubr.bf16.mxu1 %v11686_v0  ;;  %4076 = vmatpush1.bf16.msra.mxu1 %v9881_v23  ;;  %v11264_v0 = vld [vmem:[#allocation5 + $0x220] ss:$24 sps:$4 sm:$0xff]   ;;  %v1893_v23 = vld [vmem:[#allocation8 + $0x520] sm:$0xff] }
 0x135   : > { %4077 = vmatprep.subr.bf16.mxu1 %v9874_v26  ;;  %v1825_v26 = vld [vmem:[#allocation8 + $0x300] sm:$0xff] }
 0x136   : > { %1630 = vmatpush2.bf16.msra.mxu0 %v11246_v22  ;;  %v1889_v22 = vld [vmem:[#allocation8 + $0x500] sm:$0xff] }
 0x137   : > { %1631 = vmatprep.subr.bf16.mxu0 %v11254_v27  ;;  %v9986_v27 = vcombine.high %v1889_v22, %v1893_v23  ;;  %v9985_v31 = vcombine.low %v1889_v22, %v1893_v23  ;;  %v1981_v3 = vld [vmem:[#allocation8 + $0x7e0] sm:$0xff] }
 0x138   : > { %4078 = vmatpush1.bf16.msra.mxu1 %v9873_v29  ;;  %v1885_v29 = vld [vmem:[#allocation8 + $0x4e0] sm:$0xff]  ;;  %v10074_v6 = vcombine.high %v1977_v1, %v1981_v3  ;;  %v10073_v11 = vcombine.low %v1977_v1, %v1981_v3 }
 0x139   : > { %4079 = vmatprep.subr.bf16.mxu1 %v9866_v32  ;;  %v1817_v32 = vld [vmem:[#allocation8 + $0x2c0] sm:$0xff] }
 0x13a   : > { %1632 = vmatpush2.bf16.msra.mxu0 %v11252_v28  ;;  %v1881_v28 = vld [vmem:[#allocation8 + $0x4c0] sm:$0xff] }
 0x13b   : > { %1633 = vmatprep.subr.bf16.mxu0 %v11260_v33  ;;  %1707 = vmatmul.mubr.bf16.gmra.mxu1 %v11956_v2  ;;  %v11278_v2 = vld [vmem:[#allocation5 + $0x1c4] ss:$24 sps:$4 sm:$0xff]  }
 0x13c   : > { %4080 = vmatpush1.bf16.msra.mxu1 %v9865_v36  ;;  %v1821_v33 = vld [vmem:[#allocation8 + $0x2e0] sm:$0xff] }
 0x13d   : > { %4081 = vmatprep.subr.bf16.mxu1 %v9858_v39  ;;  %v11987_v36 = vld [vmem:[#allocation8 + $0x9c0] sm:$0xff]  ;;  %v9913_v47 = vcombine.low %v1817_v32, %v1821_v33 }
 0x13e   : > { %1634 = vmatpush2.bf16.msra.mxu0 %v11258_v34  ;;  %v9978_v34 = vcombine.high %v1881_v28, %v1885_v29  ;;  %v10137_v41 = vcombine.low %v11987_v36, %v11989_v37  ;;  %v1945_v23 = vld [vmem:[#allocation8 + $0x6c0] sm:$0xff] }
 0x13f   : > { %1635 = vmatprep.subr.bf16.mxu0 %v11266_v35  ;;  %v1873_v35 = vld [vmem:[#allocation8 + $0x480] sm:$0xff] }
 0x140   : > { %4082 = vmatpush1.bf16.msra.mxu1 %v9857_v40  ;;  %v11993_v40 = vld [vmem:[#allocation8 + $0x1e8] sm:$0xff] }
 0x141   : > { %4083 = vmatprep.subr.bf16.mxu1 %v9850_v43  ;;  %v9883_v42 = vcombine.low %v11991_v38, %v11993_v40  ;;  %v9977_v43 = vcombine.low %v1881_v28, %v1885_v29  ;;  %v1929_v29 = vld [vmem:[#allocation8 + $0x640] sm:$0xff] }
 0x142   : > { %1636 = vmatpush2.bf16.msra.mxu0 %v11264_v0  ;;  %v1877_v0 = vld [vmem:[#allocation8 + $0x4a0] sm:$0xff] }
 0x143   : > { %1637 = vmatprep.subr.bf16.mxu0 %v11272_v44  ;;  %v1809_v44 = vld [vmem:[#allocation8 + $0x280] sm:$0xff] }
 0x144   : > { %4084 = vmatpush1.bf16.msra.mxu1 %v9849_v46  ;;  %v9970_v46 = vcombine.high %v1873_v35, %v1877_v0 }
 0x145   : > { %4085 = vmatprep.subr.bf16.mxu1 %v9842_v49  ;;  %v1869_v49 = vld [vmem:[#allocation8 + $0x460] sm:$0xff] }
 0x146   : > { %1638 = vmatpush2.bf16.msra.mxu0 %v11270_v45  ;;  %v1813_v45 = vld [vmem:[#allocation8 + $0x2a0] sm:$0xff]  ;;  %v9962_v54 = vcombine.high %v1865_v48, %v1869_v49 }
 0x147   : > { %1639 = vmatprep.subr.bf16.mxu0 %v11278_v2  ;;  %v9906_v2 = vcombine.high %v1809_v44, %v1813_v45 }
 0x148   : > { %4086 = vmatpush1.bf16.msra.mxu1 %v9841_v52  ;;  %v1801_v52 = vld [vmem:[#allocation8 + $0x240] sm:$0xff] }
 0x149   : > { %4087 = vmatprep.subr.bf16.mxu1 %v9834_v55  ;;  %v9905_v55 = vcombine.low %v1809_v44, %v1813_v45  ;;  %v9898_v58 = vcombine.high %v1801_v52, %v1805_v53  ;;  %v617_v44 = vlaneseq }
 0x14a   : > { %1640 = vmatpush2.bf16.msra.mxu0 %v11276_v50  ;;  %v9969_v50 = vcombine.low %v1873_v35, %v1877_v0 }
 0x14b   : > { %1641 = vmatprep.subr.bf16.mxu0 %v11284_v56  ;;  %v1857_v56 = vld [vmem:[#allocation8 + $0x400] sm:$0xff] }
 0x14c   : > { %4088 = vmatpush1.bf16.msra.mxu1 %v9833_v60  ;;  %v1793_v60 = vld [vmem:[#allocation8 + $0x200] sm:$0xff]  ;;  %v9954_v62 = vcombine.high %v1857_v56, %v1861_v57 }
 0x14d   : > { %4089 = vmatprep.subr.bf16.mxu1 %v9826_v63  ;;  %v9897_v63 = vcombine.low %v1801_v52, %v1805_v53  ;;  %v9889_v8 = vcombine.low %v1793_v60, %v1797_v61 }
 0x14e   : > { %1642 = vmatpush2.bf16.msra.mxu0 %v11282_v59  ;;  %v9961_v59 = vcombine.low %v1865_v48, %v1869_v49 }
 0x14f   : > { %4128 = vmatprep.subr.bf16.mxu0 %v10010_v4  ;;  %v9890_v4 = vcombine.high %v1793_v60, %v1797_v61 }
 0x150   : > { %4090 = vmatpush1.bf16.msra.mxu1 %v9825_v5  ;;  %v9953_v5 = vcombine.low %v1857_v56, %v1861_v57 }
 0x151   : > { %1644 = vmatmul.mubr.bf16.vlgmr.msra.gmra.mxu0 %v11961_v7  ;;  %4091 = vmatprep.subr.bf16.mxu1 %v9946_v51  ;;  %v1829_v7 = vld [vmem:[#allocation8 + $0x320] sm:$0xff] }
 0x152   : > { %1653 = vmatprep.mubr.bf16.mxu0 %v11964_v12  ;;  %4129 = vmatpush1.bf16.msra.mxu0 %v10009_v9  ;;  %v9929_v12 = vcombine.low %v1833_v18, %v1837_v19  ;;  %v9922_v30 = vcombine.high %v1825_v26, %v1829_v7  ;;  %v9921_v39 = vcombine.low %v1825_v26, %v1829_v7  ;;  %v1969_v51 = vld [vmem:[#allocation8 + $0x780] sm:$0xff] }
 0x153   : > { %4130 = vmatprep.subr.bf16.mxu0 %v10002_v10  ;;  %v1973_v9 = vld [vmem:[#allocation8 + $0x7a0] sm:$0xff]  ;;  %v10138_v10 = vcombine.high %v11987_v36, %v11989_v37 }
 0x154   : > { %4092 = vmatpush2.bf16.msra.mxu1 %v9945_v13  ;;  %v10066_v13 = vcombine.high %v1969_v51, %v1973_v9  ;;  %v1953_v19 = vld [vmem:[#allocation8 + $0x700] sm:$0xff] }
 0x155   : > { %4093 = vmatprep.subr.bf16.mxu1 %v9938_v15  ;;  %v1965_v15 = vld [vmem:[#allocation8 + $0x760] sm:$0xff] }
 0x156   : > { %4131 = vmatpush1.bf16.msra.mxu0 %v10001_v16  ;;  %v10065_v16 = vcombine.low %v1969_v51, %v1973_v9  ;;  %v10058_v18 = vcombine.high %v1961_v14, %v1965_v15  ;;  %v1937_v7 = vld [vmem:[#allocation8 + $0x680] sm:$0xff] }
 0x157   : > { %4132 = vmatprep.subr.bf16.mxu0 %v9994_v20  ;;  %v1957_v20 = vld [vmem:[#allocation8 + $0x720] sm:$0xff] }
 0x158   : > { %4094 = vmatpush2.bf16.msra.mxu1 %v9937_v21  ;;  %v10057_v21 = vcombine.low %v1961_v14, %v1965_v15  ;;  %v10050_v22 = vcombine.high %v1953_v19, %v1957_v20 }
 0x159   : > { %1654 = vmatmul.mubr.bf16.gmra.mxu0 %v11969_v17  ;;  %4095 = vmatprep.subr.bf16.mxu1 %v9930_v24  ;;  %v9914_v17 = vcombine.high %v1817_v32, %v1821_v33  ;;  %v1949_v24 = vld [vmem:[#allocation8 + $0x6e0] sm:$0xff] }
 0x15a   : > { %4133 = vmatpush1.bf16.msra.mxu0 %v9993_v25  ;;  %v10049_v25 = vcombine.low %v1953_v19, %v1957_v20  ;;  %v10042_v26 = vcombine.high %v1945_v23, %v1949_v24  ;;  %v1921_v33 = vld [vmem:[#allocation8 + $0x600] sm:$0xff] }
 0x15b   : > { %4134 = vmatprep.subr.bf16.mxu0 %v9986_v27  ;;  %v1941_v27 = vld [vmem:[#allocation8 + $0x6a0] sm:$0xff] }
 0x15c   : > { %4096 = vmatpush2.bf16.msra.mxu1 %v9929_v12  ;;  %v10041_v12 = vcombine.low %v1945_v23, %v1949_v24  ;;  %v10034_v28 = vcombine.high %v1937_v7, %v1941_v27  ;;  %v2025_v20 = vld [vmem:[#allocation8 + $0x940] sm:$0xff] }
 0x15d   : > { %4097 = vmatprep.subr.bf16.mxu1 %v9922_v30  ;;  %v1933_v30 = vld [vmem:[#allocation8 + $0x660] sm:$0xff] }
 0x15e   : > { %4135 = vmatpush1.bf16.msra.mxu0 %v9985_v31  ;;  %v10033_v31 = vcombine.low %v1937_v7, %v1941_v27  ;;  %v10026_v32 = vcombine.high %v1929_v29, %v1933_v30 }
 0x15f   : > { %4136 = vmatprep.subr.bf16.mxu0 %v9978_v34  ;;  %v1925_v34 = vld [vmem:[#allocation8 + $0x620] sm:$0xff] }
 0x160   : > { %4098 = vmatpush2.bf16.msra.mxu1 %v9921_v39  ;;  %v10025_v39 = vcombine.low %v1929_v29, %v1933_v30  ;;  %v10018_v35 = vcombine.high %v1921_v33, %v1925_v34  ;;  %v10017_v0 = vcombine.low %v1921_v33, %v1925_v34  ;;  %v2017_v29 = vld [vmem:[#allocation8 + $0x900] sm:$0xff] }
 0x161   : > { %4099 = vmatprep.subr.bf16.mxu1 %v9914_v17  ;;  %v9884_v17 = vcombine.high %v11991_v38, %v11993_v40  ;;  %v2021_v30 = vld [vmem:[#allocation8 + $0x920] sm:$0xff] }
 0x162   : > { %4137 = vmatpush1.bf16.msra.mxu0 %v9977_v43  ;;  %v10114_v34 = vcombine.high %v2017_v29, %v2021_v30  ;;  %v10113_v36 = vcombine.low %v2017_v29, %v2021_v30 }
 0x163   : > { %4138 = vmatprep.subr.bf16.mxu0 %v9970_v46  ;;  %v12003_v46 = vshrl.u32 %v617_v44, 7 }
 0x164   : > { %4100 = vmatpush2.bf16.msra.mxu1 %v9913_v47 }
 0x165   : > { %4101 = vmatprep.subr.bf16.mxu1 %v9906_v2  ;;  %v12006_v48 = vsub.s32 1, %v12003_v46  ;;  %v12009_v49 = vsub.s32 0, %v12003_v46  ;;  %v12011_v2 = vld [vmem:[#allocation7] sm:$0x3f]  ;;  %v12033_v44 = vsub.s32 3, %v12003_v46 }
 0x166   : > { %4139 = vmatpush1.bf16.msra.mxu0 %v9969_v50 }
 0x167   : > { %4140 = vmatprep.subr.bf16.mxu0 %v9962_v54  ;;  %v624_v53 = vrot.slane %v12011_v2, %v12006_v48  ;;  %v620_v54 = vrot.slane %v12011_v2, %v12009_v49 }
 0x168   : > { %4102 = vmatpush2.bf16.msra.mxu1 %v9905_v55 }
 0x169   : > { %4103 = vmatprep.subr.bf16.mxu1 %v9898_v58 }
 0x16a   : > { %4141 = vmatpush1.bf16.msra.mxu0 %v9961_v59 }
 0x16b   : > { %4142 = vmatprep.subr.bf16.mxu0 %v9954_v62 }
 0x16c   : > { %4104 = vmatpush2.bf16.msra.mxu1 %v9897_v63 }
 0x16d   : > { %4105 = vmatprep.subr.bf16.mxu1 %v9890_v4 }
 0x16e   : > { %4143 = vmatpush1.bf16.msra.mxu0 %v9953_v5 }
 0x16f   : > { %4144 = vmatprep.subr.bf16.mxu0 %v10074_v6  ;;  %v2033_v6 = vld [vmem:[#allocation8 + $0x980] sm:$0xff] }
 0x170   : > { %4106 = vmatpush2.bf16.msra.mxu1 %v9889_v8  ;;  %v2037_v8 = vld [vmem:[#allocation8 + $0x9a0] sm:$0xff] }
 0x171   : > { %4181 = vmatprep.subr.bf16.mxu1 %v10138_v10  ;;  %v10129_v27 = vcombine.low %v2033_v6, %v2037_v8 }
 0x172   : > { %4145 = vmatpush2.bf16.msra.mxu0 %v10073_v11 }
 0x173   : > { %4146 = vmatprep.subr.bf16.mxu0 %v10066_v13 }
 0x176   : > { %4147 = vmatpush2.bf16.msra.mxu0 %v10065_v16 }
 0x177   : > { %4148 = vmatprep.subr.bf16.mxu0 %v10058_v18  ;;  %v10130_v18 = vcombine.high %v2033_v6, %v2037_v8  ;;  %v2105_v6 = vld [vmem:[#allocation8 + $0xbc0] sm:$0xff] }
 0x178   : > { %v2109_v8 = vld [vmem:[#allocation8 + $0xbe0] sm:$0xff] }
 0x17a   : > { %4149 = vmatpush2.bf16.msra.mxu0 %v10057_v21  ;;  %v2029_v21 = vld [vmem:[#allocation8 + $0x960] sm:$0xff] }
 0x17b   : > { %4150 = vmatprep.subr.bf16.mxu0 %v10050_v22  ;;  %v10121_v33 = vcombine.low %v2025_v20, %v2029_v21 }
 0x17e   : > { %4151 = vmatpush2.bf16.msra.mxu0 %v10049_v25 }
 0x17f   : > { %4152 = vmatprep.subr.bf16.mxu0 %v10042_v26 }
 0x182   : > { %4153 = vmatpush2.bf16.msra.mxu0 %v10041_v12  ;;  %v10122_v12 = vcombine.high %v2025_v20, %v2029_v21  ;;  %v1778_v20 = vld [vmem:[#allocation8 + $0x188] sm:$0xff]  ;;  %v10202_v21 = vcombine.high %v2105_v6, %v2109_v8 }
 0x183   : > { %4154 = vmatprep.subr.bf16.mxu0 %v10034_v28 }
 0x186   : > { %4155 = vmatpush2.bf16.msra.mxu0 %v10033_v31 }
 0x187   : > { %4156 = vmatprep.subr.bf16.mxu0 %v10026_v32 }
 0x18a   : > { %4157 = vmatpush2.bf16.msra.mxu0 %v10025_v39  ;;  %v2009_v39 = vld [vmem:[#allocation8 + $0x8c0] sm:$0xff] }
 0x18b   : > { %4158 = vmatprep.subr.bf16.mxu0 %v10018_v35  ;;  %v2013_v35 = vld [vmem:[#allocation8 + $0x8e0] sm:$0xff] }
 0x18c   : > { %v10106_v37 = vcombine.high %v2009_v39, %v2013_v35 }
 0x18e   : > { %4159 = vmatpush2.bf16.msra.mxu0 %v10017_v0  ;;  %v2005_v0 = vld [vmem:[#allocation8 + $0x8a0] sm:$0xff] }
 0x18f   : > { %4234 = vmatprep.subr.bf16.mxu0 %v9884_v17  ;;  %v10105_v17 = vcombine.low %v2009_v39, %v2013_v35 }
 0x192   : > { %v1486_v43 = vpop.f32.mrf.mxu1 }
 0x194   : > { %v1488_v45 = vpop.f32.mrf.mxu1 }
 0x196   : > { %v1490_v47 = vpop.f32.mrf.mxu1 }
 0x198   : > { %v1492_v50 = vpop.f32.mrf.mxu1 }
 0x19a   : > { %v1496_v56 = vpop.f32.mrf.mxu1 }
 0x19c   : > { %v1498_v62 = vpop.f32.mrf.mxu1 }
 0x19e   : > { %v1500_v11 = vpop.f32.mrf.mxu1 }
 0x1a0   : > { %v1502_v24 = vpop.f32.mrf.mxu1 }
 0x1b1   : > { %v1433_v52 = vpop.f32.mrf.mxu0 }
 0x1b2   : > { %v1434_v60 = vadd.f32 %v1433_v52, %v620_v54 }
 0x1b3   : > { %v1435_v55 = vpop.f32.mrf.mxu0 }
 0x1b4   : > { %v1436_v58 = vadd.f32 %v1435_v55, %v624_v53  ;;  %v1487_v51 = vadd.f32 %v1486_v43, %v1434_v60 }
 0x1b5   : > { %v1437_v57 = vpop.f32.mrf.mxu0 }
 0x1b6   : > { %v1438_v59 = vadd.f32 %v1437_v57, %v620_v54  ;;  %v1489_v4 = vadd.f32 %v1488_v45, %v1436_v58  ;;  %v1993_v45 = vld [vmem:[#allocation8 + $0x840] sm:$0xff] }
 0x1b7   : > { %v1439_v61 = vpop.f32.mrf.mxu0  ;;  %v1985_v57 = vld [vmem:[#allocation8 + $0x800] sm:$0xff] }
 0x1b8   : > { %v1440_v63 = vadd.f32 %v1439_v61, %v624_v53  ;;  %v1491_v1 = vadd.f32 %v1490_v47, %v1438_v59  ;;  %v1997_v47 = vld [vmem:[#allocation8 + $0x860] sm:$0xff] }
 0x1b9   : > { %v1443_v3 = vpop.f32.mrf.mxu0  ;;  %v10090_v55 = vcombine.high %v1993_v45, %v1997_v47  ;;  %v1989_v58 = vld [vmem:[#allocation8 + $0x820] sm:$0xff] }
 0x1ba   : > { %v1493_v5 = vadd.f32 %v1492_v50, %v1440_v63  ;;  %v1444_v9 = vadd.f32 %v1443_v3, %v620_v54  ;;  %v12019_v15 = vpack.c.bf16 %v1491_v1, %v1487_v51  ;;  %v12036_v50 = vsub.s32 2, %v12003_v46 }
 0x1bb   : > { %v1445_v10 = vpop.f32.mrf.mxu0  ;;  %v10082_v3 = vcombine.high %v1985_v57, %v1989_v58 }
 0x1bc   : > { %v12017_v13 = vpack.c.bf16 %v1493_v5, %v1489_v4  ;;  %v1446_v14 = vadd.f32 %v1445_v10, %v624_v53  ;;  %v1497_v22 = vadd.f32 %v1496_v56, %v1444_v9  ;;  %v632_v56 = vrot.slane %v12011_v2, %v12033_v44 }
 0x1bd   : > { %v1447_v16 = vpop.f32.mrf.mxu0  ;;  %v628_v59 = vrot.slane %v12011_v2, %v12036_v50 }
 0x1be   : > { %4107 = vmatprep.mubr.bf16.mxu1 %v12017_v13  ;;  %v1448_v19 = vadd.f32 %v1447_v16, %v620_v54  ;;  %v1499_v25 = vadd.f32 %v1498_v62, %v1446_v14  ;;  %v10089_v62 = vcombine.low %v1993_v45, %v1997_v47  ;;  %v10081_v14 = vcombine.low %v1985_v57, %v1989_v58  ;;  %v2093_v45 = vld [vmem:[#allocation8 + $0xb60] sm:$0xff] }
 0x1bf   : > { %4108 = vmatmul.mubr.bf16.vlgmr.msra.gmra.mxu1 %v12019_v15  ;;  %v1449_v23 = vpop.f32.mrf.mxu0 }
 0x1c0   : > { %v1450_v26 = vadd.f32 %v1449_v23, %v624_v53  ;;  %v1501_v7 = vadd.f32 %v1500_v11, %v1448_v19  ;;  %4182 = vmatpush1.bf16.msra.mxu1 %v10137_v41  ;;  %v2001_v41 = vld [vmem:[#allocation8 + $0x880] sm:$0xff] }
 0x1c1   : > { %4183 = vmatprep.subr.bf16.mxu1 %v10130_v18  ;;  %v10098_v43 = vcombine.high %v2001_v41, %v2005_v0  ;;  %v10097_v52 = vcombine.low %v2001_v41, %v2005_v0 }
 0x1c2   : > { %v1503_v28 = vadd.f32 %v1502_v24, %v1450_v26  ;;  %v12026_v31 = vpack.c.bf16 %v1501_v7, %v1497_v22  ;;  %v1782_v24 = vld [vmem:[#allocation8 + $0x1a8] sm:$0xff]  ;;  %v2101_v26 = vld [vmem:[#allocation8 + $0xba0] sm:$0xff] }
 0x1c4   : > { %v12028_v32 = vpack.c.bf16 %v1503_v28, %v1499_v25  ;;  %4184 = vmatpush1.bf16.msra.mxu1 %v10129_v27  ;;  %v2097_v25 = vld [vmem:[#allocation8 + $0xb80] sm:$0xff] }
 0x1c5   : > { %4185 = vmatprep.subr.bf16.mxu1 %v10122_v12  ;;  %v10194_v41 = vcombine.high %v2097_v25, %v2101_v26 }
 0x1c6   : > { %4117 = vmatprep.mubr.bf16.mxu1 %v12028_v32 }
 0x1c7   : > { %4118 = vmatmul.mubr.bf16.gmra.mxu1 %v12026_v31 }
 0x1c8   : > { %4186 = vmatpush1.bf16.msra.mxu1 %v10121_v33  ;;  %v10201_v33 = vcombine.low %v2105_v6, %v2109_v8  ;;  %v1758_v8 = vld [vmem:[#allocation8 + $0xe8] sm:$0xff] }
 0x1c9   : > { %4187 = vmatprep.subr.bf16.mxu1 %v10114_v34 }
 0x1cc   : > { %4188 = vmatpush1.bf16.msra.mxu1 %v10113_v36  ;;  %v9876_v36 = vcombine.high %v1778_v20, %v1782_v24 }
 0x1cd   : > { %4189 = vmatprep.subr.bf16.mxu1 %v10106_v37  ;;  %v1770_v37 = vld [vmem:[#allocation8 + $0x148] sm:$0xff] }
 0x1d0   : > { %4190 = vmatpush1.bf16.msra.mxu1 %v10105_v17  ;;  %v1774_v17 = vld [vmem:[#allocation8 + $0x168] sm:$0xff] }
 0x1d1   : > { %v1592_v54 = vpop.f32.mrf.mxu0  ;;  %4191 = vmatprep.subr.bf16.mxu1 %v10098_v43  ;;  %v2089_v43 = vld [vmem:[#allocation8 + $0xb40] sm:$0xff] }
 0x1d2   : > { %v1539_v53 = vpop.f32.mrf.mxu1  ;;  %v10185_v40 = vcombine.low %v2089_v43, %v2093_v45 }
 0x1d3   : > { %v1594_v61 = vpop.f32.mrf.mxu0  ;;  %v1540_v51 = vadd.f32 %v1539_v53, %v628_v59 }
 0x1d4   : > { %v1541_v60 = vpop.f32.mrf.mxu1  ;;  %4192 = vmatpush1.bf16.msra.mxu1 %v10097_v52 }
 0x1d5   : > { %v1596_v1 = vpop.f32.mrf.mxu0  ;;  %4193 = vmatprep.subr.bf16.mxu1 %v10090_v55  ;;  %v1542_v4 = vadd.f32 %v1541_v60, %v632_v56  ;;  %v1593_v7 = vadd.f32 %v1592_v54, %v1540_v51  ;;  %v9875_v54 = vcombine.low %v1778_v20, %v1782_v24  ;;  %v10193_v55 = vcombine.low %v2097_v25, %v2101_v26  ;;  %v1738_v26 = vld [vmem:[#allocation8 + $0x48] sm:$0xff] }
 0x1d6   : > { %v1543_v63 = vpop.f32.mrf.mxu1 }
 0x1d7   : > { %v1544_v5 = vadd.f32 %v1543_v63, %v628_v59  ;;  %v1598_v10 = vpop.f32.mrf.mxu0  ;;  %v1595_v22 = vadd.f32 %v1594_v61, %v1542_v4  ;;  %v10186_v61 = vcombine.high %v2089_v43, %v2093_v45  ;;  %v1762_v63 = vld [vmem:[#allocation8 + $0x108] sm:$0xff]  ;;  %v2081_v4 = vld [vmem:[#allocation8 + $0xb00] sm:$0xff] }
 0x1d8   : > { %v1545_v9 = vpop.f32.mrf.mxu1  ;;  %4194 = vmatpush1.bf16.msra.mxu1 %v10089_v62 }
 0x1d9   : > { %v1546_v11 = vadd.f32 %v1545_v9, %v632_v56  ;;  %v1597_v16 = vadd.f32 %v1596_v1, %v1544_v5  ;;  %v1602_v19 = vpop.f32.mrf.mxu0  ;;  %4195 = vmatprep.subr.bf16.mxu1 %v10082_v3  ;;  %v1766_v1 = vld [vmem:[#allocation8 + $0x128] sm:$0xff]  ;;  %v2085_v5 = vld [vmem:[#allocation8 + $0xb20] sm:$0xff] }
 0x1da   : > { %v1549_v18 = vpop.f32.mrf.mxu1  ;;  %v9860_v38 = vcombine.high %v1762_v63, %v1766_v1  ;;  %v10178_v51 = vcombine.high %v2081_v4, %v2085_v5  ;;  %v2073_v9 = vld [vmem:[#allocation8 + $0xac0] sm:$0xff] }
 0x1db   : > { %v1599_v23 = vadd.f32 %v1598_v10, %v1546_v11  ;;  %v1550_v27 = vadd.f32 %v1549_v18, %v628_v59  ;;  %v1604_v28 = vpop.f32.mrf.mxu0  ;;  %v12044_v34 = vpack.c.bf16 %v1597_v16, %v1593_v7  ;;  %v2077_v10 = vld [vmem:[#allocation8 + $0xae0] sm:$0xff]  ;;  %v9859_v11 = vcombine.low %v1762_v63, %v1766_v1  ;;  %v1746_v18 = vld [vmem:[#allocation8 + $0x88] sm:$0xff] }
 0x1dc   : > { %v1551_v12 = vpop.f32.mrf.mxu1  ;;  %4196 = vmatpush1.bf16.msra.mxu1 %v10081_v14  ;;  %v10177_v16 = vcombine.low %v2081_v4, %v2085_v5  ;;  %v10170_v20 = vcombine.high %v2073_v9, %v2077_v10  ;;  %v10169_v25 = vcombine.low %v2073_v9, %v2077_v10  ;;  %v1742_v7 = vld [vmem:[#allocation8 + $0x68] sm:$0xff] }
 0x1dd   : > { %v12042_v29 = vpack.c.bf16 %v1599_v23, %v1595_v22  ;;  %v1552_v30 = vadd.f32 %v1551_v12, %v632_v56  ;;  %v1606_v35 = vpop.f32.mrf.mxu0  ;;  %4197 = vmatprep.subr.bf16.mxu1 %v10202_v21  ;;  %v1603_v47 = vadd.f32 %v1602_v19, %v1550_v27  ;;  %v1750_v19 = vld [vmem:[#allocation8 + $0xa8] sm:$0xff]  ;;  %v2065_v21 = vld [vmem:[#allocation8 + $0xa80] sm:$0xff] }
 0x1de   : > { %v1553_v39 = vpop.f32.mrf.mxu1  ;;  %v2069_v22 = vld [vmem:[#allocation8 + $0xaa0] sm:$0xff]  ;;  %v9844_v24 = vcombine.high %v1746_v18, %v1750_v19  ;;  %v1834_v4 = vld [vmem:[#allocation8 + $0x348] sm:$0xff] }
 0x1df   : > { %v1554_v0 = vadd.f32 %v1553_v39, %v628_v59  ;;  %4160 = vmatprep.mubr.bf16.mxu0 %v12042_v29  ;;  %v1608_v53 = vpop.f32.mrf.mxu0  ;;  %v1605_v57 = vadd.f32 %v1604_v28, %v1552_v30  ;;  %v9868_v59 = vcombine.high %v1770_v37, %v1774_v17  ;;  %v10162_v27 = vcombine.high %v2065_v21, %v2069_v22  ;;  %v2057_v12 = vld [vmem:[#allocation8 + $0xa40] sm:$0xff]  ;;  %v1838_v5 = vld [vmem:[#allocation8 + $0x368] sm:$0xff] }
 0x1e0   : > { %v1555_v52 = vpop.f32.mrf.mxu1  ;;  %4161 = vmatmul.mubr.bf16.vlgmr.msra.gmra.mxu0 %v12044_v34  ;;  %4198 = vmatpush2.bf16.msra.mxu1 %v10201_v33  ;;  %v2061_v28 = vld [vmem:[#allocation8 + $0xa60] sm:$0xff]  ;;  %v9843_v30 = vcombine.low %v1746_v18, %v1750_v19  ;;  %v9836_v33 = vcombine.high %v1738_v26, %v1742_v7  ;;  %v10161_v39 = vcombine.low %v2065_v21, %v2069_v22  ;;  %v1818_v10 = vld [vmem:[#allocation8 + $0x2c8] sm:$0xff] }
 0x1e1   : > { %v1556_v58 = vadd.f32 %v1555_v52, %v632_v56  ;;  %v1607_v60 = vadd.f32 %v1606_v35, %v1554_v0  ;;  %4235 = vmatpush1.bf16.msra.mxu0 %v9883_v42  ;;  %4199 = vmatprep.subr.bf16.mxu1 %v10194_v41  ;;  %v9867_v56 = vcombine.low %v1770_v37, %v1774_v17  ;;  %v1754_v42 = vld [vmem:[#allocation8 + $0xc8] sm:$0xff]  ;;  %v2049_v41 = vld [vmem:[#allocation8 + $0xa00] sm:$0xff] }
 0x1e2   : > { %4236 = vmatprep.subr.bf16.mxu0 %v9876_v36  ;;  %v9852_v14 = vcombine.high %v1754_v42, %v1758_v8  ;;  %v9851_v23 = vcombine.low %v1754_v42, %v1758_v8  ;;  %v1730_v35 = vld [vmem:[#allocation8 + $0x8] sm:$0xff]  ;;  %v10154_v37 = vcombine.high %v2057_v12, %v2061_v28  ;;  %v2053_v0 = vld [vmem:[#allocation8 + $0xa20] sm:$0xff]  ;;  %v9835_v17 = vcombine.low %v1738_v26, %v1742_v7 }
 0x1e3   : > { %v1609_v62 = vadd.f32 %v1608_v53, %v1556_v58  ;;  %v12051_v3 = vpack.c.bf16 %v1607_v60, %v1603_v47  ;;  %v1734_v36 = vld [vmem:[#allocation8 + $0x28] sm:$0xff]  ;;  %v10153_v45 = vcombine.low %v2057_v12, %v2061_v28  ;;  %v10146_v53 = vcombine.high %v2049_v41, %v2053_v0 }
 0x1e4   : > { %4200 = vmatpush2.bf16.msra.mxu1 %v10193_v55  ;;  %v9828_v43 = vcombine.high %v1730_v35, %v1734_v36  ;;  %v1850_v47 = vld [vmem:[#allocation8 + $0x3c8] sm:$0xff]  ;;  %v10145_v60 = vcombine.low %v2049_v41, %v2053_v0  ;;  %v9931_v8 = vcombine.low %v1834_v4, %v1838_v5  ;;  %v12068_v7 = vsub.s32 4, %v12003_v46 }
 0x1e5   : > { %v12053_v6 = vpack.c.bf16 %v1609_v62, %v1605_v57  ;;  %4237 = vmatpush1.bf16.msra.mxu0 %v9875_v54  ;;  %4201 = vmatprep.subr.bf16.mxu1 %v10186_v61  ;;  %v1854_v52 = vld [vmem:[#allocation8 + $0x3e8] sm:$0xff]  ;;  %v9827_v57 = vcombine.low %v1730_v35, %v1734_v36 }
 0x1e6   : > { %4238 = vmatprep.subr.bf16.mxu0 %v9868_v59  ;;  %v12058_v54 = vld [vmem:[#allocation8 + $0x5c8] sm:$0xff]  ;;  %v9948_v58 = vcombine.high %v1850_v47, %v1854_v52  ;;  %v9947_v63 = vcombine.low %v1850_v47, %v1854_v52  ;;  %v636_v36 = vrot.slane %v12011_v2, %v12068_v7 }
 0x1e7   : > { %4170 = vmatprep.mubr.bf16.mxu0 %v12053_v6  ;;  %v12060_v55 = vld [vmem:[#allocation8 + $0x5e8] sm:$0xff] }
 0x1e8   : > { %4171 = vmatmul.mubr.bf16.gmra.mxu0 %v12051_v3  ;;  %4202 = vmatpush2.bf16.msra.mxu1 %v10185_v40  ;;  %v1842_v59 = vld [vmem:[#allocation8 + $0x388] sm:$0xff]  ;;  %v10012_v62 = vcombine.high %v12058_v54, %v12060_v55 }
 0x1e9   : > { %4239 = vmatpush1.bf16.msra.mxu0 %v9867_v56  ;;  %4266 = vmatprep.mubr.bf16.mxu0 %v12017_v13  ;;  %v1846_v61 = vld [vmem:[#allocation8 + $0x3a8] sm:$0xff] }
 0x1ea   : > { %4240 = vmatprep.subr.bf16.mxu0 %v9860_v38  ;;  %4203 = vmatprep.subr.bf16.mxu1 %v10178_v51  ;;  %v9940_v1 = vcombine.high %v1842_v59, %v1846_v61  ;;  %v9939_v56 = vcombine.low %v1842_v59, %v1846_v61  ;;  %v9932_v38 = vcombine.high %v1834_v4, %v1838_v5  ;;  %v1826_v40 = vld [vmem:[#allocation8 + $0x308] sm:$0xff] }
 0x1eb   : > { %v1830_v42 = vld [vmem:[#allocation8 + $0x328] sm:$0xff] }
 0x1ec   : > { %4204 = vmatpush2.bf16.msra.mxu1 %v10177_v16  ;;  %v9924_v51 = vcombine.high %v1826_v40, %v1830_v42  ;;  %v1810_v19 = vld [vmem:[#allocation8 + $0x288] sm:$0xff] }
 0x1ed   : > { %4241 = vmatpush1.bf16.msra.mxu0 %v9859_v11  ;;  %4205 = vmatprep.subr.bf16.mxu1 %v10170_v20  ;;  %v1822_v11 = vld [vmem:[#allocation8 + $0x2e8] sm:$0xff] }
 0x1ee   : > { %4242 = vmatprep.subr.bf16.mxu0 %v9852_v14  ;;  %v9923_v14 = vcombine.low %v1826_v40, %v1830_v42  ;;  %v9916_v16 = vcombine.high %v1818_v10, %v1822_v11  ;;  %v1814_v20 = vld [vmem:[#allocation8 + $0x2a8] sm:$0xff]  ;;  %v9915_v21 = vcombine.low %v1818_v10, %v1822_v11 }
 0x1ef   : > { %v1806_v26 = vld [vmem:[#allocation8 + $0x268] sm:$0xff] }
 0x1f0   : > { %4206 = vmatpush2.bf16.msra.mxu1 %v10169_v25  ;;  %v1802_v25 = vld [vmem:[#allocation8 + $0x248] sm:$0xff] }
 0x1f1   : > { %4243 = vmatpush1.bf16.msra.mxu0 %v9851_v23  ;;  %4207 = vmatprep.subr.bf16.mxu1 %v10162_v27  ;;  %v9908_v23 = vcombine.high %v1810_v19, %v1814_v20  ;;  %v9907_v27 = vcombine.low %v1810_v19, %v1814_v20  ;;  %v1798_v35 = vld [vmem:[#allocation8 + $0x228] sm:$0xff]  ;;  %v9899_v0 = vcombine.low %v1802_v25, %v1806_v26 }
 0x1f2   : > { %4244 = vmatprep.subr.bf16.mxu0 %v9844_v24  ;;  %v12065_v24 = vsub.s32 5, %v12003_v46  ;;  %v2042_v52 = vld [vmem:[#allocation8 + $0x9c8] sm:$0xff] }
 0x1f3   : > { %v1698_v9 = vpop.f32.mrf.mxu1  ;;  %v1906_v5 = vld [vmem:[#allocation8 + $0x588] sm:$0xff] }
 0x1f4   : > { %4208 = vmatpush2.bf16.msra.mxu1 %v10161_v39  ;;  %v1794_v39 = vld [vmem:[#allocation8 + $0x208] sm:$0xff] }
 0x1f5   : > { %4245 = vmatpush1.bf16.msra.mxu0 %v9843_v30  ;;  %4209 = vmatprep.subr.bf16.mxu1 %v10154_v37  ;;  %v1700_v18 = vpop.f32.mrf.mxu1  ;;  %v9900_v30 = vcombine.high %v1802_v25, %v1806_v26  ;;  %v9891_v61 = vcombine.low %v1794_v39, %v1798_v35  ;;  %v2038_v10 = vld [vmem:[#allocation8 + $0x9a8] sm:$0xff] }
 0x1f6   : > { %4246 = vmatprep.subr.bf16.mxu0 %v9836_v33  ;;  %v640_v33 = vrot.slane %v12011_v2, %v12065_v24  ;;  %v1902_v25 = vld [vmem:[#allocation8 + $0x568] sm:$0xff] }
 0x1f7   : > { %v1702_v22 = vpop.f32.mrf.mxu1 }
 0x1f8   : > { %4210 = vmatpush2.bf16.msra.mxu1 %v10153_v45 }
 0x1f9   : > { %4247 = vmatpush1.bf16.msra.mxu0 %v9835_v17  ;;  %4211 = vmatprep.subr.bf16.mxu1 %v10146_v53  ;;  %v1704_v28 = vpop.f32.mrf.mxu1  ;;  %v2046_v53 = vld [vmem:[#allocation8 + $0x9e8] sm:$0xff] }
 0x1fa   : > { %4248 = vmatprep.subr.bf16.mxu0 %v9828_v43  ;;  %v9892_v43 = vcombine.high %v1794_v39, %v1798_v35  ;;  %v10140_v2 = vcombine.high %v2042_v52, %v2046_v53 }
 0x1fb   : > { %v1708_v41 = vpop.f32.mrf.mxu1 }
 0x1fc   : > { %4212 = vmatpush2.bf16.msra.mxu1 %v10145_v60 }
 0x1fd   : > { %4249 = vmatpush1.bf16.msra.mxu0 %v9827_v57  ;;  %4287 = vmatprep.subr.bf16.mxu1 %v10012_v62  ;;  %v1710_v60 = vpop.f32.mrf.mxu1 }
 0x1fe   : > { %4250 = vmatprep.subr.bf16.mxu0 %v9948_v58 }
 0x201   : > { %4251 = vmatpush2.bf16.msra.mxu0 %v9947_v63 }
 0x202   : > { %4252 = vmatprep.subr.bf16.mxu0 %v9940_v1 }
 0x205   : > { %4253 = vmatpush2.bf16.msra.mxu0 %v9939_v56  ;;  %v1910_v56 = vld [vmem:[#allocation8 + $0x5a8] sm:$0xff] }
 0x206   : > { %4254 = vmatprep.subr.bf16.mxu0 %v9932_v38 }
 0x209   : > { %4255 = vmatpush2.bf16.msra.mxu0 %v9931_v8  ;;  %v1712_v8 = vpop.f32.mrf.mxu1 }
 0x20a   : > { %4256 = vmatprep.subr.bf16.mxu0 %v9924_v51  ;;  %v2034_v51 = vld [vmem:[#allocation8 + $0x988] sm:$0xff] }
 0x20d   : > { %4257 = vmatpush2.bf16.msra.mxu0 %v9923_v14 }
 0x20e   : > { %4258 = vmatprep.subr.bf16.mxu0 %v9916_v16  ;;  %v10011_v16 = vcombine.low %v12058_v54, %v12060_v55  ;;  %v10003_v54 = vcombine.low %v1906_v5, %v1910_v56  ;;  %v2026_v55 = vld [vmem:[#allocation8 + $0x948] sm:$0xff] }
 0x211   : > { %4259 = vmatpush2.bf16.msra.mxu0 %v9915_v21  ;;  %v1645_v12 = vpop.f32.mrf.mxu0  ;;  %v10004_v21 = vcombine.high %v1906_v5, %v1910_v56  ;;  %v1874_v56 = vld [vmem:[#allocation8 + $0x488] sm:$0xff] }
 0x212   : > { %4260 = vmatprep.subr.bf16.mxu0 %v9908_v23  ;;  %v1646_v57 = vadd.f32 %v1645_v12, %v636_v36  ;;  %v1898_v23 = vld [vmem:[#allocation8 + $0x548] sm:$0xff]  ;;  %v1714_v12 = vpop.f32.mrf.mxu1 }
 0x213   : > { %v1647_v37 = vpop.f32.mrf.mxu0 }
 0x214   : > { %v1648_v45 = vadd.f32 %v1647_v37, %v640_v33  ;;  %v1699_v38 = vadd.f32 %v1698_v9, %v1646_v57  ;;  %v10132_v9 = vcombine.high %v2034_v51, %v2038_v10  ;;  %v9996_v37 = vcombine.high %v1898_v23, %v1902_v25 }
 0x215   : > { %4261 = vmatpush2.bf16.msra.mxu0 %v9907_v27  ;;  %v1649_v17 = vpop.f32.mrf.mxu0 }
 0x216   : > { %4262 = vmatprep.subr.bf16.mxu0 %v9900_v30  ;;  %v1650_v47 = vadd.f32 %v1649_v17, %v636_v36  ;;  %v1701_v1 = vadd.f32 %v1700_v18, %v1648_v45  ;;  %v10139_v18 = vcombine.low %v2042_v52, %v2046_v53  ;;  %v1890_v17 = vld [vmem:[#allocation8 + $0x508] sm:$0xff] }
 0x217   : > { %v1651_v58 = vpop.f32.mrf.mxu0  ;;  %v1894_v45 = vld [vmem:[#allocation8 + $0x528] sm:$0xff] }
 0x218   : > { %v1652_v59 = vadd.f32 %v1651_v58, %v640_v33  ;;  %v1703_v62 = vadd.f32 %v1702_v22, %v1650_v47  ;;  %v2018_v47 = vld [vmem:[#allocation8 + $0x908] sm:$0xff]  ;;  %v9988_v58 = vcombine.high %v1890_v17, %v1894_v45 }
 0x219   : > { %4263 = vmatpush2.bf16.msra.mxu0 %v9899_v0  ;;  %v1655_v63 = vpop.f32.mrf.mxu0  ;;  %v2022_v52 = vld [vmem:[#allocation8 + $0x928] sm:$0xff] }
 0x21a   : > { %4264 = vmatprep.subr.bf16.mxu0 %v9892_v43  ;;  %v1705_v4 = vadd.f32 %v1704_v28, %v1652_v59  ;;  %v1656_v40 = vadd.f32 %v1655_v63, %v636_v36  ;;  %v12078_v19 = vpack.c.bf16 %v1703_v62, %v1699_v38  ;;  %v2030_v28 = vld [vmem:[#allocation8 + $0x968] sm:$0xff] }
 0x21b   : > { %v1657_v42 = vpop.f32.mrf.mxu0  ;;  %v10124_v0 = vcombine.high %v2026_v55, %v2030_v28  ;;  %v10123_v57 = vcombine.low %v2026_v55, %v2030_v28  ;;  %v1882_v59 = vld [vmem:[#allocation8 + $0x4c8] sm:$0xff] }
 0x21c   : > { %v12074_v11 = vpack.c.bf16 %v1705_v4, %v1701_v1  ;;  %v1658_v14 = vadd.f32 %v1657_v42, %v640_v33  ;;  %v1709_v26 = vadd.f32 %v1708_v41, %v1656_v40  ;;  %v2010_v62 = vld [vmem:[#allocation8 + $0x8c8] sm:$0xff]  ;;  %v10115_v1 = vcombine.low %v2018_v47, %v2022_v52 }
 0x21d   : > { %4265 = vmatpush2.bf16.msra.mxu0 %v9891_v61  ;;  %v1659_v20 = vpop.f32.mrf.mxu0  ;;  %v1886_v61 = vld [vmem:[#allocation8 + $0x4e8] sm:$0xff] }
 0x21e   : > { %4340 = vmatprep.subr.bf16.mxu0 %v10140_v2  ;;  %v1660_v22 = vadd.f32 %v1659_v20, %v636_v36  ;;  %4213 = vmatprep.mubr.bf16.mxu1 %v12074_v11  ;;  %v1711_v30 = vadd.f32 %v1710_v60, %v1658_v14  ;;  %v10131_v36 = vcombine.low %v2034_v51, %v2038_v10  ;;  %v2014_v63 = vld [vmem:[#allocation8 + $0x8e8] sm:$0xff] }
 0x21f   : > { %v1661_v27 = vpop.f32.mrf.mxu0  ;;  %4214 = vmatmul.mubr.bf16.vlgmr.msra.gmra.mxu1 %v12078_v19  ;;  %v10116_v60 = vcombine.high %v2018_v47, %v2022_v52  ;;  %v9987_v2 = vcombine.low %v1890_v17, %v1894_v45  ;;  %v9980_v4 = vcombine.high %v1882_v59, %v1886_v61  ;;  %v10108_v5 = vcombine.high %v2010_v62, %v2014_v63  ;;  %v1878_v38 = vld [vmem:[#allocation8 + $0x4a8] sm:$0xff] }
 0x220   : > { %4267 = vmatmul.mubr.bf16.vlgmr.msra.gmra.mxu0 %v12019_v15  ;;  %v1662_v39 = vadd.f32 %v1661_v27, %v640_v33  ;;  %v1713_v35 = vadd.f32 %v1712_v8, %v1660_v22  ;;  %4288 = vmatpush1.bf16.msra.mxu1 %v10011_v16  ;;  %v9995_v33 = vcombine.low %v1898_v23, %v1902_v25  ;;  %v2002_v40 = vld [vmem:[#allocation8 + $0x888] sm:$0xff] }
 0x221   : > { %4276 = vmatprep.mubr.bf16.mxu0 %v12028_v32  ;;  %4341 = vmatpush1.bf16.msra.mxu0 %v10139_v18  ;;  %v2006_v42 = vld [vmem:[#allocation8 + $0x8a8] sm:$0xff]  ;;  %v9979_v8 = vcombine.low %v1882_v59, %v1886_v61  ;;  %v10107_v51 = vcombine.low %v2010_v62, %v2014_v63  ;;  %v9972_v10 = vcombine.high %v1874_v56, %v1878_v38 }
 0x222   : > { %4289 = vmatprep.subr.bf16.mxu1 %v10004_v21  ;;  %v1715_v41 = vadd.f32 %v1714_v12, %v1662_v39  ;;  %4342 = vmatprep.subr.bf16.mxu0 %v10132_v9  ;;  %v12084_v43 = vpack.c.bf16 %v1713_v35, %v1709_v26  ;;  %v10100_v14 = vcombine.high %v2002_v40, %v2006_v42  ;;  %v1866_v16 = vld [vmem:[#allocation8 + $0x448] sm:$0xff] }
 0x223   : > { %v1870_v20 = vld [vmem:[#allocation8 + $0x468] sm:$0xff]  ;;  %v9971_v22 = vcombine.low %v1874_v56, %v1878_v38  ;;  %v10099_v9 = vcombine.low %v2002_v40, %v2006_v42 }
 0x224   : > { %v12086_v53 = vpack.c.bf16 %v1715_v41, %v1711_v30  ;;  %4290 = vmatpush1.bf16.msra.mxu1 %v10003_v54  ;;  %v1994_v18 = vld [vmem:[#allocation8 + $0x848] sm:$0xff]  ;;  %v9964_v23 = vcombine.high %v1866_v16, %v1870_v20  ;;  %v9963_v55 = vcombine.low %v1866_v16, %v1870_v20 }
 0x225   : > { %4343 = vmatpush1.bf16.msra.mxu0 %v10131_v36  ;;  %4291 = vmatprep.subr.bf16.mxu1 %v9996_v37  ;;  %v1998_v21 = vld [vmem:[#allocation8 + $0x868] sm:$0xff] }
 0x226   : > { %4223 = vmatprep.mubr.bf16.mxu1 %v12086_v53  ;;  %4344 = vmatprep.subr.bf16.mxu0 %v10124_v0  ;;  %v10092_v25 = vcombine.high %v1994_v18, %v1998_v21  ;;  %v1858_v26 = vld [vmem:[#allocation8 + $0x408] sm:$0xff]  ;;  %v10091_v28 = vcombine.low %v1994_v18, %v1998_v21 }
 0x227   : > { %4224 = vmatmul.mubr.bf16.gmra.mxu1 %v12084_v43  ;;  %v1862_v27 = vld [vmem:[#allocation8 + $0x428] sm:$0xff] }
 0x228   : > { %4277 = vmatmul.mubr.bf16.gmra.mxu0 %v12026_v31  ;;  %4292 = vmatpush1.bf16.msra.mxu1 %v9995_v33  ;;  %v1986_v12 = vld [vmem:[#allocation8 + $0x808] sm:$0xff]  ;;  %v9956_v30 = vcombine.high %v1858_v26, %v1862_v27  ;;  %v9955_v0 = vcombine.low %v1858_v26, %v1862_v27 }
 0x229   : > { %4372 = vmatprep.mubr.bf16.mxu0 %v12074_v11  ;;  %4345 = vmatpush1.bf16.msra.mxu0 %v10123_v57  ;;  %v1990_v54 = vld [vmem:[#allocation8 + $0x828] sm:$0xff] }
 0x22a   : > { %4319 = vmatprep.mubr.bf16.mxu1 %v12042_v29  ;;  %4293 = vmatprep.subr.bf16.mxu1 %v9988_v58  ;;  %v10084_v39 = vcombine.high %v1986_v12, %v1990_v54  ;;  %v1978_v35 = vld [vmem:[#allocation8 + $0x7c8] sm:$0xff]  ;;  %v10083_v17 = vcombine.low %v1986_v12, %v1990_v54 }
 0x22b   : > { %4346 = vmatprep.subr.bf16.mxu0 %v10116_v60  ;;  %v1982_v36 = vld [vmem:[#allocation8 + $0x7e8] sm:$0xff] }
 0x22c   : > { %4294 = vmatpush1.bf16.msra.mxu1 %v9987_v2  ;;  %v2106_v37 = vld [vmem:[#allocation8 + $0xbc8] sm:$0xff]  ;;  %v10076_v45 = vcombine.high %v1978_v35, %v1982_v36  ;;  %v10075_v60 = vcombine.low %v1978_v35, %v1982_v36 }
 0x22d   : > { %4347 = vmatpush1.bf16.msra.mxu0 %v10115_v1  ;;  %4295 = vmatprep.subr.bf16.mxu1 %v9980_v4  ;;  %v2110_v41 = vld [vmem:[#allocation8 + $0xbe8] sm:$0xff] }
 0x22e   : > { %4348 = vmatprep.subr.bf16.mxu0 %v10108_v5  ;;  %v10204_v47 = vcombine.high %v2106_v37, %v2110_v41  ;;  %v1970_v52 = vld [vmem:[#allocation8 + $0x788] sm:$0xff]  ;;  %v10203_v59 = vcombine.low %v2106_v37, %v2110_v41 }
 0x22f   : > { %v1974_v33 = vld [vmem:[#allocation8 + $0x7a8] sm:$0xff] }
 0x230   : > { %4296 = vmatpush1.bf16.msra.mxu1 %v9979_v8  ;;  %v2098_v57 = vld [vmem:[#allocation8 + $0xb88] sm:$0xff]  ;;  %v10068_v61 = vcombine.high %v1970_v52, %v1974_v33  ;;  %v10067_v5 = vcombine.low %v1970_v52, %v1974_v33 }
 0x231   : > { %4349 = vmatpush1.bf16.msra.mxu0 %v10107_v51  ;;  %4297 = vmatprep.subr.bf16.mxu1 %v9972_v10  ;;  %v2102_v58 = vld [vmem:[#allocation8 + $0xba8] sm:$0xff] }
 0x232   : > { %4350 = vmatprep.subr.bf16.mxu0 %v10100_v14  ;;  %v10196_v62 = vcombine.high %v2098_v57, %v2102_v58  ;;  %v1962_v63 = vld [vmem:[#allocation8 + $0x748] sm:$0xff]  ;;  %v10195_v56 = vcombine.low %v2098_v57, %v2102_v58 }
 0x233   : > { %v1966_v2 = vld [vmem:[#allocation8 + $0x768] sm:$0xff] }
 0x234   : > { %4298 = vmatpush1.bf16.msra.mxu1 %v9971_v22  ;;  %v2090_v1 = vld [vmem:[#allocation8 + $0xb48] sm:$0xff]  ;;  %v10060_v38 = vcombine.high %v1962_v63, %v1966_v2  ;;  %v10059_v14 = vcombine.low %v1962_v63, %v1966_v2 }
 0x235   : > { %4351 = vmatpush1.bf16.msra.mxu0 %v10099_v9  ;;  %4299 = vmatprep.subr.bf16.mxu1 %v9964_v23  ;;  %v2094_v4 = vld [vmem:[#allocation8 + $0xb68] sm:$0xff] }
 0x236   : > { %4352 = vmatprep.subr.bf16.mxu0 %v10092_v25  ;;  %v10188_v40 = vcombine.high %v2090_v1, %v2094_v4  ;;  %v1954_v42 = vld [vmem:[#allocation8 + $0x708] sm:$0xff]  ;;  %v10187_v16 = vcombine.low %v2090_v1, %v2094_v4  ;;  %v1787_v4 = vld [vmem:[#allocation8 + $0x1d0] sm:$0xff] }
 0x237   : > { %v1958_v8 = vld [vmem:[#allocation8 + $0x728] sm:$0xff] }
 0x238   : > { %4300 = vmatpush1.bf16.msra.mxu1 %v9963_v55  ;;  %v2082_v51 = vld [vmem:[#allocation8 + $0xb08] sm:$0xff]  ;;  %v10052_v20 = vcombine.high %v1954_v42, %v1958_v8  ;;  %v10051_v25 = vcombine.low %v1954_v42, %v1958_v8 }
 0x239   : > { %4353 = vmatpush1.bf16.msra.mxu0 %v10091_v28  ;;  %4301 = vmatprep.subr.bf16.mxu1 %v9956_v30  ;;  %v2086_v10 = vld [vmem:[#allocation8 + $0xb28] sm:$0xff] }
 0x23a   : > { %4354 = vmatprep.subr.bf16.mxu0 %v10084_v39  ;;  %v10180_v18 = vcombine.high %v2082_v51, %v2086_v10  ;;  %v1946_v21 = vld [vmem:[#allocation8 + $0x6c8] sm:$0xff]  ;;  %v10179_v26 = vcombine.low %v2082_v51, %v2086_v10  ;;  %v1779_v10 = vld [vmem:[#allocation8 + $0x190] sm:$0xff] }
 0x23b   : > { %v1950_v22 = vld [vmem:[#allocation8 + $0x6e8] sm:$0xff] }
 0x23c   : > { %4302 = vmatpush1.bf16.msra.mxu1 %v9955_v0  ;;  %v2074_v9 = vld [vmem:[#allocation8 + $0xac8] sm:$0xff]  ;;  %v10044_v27 = vcombine.high %v1946_v21, %v1950_v22  ;;  %v10043_v39 = vcombine.low %v1946_v21, %v1950_v22 }
 0x23d   : > { %4355 = vmatpush1.bf16.msra.mxu0 %v10083_v17  ;;  %4303 = vmatprep.subr.bf16.mxu1 %v10076_v45  ;;  %v2078_v23 = vld [vmem:[#allocation8 + $0xae8] sm:$0xff] }
 0x23e   : > { %4356 = vmatprep.subr.bf16.mxu0 %v10204_v47  ;;  %v10172_v12 = vcombine.high %v2074_v9, %v2078_v23  ;;  %v1938_v54 = vld [vmem:[#allocation8 + $0x688] sm:$0xff]  ;;  %v10171_v35 = vcombine.low %v2074_v9, %v2078_v23  ;;  %v1771_v23 = vld [vmem:[#allocation8 + $0x150] sm:$0xff] }
 0x23f   : > { %v1942_v55 = vld [vmem:[#allocation8 + $0x6a8] sm:$0xff] }
 0x240   : > { %4304 = vmatpush2.bf16.msra.mxu1 %v10075_v60  ;;  %v2066_v28 = vld [vmem:[#allocation8 + $0xa88] sm:$0xff]  ;;  %v10036_v36 = vcombine.high %v1938_v54, %v1942_v55  ;;  %v10035_v47 = vcombine.low %v1938_v54, %v1942_v55 }
 0x241   : > { %4357 = vmatpush2.bf16.msra.mxu0 %v10203_v59  ;;  %4305 = vmatprep.subr.bf16.mxu1 %v10068_v61  ;;  %v2070_v30 = vld [vmem:[#allocation8 + $0xaa8] sm:$0xff] }
 0x242   : > { %4358 = vmatprep.subr.bf16.mxu0 %v10196_v62  ;;  %v10164_v37 = vcombine.high %v2066_v28, %v2070_v30  ;;  %v1930_v41 = vld [vmem:[#allocation8 + $0x648] sm:$0xff]  ;;  %v10163_v52 = vcombine.low %v2066_v28, %v2070_v30  ;;  %v1763_v30 = vld [vmem:[#allocation8 + $0x110] sm:$0xff] }
 0x243   : > { %v1934_v0 = vld [vmem:[#allocation8 + $0x668] sm:$0xff] }
 0x244   : > { %4306 = vmatpush2.bf16.msra.mxu1 %v10067_v5  ;;  %v2058_v17 = vld [vmem:[#allocation8 + $0xa48] sm:$0xff]  ;;  %v10028_v33 = vcombine.high %v1930_v41, %v1934_v0  ;;  %v10027_v62 = vcombine.low %v1930_v41, %v1934_v0  ;;  %v1791_v5 = vld [vmem:[#allocation8 + $0x1f0] sm:$0xff] }
 0x245   : > { %4359 = vmatpush2.bf16.msra.mxu0 %v10195_v56  ;;  %4307 = vmatprep.subr.bf16.mxu1 %v10060_v38  ;;  %v2062_v45 = vld [vmem:[#allocation8 + $0xa68] sm:$0xff]  ;;  %v1915_v56 = vld [vmem:[#allocation8 + $0x5d0] sm:$0xff]  ;;  %v9886_v8 = vcombine.high %v1787_v4, %v1791_v5 }
 0x246   : > { %4360 = vmatprep.subr.bf16.mxu0 %v10188_v40  ;;  %v10156_v57 = vcombine.high %v2058_v17, %v2062_v45  ;;  %v1922_v58 = vld [vmem:[#allocation8 + $0x608] sm:$0xff]  ;;  %v10155_v63 = vcombine.low %v2058_v17, %v2062_v45  ;;  %v1919_v38 = vld [vmem:[#allocation8 + $0x5f0] sm:$0xff] }
 0x247   : > { %v1926_v60 = vld [vmem:[#allocation8 + $0x628] sm:$0xff]  ;;  %v10014_v51 = vcombine.high %v1915_v56, %v1919_v38  ;;  %v10013_v21 = vcombine.low %v1915_v56, %v1919_v38  ;;  %v1755_v45 = vld [vmem:[#allocation8 + $0xd0] sm:$0xff] }
 0x248   : > { %4308 = vmatpush2.bf16.msra.mxu1 %v10059_v14  ;;  %v2050_v59 = vld [vmem:[#allocation8 + $0xa08] sm:$0xff]  ;;  %v10020_v2 = vcombine.high %v1922_v58, %v1926_v60  ;;  %v10019_v40 = vcombine.low %v1922_v58, %v1926_v60  ;;  %v1783_v14 = vld [vmem:[#allocation8 + $0x1b0] sm:$0xff] }
 0x249   : > { %4361 = vmatpush2.bf16.msra.mxu0 %v10187_v16  ;;  %4309 = vmatprep.subr.bf16.mxu1 %v10052_v20  ;;  %v2054_v61 = vld [vmem:[#allocation8 + $0xa28] sm:$0xff]  ;;  %v1907_v16 = vld [vmem:[#allocation8 + $0x590] sm:$0xff]  ;;  %v9878_v22 = vcombine.high %v1779_v10, %v1783_v14 }
 0x24a   : > { %4362 = vmatprep.subr.bf16.mxu0 %v10180_v18  ;;  %v10148_v1 = vcombine.high %v2050_v59, %v2054_v61  ;;  %v10147_v42 = vcombine.low %v2050_v59, %v2054_v61  ;;  %v1911_v20 = vld [vmem:[#allocation8 + $0x5b0] sm:$0xff]  ;;  %v9885_v18 = vcombine.low %v1787_v4, %v1791_v5 }
 0x24b   : > { %v10006_v9 = vcombine.high %v1907_v16, %v1911_v20  ;;  %v10005_v54 = vcombine.low %v1907_v16, %v1911_v20  ;;  %v1747_v61 = vld [vmem:[#allocation8 + $0x90] sm:$0xff] }
 0x24c   : > { %4310 = vmatpush2.bf16.msra.mxu1 %v10051_v25  ;;  %v1775_v25 = vld [vmem:[#allocation8 + $0x170] sm:$0xff] }
 0x24d   : > { %4363 = vmatpush2.bf16.msra.mxu0 %v10179_v26  ;;  %4311 = vmatprep.subr.bf16.mxu1 %v10044_v27  ;;  %v1899_v26 = vld [vmem:[#allocation8 + $0x550] sm:$0xff]  ;;  %v9870_v55 = vcombine.high %v1771_v23, %v1775_v25 }
 0x24e   : > { %4364 = vmatprep.subr.bf16.mxu0 %v10172_v12  ;;  %v1903_v27 = vld [vmem:[#allocation8 + $0x570] sm:$0xff]  ;;  %v9877_v12 = vcombine.low %v1779_v10, %v1783_v14 }
 0x24f   : > { %v9998_v28 = vcombine.high %v1899_v26, %v1903_v27  ;;  %v9997_v41 = vcombine.low %v1899_v26, %v1903_v27  ;;  %v1739_v38 = vld [vmem:[#allocation8 + $0x50] sm:$0xff] }
 0x250   : > { %4312 = vmatpush2.bf16.msra.mxu1 %v10043_v39  ;;  %v1767_v39 = vld [vmem:[#allocation8 + $0x130] sm:$0xff] }
 0x251   : > { %4365 = vmatpush2.bf16.msra.mxu0 %v10171_v35  ;;  %4313 = vmatprep.subr.bf16.mxu1 %v10036_v36  ;;  %v1891_v35 = vld [vmem:[#allocation8 + $0x510] sm:$0xff]  ;;  %v9862_v0 = vcombine.high %v1763_v30, %v1767_v39 }
 0x252   : > { %4366 = vmatprep.subr.bf16.mxu0 %v10164_v37  ;;  %v1895_v36 = vld [vmem:[#allocation8 + $0x530] sm:$0xff]  ;;  %v9869_v37 = vcombine.low %v1771_v23, %v1775_v25 }
 0x253   : > { %v9990_v17 = vcombine.high %v1891_v35, %v1895_v36  ;;  %v9989_v58 = vcombine.low %v1891_v35, %v1895_v36  ;;  %v1731_v20 = vld [vmem:[#allocation8 + $0x10] sm:$0xff] }
 0x254   : > { %4314 = vmatpush2.bf16.msra.mxu1 %v10035_v47  ;;  %v1759_v47 = vld [vmem:[#allocation8 + $0xf0] sm:$0xff] }
 0x255   : > { %4367 = vmatpush2.bf16.msra.mxu0 %v10163_v52  ;;  %4315 = vmatprep.subr.bf16.mxu1 %v10028_v33  ;;  %v1883_v52 = vld [vmem:[#allocation8 + $0x4d0] sm:$0xff]  ;;  %v9854_v60 = vcombine.high %v1755_v45, %v1759_v47 }
 0x256   : > { %4368 = vmatprep.subr.bf16.mxu0 %v10156_v57  ;;  %v1887_v33 = vld [vmem:[#allocation8 + $0x4f0] sm:$0xff]  ;;  %v9861_v57 = vcombine.low %v1763_v30, %v1767_v39 }
 0x257   : > { %v9982_v59 = vcombine.high %v1883_v52, %v1887_v33  ;;  %v9981_v4 = vcombine.low %v1883_v52, %v1887_v33  ;;  %v1851_v27 = vld [vmem:[#allocation8 + $0x3d0] sm:$0xff] }
 0x258   : > { %4316 = vmatpush2.bf16.msra.mxu1 %v10027_v62  ;;  %v1751_v62 = vld [vmem:[#allocation8 + $0xb0] sm:$0xff] }
 0x259   : > { %4369 = vmatpush2.bf16.msra.mxu0 %v10155_v63  ;;  %4317 = vmatprep.subr.bf16.mxu1 %v10020_v2  ;;  %v1875_v63 = vld [vmem:[#allocation8 + $0x490] sm:$0xff]  ;;  %v9846_v5 = vcombine.high %v1747_v61, %v1751_v62 }
 0x25a   : > { %4370 = vmatprep.subr.bf16.mxu0 %v10148_v1  ;;  %v1879_v2 = vld [vmem:[#allocation8 + $0x4b0] sm:$0xff]  ;;  %v9853_v1 = vcombine.low %v1755_v45, %v1759_v47 }
 0x25b   : > { %v9974_v56 = vcombine.high %v1875_v63, %v1879_v2  ;;  %v9973_v10 = vcombine.low %v1875_v63, %v1879_v2  ;;  %v1843_v36 = vld [vmem:[#allocation8 + $0x390] sm:$0xff] }
 0x25c   : > { %4318 = vmatpush2.bf16.msra.mxu1 %v10019_v40  ;;  %v1743_v40 = vld [vmem:[#allocation8 + $0x70] sm:$0xff] }
 0x25d   : > { %4371 = vmatpush2.bf16.msra.mxu0 %v10147_v42  ;;  %4393 = vmatprep.subr.bf16.mxu1 %v9886_v8  ;;  %v1867_v42 = vld [vmem:[#allocation8 + $0x450] sm:$0xff]  ;;  %v9838_v14 = vcombine.high %v1739_v38, %v1743_v40 }
 0x25e   : > { %4446 = vmatprep.subr.bf16.mxu0 %v10014_v51  ;;  %v1871_v8 = vld [vmem:[#allocation8 + $0x470] sm:$0xff]  ;;  %v9845_v51 = vcombine.low %v1747_v61, %v1751_v62 }
 0x25f   : > { %4320 = vmatmul.mubr.bf16.vlgmr.msra.gmra.mxu1 %v12044_v34  ;;  %v9966_v16 = vcombine.high %v1867_v42, %v1871_v8  ;;  %v9965_v23 = vcombine.low %v1867_v42, %v1871_v8  ;;  %v1835_v33 = vld [vmem:[#allocation8 + $0x350] sm:$0xff] }
 0x260   : > { %4373 = vmatmul.mubr.bf16.vlgmr.msra.gmra.mxu0 %v12078_v19  ;;  %4329 = vmatprep.mubr.bf16.mxu1 %v12053_v6  ;;  %v1827_v2 = vld [vmem:[#allocation8 + $0x310] sm:$0xff] }
 0x261   : > { %4382 = vmatprep.mubr.bf16.mxu0 %v12086_v53  ;;  %4394 = vmatpush1.bf16.msra.mxu1 %v9885_v18  ;;  %v1735_v18 = vld [vmem:[#allocation8 + $0x30] sm:$0xff] }
 0x262   : > { %4447 = vmatpush1.bf16.msra.mxu0 %v10013_v21  ;;  %4395 = vmatprep.subr.bf16.mxu1 %v9878_v22  ;;  %v1859_v21 = vld [vmem:[#allocation8 + $0x410] sm:$0xff]  ;;  %v9830_v25 = vcombine.high %v1731_v20, %v1735_v18 }
 0x263   : > { %4448 = vmatprep.subr.bf16.mxu0 %v10006_v9  ;;  %v1863_v22 = vld [vmem:[#allocation8 + $0x430] sm:$0xff]  ;;  %v9837_v9 = vcombine.low %v1739_v38, %v1743_v40 }
 0x264   : > { %v9958_v26 = vcombine.high %v1859_v21, %v1863_v22  ;;  %v9957_v30 = vcombine.low %v1859_v21, %v1863_v22  ;;  %v1819_v8 = vld [vmem:[#allocation8 + $0x2d0] sm:$0xff] }
 0x265   : > { %4396 = vmatpush1.bf16.msra.mxu1 %v9877_v12  ;;  %v1855_v12 = vld [vmem:[#allocation8 + $0x3f0] sm:$0xff] }
 0x266   : > { %4449 = vmatpush1.bf16.msra.mxu0 %v10005_v54  ;;  %4397 = vmatprep.subr.bf16.mxu1 %v9870_v55  ;;  %v1979_v54 = vld [vmem:[#allocation8 + $0x7d0] sm:$0xff]  ;;  %v9950_v39 = vcombine.high %v1851_v27, %v1855_v12 }
 0x267   : > { %4330 = vmatmul.mubr.bf16.gmra.mxu1 %v12051_v3  ;;  %4450 = vmatprep.subr.bf16.mxu0 %v9998_v28  ;;  %v1983_v55 = vld [vmem:[#allocation8 + $0x7f0] sm:$0xff]  ;;  %v9829_v28 = vcombine.low %v1731_v20, %v1735_v18 }
 0x268   : > { %4383 = vmatmul.mubr.bf16.gmra.mxu0 %v12084_v43  ;;  %4425 = vmatprep.mubr.bf16.mxu1 %v12017_v13  ;;  %v10078_v35 = vcombine.high %v1979_v54, %v1983_v55  ;;  %v10077_v45 = vcombine.low %v1979_v54, %v1983_v55  ;;  %v1811_v22 = vld [vmem:[#allocation8 + $0x290] sm:$0xff] }
 0x269   : > { %4398 = vmatpush1.bf16.msra.mxu1 %v9869_v37  ;;  %4478 = vmatprep.mubr.bf16.mxu0 %v12042_v29  ;;  %v1847_v37 = vld [vmem:[#allocation8 + $0x3b0] sm:$0xff] }
 0x26a   : > { %4451 = vmatpush1.bf16.msra.mxu0 %v9997_v41  ;;  %4399 = vmatprep.subr.bf16.mxu1 %v9862_v0  ;;  %v1971_v41 = vld [vmem:[#allocation8 + $0x790] sm:$0xff]  ;;  %v9942_v47 = vcombine.high %v1843_v36, %v1847_v37 }
 0x26b   : > { %4452 = vmatprep.subr.bf16.mxu0 %v9990_v17  ;;  %v1975_v0 = vld [vmem:[#allocation8 + $0x7b0] sm:$0xff]  ;;  %v9949_v17 = vcombine.low %v1851_v27, %v1855_v12 }
 0x26c   : > { %v10070_v52 = vcombine.high %v1971_v41, %v1975_v0  ;;  %v10069_v61 = vcombine.low %v1971_v41, %v1975_v0  ;;  %v1803_v55 = vld [vmem:[#allocation8 + $0x250] sm:$0xff] }
 0x26d   : > { %4400 = vmatpush1.bf16.msra.mxu1 %v9861_v57  ;;  %v1839_v57 = vld [vmem:[#allocation8 + $0x370] sm:$0xff] }
 0x26e   : > { %4453 = vmatpush1.bf16.msra.mxu0 %v9989_v58  ;;  %4401 = vmatprep.subr.bf16.mxu1 %v9854_v60  ;;  %v1963_v58 = vld [vmem:[#allocation8 + $0x750] sm:$0xff]  ;;  %v9934_v62 = vcombine.high %v1835_v33, %v1839_v57 }
 0x26f   : > { %4454 = vmatprep.subr.bf16.mxu0 %v9982_v59  ;;  %v1967_v60 = vld [vmem:[#allocation8 + $0x770] sm:$0xff]  ;;  %v9941_v59 = vcombine.low %v1843_v36, %v1847_v37 }
 0x270   : > { %v10062_v63 = vcombine.high %v1963_v58, %v1967_v60  ;;  %v10061_v38 = vcombine.low %v1963_v58, %v1967_v60  ;;  %v12101_v60 = vld [vmem:[#allocation10] sm:$0xff] }
 0x271   : > { %4402 = vmatpush1.bf16.msra.mxu1 %v9853_v1  ;;  %v1831_v1 = vld [vmem:[#allocation8 + $0x330] sm:$0xff] }
 0x272   : > { %4455 = vmatpush1.bf16.msra.mxu0 %v9981_v4  ;;  %4403 = vmatprep.subr.bf16.mxu1 %v9846_v5  ;;  %v1955_v4 = vld [vmem:[#allocation8 + $0x710] sm:$0xff]  ;;  %v9926_v40 = vcombine.high %v1827_v2, %v1831_v1 }
 0x273   : > { %4456 = vmatprep.subr.bf16.mxu0 %v9974_v56  ;;  %v1959_v5 = vld [vmem:[#allocation8 + $0x730] sm:$0xff]  ;;  %v9933_v56 = vcombine.low %v1835_v33, %v1839_v57 }
 0x274   : > { %v10054_v42 = vcombine.high %v1955_v4, %v1959_v5  ;;  %v10053_v20 = vcombine.low %v1955_v4, %v1959_v5  ;;  %v12107_v5 = vrot.slane %v12101_v60, %v12009_v49 }
 0x275   : > { %4404 = vmatpush1.bf16.msra.mxu1 %v9845_v51  ;;  %v1823_v51 = vld [vmem:[#allocation8 + $0x2f0] sm:$0xff] }
 0x276   : > { %4457 = vmatpush1.bf16.msra.mxu0 %v9973_v10  ;;  %4405 = vmatprep.subr.bf16.mxu1 %v9838_v14  ;;  %v1947_v10 = vld [vmem:[#allocation8 + $0x6d0] sm:$0xff]  ;;  %v9918_v18 = vcombine.high %v1819_v8, %v1823_v51 }
 0x277   : > { %4458 = vmatprep.subr.bf16.mxu0 %v9966_v16  ;;  %v1951_v14 = vld [vmem:[#allocation8 + $0x6f0] sm:$0xff]  ;;  %v9925_v16 = vcombine.low %v1827_v2, %v1831_v1  ;;  %v1788_v2 = vld [vmem:[#allocation8 + $0x1d8] sm:$0xff] }
 0x278   : > { %v10046_v21 = vcombine.high %v1947_v10, %v1951_v14  ;;  %v10045_v27 = vcombine.low %v1947_v10, %v1951_v14  ;;  %v1792_v1 = vld [vmem:[#allocation8 + $0x1f8] sm:$0xff] }
 0x279   : > { %4406 = vmatpush1.bf16.msra.mxu1 %v9837_v9  ;;  %v1815_v9 = vld [vmem:[#allocation8 + $0x2b0] sm:$0xff]  ;;  %v1780_v10 = vld [vmem:[#allocation8 + $0x198] sm:$0xff] }
 0x27a   : > { %4459 = vmatpush1.bf16.msra.mxu0 %v9965_v23  ;;  %4407 = vmatprep.subr.bf16.mxu1 %v9830_v25  ;;  %v1939_v23 = vld [vmem:[#allocation8 + $0x690] sm:$0xff]  ;;  %v9910_v12 = vcombine.high %v1811_v22, %v1815_v9  ;;  %v1784_v14 = vld [vmem:[#allocation8 + $0x1b8] sm:$0xff] }
 0x27b   : > { %4460 = vmatprep.subr.bf16.mxu0 %v9958_v26  ;;  %v1943_v25 = vld [vmem:[#allocation8 + $0x6b0] sm:$0xff]  ;;  %v9917_v26 = vcombine.low %v1819_v8, %v1823_v51 }
 0x27c   : > { %v10038_v54 = vcombine.high %v1939_v23, %v1943_v25  ;;  %v10037_v36 = vcombine.low %v1939_v23, %v1943_v25  ;;  %v2035_v8 = vld [vmem:[#allocation8 + $0x990] sm:$0xff]  ;;  %v9880_v25 = vcombine.high %v1780_v10, %v1784_v14 }
 0x27d   : > { %4408 = vmatpush1.bf16.msra.mxu1 %v9829_v28  ;;  %v1807_v28 = vld [vmem:[#allocation8 + $0x270] sm:$0xff] }
 0x27e   : > { %4461 = vmatpush1.bf16.msra.mxu0 %v9957_v30  ;;  %4409 = vmatprep.subr.bf16.mxu1 %v9950_v39  ;;  %v1931_v30 = vld [vmem:[#allocation8 + $0x650] sm:$0xff]  ;;  %v9902_v37 = vcombine.high %v1803_v55, %v1807_v28  ;;  %v9901_v33 = vcombine.low %v1803_v55, %v1807_v28  ;;  %v1772_v55 = vld [vmem:[#allocation8 + $0x158] sm:$0xff] }
 0x27f   : > { %4462 = vmatprep.subr.bf16.mxu0 %v10078_v35  ;;  %v1935_v39 = vld [vmem:[#allocation8 + $0x670] sm:$0xff]  ;;  %v9909_v35 = vcombine.low %v1811_v22, %v1815_v9  ;;  %v4109_v41 = vpop.f32.mrf.mxu1  ;;  %v1776_v28 = vld [vmem:[#allocation8 + $0x178] sm:$0xff] }
 0x280   : > { %v10030_v0 = vcombine.high %v1931_v30, %v1935_v39  ;;  %v10029_v57 = vcombine.low %v1931_v30, %v1935_v39  ;;  %v2039_v51 = vld [vmem:[#allocation8 + $0x9b0] sm:$0xff] }
 0x281   : > { %4410 = vmatpush2.bf16.msra.mxu1 %v9949_v17  ;;  %v1795_v17 = vld [vmem:[#allocation8 + $0x210] sm:$0xff]  ;;  %v10134_v9 = vcombine.high %v2035_v8, %v2039_v51  ;;  %v10133_v39 = vcombine.low %v2035_v8, %v2039_v51 }
 0x282   : > { %4463 = vmatpush2.bf16.msra.mxu0 %v10077_v45  ;;  %4411 = vmatprep.subr.bf16.mxu1 %v9942_v47  ;;  %v1799_v45 = vld [vmem:[#allocation8 + $0x230] sm:$0xff] }
 0x283   : > { %4464 = vmatprep.subr.bf16.mxu0 %v10070_v52  ;;  %v1923_v47 = vld [vmem:[#allocation8 + $0x610] sm:$0xff]  ;;  %v9894_v58 = vcombine.high %v1795_v17, %v1799_v45  ;;  %v9893_v4 = vcombine.low %v1795_v17, %v1799_v45 }
 0x284   : > { %v1927_v52 = vld [vmem:[#allocation8 + $0x630] sm:$0xff] }
 0x285   : > { %4412 = vmatpush2.bf16.msra.mxu1 %v9941_v59  ;;  %v12103_v59 = vpop.f32.mrf.mxu1  ;;  %v2019_v17 = vld [vmem:[#allocation8 + $0x910] sm:$0xff] }
 0x286   : > { %4465 = vmatpush2.bf16.msra.mxu0 %v10069_v61  ;;  %4413 = vmatprep.subr.bf16.mxu1 %v9934_v62  ;;  %v10022_v61 = vcombine.high %v1923_v47, %v1927_v52  ;;  %v2043_v62 = vld [vmem:[#allocation8 + $0x9d0] sm:$0xff] }
 0x287   : > { %4466 = vmatprep.subr.bf16.mxu0 %v10062_v63  ;;  %v2047_v63 = vld [vmem:[#allocation8 + $0x9f0] sm:$0xff] }
 0x288   : > { %v2023_v45 = vld [vmem:[#allocation8 + $0x930] sm:$0xff] }
 0x289   : > { %4414 = vmatpush2.bf16.msra.mxu1 %v9933_v56  ;;  %v10021_v56 = vcombine.low %v1923_v47, %v1927_v52 }
 0x28a   : > { %4467 = vmatpush2.bf16.msra.mxu0 %v10061_v38  ;;  %4415 = vmatprep.subr.bf16.mxu1 %v9926_v40  ;;  %v10142_v38 = vcombine.high %v2043_v62, %v2047_v63  ;;  %v4113_v40 = vpop.f32.mrf.mxu1 }
 0x28b   : > { %4468 = vmatprep.subr.bf16.mxu0 %v10054_v42  ;;  %v9888_v42 = vcombine.high %v1788_v2, %v1792_v1  ;;  %v4114_v30 = vadd.f32 %v4113_v40, %v12107_v5  ;;  %v2011_v40 = vld [vmem:[#allocation8 + $0x8d0] sm:$0xff] }
 0x28d   : > { %4416 = vmatpush2.bf16.msra.mxu1 %v9925_v16  ;;  %v4110_v16 = vadd.f32 %v4109_v41, %v12107_v5 }
 0x28e   : > { %4469 = vmatpush2.bf16.msra.mxu0 %v10053_v20  ;;  %4417 = vmatprep.subr.bf16.mxu1 %v9918_v18  ;;  %v10141_v20 = vcombine.low %v2043_v62, %v2047_v63  ;;  %v12110_v18 = vpop.f32.mrf.mxu1  ;;  %v9871_v63 = vcombine.low %v1772_v55, %v1776_v28 }
 0x28f   : > { %4470 = vmatprep.subr.bf16.mxu0 %v10046_v21  ;;  %v9887_v21 = vcombine.low %v1788_v2, %v1792_v1  ;;  %v10118_v1 = vcombine.high %v2019_v17, %v2023_v45 }
 0x291   : > { %4418 = vmatpush2.bf16.msra.mxu1 %v9917_v26  ;;  %v2027_v26 = vld [vmem:[#allocation8 + $0x950] sm:$0xff] }
 0x292   : > { %4471 = vmatpush2.bf16.msra.mxu0 %v10045_v27  ;;  %4419 = vmatprep.subr.bf16.mxu1 %v9910_v12  ;;  %v2031_v27 = vld [vmem:[#allocation8 + $0x970] sm:$0xff]  ;;  %v4119_v12 = vpop.f32.mrf.mxu1 }
 0x293   : > { %4472 = vmatprep.subr.bf16.mxu0 %v10038_v54  ;;  %v10125_v62 = vcombine.low %v2027_v26, %v2031_v27 }
 0x294   : > { %v4121_v47 = vpop.f32.mrf.mxu1 }
 0x295   : > { %4420 = vmatpush2.bf16.msra.mxu1 %v9909_v35  ;;  %v9879_v35 = vcombine.low %v1780_v10, %v1784_v14  ;;  %v1756_v10 = vld [vmem:[#allocation8 + $0xd8] sm:$0xff] }
 0x296   : > { %4473 = vmatpush2.bf16.msra.mxu0 %v10037_v36  ;;  %4421 = vmatprep.subr.bf16.mxu1 %v9902_v37  ;;  %v10126_v37 = vcombine.high %v2027_v26, %v2031_v27  ;;  %v4123_v8 = vpop.f32.mrf.mxu1  ;;  %v1760_v14 = vld [vmem:[#allocation8 + $0xf8] sm:$0xff] }
 0x297   : > { %4474 = vmatprep.subr.bf16.mxu0 %v10030_v0  ;;  %v9872_v0 = vcombine.high %v1772_v55, %v1776_v28  ;;  %v9856_v27 = vcombine.high %v1756_v10, %v1760_v14  ;;  %v2007_v55 = vld [vmem:[#allocation8 + $0x8b0] sm:$0xff]  ;;  %v1748_v28 = vld [vmem:[#allocation8 + $0x98] sm:$0xff] }
 0x299   : > { %4422 = vmatpush2.bf16.msra.mxu1 %v9901_v33  ;;  %v1764_v33 = vld [vmem:[#allocation8 + $0x118] sm:$0xff] }
 0x29a   : > { %4475 = vmatpush2.bf16.msra.mxu0 %v10029_v57  ;;  %4423 = vmatprep.subr.bf16.mxu1 %v9894_v58  ;;  %v1768_v57 = vld [vmem:[#allocation8 + $0x138] sm:$0xff]  ;;  %v12127_v58 = vrot.slane %v12101_v60, %v12006_v48 }
 0x29b   : > { %4476 = vmatprep.subr.bf16.mxu0 %v10022_v61  ;;  %v4120_v61 = vadd.f32 %v4119_v12, %v12107_v5  ;;  %v2003_v12 = vld [vmem:[#allocation8 + $0x890] sm:$0xff] }
 0x29d   : > { %4424 = vmatpush2.bf16.msra.mxu1 %v9893_v4  ;;  %v4122_v4 = vadd.f32 %v4121_v47, %v12127_v58 }
 0x29e   : > { %4477 = vmatpush2.bf16.msra.mxu0 %v10021_v56  ;;  %4499 = vmatprep.subr.bf16.mxu1 %v10142_v38  ;;  %v9864_v38 = vcombine.high %v1764_v33, %v1768_v57 }
 0x29f   : > { %4552 = vmatprep.subr.bf16.mxu0 %v9888_v42  ;;  %v2015_v42 = vld [vmem:[#allocation8 + $0x8f0] sm:$0xff] }
 0x2a0   : > { %v4162_v22 = vpop.f32.mrf.mxu0  ;;  %4426 = vmatmul.mubr.bf16.vlgmr.msra.gmra.mxu1 %v12019_v15 }
 0x2a1   : > { %v12113_v23 = vadd.f32 %v4162_v22, %v4110_v16  ;;  %4479 = vmatmul.mubr.bf16.vlgmr.msra.gmra.mxu0 %v12044_v34  ;;  %4435 = vmatprep.mubr.bf16.mxu1 %v12028_v32  ;;  %v4124_v16 = vadd.f32 %v4123_v8, %v12107_v5  ;;  %v9863_v22 = vcombine.low %v1764_v33, %v1768_v57  ;;  %v2111_v8 = vld [vmem:[#allocation8 + $0xbf0] sm:$0xff] }
 0x2a2   : > { %v12117_v54 = vpop.f32.mrf.mxu0  ;;  %4488 = vmatprep.mubr.bf16.mxu0 %v12053_v6  ;;  %4500 = vmatpush1.bf16.msra.mxu1 %v10141_v20  ;;  %v10109_v5 = vcombine.low %v2011_v40, %v2015_v42 }
 0x2a3   : > { %4553 = vmatpush1.bf16.msra.mxu0 %v9887_v21  ;;  %4501 = vmatprep.subr.bf16.mxu1 %v10134_v9  ;;  %v10117_v21 = vcombine.low %v2019_v17, %v2023_v45  ;;  %v1744_v17 = vld [vmem:[#allocation8 + $0x78] sm:$0xff]  ;;  %v10101_v45 = vcombine.low %v2003_v12, %v2007_v55 }
 0x2a4   : > { %v4166_v36 = vpop.f32.mrf.mxu0  ;;  %4554 = vmatprep.subr.bf16.mxu0 %v9880_v25  ;;  %v10110_v25 = vcombine.high %v2011_v40, %v2015_v42  ;;  %v2107_v42 = vld [vmem:[#allocation8 + $0xbd0] sm:$0xff] }
 0x2a5   : > { %v12121_v41 = vadd.f32 %v4166_v36, %v4114_v30  ;;  %v1752_v30 = vld [vmem:[#allocation8 + $0xb8] sm:$0xff]  ;;  %v1995_v36 = vld [vmem:[#allocation8 + $0x850] sm:$0xff] }
 0x2a6   : > { %v12123_v52 = vpop.f32.mrf.mxu0  ;;  %4502 = vmatpush1.bf16.msra.mxu1 %v10133_v39  ;;  %v10102_v39 = vcombine.high %v2003_v12, %v2007_v55  ;;  %v9847_v47 = vcombine.low %v1748_v28, %v1752_v30  ;;  %v1848_v12 = vld [vmem:[#allocation8 + $0x3b8] sm:$0xff]  ;;  %v10205_v55 = vcombine.low %v2107_v42, %v2111_v8 }
 0x2a7   : > { %4555 = vmatpush1.bf16.msra.mxu0 %v9879_v35  ;;  %4503 = vmatprep.subr.bf16.mxu1 %v10126_v37  ;;  %v9848_v35 = vcombine.high %v1748_v28, %v1752_v30  ;;  %v1999_v37 = vld [vmem:[#allocation8 + $0x870] sm:$0xff] }
 0x2a8   : > { %v4172_v2 = vpop.f32.mrf.mxu0  ;;  %4436 = vmatmul.mubr.bf16.gmra.mxu1 %v12026_v31  ;;  %4556 = vmatprep.subr.bf16.mxu0 %v9872_v0  ;;  %v1740_v0 = vld [vmem:[#allocation8 + $0x58] sm:$0xff]  ;;  %v10094_v33 = vcombine.high %v1995_v36, %v1999_v37 }
 0x2a9   : > { %v12132_v56 = vadd.f32 %v4172_v2, %v4120_v61  ;;  %4489 = vmatmul.mubr.bf16.gmra.mxu0 %v12051_v3  ;;  %4531 = vmatprep.mubr.bf16.mxu1 %v12074_v11  ;;  %v9840_v57 = vcombine.high %v1740_v0, %v1744_v17  ;;  %v1987_v61 = vld [vmem:[#allocation8 + $0x810] sm:$0xff]  ;;  %v1736_v2 = vld [vmem:[#allocation8 + $0x38] sm:$0xff] }
 0x2aa   : > { %v4174_v51 = vpop.f32.mrf.mxu0  ;;  %4504 = vmatpush1.bf16.msra.mxu1 %v10125_v62  ;;  %4584 = vmatprep.mubr.bf16.mxu0 %v12017_v13  ;;  %v9855_v13 = vcombine.low %v1756_v10, %v1760_v14  ;;  %v1991_v62 = vld [vmem:[#allocation8 + $0x830] sm:$0xff]  ;;  %v1856_v10 = vld [vmem:[#allocation8 + $0x3f8] sm:$0xff] }
 0x2ab   : > { %v12138_v20 = vadd.f32 %v4174_v51, %v4122_v4  ;;  %4557 = vmatpush1.bf16.msra.mxu0 %v9871_v63  ;;  %4505 = vmatprep.subr.bf16.mxu1 %v10118_v1  ;;  %v1732_v63 = vld [vmem:[#allocation8 + $0x18] sm:$0xff]  ;;  %v10093_v1 = vcombine.low %v1995_v36, %v1999_v37  ;;  %v9839_v4 = vcombine.low %v1740_v0, %v1744_v17 }
 0x2ac   : > { %v4176_v9 = vpop.f32.mrf.mxu0  ;;  %4558 = vmatprep.subr.bf16.mxu0 %v9864_v38  ;;  %v10086_v38 = vcombine.high %v1987_v61, %v1991_v62  ;;  %v9832_v40 = vcombine.high %v1732_v63, %v1736_v2  ;;  %v1852_v51 = vld [vmem:[#allocation8 + $0x3d8] sm:$0xff]  ;;  %v10085_v14 = vcombine.low %v1987_v61, %v1991_v62 }
 0x2ad   : > { %v12140_v26 = vadd.f32 %v4176_v9, %v4124_v16  ;;  %v9831_v16 = vcombine.low %v1732_v63, %v1736_v2  ;;  %v2099_v9 = vld [vmem:[#allocation8 + $0xb90] sm:$0xff]  ;;  %v9951_v28 = vcombine.low %v1852_v51, %v1856_v10  ;;  %v1840_v36 = vld [vmem:[#allocation8 + $0x378] sm:$0xff] }
 0x2ae   : > { %4506 = vmatpush1.bf16.msra.mxu1 %v10117_v21  ;;  %v10206_v21 = vcombine.high %v2107_v42, %v2111_v8  ;;  %v1832_v61 = vld [vmem:[#allocation8 + $0x338] sm:$0xff] }
 0x2af   : > { %4559 = vmatpush1.bf16.msra.mxu0 %v9863_v22  ;;  %4507 = vmatprep.subr.bf16.mxu1 %v10110_v25  ;;  %v9952_v22 = vcombine.high %v1852_v51, %v1856_v10  ;;  %v2103_v25 = vld [vmem:[#allocation8 + $0xbb0] sm:$0xff]  ;;  %v1824_v42 = vld [vmem:[#allocation8 + $0x2f8] sm:$0xff] }
 0x2b0   : > { %4560 = vmatprep.subr.bf16.mxu0 %v9856_v27  ;;  %v1844_v27 = vld [vmem:[#allocation8 + $0x398] sm:$0xff]  ;;  %v10198_v30 = vcombine.high %v2099_v9, %v2103_v25  ;;  %v10197_v37 = vcombine.low %v2099_v9, %v2103_v25 }
 0x2b1   : > { %v9943_v0 = vcombine.low %v1844_v27, %v1848_v12  ;;  %v1816_v9 = vld [vmem:[#allocation8 + $0x2b8] sm:$0xff] }
 0x2b2   : > { %4508 = vmatpush1.bf16.msra.mxu1 %v10109_v5  ;;  %v9944_v5 = vcombine.high %v1844_v27, %v1848_v12 }
 0x2b3   : > { %4561 = vmatpush1.bf16.msra.mxu0 %v9855_v13  ;;  %4509 = vmatprep.subr.bf16.mxu1 %v10102_v39  ;;  %v2091_v13 = vld [vmem:[#allocation8 + $0xb50] sm:$0xff] }
 0x2b4   : > { %4562 = vmatprep.subr.bf16.mxu0 %v9848_v35  ;;  %v2095_v39 = vld [vmem:[#allocation8 + $0xb70] sm:$0xff]  ;;  %v1836_v35 = vld [vmem:[#allocation8 + $0x358] sm:$0xff] }
 0x2b5   : > { %v10190_v17 = vcombine.high %v2091_v13, %v2095_v39  ;;  %v10189_v62 = vcombine.low %v2091_v13, %v2095_v39  ;;  %v9935_v63 = vcombine.low %v1836_v35, %v1840_v36  ;;  %v1808_v13 = vld [vmem:[#allocation8 + $0x278] sm:$0xff] }
 0x2b6   : > { %4510 = vmatpush1.bf16.msra.mxu1 %v10101_v45  ;;  %v9936_v45 = vcombine.high %v1836_v35, %v1840_v36 }
 0x2b7   : > { %4563 = vmatpush1.bf16.msra.mxu0 %v9847_v47  ;;  %4511 = vmatprep.subr.bf16.mxu1 %v10094_v33  ;;  %v2083_v47 = vld [vmem:[#allocation8 + $0xb10] sm:$0xff] }
 0x2b8   : > { %4564 = vmatprep.subr.bf16.mxu0 %v9840_v57  ;;  %v2087_v33 = vld [vmem:[#allocation8 + $0xb30] sm:$0xff]  ;;  %v1828_v57 = vld [vmem:[#allocation8 + $0x318] sm:$0xff] }
 0x2b9   : > { %v10182_v2 = vcombine.high %v2083_v47, %v2087_v33  ;;  %v10181_v8 = vcombine.low %v2083_v47, %v2087_v33  ;;  %v9927_v51 = vcombine.low %v1828_v57, %v1832_v61  ;;  %v1800_v47 = vld [vmem:[#allocation8 + $0x238] sm:$0xff] }
 0x2ba   : > { %4512 = vmatpush1.bf16.msra.mxu1 %v10093_v1  ;;  %v9928_v1 = vcombine.high %v1828_v57, %v1832_v61 }
 0x2bb   : > { %4565 = vmatpush1.bf16.msra.mxu0 %v9839_v4  ;;  %4513 = vmatprep.subr.bf16.mxu1 %v10086_v38  ;;  %v2075_v4 = vld [vmem:[#allocation8 + $0xad0] sm:$0xff] }
 0x2bc   : > { %4566 = vmatprep.subr.bf16.mxu0 %v9832_v40  ;;  %v2079_v38 = vld [vmem:[#allocation8 + $0xaf0] sm:$0xff]  ;;  %v1820_v40 = vld [vmem:[#allocation8 + $0x2d8] sm:$0xff] }
 0x2bd   : > { %v10174_v10 = vcombine.high %v2075_v4, %v2079_v38  ;;  %v10173_v25 = vcombine.low %v2075_v4, %v2079_v38  ;;  %v9919_v27 = vcombine.low %v1820_v40, %v1824_v42  ;;  %v2048_v4 = vld [vmem:[#allocation8 + $0x9f8] sm:$0xff] }
 0x2be   : > { %4514 = vmatpush1.bf16.msra.mxu1 %v10085_v14  ;;  %v9920_v14 = vcombine.high %v1820_v40, %v1824_v42 }
 0x2bf   : > { %4567 = vmatpush1.bf16.msra.mxu0 %v9831_v16  ;;  %4515 = vmatprep.subr.bf16.mxu1 %v10206_v21  ;;  %v2067_v16 = vld [vmem:[#allocation8 + $0xa90] sm:$0xff] }
 0x2c0   : > { %4568 = vmatprep.subr.bf16.mxu0 %v9952_v22  ;;  %v2071_v21 = vld [vmem:[#allocation8 + $0xab0] sm:$0xff]  ;;  %v1812_v22 = vld [vmem:[#allocation8 + $0x298] sm:$0xff] }
 0x2c1   : > { %v10166_v12 = vcombine.high %v2067_v16, %v2071_v21  ;;  %v10165_v39 = vcombine.low %v2067_v16, %v2071_v21  ;;  %v9911_v35 = vcombine.low %v1812_v22, %v1816_v9  ;;  %v2036_v16 = vld [vmem:[#allocation8 + $0x998] sm:$0xff] }
 0x2c2   : > { %4516 = vmatpush2.bf16.msra.mxu1 %v10205_v55  ;;  %v9912_v55 = vcombine.high %v1812_v22, %v1816_v9  ;;  %v2040_v21 = vld [vmem:[#allocation8 + $0x9b8] sm:$0xff] }
 0x2c3   : > { %4569 = vmatpush2.bf16.msra.mxu0 %v9951_v28  ;;  %4517 = vmatprep.subr.bf16.mxu1 %v10198_v30  ;;  %v2059_v28 = vld [vmem:[#allocation8 + $0xa50] sm:$0xff] }
 0x2c4   : > { %4570 = vmatprep.subr.bf16.mxu0 %v9944_v5  ;;  %v2063_v30 = vld [vmem:[#allocation8 + $0xa70] sm:$0xff]  ;;  %v1804_v5 = vld [vmem:[#allocation8 + $0x258] sm:$0xff] }
 0x2c5   : > { %v10158_v36 = vcombine.high %v2059_v28, %v2063_v30  ;;  %v10157_v33 = vcombine.low %v2059_v28, %v2063_v30  ;;  %v9903_v57 = vcombine.low %v1804_v5, %v1808_v13  ;;  %v10136_v28 = vcombine.high %v2036_v16, %v2040_v21  ;;  %v1900_v30 = vld [vmem:[#allocation8 + $0x558] sm:$0xff] }
 0x2c6   : > { %4518 = vmatpush2.bf16.msra.mxu1 %v10197_v37  ;;  %v9904_v37 = vcombine.high %v1804_v5, %v1808_v13  ;;  %v1904_v5 = vld [vmem:[#allocation8 + $0x578] sm:$0xff] }
 0x2c7   : > { %4571 = vmatpush2.bf16.msra.mxu0 %v9943_v0  ;;  %4519 = vmatprep.subr.bf16.mxu1 %v10190_v17  ;;  %v2051_v0 = vld [vmem:[#allocation8 + $0xa10] sm:$0xff]  ;;  %v2028_v13 = vld [vmem:[#allocation8 + $0x958] sm:$0xff] }
 0x2c8   : > { %4572 = vmatprep.subr.bf16.mxu0 %v9936_v45  ;;  %v2055_v17 = vld [vmem:[#allocation8 + $0xa30] sm:$0xff]  ;;  %v1796_v45 = vld [vmem:[#allocation8 + $0x218] sm:$0xff] }
 0x2c9   : > { %v10150_v61 = vcombine.high %v2051_v0, %v2055_v17  ;;  %v10149_v38 = vcombine.low %v2051_v0, %v2055_v17  ;;  %v9895_v40 = vcombine.low %v1796_v45, %v1800_v47  ;;  %v10000_v0 = vcombine.high %v1900_v30, %v1904_v5 }
 0x2ca   : > { %4520 = vmatpush2.bf16.msra.mxu1 %v10189_v62  ;;  %v9896_v62 = vcombine.high %v1796_v45, %v1800_v47  ;;  %v1896_v47 = vld [vmem:[#allocation8 + $0x538] sm:$0xff] }
 0x2cb   : > { %4573 = vmatpush2.bf16.msra.mxu0 %v9935_v63  ;;  %4521 = vmatprep.subr.bf16.mxu1 %v10182_v2  ;;  %v1916_v63 = vld [vmem:[#allocation8 + $0x5d8] sm:$0xff] }
 0x2cc   : > { %4574 = vmatprep.subr.bf16.mxu0 %v9928_v1  ;;  %v1920_v2 = vld [vmem:[#allocation8 + $0x5f8] sm:$0xff] }
 0x2cd   : > { %v2044_v1 = vld [vmem:[#allocation8 + $0x9d8] sm:$0xff]  ;;  %v10016_v42 = vcombine.high %v1916_v63, %v1920_v2  ;;  %v10015_v22 = vcombine.low %v1916_v63, %v1920_v2 }
 0x2ce   : > { %4522 = vmatpush2.bf16.msra.mxu1 %v10181_v8  ;;  %v10144_v8 = vcombine.high %v2044_v1, %v2048_v4 }
 0x2cf   : > { %4575 = vmatpush2.bf16.msra.mxu0 %v9927_v51  ;;  %4523 = vmatprep.subr.bf16.mxu1 %v10174_v10  ;;  %v12142_v51 = vpop.f32.mrf.mxu1  ;;  %v1908_v10 = vld [vmem:[#allocation8 + $0x598] sm:$0xff] }
 0x2d0   : > { %4576 = vmatprep.subr.bf16.mxu0 %v9920_v14  ;;  %v1912_v14 = vld [vmem:[#allocation8 + $0x5b8] sm:$0xff] }
 0x2d2   : > { %4524 = vmatpush2.bf16.msra.mxu1 %v10173_v25  ;;  %v10143_v25 = vcombine.low %v2044_v1, %v2048_v4 }
 0x2d3   : > { %4577 = vmatpush2.bf16.msra.mxu0 %v9919_v27  ;;  %4525 = vmatprep.subr.bf16.mxu1 %v10166_v12  ;;  %v10008_v12 = vcombine.high %v1908_v10, %v1912_v14 }
 0x2d4   : > { %4578 = vmatprep.subr.bf16.mxu0 %v9912_v55 }
 0x2d6   : > { %4526 = vmatpush2.bf16.msra.mxu1 %v10165_v39  ;;  %v2032_v39 = vld [vmem:[#allocation8 + $0x978] sm:$0xff] }
 0x2d7   : > { %4579 = vmatpush2.bf16.msra.mxu0 %v9911_v35  ;;  %4527 = vmatprep.subr.bf16.mxu1 %v10158_v36  ;;  %v10007_v35 = vcombine.low %v1908_v10, %v1912_v14  ;;  %v10128_v45 = vcombine.high %v2028_v13, %v2032_v39  ;;  %v10127_v63 = vcombine.low %v2028_v13, %v2032_v39  ;;  %v2012_v14 = vld [vmem:[#allocation8 + $0x8d8] sm:$0xff] }
 0x2d8   : > { %4580 = vmatprep.subr.bf16.mxu0 %v9904_v37 }
 0x2da   : > { %4528 = vmatpush2.bf16.msra.mxu1 %v10157_v33 }
 0x2db   : > { %4581 = vmatpush2.bf16.msra.mxu0 %v9903_v57  ;;  %4529 = vmatprep.subr.bf16.mxu1 %v10150_v61  ;;  %v2020_v61 = vld [vmem:[#allocation8 + $0x918] sm:$0xff] }
 0x2dc   : > { %4582 = vmatprep.subr.bf16.mxu0 %v9896_v62  ;;  %v2024_v62 = vld [vmem:[#allocation8 + $0x938] sm:$0xff] }
 0x2de   : > { %4530 = vmatpush2.bf16.msra.mxu1 %v10149_v38 }
 0x2df   : > { %4583 = vmatpush2.bf16.msra.mxu0 %v9895_v40  ;;  %4605 = vmatprep.subr.bf16.mxu1 %v10016_v42  ;;  %v4215_v9 = vpop.f32.mrf.mxu1  ;;  %v10120_v40 = vcombine.high %v2020_v61, %v2024_v62  ;;  %v1884_v42 = vld [vmem:[#allocation8 + $0x4d8] sm:$0xff] }
 0x2e0   : > { %4658 = vmatprep.subr.bf16.mxu0 %v10144_v8  ;;  %v4216_v27 = vadd.f32 %v4215_v9, %v12113_v23  ;;  %v10135_v23 = vcombine.low %v2036_v16, %v2040_v21  ;;  %v1888_v8 = vld [vmem:[#allocation8 + $0x4f8] sm:$0xff] }
 0x2e1   : > { %4532 = vmatmul.mubr.bf16.vlgmr.msra.gmra.mxu1 %v12078_v19  ;;  %v12146_v55 = vpop.f32.mrf.mxu1  ;;  %v2016_v16 = vld [vmem:[#allocation8 + $0x8f8] sm:$0xff] }
 0x2e2   : > { %4585 = vmatmul.mubr.bf16.vlgmr.msra.gmra.mxu0 %v12019_v15  ;;  %4541 = vmatprep.mubr.bf16.mxu1 %v12086_v53  ;;  %v1892_v15 = vld [vmem:[#allocation8 + $0x518] sm:$0xff]  ;;  %v4711_v33 = vmax.f32 %v4216_v27, 0.0 }
 0x2e3   : > { %4594 = vmatprep.mubr.bf16.mxu0 %v12028_v32  ;;  %4606 = vmatpush1.bf16.msra.mxu1 %v10015_v22  ;;  %v4219_v36 = vpop.f32.mrf.mxu1  ;;  %v9999_v32 = vcombine.low %v1900_v30, %v1904_v5  ;;  %v9992_v4 = vcombine.high %v1892_v15, %v1896_v47  ;;  %v10119_v22 = vcombine.low %v2020_v61, %v2024_v62  ;;  %v1876_v27 = vld [vmem:[#allocation8 + $0x498] sm:$0xff] }
 0x2e4   : > { %4659 = vmatpush1.bf16.msra.mxu0 %v10143_v25  ;;  %4607 = vmatprep.subr.bf16.mxu1 %v10008_v12  ;;  %v4220_v37 = vadd.f32 %v4219_v36, %v12121_v41  ;;  %v9984_v25 = vcombine.high %v1884_v42, %v1888_v8  ;;  %v2008_v30 = vld [vmem:[#allocation8 + $0x8b8] sm:$0xff]  ;;  %v9983_v5 = vcombine.low %v1884_v42, %v1888_v8 }
 0x2e5   : > { %4660 = vmatprep.subr.bf16.mxu0 %v10136_v28  ;;  %v12152_v17 = vpop.f32.mrf.mxu1  ;;  %v2004_v28 = vld [vmem:[#allocation8 + $0x898] sm:$0xff] }
 0x2e6   : > { %v4719_v57 = vmax.f32 %v4220_v37, 0.0  ;;  %v1872_v36 = vld [vmem:[#allocation8 + $0x478] sm:$0xff] }
 0x2e7   : > { %4608 = vmatpush1.bf16.msra.mxu1 %v10007_v35  ;;  %v4225_v2 = vpop.f32.mrf.mxu1  ;;  %v10104_v35 = vcombine.high %v2004_v28, %v2008_v30  ;;  %v2000_v37 = vld [vmem:[#allocation8 + $0x878] sm:$0xff] }
 0x2e8   : > { %v12154_v1 = vpack.c.bf16 %v4719_v57, %v4711_v33  ;;  %4661 = vmatpush1.bf16.msra.mxu0 %v10135_v23  ;;  %4609 = vmatprep.subr.bf16.mxu1 %v10000_v0  ;;  %v4226_v41 = vadd.f32 %v4225_v2, %v12132_v56  ;;  %v9991_v56 = vcombine.low %v1892_v15, %v1896_v47  ;;  %v1996_v23 = vld [vmem:[#allocation8 + $0x858] sm:$0xff] }
 0x2e9   : > { %4542 = vmatmul.mubr.bf16.gmra.mxu1 %v12084_v43  ;;  %4662 = vmatprep.subr.bf16.mxu0 %v10128_v45  ;;  %v4227_v38 = vpop.f32.mrf.mxu1  ;;  %v10103_v45 = vcombine.low %v2004_v28, %v2008_v30  ;;  %v10096_v47 = vcombine.high %v1996_v23, %v2000_v37  ;;  %v1860_v33 = vld [vmem:[#allocation8 + $0x418] sm:$0xff] }
 0x2ea   : > { %4595 = vmatmul.mubr.bf16.gmra.mxu0 %v12026_v31  ;;  %4637 = vmatprep.mubr.bf16.mxu1 %v12042_v29  ;;  %v12161_v10 = vadd.f32 %v4227_v38, %v12138_v20  ;;  %v10112_v31 = vcombine.high %v2012_v14, %v2016_v16  ;;  %v1880_v29 = vld [vmem:[#allocation8 + $0x4b8] sm:$0xff]  ;;  %v4727_v12 = vmax.f32 %v4226_v41, 0.0 }
 0x2eb   : > { %4610 = vmatpush1.bf16.msra.mxu1 %v9999_v32  ;;  %4690 = vmatprep.mubr.bf16.mxu0 %v12074_v11  ;;  %v4229_v21 = vpop.f32.mrf.mxu1  ;;  %v10111_v11 = vcombine.low %v2012_v14, %v2016_v16  ;;  %v9976_v39 = vcombine.high %v1876_v27, %v1880_v29  ;;  %v9975_v0 = vcombine.low %v1876_v27, %v1880_v29  ;;  %v1864_v57 = vld [vmem:[#allocation8 + $0x438] sm:$0xff]  ;;  %v12167_v27 = vpop.f32.mrf.mxu0 }
 0x2ec   : > { %4663 = vmatpush1.bf16.msra.mxu0 %v10127_v63  ;;  %4611 = vmatprep.subr.bf16.mxu1 %v9992_v4  ;;  %v4230_v9 = vadd.f32 %v4229_v21, %v12140_v26  ;;  %v1868_v26 = vld [vmem:[#allocation8 + $0x458] sm:$0xff]  ;;  %v10095_v63 = vcombine.low %v1996_v23, %v2000_v37  ;;  %v9960_v2 = vcombine.high %v1860_v33, %v1864_v57 }
 0x2ed   : > { %4664 = vmatprep.subr.bf16.mxu0 %v10120_v40  ;;  %v9968_v15 = vcombine.high %v1868_v26, %v1872_v36  ;;  %v1988_v61 = vld [vmem:[#allocation8 + $0x818] sm:$0xff]  ;;  %v9967_v32 = vcombine.low %v1868_v26, %v1872_v36  ;;  %v9959_v8 = vcombine.low %v1860_v33, %v1864_v57 }
 0x2ee   : > { %v4735_v20 = vmax.f32 %v4230_v9, 0.0  ;;  %v1992_v62 = vld [vmem:[#allocation8 + $0x838] sm:$0xff] }
 0x2ef   : > { %4612 = vmatpush1.bf16.msra.mxu1 %v9991_v56  ;;  %v10088_v41 = vcombine.high %v1988_v61, %v1992_v62  ;;  %v1980_v4 = vld [vmem:[#allocation8 + $0x7d8] sm:$0xff]  ;;  %v10087_v14 = vcombine.low %v1988_v61, %v1992_v62 }
 0x2f0   : > { %v12165_v13 = vpack.c.bf16 %v4735_v20, %v4727_v12  ;;  %4665 = vmatpush1.bf16.msra.mxu0 %v10119_v22  ;;  %4613 = vmatprep.subr.bf16.mxu1 %v9984_v25  ;;  %v1984_v38 = vld [vmem:[#allocation8 + $0x7f8] sm:$0xff] }
 0x2f1   : > { %4666 = vmatprep.subr.bf16.mxu0 %v10112_v31  ;;  %v2108_v40 = vld [vmem:[#allocation8 + $0xbd8] sm:$0xff]  ;;  %v10080_v16 = vcombine.high %v1980_v4, %v1984_v38  ;;  %v10079_v31 = vcombine.low %v1980_v4, %v1984_v38 }
 0x2f2   : > { %v2112_v42 = vld [vmem:[#allocation8 + $0xbf8] sm:$0xff] }
 0x2f3   : > { %4614 = vmatpush1.bf16.msra.mxu1 %v9983_v5  ;;  %v10208_v56 = vcombine.high %v2108_v40, %v2112_v42  ;;  %v1972_v21 = vld [vmem:[#allocation8 + $0x798] sm:$0xff]  ;;  %v10207_v29 = vcombine.low %v2108_v40, %v2112_v42  ;;  %v12169_v5 = vpop.f32.mrf.mxu0 }
 0x2f4   : > { %4667 = vmatpush1.bf16.msra.mxu0 %v10111_v11  ;;  %4615 = vmatprep.subr.bf16.mxu1 %v9976_v39  ;;  %v1976_v22 = vld [vmem:[#allocation8 + $0x7b8] sm:$0xff] }
 0x2f5   : > { %4668 = vmatprep.subr.bf16.mxu0 %v10104_v35  ;;  %v2100_v9 = vld [vmem:[#allocation8 + $0xb98] sm:$0xff]  ;;  %v10072_v12 = vcombine.high %v1972_v21, %v1976_v22  ;;  %v10071_v35 = vcombine.low %v1972_v21, %v1976_v22 }
 0x2f6   : > { %v2104_v25 = vld [vmem:[#allocation8 + $0xbb8] sm:$0xff] }
 0x2f7   : > { %4616 = vmatpush1.bf16.msra.mxu1 %v9975_v0  ;;  %v10200_v20 = vcombine.high %v2100_v9, %v2104_v25  ;;  %v1964_v28 = vld [vmem:[#allocation8 + $0x758] sm:$0xff]  ;;  %v10199_v26 = vcombine.low %v2100_v9, %v2104_v25 }
 0x2f8   : > { %4669 = vmatpush1.bf16.msra.mxu0 %v10103_v45  ;;  %4617 = vmatprep.subr.bf16.mxu1 %v9968_v15  ;;  %v1968_v30 = vld [vmem:[#allocation8 + $0x778] sm:$0xff]  ;;  %v12171_v45 = vpop.f32.mrf.mxu0 }
 0x2f9   : > { %4670 = vmatprep.subr.bf16.mxu0 %v10096_v47  ;;  %v2092_v11 = vld [vmem:[#allocation8 + $0xb58] sm:$0xff]  ;;  %v10064_v36 = vcombine.high %v1964_v28, %v1968_v30  ;;  %v10063_v33 = vcombine.low %v1964_v28, %v1968_v30 }
 0x2fa   : > { %v2096_v39 = vld [vmem:[#allocation8 + $0xb78] sm:$0xff] }
 0x2fb   : > { %4618 = vmatpush1.bf16.msra.mxu1 %v9967_v32  ;;  %v10192_v23 = vcombine.high %v2092_v11, %v2096_v39  ;;  %v1956_v37 = vld [vmem:[#allocation8 + $0x718] sm:$0xff]  ;;  %v10191_v57 = vcombine.low %v2092_v11, %v2096_v39 }
 0x2fc   : > { %4671 = vmatpush1.bf16.msra.mxu0 %v10095_v63  ;;  %4619 = vmatprep.subr.bf16.mxu1 %v9960_v2  ;;  %v1960_v0 = vld [vmem:[#allocation8 + $0x738] sm:$0xff]  ;;  %v12173_v2 = vpop.f32.mrf.mxu0 }
 0x2fd   : > { %4672 = vmatprep.subr.bf16.mxu0 %v10088_v41  ;;  %v2084_v15 = vld [vmem:[#allocation8 + $0xb18] sm:$0xff]  ;;  %v10056_v61 = vcombine.high %v1956_v37, %v1960_v0  ;;  %v10055_v38 = vcombine.low %v1956_v37, %v1960_v0 }
 0x2fe   : > { %v2088_v47 = vld [vmem:[#allocation8 + $0xb38] sm:$0xff] }
 0x2ff   : > { %4620 = vmatpush1.bf16.msra.mxu1 %v9959_v8  ;;  %v10184_v62 = vcombine.high %v2084_v15, %v2088_v47  ;;  %v1948_v32 = vld [vmem:[#allocation8 + $0x6d8] sm:$0xff]  ;;  %v10183_v40 = vcombine.low %v2084_v15, %v2088_v47 }
 0x300   : > { %4673 = vmatpush1.bf16.msra.mxu0 %v10087_v14  ;;  %4621 = vmatprep.subr.bf16.mxu1 %v10080_v16  ;;  %v1952_v63 = vld [vmem:[#allocation8 + $0x6f8] sm:$0xff] }
 0x301   : > { %4674 = vmatprep.subr.bf16.mxu0 %v10208_v56  ;;  %v2076_v41 = vld [vmem:[#allocation8 + $0xad8] sm:$0xff]  ;;  %v10048_v42 = vcombine.high %v1948_v32, %v1952_v63  ;;  %v12175_v56 = vpop.f32.mrf.mxu0  ;;  %v10047_v9 = vcombine.low %v1948_v32, %v1952_v63  ;;  %v4815_v32 = vld [vmem:[#allocation11 + $0x1c0] sm:$0xff] }
 0x302   : > { %v2080_v4 = vld [vmem:[#allocation8 + $0xaf8] sm:$0xff]  ;;  %v4819_v63 = vld [vmem:[#allocation11 + $0x1e0] sm:$0xff] }
 0x303   : > { %4622 = vmatpush2.bf16.msra.mxu1 %v10079_v31  ;;  %v10176_v8 = vcombine.high %v2076_v41, %v2080_v4  ;;  %v1940_v14 = vld [vmem:[#allocation8 + $0x698] sm:$0xff]  ;;  %v10175_v25 = vcombine.low %v2076_v41, %v2080_v4  ;;  %v12177_v28 = vpop.f32.mrf.mxu0  ;;  %v12183_v41 = vrot.slane %v12101_v60, %v12036_v50 }
 0x304   : > { %4675 = vmatpush2.bf16.msra.mxu0 %v10207_v29  ;;  %4623 = vmatprep.subr.bf16.mxu1 %v10072_v12  ;;  %v1944_v16 = vld [vmem:[#allocation8 + $0x6b8] sm:$0xff] }
 0x305   : > { %4676 = vmatprep.subr.bf16.mxu0 %v10200_v20  ;;  %v2068_v21 = vld [vmem:[#allocation8 + $0xa98] sm:$0xff]  ;;  %v10040_v31 = vcombine.high %v1940_v14, %v1944_v16  ;;  %v10039_v39 = vcombine.low %v1940_v14, %v1944_v16  ;;  %v12179_v0 = vpop.f32.mrf.mxu0  ;;  %v10266_v16 = vcombine.high %v4815_v32, %v4819_v63 }
 0x306   : > { %v2072_v22 = vld [vmem:[#allocation8 + $0xab8] sm:$0xff] }
 0x307   : > { %4624 = vmatpush2.bf16.msra.mxu1 %v10071_v35  ;;  %v10168_v29 = vcombine.high %v2068_v21, %v2072_v22  ;;  %v1932_v12 = vld [vmem:[#allocation8 + $0x658] sm:$0xff]  ;;  %v10167_v35 = vcombine.low %v2068_v21, %v2072_v22  ;;  %v12185_v4 = vpop.f32.mrf.mxu0  ;;  %v4116_v21 = vadd.f32 %v12110_v18, %v12127_v58  ;;  %v12193_v22 = vpop.f32.mrf.mxu1  ;;  %v4935_v18 = vld [vmem:[#allocation11 + $0x580] sm:$0xff] }
 0x308   : > { %4677 = vmatpush2.bf16.msra.mxu0 %v10199_v26  ;;  %4625 = vmatprep.subr.bf16.mxu1 %v10064_v36  ;;  %v1936_v20 = vld [vmem:[#allocation8 + $0x678] sm:$0xff] }
 0x309   : > { %4678 = vmatprep.subr.bf16.mxu0 %v10192_v23  ;;  %v2060_v30 = vld [vmem:[#allocation8 + $0xa58] sm:$0xff]  ;;  %v10032_v26 = vcombine.high %v1932_v12, %v1936_v20 }
 0x30a   : > { %v2064_v11 = vld [vmem:[#allocation8 + $0xa78] sm:$0xff] }
 0x30b   : > { %4626 = vmatpush2.bf16.msra.mxu1 %v10063_v33  ;;  %v10160_v36 = vcombine.high %v2060_v30, %v2064_v11  ;;  %v1924_v23 = vld [vmem:[#allocation8 + $0x618] sm:$0xff]  ;;  %v10031_v33 = vcombine.low %v1932_v12, %v1936_v20  ;;  %v4112_v12 = vadd.f32 %v12103_v59, %v12127_v58  ;;  %v4169_v20 = vadd.f32 %v12123_v52, %v4116_v21 }
 0x30c   : > { %4679 = vmatpush2.bf16.msra.mxu0 %v10191_v57  ;;  %4627 = vmatprep.subr.bf16.mxu1 %v10056_v61  ;;  %v1928_v37 = vld [vmem:[#allocation8 + $0x638] sm:$0xff]  ;;  %v10159_v57 = vcombine.low %v2060_v30, %v2064_v11  ;;  %v4939_v11 = vld [vmem:[#allocation11 + $0x5a0] sm:$0xff] }
 0x30d   : > { %4680 = vmatprep.subr.bf16.mxu0 %v10184_v62  ;;  %v2052_v15 = vld [vmem:[#allocation8 + $0xa18] sm:$0xff]  ;;  %v10024_v61 = vcombine.high %v1924_v23, %v1928_v37 }
 0x30e   : > { %v2056_v47 = vld [vmem:[#allocation8 + $0xa38] sm:$0xff] }
 0x30f   : > { %4628 = vmatpush2.bf16.msra.mxu1 %v10055_v38  ;;  %v10152_v62 = vcombine.high %v2052_v15, %v2056_v47  ;;  %v4943_v38 = vld [vmem:[#allocation11 + $0x5c0] sm:$0xff]  ;;  %v10151_v14 = vcombine.low %v2052_v15, %v2056_v47  ;;  %v4273_v47 = vadd.f32 %v12173_v2, %v12183_v41 }
 0x310   : > { %4681 = vmatpush2.bf16.msra.mxu0 %v10183_v40  ;;  %4629 = vmatprep.subr.bf16.mxu1 %v10048_v42  ;;  %v4947_v40 = vld [vmem:[#allocation11 + $0x5e0] sm:$0xff]  ;;  %v10023_v42 = vcombine.low %v1924_v23, %v1928_v37  ;;  %v4222_v23 = vadd.f32 %v12152_v17, %v4169_v20 }
 0x311   : > { %4682 = vmatprep.subr.bf16.mxu0 %v10176_v8  ;;  %v12189_v8 = vrot.slane %v12101_v60, %v12033_v44  ;;  %v4811_v60 = vld [vmem:[#allocation11 + $0x1a0] sm:$0xff]  ;;  %v10393_v37 = vcombine.low %v4943_v38, %v4947_v40 }
 0x312   : > { %v12209_v15 = vld [vmem:[#allocation11 + $0x140] sm:$0xff] }
 0x313   : > { %4630 = vmatpush2.bf16.msra.mxu1 %v10047_v9  ;;  %v10394_v9 = vcombine.high %v4943_v38, %v4947_v40  ;;  %v12218_v17 = vld [vmem:[#allocation11 + $0x560] sm:$0xff] }
 0x314   : > { %4683 = vmatpush2.bf16.msra.mxu0 %v10175_v25  ;;  %4631 = vmatprep.subr.bf16.mxu1 %v10040_v31  ;;  %v4269_v25 = vadd.f32 %v12169_v5, %v12183_v41  ;;  %v12197_v31 = vpop.f32.mrf.mxu0 }
 0x315   : > { %4684 = vmatprep.subr.bf16.mxu0 %v10168_v29  ;;  %v12199_v29 = vld [vmem:[#allocation11 + $0x180] sm:$0xff] }
 0x316   : > { %v10258_v52 = vcombine.high %v12199_v29, %v4811_v60  ;;  %v10257_v2 = vcombine.low %v12199_v29, %v4811_v60  ;;  %v4795_v29 = vld [vmem:[#allocation11 + $0x120] sm:$0xff] }
 0x317   : > { %4632 = vmatpush2.bf16.msra.mxu1 %v10039_v39  ;;  %v4271_v39 = vadd.f32 %v12171_v45, %v12189_v8  ;;  %v4919_v60 = vld [vmem:[#allocation11 + $0x500] sm:$0xff] }
 0x318   : > { %4685 = vmatpush2.bf16.msra.mxu0 %v10167_v35  ;;  %4633 = vmatprep.subr.bf16.mxu1 %v10032_v26  ;;  %v10265_v26 = vcombine.low %v4815_v32, %v4819_v63 }
 0x319   : > { %4686 = vmatprep.subr.bf16.mxu0 %v10160_v36  ;;  %v4165_v36 = vadd.f32 %v12117_v54, %v4112_v12  ;;  %v12216_v54 = vld [vmem:[#allocation11 + $0x540] sm:$0xff] }
 0x31a   : > { %v4923_v12 = vld [vmem:[#allocation11 + $0x520] sm:$0xff] }
 0x31b   : > { %4634 = vmatpush2.bf16.msra.mxu1 %v10031_v33 }
 0x31c   : > { %4687 = vmatpush2.bf16.msra.mxu0 %v10159_v57  ;;  %4635 = vmatprep.subr.bf16.mxu1 %v10024_v61  ;;  %v10386_v57 = vcombine.high %v4935_v18, %v4939_v11  ;;  %v12214_v61 = vld [vmem:[#allocation11 + $0x160] sm:$0xff] }
 0x31d   : > { %4688 = vmatprep.subr.bf16.mxu0 %v10152_v62  ;;  %v4218_v62 = vadd.f32 %v12146_v55, %v4165_v36  ;;  %v10385_v55 = vcombine.low %v4935_v18, %v4939_v11  ;;  %v10249_v18 = vcombine.low %v12209_v15, %v12214_v61  ;;  %v10377_v11 = vcombine.low %v12216_v54, %v12218_v17 }
 0x31f   : > { %4636 = vmatpush2.bf16.msra.mxu1 %v10023_v42  ;;  %v4321_v30 = vpop.f32.mrf.mxu1  ;;  %v4720_v42 = vmax.f32 %v4222_v23, 0.0  ;;  %v4712_v20 = vmax.f32 %v4218_v62, 0.0  ;;  %v4915_v62 = vld [vmem:[#allocation11 + $0x4e0] sm:$0xff] }
 0x320   : > { %4689 = vmatpush2.bf16.msra.mxu0 %v10151_v14  ;;  %v4322_v35 = vadd.f32 %v4321_v30, %v4269_v25  ;;  %v4374_v5 = vpop.f32.mrf.mxu0  ;;  %7873 = vmatprep.subr.bf16.mxu1 %v10266_v16  ;;  %v4791_v16 = vld [vmem:[#allocation11 + $0x100] sm:$0xff] }
 0x321   : > { %7926 = vmatprep.subr.bf16.mxu0 %v10394_v9  ;;  %v4323_v59 = vpop.f32.mrf.mxu1  ;;  %v12237_v36 = vpack.c.bf16 %v4720_v42, %v4712_v20  ;;  %v4779_v42 = vld [vmem:[#allocation11 + $0xa0] sm:$0xff] }
 0x322   : > { %4638 = vmatmul.mubr.bf16.vlgmr.msra.gmra.mxu1 %v12044_v34  ;;  %v4324_v45 = vadd.f32 %v4323_v59, %v4271_v39  ;;  %v4376_v33 = vpop.f32.mrf.mxu0  ;;  %v4275_v34 = vadd.f32 %v12175_v56, %v12189_v8  ;;  %v4375_v63 = vadd.f32 %v4374_v5, %v4322_v35  ;;  %v4279_v56 = vadd.f32 %v12177_v28, %v12183_v41 }
 0x323   : > { %4691 = vmatmul.mubr.bf16.vlgmr.msra.gmra.mxu0 %v12078_v19  ;;  %4647 = vmatprep.mubr.bf16.mxu1 %v12053_v6  ;;  %v4325_v32 = vpop.f32.mrf.mxu1  ;;  %v10250_v6 = vcombine.high %v12209_v15, %v12214_v61  ;;  %v10378_v19 = vcombine.high %v12216_v54, %v12218_v17  ;;  %v10370_v59 = vcombine.high %v4919_v60, %v4923_v12  ;;  %v4787_v61 = vld [vmem:[#allocation11 + $0xe0] sm:$0xff] }
 0x324   : > { %4700 = vmatprep.mubr.bf16.mxu0 %v12086_v53  ;;  %7874 = vmatpush1.bf16.msra.mxu1 %v10265_v26  ;;  %v4326_v38 = vadd.f32 %v4325_v32, %v4273_v47  ;;  %v4378_v40 = vpop.f32.mrf.mxu0  ;;  %v4377_v21 = vadd.f32 %v4376_v33, %v4324_v45  ;;  %v4713_v39 = vmax.f32 %v4375_v63, 0.0  ;;  %v4911_v17 = vld [vmem:[#allocation11 + $0x4c0] sm:$0xff] }
 0x325   : > { %7927 = vmatpush1.bf16.msra.mxu0 %v10393_v37  ;;  %7875 = vmatprep.subr.bf16.mxu1 %v10258_v52  ;;  %v4327_v14 = vpop.f32.mrf.mxu1  ;;  %v10242_v37 = vcombine.high %v4791_v16, %v4795_v29  ;;  %v4283_v52 = vadd.f32 %v12185_v4, %v12183_v41 }
 0x326   : > { %v4379_v53 = vadd.f32 %v4378_v40, %v4326_v38  ;;  %7928 = vmatprep.subr.bf16.mxu0 %v10386_v57  ;;  %v4328_v9 = vadd.f32 %v4327_v14, %v4275_v34  ;;  %v4380_v25 = vpop.f32.mrf.mxu0  ;;  %v4714_v15 = vmax.f32 %v4377_v21, 0.0  ;;  %v4783_v57 = vld [vmem:[#allocation11 + $0xc0] sm:$0xff]  ;;  %v10369_v34 = vcombine.low %v4919_v60, %v4923_v12 }
 0x327   : > { %v4331_v30 = vpop.f32.mrf.mxu1  ;;  %v10234_v63 = vcombine.high %v4783_v57, %v4787_v61  ;;  %v4775_v40 = vld [vmem:[#allocation11 + $0x80] sm:$0xff] }
 0x328   : > { %v4721_v35 = vmax.f32 %v4379_v53, 0.0  ;;  %7876 = vmatpush1.bf16.msra.mxu1 %v10257_v2  ;;  %v4381_v28 = vadd.f32 %v4380_v25, %v4328_v9  ;;  %v4332_v5 = vadd.f32 %v4331_v30, %v4279_v56  ;;  %v4384_v26 = vpop.f32.mrf.mxu0  ;;  %v10241_v2 = vcombine.low %v4791_v16, %v4795_v29  ;;  %v4907_v14 = vld [vmem:[#allocation11 + $0x4a0] sm:$0xff] }
 0x329   : > { %7929 = vmatpush1.bf16.msra.mxu0 %v10385_v55  ;;  %7877 = vmatprep.subr.bf16.mxu1 %v10250_v6  ;;  %v12239_v23 = vpop.f32.mrf.mxu1  ;;  %v4903_v55 = vld [vmem:[#allocation11 + $0x480] sm:$0xff]  ;;  %v10233_v56 = vcombine.low %v4783_v57, %v4787_v61  ;;  %v10361_v16 = vcombine.low %v4911_v17, %v4915_v62  ;;  %v10226_v21 = vcombine.high %v4775_v40, %v4779_v42 }
 0x32a   : > { %v12243_v47 = vpack.c.bf16 %v4721_v35, %v4713_v39  ;;  %v4722_v45 = vmax.f32 %v4381_v28, 0.0  ;;  %4648 = vmatmul.mubr.bf16.gmra.mxu1 %v12051_v3  ;;  %7930 = vmatprep.subr.bf16.mxu0 %v10378_v19  ;;  %v12246_v33 = vpop.f32.mrf.mxu0  ;;  %v4385_v41 = vadd.f32 %v4384_v26, %v4332_v5  ;;  %v10354_v9 = vcombine.high %v4903_v55, %v4907_v14  ;;  %v4767_v25 = vld [vmem:[#allocation11 + $0x40] sm:$0xff] }
 0x32b   : > { %4701 = vmatmul.mubr.bf16.gmra.mxu0 %v12084_v43  ;;  %7905 = vmatprep.mubr.bf16.mxu1 %v12237_v36  ;;  %v4335_v54 = vpop.f32.mrf.mxu1  ;;  %v10362_v43 = vcombine.high %v4911_v17, %v4915_v62  ;;  %v4771_v29 = vld [vmem:[#allocation11 + $0x60] sm:$0xff]  ;;  %v10225_v20 = vcombine.low %v4775_v40, %v4779_v42  ;;  %v10353_v30 = vcombine.low %v4903_v55, %v4907_v14 }
 0x32c   : > { %v12250_v32 = vpack.c.bf16 %v4722_v45, %v4714_v15  ;;  %7878 = vmatpush1.bf16.msra.mxu1 %v10249_v18  ;;  %v4336_v4 = vadd.f32 %v4335_v54, %v4283_v52  ;;  %v4388_v3 = vpop.f32.mrf.mxu0  ;;  %v4729_v6 = vmax.f32 %v4385_v41, 0.0  ;;  %v4895_v60 = vld [vmem:[#allocation11 + $0x440] sm:$0xff]  ;;  %v10218_v18 = vcombine.high %v4767_v25, %v4771_v29 }
 0x32d   : > { %7931 = vmatpush1.bf16.msra.mxu0 %v10377_v11  ;;  %7879 = vmatprep.subr.bf16.mxu1 %v10242_v37  ;;  %v4899_v12 = vld [vmem:[#allocation11 + $0x460] sm:$0xff]  ;;  %v10217_v26 = vcombine.low %v4767_v25, %v4771_v29 }
 0x32e   : > { %v4389_v38 = vadd.f32 %v4388_v3, %v4336_v4  ;;  %7932 = vmatprep.subr.bf16.mxu0 %v10370_v59  ;;  %7958 = vmatprep.mubr.bf16.mxu0 %v12250_v32  ;;  %v10346_v11 = vcombine.high %v4895_v60, %v4899_v12  ;;  %v4759_v39 = vld [vmem:[#allocation11] sm:$0xff]  ;;  %v10345_v37 = vcombine.low %v4895_v60, %v4899_v12 }
 0x32f   : > { %v4763_v35 = vld [vmem:[#allocation11 + $0x20] sm:$0xff] }
 0x330   : > { %v4737_v19 = vmax.f32 %v4389_v38, 0.0  ;;  %7880 = vmatpush1.bf16.msra.mxu1 %v10241_v2  ;;  %v4887_v28 = vld [vmem:[#allocation11 + $0x400] sm:$0xff]  ;;  %v10210_v59 = vcombine.high %v4759_v39, %v4763_v35  ;;  %v10209_v54 = vcombine.low %v4759_v39, %v4763_v35 }
 0x331   : > { %7933 = vmatpush1.bf16.msra.mxu0 %v10369_v34  ;;  %7881 = vmatprep.subr.bf16.mxu1 %v10234_v63  ;;  %v4891_v5 = vld [vmem:[#allocation11 + $0x420] sm:$0xff] }
 0x332   : > { %v12253_v53 = vpack.c.bf16 %v4737_v19, %v4729_v6  ;;  %7934 = vmatprep.subr.bf16.mxu0 %v10362_v43  ;;  %v10338_v52 = vcombine.high %v4887_v28, %v4891_v5  ;;  %v4879_v15 = vld [vmem:[#allocation11 + $0x3c0] sm:$0xff]  ;;  %v10337_v17 = vcombine.low %v4887_v28, %v4891_v5 }
 0x333   : > { %v4883_v45 = vld [vmem:[#allocation11 + $0x3e0] sm:$0xff] }
 0x334   : > { %7882 = vmatpush1.bf16.msra.mxu1 %v10233_v56  ;;  %v5007_v57 = vld [vmem:[#allocation11 + $0x7c0] sm:$0xff]  ;;  %v10330_v62 = vcombine.high %v4879_v15, %v4883_v45  ;;  %v10329_v63 = vcombine.low %v4879_v15, %v4883_v45 }
 0x335   : > { %7935 = vmatpush1.bf16.msra.mxu0 %v10361_v16  ;;  %7883 = vmatprep.subr.bf16.mxu1 %v10226_v21  ;;  %v5011_v61 = vld [vmem:[#allocation11 + $0x7e0] sm:$0xff] }
 0x336   : > { %7936 = vmatprep.subr.bf16.mxu0 %v10354_v9  ;;  %v10458_v41 = vcombine.high %v5007_v57, %v5011_v61  ;;  %v4871_v4 = vld [vmem:[#allocation11 + $0x380] sm:$0xff]  ;;  %v10457_v38 = vcombine.low %v5007_v57, %v5011_v61 }
 0x337   : > { %v4875_v2 = vld [vmem:[#allocation11 + $0x3a0] sm:$0xff] }
 0x338   : > { %7884 = vmatpush1.bf16.msra.mxu1 %v10225_v20  ;;  %v4999_v3 = vld [vmem:[#allocation11 + $0x780] sm:$0xff]  ;;  %v10322_v43 = vcombine.high %v4871_v4, %v4875_v2  ;;  %v10321_v19 = vcombine.low %v4871_v4, %v4875_v2 }
 0x339   : > { %7937 = vmatpush1.bf16.msra.mxu0 %v10353_v30  ;;  %7885 = vmatprep.subr.bf16.mxu1 %v10218_v18  ;;  %v5003_v34 = vld [vmem:[#allocation11 + $0x7a0] sm:$0xff] }
 0x33a   : > { %7938 = vmatprep.subr.bf16.mxu0 %v10346_v11  ;;  %v10450_v40 = vcombine.high %v4999_v3, %v5003_v34  ;;  %v4863_v42 = vld [vmem:[#allocation11 + $0x340] sm:$0xff]  ;;  %v10449_v56 = vcombine.low %v4999_v3, %v5003_v34  ;;  %v4337_v34 = vpop.f32.mrf.mxu1 }
 0x33b   : > { %v4867_v55 = vld [vmem:[#allocation11 + $0x360] sm:$0xff] }
 0x33c   : > { %7886 = vmatpush1.bf16.msra.mxu1 %v10217_v26  ;;  %v4991_v14 = vld [vmem:[#allocation11 + $0x740] sm:$0xff]  ;;  %v10314_v16 = vcombine.high %v4863_v42, %v4867_v55  ;;  %v10313_v12 = vcombine.low %v4863_v42, %v4867_v55  ;;  %v4126_v42 = vadd.f32 %v12142_v51, %v12127_v58 }
 0x33d   : > { %7939 = vmatpush1.bf16.msra.mxu0 %v10345_v37  ;;  %7887 = vmatprep.subr.bf16.mxu1 %v10210_v59  ;;  %v4995_v6 = vld [vmem:[#allocation11 + $0x760] sm:$0xff] }
 0x33e   : > { %7940 = vmatprep.subr.bf16.mxu0 %v10338_v52  ;;  %v10442_v21 = vcombine.high %v4991_v14, %v4995_v6  ;;  %v4855_v9 = vld [vmem:[#allocation11 + $0x300] sm:$0xff]  ;;  %v10441_v20 = vcombine.low %v4991_v14, %v4995_v6 }
 0x33f   : > { %v4859_v25 = vld [vmem:[#allocation11 + $0x320] sm:$0xff] }
 0x340   : > { %7888 = vmatpush1.bf16.msra.mxu1 %v10209_v54  ;;  %v4983_v29 = vld [vmem:[#allocation11 + $0x700] sm:$0xff]  ;;  %v10306_v30 = vcombine.high %v4855_v9, %v4859_v25  ;;  %v10305_v5 = vcombine.low %v4855_v9, %v4859_v25  ;;  %v4179_v9 = vadd.f32 %v12167_v27, %v4126_v42 }
 0x341   : > { %7941 = vmatpush1.bf16.msra.mxu0 %v10337_v17  ;;  %7889 = vmatprep.subr.bf16.mxu1 %v10330_v62  ;;  %v4987_v60 = vld [vmem:[#allocation11 + $0x720] sm:$0xff] }
 0x342   : > { %7942 = vmatprep.subr.bf16.mxu0 %v10458_v41  ;;  %v10434_v18 = vcombine.high %v4983_v29, %v4987_v60  ;;  %v4847_v11 = vld [vmem:[#allocation11 + $0x2c0] sm:$0xff]  ;;  %v10433_v26 = vcombine.low %v4983_v29, %v4987_v60  ;;  %v4232_v51 = vadd.f32 %v12193_v22, %v4179_v9  ;;  %v4390_v60 = vpop.f32.mrf.mxu0 }
 0x343   : > { %v4851_v39 = vld [vmem:[#allocation11 + $0x2e0] sm:$0xff] }
 0x344   : > { %7890 = vmatpush2.bf16.msra.mxu1 %v10329_v63  ;;  %v4975_v35 = vld [vmem:[#allocation11 + $0x6c0] sm:$0xff]  ;;  %v10298_v37 = vcombine.high %v4847_v11, %v4851_v39  ;;  %v10297_v61 = vcombine.low %v4847_v11, %v4851_v39 }
 0x345   : > { %7943 = vmatpush2.bf16.msra.mxu0 %v10457_v38  ;;  %7891 = vmatprep.subr.bf16.mxu1 %v10322_v43  ;;  %v4979_v28 = vld [vmem:[#allocation11 + $0x6e0] sm:$0xff]  ;;  %v4285_v38 = vadd.f32 %v12197_v31, %v12189_v8 }
 0x346   : > { %7944 = vmatprep.subr.bf16.mxu0 %v10450_v40  ;;  %v10426_v59 = vcombine.high %v4975_v35, %v4979_v28  ;;  %v4839_v52 = vld [vmem:[#allocation11 + $0x280] sm:$0xff]  ;;  %v10425_v54 = vcombine.low %v4975_v35, %v4979_v28  ;;  %v4736_v35 = vmax.f32 %v4232_v51, 0.0 }
 0x347   : > { %v4843_v15 = vld [vmem:[#allocation11 + $0x2a0] sm:$0xff] }
 0x348   : > { %7892 = vmatpush2.bf16.msra.mxu1 %v10321_v19  ;;  %v4967_v45 = vld [vmem:[#allocation11 + $0x680] sm:$0xff]  ;;  %v10290_v17 = vcombine.high %v4839_v52, %v4843_v15  ;;  %v10289_v63 = vcombine.low %v4839_v52, %v4843_v15  ;;  %v4281_v19 = vadd.f32 %v12179_v0, %v12189_v8 }
 0x349   : > { %7945 = vmatpush2.bf16.msra.mxu0 %v10449_v56  ;;  %7893 = vmatprep.subr.bf16.mxu1 %v10314_v16  ;;  %v4971_v57 = vld [vmem:[#allocation11 + $0x6a0] sm:$0xff]  ;;  %v4338_v56 = vadd.f32 %v4337_v34, %v4285_v38 }
 0x34a   : > { %7946 = vmatprep.subr.bf16.mxu0 %v10442_v21  ;;  %v10418_v62 = vcombine.high %v4967_v45, %v4971_v57  ;;  %v4831_v41 = vld [vmem:[#allocation11 + $0x240] sm:$0xff]  ;;  %v10417_v43 = vcombine.low %v4967_v45, %v4971_v57  ;;  %v4334_v25 = vadd.f32 %v12239_v23, %v4281_v19 }
 0x34b   : > { %v4835_v4 = vld [vmem:[#allocation11 + $0x260] sm:$0xff]  ;;  %v4391_v8 = vadd.f32 %v4390_v60, %v4338_v56 }
 0x34c   : > { %7894 = vmatpush2.bf16.msra.mxu1 %v10313_v12  ;;  %v4959_v2 = vld [vmem:[#allocation11 + $0x640] sm:$0xff]  ;;  %v10282_v40 = vcombine.high %v4831_v41, %v4835_v4  ;;  %v10281_v31 = vcombine.low %v4831_v41, %v4835_v4  ;;  %v4387_v11 = vadd.f32 %v12246_v33, %v4334_v25 }
 0x34d   : > { %7947 = vmatpush2.bf16.msra.mxu0 %v10441_v20  ;;  %7895 = vmatprep.subr.bf16.mxu1 %v10306_v30  ;;  %v4963_v3 = vld [vmem:[#allocation11 + $0x660] sm:$0xff]  ;;  %v4738_v22 = vmax.f32 %v4391_v8, 0.0  ;;  %v12278_v8 = vld [vmem:[#allocation11 + $0x5e8] sm:$0xff] }
 0x34e   : > { %7948 = vmatprep.subr.bf16.mxu0 %v10434_v18  ;;  %v10410_v55 = vcombine.high %v4959_v2, %v4963_v3  ;;  %v4823_v14 = vld [vmem:[#allocation11 + $0x200] sm:$0xff]  ;;  %v10409_v29 = vcombine.low %v4959_v2, %v4963_v3  ;;  %v4730_v15 = vmax.f32 %v4387_v11, 0.0 }
 0x34f   : > { %v4827_v6 = vld [vmem:[#allocation11 + $0x220] sm:$0xff] }
 0x350   : > { %7896 = vmatpush2.bf16.msra.mxu1 %v10305_v5  ;;  %v4951_v16 = vld [vmem:[#allocation11 + $0x600] sm:$0xff]  ;;  %v10274_v58 = vcombine.high %v4823_v14, %v4827_v6  ;;  %v10273_v27 = vcombine.low %v4823_v14, %v4827_v6 }
 0x351   : > { %7949 = vmatpush2.bf16.msra.mxu0 %v10433_v26  ;;  %7897 = vmatprep.subr.bf16.mxu1 %v10298_v37  ;;  %v4955_v21 = vld [vmem:[#allocation11 + $0x620] sm:$0xff]  ;;  %v4728_v37 = vmax.f32 %v12161_v10, 0.0 }
 0x352   : > { %7950 = vmatprep.subr.bf16.mxu0 %v10426_v59  ;;  %v10402_v12 = vcombine.high %v4951_v16, %v4955_v21  ;;  %v5071_v20 = vld [vmem:[#allocation11 + $0x9c0] sm:$0xff]  ;;  %v10401_v23 = vcombine.low %v4951_v16, %v4955_v21 }
 0x353   : > { %v5075_v0 = vld [vmem:[#allocation11 + $0x9e0] sm:$0xff]  ;;  %v12266_v33 = vpack.c.bf16 %v4736_v35, %v4728_v37 }
 0x354   : > { %7898 = vmatpush2.bf16.msra.mxu1 %v10297_v61  ;;  %v5199_v30 = vld [vmem:[#allocation11 + $0xdc0] sm:$0xff]  ;;  %v10522_v39 = vcombine.high %v5071_v20, %v5075_v0  ;;  %v10521_v45 = vcombine.low %v5071_v20, %v5075_v0  ;;  %v12276_v0 = vld [vmem:[#allocation11 + $0x5c8] sm:$0xff] }
 0x355   : > { %7951 = vmatpush2.bf16.msra.mxu0 %v10425_v54  ;;  %7899 = vmatprep.subr.bf16.mxu1 %v10290_v17  ;;  %v5203_v18 = vld [vmem:[#allocation11 + $0xde0] sm:$0xff]  ;;  %v12268_v54 = vpack.c.bf16 %v4738_v22, %v4730_v15  ;;  %v10395_v11 = vcombine.low %v12276_v0, %v12278_v8 }
 0x356   : > { %7952 = vmatprep.subr.bf16.mxu0 %v10418_v62  ;;  %v10650_v28 = vcombine.high %v5199_v30, %v5203_v18  ;;  %v5063_v5 = vld [vmem:[#allocation11 + $0x980] sm:$0xff]  ;;  %v10649_v61 = vcombine.low %v5199_v30, %v5203_v18 }
 0x357   : > { %v5067_v26 = vld [vmem:[#allocation11 + $0x9a0] sm:$0xff] }
 0x358   : > { %7900 = vmatpush2.bf16.msra.mxu1 %v10289_v63  ;;  %v5191_v59 = vld [vmem:[#allocation11 + $0xd80] sm:$0xff]  ;;  %v10514_v57 = vcombine.high %v5063_v5, %v5067_v26  ;;  %v10513_v2 = vcombine.low %v5063_v5, %v5067_v26 }
 0x359   : > { %7953 = vmatpush2.bf16.msra.mxu0 %v10417_v43  ;;  %7901 = vmatprep.subr.bf16.mxu1 %v10282_v40  ;;  %v5195_v52 = vld [vmem:[#allocation11 + $0xda0] sm:$0xff] }
 0x35a   : > { %7954 = vmatprep.subr.bf16.mxu0 %v10410_v55  ;;  %v5055_v17 = vld [vmem:[#allocation11 + $0x940] sm:$0xff]  ;;  %v10642_v41 = vcombine.high %v5191_v59, %v5195_v52  ;;  %v10641_v34 = vcombine.low %v5191_v59, %v5195_v52 }
 0x35b   : > { %v5059_v62 = vld [vmem:[#allocation11 + $0x960] sm:$0xff] }
 0x35c   : > { %7902 = vmatpush2.bf16.msra.mxu1 %v10281_v31  ;;  %v5183_v10 = vld [vmem:[#allocation11 + $0xd40] sm:$0xff]  ;;  %v10506_v3 = vcombine.high %v5055_v17, %v5059_v62  ;;  %v10505_v55 = vcombine.low %v5055_v17, %v5059_v62 }
 0x35d   : > { %7955 = vmatpush2.bf16.msra.mxu0 %v10409_v29  ;;  %7903 = vmatprep.subr.bf16.mxu1 %v10274_v58  ;;  %v5187_v4 = vld [vmem:[#allocation11 + $0xd60] sm:$0xff] }
 0x35e   : > { %7956 = vmatprep.subr.bf16.mxu0 %v10402_v12  ;;  %v5047_v63 = vld [vmem:[#allocation11 + $0x900] sm:$0xff]  ;;  %v10634_v43 = vcombine.high %v5183_v10, %v5187_v4  ;;  %v10633_v6 = vcombine.low %v5183_v10, %v5187_v4 }
 0x35f   : > { %v5051_v38 = vld [vmem:[#allocation11 + $0x920] sm:$0xff] }
 0x360   : > { %7904 = vmatpush2.bf16.msra.mxu1 %v10273_v27  ;;  %v5175_v40 = vld [vmem:[#allocation11 + $0xd00] sm:$0xff]  ;;  %v10498_v14 = vcombine.high %v5047_v63, %v5051_v38  ;;  %v10497_v31 = vcombine.low %v5047_v63, %v5051_v38 }
 0x361   : > { %7957 = vmatpush2.bf16.msra.mxu0 %v10401_v23  ;;  %7979 = vmatprep.subr.bf16.mxu1 %v10522_v39  ;;  %v5179_v42 = vld [vmem:[#allocation11 + $0xd20] sm:$0xff] }
 0x362   : > { %8032 = vmatprep.subr.bf16.mxu0 %v10650_v28  ;;  %v5039_v19 = vld [vmem:[#allocation11 + $0x8c0] sm:$0xff]  ;;  %v10626_v16 = vcombine.high %v5175_v40, %v5179_v42  ;;  %v10625_v29 = vcombine.low %v5175_v40, %v5179_v42 }
 0x363   : > { %7906 = vmatmul.mubr.bf16.vlgmr.msra.gmra.mxu1 %v12154_v1  ;;  %v5043_v56 = vld [vmem:[#allocation11 + $0x8e0] sm:$0xff] }
 0x364   : > { %7959 = vmatmul.mubr.bf16.vlgmr.msra.gmra.mxu0 %v12243_v47  ;;  %7915 = vmatprep.mubr.bf16.mxu1 %v12266_v33  ;;  %v5167_v21 = vld [vmem:[#allocation11 + $0xcc0] sm:$0xff]  ;;  %v10490_v25 = vcombine.high %v5039_v19, %v5043_v56  ;;  %v10489_v30 = vcombine.low %v5039_v19, %v5043_v56 }
 0x365   : > { %7968 = vmatprep.mubr.bf16.mxu0 %v12268_v54  ;;  %7980 = vmatpush1.bf16.msra.mxu1 %v10521_v45  ;;  %v5171_v9 = vld [vmem:[#allocation11 + $0xce0] sm:$0xff] }
 0x366   : > { %7981 = vmatprep.subr.bf16.mxu1 %v10514_v57  ;;  %8033 = vmatpush1.bf16.msra.mxu0 %v10649_v61  ;;  %v5031_v58 = vld [vmem:[#allocation11 + $0x880] sm:$0xff]  ;;  %v10618_v60 = vcombine.high %v5167_v21, %v5171_v9  ;;  %v10617_v27 = vcombine.low %v5167_v21, %v5171_v9 }
 0x367   : > { %8034 = vmatprep.subr.bf16.mxu0 %v10642_v41  ;;  %v5035_v51 = vld [vmem:[#allocation11 + $0x8a0] sm:$0xff] }
 0x368   : > { %v5159_v12 = vld [vmem:[#allocation11 + $0xc80] sm:$0xff]  ;;  %v10482_v18 = vcombine.high %v5031_v58, %v5035_v51  ;;  %v10481_v5 = vcombine.low %v5031_v58, %v5035_v51 }
 0x369   : > { %7982 = vmatpush1.bf16.msra.mxu1 %v10513_v2  ;;  %v5163_v20 = vld [vmem:[#allocation11 + $0xca0] sm:$0xff] }
 0x36a   : > { %7983 = vmatprep.subr.bf16.mxu1 %v10506_v3  ;;  %8035 = vmatpush1.bf16.msra.mxu0 %v10641_v34  ;;  %v5023_v23 = vld [vmem:[#allocation11 + $0x840] sm:$0xff]  ;;  %v10610_v35 = vcombine.high %v5159_v12, %v5163_v20  ;;  %v10609_v37 = vcombine.low %v5159_v12, %v5163_v20 }
 0x36b   : > { %7916 = vmatmul.mubr.bf16.gmra.mxu1 %v12165_v13  ;;  %8036 = vmatprep.subr.bf16.mxu0 %v10634_v43  ;;  %v5027_v39 = vld [vmem:[#allocation11 + $0x860] sm:$0xff] }
 0x36c   : > { %7969 = vmatmul.mubr.bf16.gmra.mxu0 %v12253_v53  ;;  %v5151_v28 = vld [vmem:[#allocation11 + $0xc40] sm:$0xff]  ;;  %v10474_v26 = vcombine.high %v5023_v23, %v5027_v39  ;;  %v10473_v61 = vcombine.low %v5023_v23, %v5027_v39 }
 0x36d   : > { %7984 = vmatpush1.bf16.msra.mxu1 %v10505_v55  ;;  %v5155_v22 = vld [vmem:[#allocation11 + $0xc60] sm:$0xff] }
 0x36e   : > { %7985 = vmatprep.subr.bf16.mxu1 %v10498_v14  ;;  %8037 = vmatpush1.bf16.msra.mxu0 %v10633_v6  ;;  %v5015_v59 = vld [vmem:[#allocation11 + $0x800] sm:$0xff]  ;;  %v10602_v15 = vcombine.high %v5151_v28, %v5155_v22  ;;  %v10601_v62 = vcombine.low %v5151_v28, %v5155_v22 }
 0x36f   : > { %8038 = vmatprep.subr.bf16.mxu0 %v10626_v16  ;;  %v5019_v52 = vld [vmem:[#allocation11 + $0x820] sm:$0xff]  ;;  %v12282_v16 = vpop.f32.mrf.mxu1 }
 0x370   : > { %v5143_v45 = vld [vmem:[#allocation11 + $0xc00] sm:$0xff]  ;;  %v10466_v17 = vcombine.high %v5015_v59, %v5019_v52  ;;  %v10465_v34 = vcombine.low %v5015_v59, %v5019_v52 }
 0x371   : > { %7986 = vmatpush1.bf16.msra.mxu1 %v10497_v31  ;;  %v5147_v57 = vld [vmem:[#allocation11 + $0xc20] sm:$0xff]  ;;  %v12284_v12 = vpop.f32.mrf.mxu1 }
 0x372   : > { %7987 = vmatprep.subr.bf16.mxu1 %v10490_v25  ;;  %8039 = vmatpush1.bf16.msra.mxu0 %v10625_v29  ;;  %v5135_v41 = vld [vmem:[#allocation11 + $0xbc0] sm:$0xff]  ;;  %v10594_v4 = vcombine.high %v5143_v45, %v5147_v57  ;;  %v10593_v38 = vcombine.low %v5143_v45, %v5147_v57 }
 0x373   : > { %8040 = vmatprep.subr.bf16.mxu0 %v10618_v60  ;;  %v5139_v10 = vld [vmem:[#allocation11 + $0xbe0] sm:$0xff]  ;;  %v12286_v22 = vpop.f32.mrf.mxu1 }
 0x374   : > { %v5263_v2 = vld [vmem:[#allocation11 + $0xfc0] sm:$0xff]  ;;  %v10586_v63 = vcombine.high %v5135_v41, %v5139_v10  ;;  %v10585_v6 = vcombine.low %v5135_v41, %v5139_v10 }
 0x375   : > { %7988 = vmatpush1.bf16.msra.mxu1 %v10489_v30  ;;  %v5267_v3 = vld [vmem:[#allocation11 + $0xfe0] sm:$0xff] }
 0x376   : > { %7989 = vmatprep.subr.bf16.mxu1 %v10482_v18  ;;  %8041 = vmatpush1.bf16.msra.mxu0 %v10617_v27  ;;  %v5127_v43 = vld [vmem:[#allocation11 + $0xb80] sm:$0xff]  ;;  %v10714_v42 = vcombine.high %v5263_v2, %v5267_v3  ;;  %v10713_v56 = vcombine.low %v5263_v2, %v5267_v3  ;;  %v12290_v2 = vpop.f32.mrf.mxu0 }
 0x377   : > { %8042 = vmatprep.subr.bf16.mxu0 %v10610_v35  ;;  %v5131_v40 = vld [vmem:[#allocation11 + $0xba0] sm:$0xff] }
 0x378   : > { %v5255_v55 = vld [vmem:[#allocation11 + $0xf80] sm:$0xff]  ;;  %v10578_v19 = vcombine.high %v5127_v43, %v5131_v40  ;;  %v10577_v58 = vcombine.low %v5127_v43, %v5131_v40 }
 0x379   : > { %7990 = vmatpush1.bf16.msra.mxu1 %v10481_v5  ;;  %v5259_v14 = vld [vmem:[#allocation11 + $0xfa0] sm:$0xff] }
 0x37a   : > { %7991 = vmatprep.subr.bf16.mxu1 %v10474_v26  ;;  %8043 = vmatpush1.bf16.msra.mxu0 %v10609_v37  ;;  %v5119_v21 = vld [vmem:[#allocation11 + $0xb40] sm:$0xff]  ;;  %v10706_v31 = vcombine.high %v5255_v55, %v5259_v14  ;;  %v10705_v60 = vcombine.low %v5255_v55, %v5259_v14 }
 0x37b   : > { %8044 = vmatprep.subr.bf16.mxu0 %v10602_v15  ;;  %v5123_v9 = vld [vmem:[#allocation11 + $0xb60] sm:$0xff] }
 0x37c   : > { %v5247_v25 = vld [vmem:[#allocation11 + $0xf40] sm:$0xff]  ;;  %v10570_v51 = vcombine.high %v5119_v21, %v5123_v9  ;;  %v10569_v39 = vcombine.low %v5119_v21, %v5123_v9 }
 0x37d   : > { %7992 = vmatpush1.bf16.msra.mxu1 %v10473_v61  ;;  %v5251_v29 = vld [vmem:[#allocation11 + $0xf60] sm:$0xff]  ;;  %v12288_v61 = vpop.f32.mrf.mxu1 }
 0x37e   : > { %7993 = vmatprep.subr.bf16.mxu1 %v10466_v17  ;;  %8045 = vmatpush1.bf16.msra.mxu0 %v10601_v62  ;;  %v5111_v20 = vld [vmem:[#allocation11 + $0xb00] sm:$0xff]  ;;  %v10698_v18 = vcombine.high %v5247_v25, %v5251_v29  ;;  %v10697_v28 = vcombine.low %v5247_v25, %v5251_v29 }
 0x37f   : > { %8046 = vmatprep.subr.bf16.mxu0 %v10594_v4  ;;  %v5115_v30 = vld [vmem:[#allocation11 + $0xb20] sm:$0xff] }
 0x380   : > { %v5239_v27 = vld [vmem:[#allocation11 + $0xf00] sm:$0xff]  ;;  %v10562_v35 = vcombine.high %v5111_v20, %v5115_v30  ;;  %v10561_v15 = vcombine.low %v5111_v20, %v5115_v30 }
 0x381   : > { %7994 = vmatpush1.bf16.msra.mxu1 %v10465_v34  ;;  %v5243_v23 = vld [vmem:[#allocation11 + $0xf20] sm:$0xff] }
 0x382   : > { %7995 = vmatprep.subr.bf16.mxu1 %v10586_v63  ;;  %8047 = vmatpush1.bf16.msra.mxu0 %v10593_v38  ;;  %v5103_v5 = vld [vmem:[#allocation11 + $0xac0] sm:$0xff]  ;;  %v10690_v37 = vcombine.high %v5239_v27, %v5243_v23  ;;  %v10689_v57 = vcombine.low %v5239_v27, %v5243_v23  ;;  %v12292_v38 = vpop.f32.mrf.mxu1  ;;  %v12294_v23 = vld [vmem:[#allocation11 + $0x1c8] sm:$0xff] }
 0x383   : > { %8048 = vmatprep.subr.bf16.mxu0 %v10714_v42  ;;  %v5107_v26 = vld [vmem:[#allocation11 + $0xae0] sm:$0xff] }
 0x384   : > { %v5231_v59 = vld [vmem:[#allocation11 + $0xec0] sm:$0xff]  ;;  %v10554_v45 = vcombine.high %v5103_v5, %v5107_v26  ;;  %v10553_v3 = vcombine.low %v5103_v5, %v5107_v26  ;;  %v4439_v9 = vpop.f32.mrf.mxu1 }
 0x385   : > { %7996 = vmatpush2.bf16.msra.mxu1 %v10585_v6  ;;  %v5235_v52 = vld [vmem:[#allocation11 + $0xee0] sm:$0xff]  ;;  %v4482_v6 = vpop.f32.mrf.mxu0 }
 0x386   : > { %7997 = vmatprep.subr.bf16.mxu1 %v10578_v19  ;;  %8049 = vmatpush2.bf16.msra.mxu0 %v10713_v56  ;;  %v5095_v17 = vld [vmem:[#allocation11 + $0xa80] sm:$0xff]  ;;  %v10682_v41 = vcombine.high %v5231_v59, %v5235_v52  ;;  %v10681_v63 = vcombine.low %v5231_v59, %v5235_v52  ;;  %v4441_v27 = vpop.f32.mrf.mxu1 }
 0x387   : > { %8050 = vmatprep.subr.bf16.mxu0 %v10706_v31  ;;  %v5099_v62 = vld [vmem:[#allocation11 + $0xaa0] sm:$0xff] }
 0x388   : > { %v5223_v10 = vld [vmem:[#allocation11 + $0xe80] sm:$0xff]  ;;  %v10546_v34 = vcombine.high %v5095_v17, %v5099_v62  ;;  %v10545_v19 = vcombine.low %v5095_v17, %v5099_v62 }
 0x389   : > { %7998 = vmatpush2.bf16.msra.mxu1 %v10577_v58  ;;  %v5227_v4 = vld [vmem:[#allocation11 + $0xea0] sm:$0xff] }
 0x38a   : > { %7999 = vmatprep.subr.bf16.mxu1 %v10570_v51  ;;  %8051 = vmatpush2.bf16.msra.mxu0 %v10705_v60  ;;  %v5087_v43 = vld [vmem:[#allocation11 + $0xa40] sm:$0xff]  ;;  %v10674_v42 = vcombine.high %v5223_v10, %v5227_v4  ;;  %v10673_v21 = vcombine.low %v5223_v10, %v5227_v4  ;;  %v4484_v60 = vpop.f32.mrf.mxu0 }
 0x38b   : > { %8052 = vmatprep.subr.bf16.mxu0 %v10698_v18  ;;  %v5091_v40 = vld [vmem:[#allocation11 + $0xa60] sm:$0xff] }
 0x38c   : > { %v5215_v55 = vld [vmem:[#allocation11 + $0xe40] sm:$0xff]  ;;  %v10538_v56 = vcombine.high %v5087_v43, %v5091_v40  ;;  %v10537_v20 = vcombine.low %v5087_v43, %v5091_v40 }
 0x38d   : > { %8000 = vmatpush2.bf16.msra.mxu1 %v10569_v39  ;;  %v5219_v14 = vld [vmem:[#allocation11 + $0xe60] sm:$0xff]  ;;  %v12296_v39 = vld [vmem:[#allocation11 + $0x1e8] sm:$0xff] }
 0x38e   : > { %8001 = vmatprep.subr.bf16.mxu1 %v10562_v35  ;;  %8053 = vmatpush2.bf16.msra.mxu0 %v10697_v28  ;;  %v5079_v31 = vld [vmem:[#allocation11 + $0xa00] sm:$0xff]  ;;  %v10666_v29 = vcombine.high %v5215_v55, %v5219_v14  ;;  %v10665_v18 = vcombine.low %v5215_v55, %v5219_v14  ;;  %v12298_v28 = vld [vmem:[#allocation10] sm:$0xff]  ;;  %v10268_v52 = vcombine.high %v12294_v23, %v12296_v39 }
 0x38f   : > { %8054 = vmatprep.subr.bf16.mxu0 %v10690_v37  ;;  %v5083_v25 = vld [vmem:[#allocation11 + $0xa20] sm:$0xff]  ;;  %v2138_v5 = vrot.slane %v12298_v28, %v12065_v24  ;;  %v2134_v26 = vrot.slane %v12298_v28, %v12068_v7  ;;  %v4486_v37 = vpop.f32.mrf.mxu0 }
 0x390   : > { %v5207_v58 = vld [vmem:[#allocation11 + $0xe00] sm:$0xff]  ;;  %v10530_v30 = vcombine.high %v5079_v31, %v5083_v25  ;;  %v10529_v59 = vcombine.low %v5079_v31, %v5083_v25 }
 0x391   : > { %8002 = vmatpush2.bf16.msra.mxu1 %v10561_v15  ;;  %v5211_v51 = vld [vmem:[#allocation11 + $0xe20] sm:$0xff]  ;;  %v4430_v17 = vadd.f32 %v12284_v12, %v2138_v5  ;;  %v4432_v62 = vadd.f32 %v12286_v22, %v2134_v26  ;;  %v4490_v10 = vpop.f32.mrf.mxu0 }
 0x392   : > { %8003 = vmatprep.subr.bf16.mxu1 %v10554_v45  ;;  %8055 = vmatpush2.bf16.msra.mxu0 %v10689_v57  ;;  %v10658_v35 = vcombine.high %v5207_v58, %v5211_v51  ;;  %v10657_v15 = vcombine.low %v5207_v58, %v5211_v51  ;;  %v4443_v45 = vpop.f32.mrf.mxu1  ;;  %v10396_v57 = vcombine.high %v12276_v0, %v12278_v8 }
 0x393   : > { %8056 = vmatprep.subr.bf16.mxu0 %v10682_v41  ;;  %v4428_v41 = vadd.f32 %v12282_v16, %v2134_v26  ;;  %v4485_v43 = vadd.f32 %v4484_v60, %v4432_v62  ;;  %v4444_v51 = vadd.f32 %v4443_v45, %v2138_v5  ;;  %v4804_v62 = vld [vmem:[#allocation11 + $0x168] sm:$0xff] }
 0x395   : > { %8004 = vmatpush2.bf16.msra.mxu1 %v10553_v3  ;;  %v4434_v3 = vadd.f32 %v12288_v61, %v2138_v5  ;;  %v4481_v40 = vadd.f32 %v12290_v2, %v4428_v41  ;;  %v4438_v61 = vadd.f32 %v12292_v38, %v2134_v26  ;;  %v4812_v2 = vld [vmem:[#allocation11 + $0x1a8] sm:$0xff] }
 0x396   : > { %8005 = vmatprep.subr.bf16.mxu1 %v10546_v34  ;;  %8057 = vmatpush2.bf16.msra.mxu0 %v10681_v63  ;;  %v4483_v63 = vadd.f32 %v4482_v6, %v4430_v17  ;;  %v4800_v17 = vld [vmem:[#allocation11 + $0x148] sm:$0xff] }
 0x397   : > { %8058 = vmatprep.subr.bf16.mxu0 %v10674_v42  ;;  %v4492_v42 = vpop.f32.mrf.mxu0  ;;  %v4487_v12 = vadd.f32 %v4486_v37, %v4434_v3 }
 0x399   : > { %8006 = vmatpush2.bf16.msra.mxu1 %v10545_v19  ;;  %v4494_v25 = vpop.f32.mrf.mxu0 }
 0x39a   : > { %8007 = vmatprep.subr.bf16.mxu1 %v10538_v56  ;;  %8059 = vmatpush2.bf16.msra.mxu0 %v10673_v21  ;;  %v4440_v56 = vadd.f32 %v4439_v9, %v2138_v5  ;;  %v4442_v21 = vadd.f32 %v4441_v27, %v2134_v26  ;;  %v10267_v9 = vcombine.low %v12294_v23, %v12296_v39 }
 0x39b   : > { %8060 = vmatprep.subr.bf16.mxu0 %v10666_v29  ;;  %v4491_v27 = vadd.f32 %v4490_v10, %v4438_v61  ;;  %v10252_v10 = vcombine.high %v4800_v17, %v4804_v62  ;;  %v4780_v61 = vld [vmem:[#allocation11 + $0xa8] sm:$0xff] }
 0x39c   : > { %v4495_v37 = vadd.f32 %v4494_v25, %v4442_v21 }
 0x39d   : > { %8008 = vmatpush2.bf16.msra.mxu1 %v10537_v20  ;;  %v4808_v20 = vld [vmem:[#allocation11 + $0x188] sm:$0xff] }
 0x39e   : > { %8009 = vmatprep.subr.bf16.mxu1 %v10530_v30  ;;  %8061 = vmatpush2.bf16.msra.mxu0 %v10665_v18  ;;  %v10259_v23 = vcombine.low %v4808_v20, %v4812_v2 }
 0x39f   : > { %8062 = vmatprep.subr.bf16.mxu0 %v10658_v35  ;;  %v4493_v35 = vadd.f32 %v4492_v42, %v4440_v56 }
 0x3a1   : > { %v4533_v4 = vpop.f32.mrf.mxu1  ;;  %8010 = vmatpush2.bf16.msra.mxu1 %v10529_v59 }
 0x3a2   : > { %8085 = vmatprep.subr.bf16.mxu1 %v10268_v52  ;;  %8063 = vmatpush2.bf16.msra.mxu0 %v10657_v15  ;;  %v4534_v19 = vadd.f32 %v4533_v4, %v4481_v40  ;;  %v4496_v52 = vpop.f32.mrf.mxu0  ;;  %v10260_v15 = vcombine.high %v4808_v20, %v4812_v2  ;;  %v4796_v40 = vld [vmem:[#allocation11 + $0x128] sm:$0xff] }
 0x3a3   : > { %v4535_v34 = vpop.f32.mrf.mxu1  ;;  %8138 = vmatprep.subr.bf16.mxu0 %v10396_v57  ;;  %v4497_v5 = vadd.f32 %v4496_v52, %v4444_v51  ;;  %v4772_v51 = vld [vmem:[#allocation11 + $0x68] sm:$0xff] }
 0x3a4   : > { %v4536_v14 = vadd.f32 %v4535_v34, %v4483_v63  ;;  %v4715_v30 = vmax.f32 %v4534_v19, 0.0  ;;  %v4784_v19 = vld [vmem:[#allocation11 + $0xc8] sm:$0xff] }
 0x3a5   : > { %v4537_v55 = vpop.f32.mrf.mxu1  ;;  %v4760_v20 = vld [vmem:[#allocation11 + $0x8] sm:$0xff] }
 0x3a6   : > { %v4538_v22 = vadd.f32 %v4537_v55, %v4485_v43  ;;  %v4716_v6 = vmax.f32 %v4536_v14, 0.0  ;;  %v4792_v43 = vld [vmem:[#allocation11 + $0x108] sm:$0xff] }
 0x3a7   : > { %v4539_v16 = vpop.f32.mrf.mxu1  ;;  %v10243_v56 = vcombine.low %v4792_v43, %v4796_v40  ;;  %v4764_v2 = vld [vmem:[#allocation11 + $0x28] sm:$0xff] }
 0x3a8   : > { %v4540_v31 = vadd.f32 %v4539_v16, %v4487_v12  ;;  %v4723_v29 = vmax.f32 %v4538_v22, 0.0  ;;  %v10251_v12 = vcombine.low %v4800_v17, %v4804_v62  ;;  %v10244_v22 = vcombine.high %v4792_v43, %v4796_v40  ;;  %v4788_v16 = vld [vmem:[#allocation11 + $0xe8] sm:$0xff] }
 0x3a9   : > { %v4543_v58 = vpop.f32.mrf.mxu1  ;;  %v10236_v21 = vcombine.high %v4784_v19, %v4788_v16  ;;  %v10235_v25 = vcombine.low %v4784_v19, %v4788_v16  ;;  %v4864_v62 = vld [vmem:[#allocation11 + $0x348] sm:$0xff] }
 0x3aa   : > { %v4724_v60 = vmax.f32 %v4540_v31, 0.0  ;;  %v12318_v38 = vpack.c.bf16 %v4723_v29, %v4715_v30  ;;  %v4544_v41 = vadd.f32 %v4543_v58, %v4491_v27  ;;  %v4776_v31 = vld [vmem:[#allocation11 + $0x88] sm:$0xff]  ;;  %v10211_v27 = vcombine.low %v4760_v20, %v4764_v2 }
 0x3ab   : > { %v4545_v18 = vpop.f32.mrf.mxu1  ;;  %v10228_v29 = vcombine.high %v4776_v31, %v4780_v61  ;;  %v4768_v58 = vld [vmem:[#allocation11 + $0x48] sm:$0xff] }
 0x3ac   : > { %v12314_v59 = vpack.c.bf16 %v4724_v60, %v4716_v6  ;;  %v4546_v45 = vadd.f32 %v4545_v18, %v4493_v35  ;;  %v4731_v42 = vmax.f32 %v4544_v41, 0.0  ;;  %v10227_v6 = vcombine.low %v4776_v31, %v4780_v61  ;;  %v4586_v18 = vpop.f32.mrf.mxu0  ;;  %v4868_v41 = vld [vmem:[#allocation11 + $0x368] sm:$0xff] }
 0x3ad   : > { %v4547_v26 = vpop.f32.mrf.mxu1  ;;  %v10220_v60 = vcombine.high %v4768_v58, %v4772_v51  ;;  %v10219_v30 = vcombine.low %v4768_v58, %v4772_v51  ;;  %v10212_v35 = vcombine.high %v4760_v20, %v4764_v2  ;;  %v4848_v40 = vld [vmem:[#allocation11 + $0x2c8] sm:$0xff]  ;;  %v2141_v31 = vsub.s32 6, %v12003_v46 }
 0x3ae   : > { %v4548_v57 = vadd.f32 %v4547_v26, %v4495_v37  ;;  %8011 = vmatprep.mubr.bf16.mxu1 %v12314_v59  ;;  %v4732_v34 = vmax.f32 %v4546_v45, 0.0  ;;  %v4880_v37 = vld [vmem:[#allocation11 + $0x3c8] sm:$0xff]  ;;  %v4588_v52 = vpop.f32.mrf.mxu0 }
 0x3af   : > { %v4549_v4 = vpop.f32.mrf.mxu1  ;;  %8012 = vmatmul.mubr.bf16.vlgmr.msra.gmra.mxu1 %v12318_v38  ;;  %v4840_v16 = vld [vmem:[#allocation11 + $0x288] sm:$0xff] }
 0x3b0   : > { %v4550_v3 = vadd.f32 %v4549_v4, %v4497_v5  ;;  %8086 = vmatpush1.bf16.msra.mxu1 %v10267_v9  ;;  %v4739_v39 = vmax.f32 %v4548_v57, 0.0  ;;  %v4884_v9 = vld [vmem:[#allocation11 + $0x3e8] sm:$0xff]  ;;  %v4590_v57 = vpop.f32.mrf.mxu0 }
 0x3b1   : > { %8087 = vmatprep.subr.bf16.mxu1 %v10260_v15  ;;  %v10332_v26 = vcombine.high %v4880_v37, %v4884_v9  ;;  %v4872_v15 = vld [vmem:[#allocation11 + $0x388] sm:$0xff]  ;;  %v10331_v45 = vcombine.low %v4880_v37, %v4884_v9 }
 0x3b2   : > { %v4740_v63 = vmax.f32 %v4550_v3, 0.0  ;;  %v12324_v14 = vpack.c.bf16 %v4739_v39, %v4731_v42  ;;  %v4876_v5 = vld [vmem:[#allocation11 + $0x3a8] sm:$0xff]  ;;  %v4592_v3 = vpop.f32.mrf.mxu0 }
 0x3b3   : > { %v10324_v17 = vcombine.high %v4872_v15, %v4876_v5  ;;  %v10323_v4 = vcombine.low %v4872_v15, %v4876_v5  ;;  %v4856_v39 = vld [vmem:[#allocation11 + $0x308] sm:$0xff] }
 0x3b4   : > { %v12322_v55 = vpack.c.bf16 %v4740_v63, %v4732_v34  ;;  %8088 = vmatpush1.bf16.msra.mxu1 %v10259_v23  ;;  %v10316_v23 = vcombine.high %v4864_v62, %v4868_v41  ;;  %v10315_v34 = vcombine.low %v4864_v62, %v4868_v41  ;;  %v12329_v63 = vpop.f32.mrf.mxu0  ;;  %v4852_v42 = vld [vmem:[#allocation11 + $0x2e8] sm:$0xff] }
 0x3b5   : > { %8089 = vmatprep.subr.bf16.mxu1 %v10252_v10  ;;  %v4860_v10 = vld [vmem:[#allocation11 + $0x328] sm:$0xff]  ;;  %v10300_v19 = vcombine.high %v4848_v40, %v4852_v42  ;;  %v10299_v61 = vcombine.low %v4848_v40, %v4852_v42 }
 0x3b6   : > { %8021 = vmatprep.mubr.bf16.mxu1 %v12322_v55  ;;  %v10308_v43 = vcombine.high %v4856_v39, %v4860_v10  ;;  %v4832_v58 = vld [vmem:[#allocation11 + $0x248] sm:$0xff] }
 0x3b7   : > { %8022 = vmatmul.mubr.bf16.gmra.mxu1 %v12324_v14  ;;  %v4836_v51 = vld [vmem:[#allocation11 + $0x268] sm:$0xff] }
 0x3b8   : > { %8090 = vmatpush1.bf16.msra.mxu1 %v10251_v12  ;;  %8117 = vmatprep.mubr.bf16.mxu1 %v12237_v36  ;;  %v10307_v12 = vcombine.low %v4856_v39, %v4860_v10  ;;  %v4824_v37 = vld [vmem:[#allocation11 + $0x208] sm:$0xff] }
 0x3b9   : > { %8091 = vmatprep.subr.bf16.mxu1 %v10244_v22  ;;  %v4598_v22 = vpop.f32.mrf.mxu0  ;;  %v4828_v9 = vld [vmem:[#allocation11 + $0x228] sm:$0xff] }
 0x3ba   : > { %v5072_v39 = vld [vmem:[#allocation11 + $0x9c8] sm:$0xff] }
 0x3bb   : > { %v5076_v10 = vld [vmem:[#allocation11 + $0x9e8] sm:$0xff] }
 0x3bc   : > { %8092 = vmatpush1.bf16.msra.mxu1 %v10243_v56  ;;  %v4844_v56 = vld [vmem:[#allocation11 + $0x2a8] sm:$0xff] }
 0x3bd   : > { %8093 = vmatprep.subr.bf16.mxu1 %v10236_v21  ;;  %v2145_v21 = vsub.s32 7, %v12003_v46  ;;  %v10291_v20 = vcombine.low %v4840_v16, %v4844_v56 }
 0x3c0   : > { %8094 = vmatpush1.bf16.msra.mxu1 %v10235_v25  ;;  %v4600_v25 = vpop.f32.mrf.mxu0 }
 0x3c1   : > { %8095 = vmatprep.subr.bf16.mxu1 %v10228_v29  ;;  %v10292_v29 = vcombine.high %v4840_v16, %v4844_v56  ;;  %v5064_v56 = vld [vmem:[#allocation11 + $0x988] sm:$0xff] }
 0x3c2   : > { %v4602_v2 = vpop.f32.mrf.mxu0 }
 0x3c4   : > { %8096 = vmatpush1.bf16.msra.mxu1 %v10227_v6  ;;  %v12336_v6 = vrot.slane %v12298_v28, %v2145_v21 }
 0x3c5   : > { %8097 = vmatprep.subr.bf16.mxu1 %v10220_v60  ;;  %v2142_v60 = vrot.slane %v12298_v28, %v2141_v31  ;;  %v10276_v28 = vcombine.high %v4824_v37, %v4828_v9 }
 0x3c7   : > { %v4587_v15 = vadd.f32 %v4586_v18, %v2142_v60 }
 0x3c8   : > { %8098 = vmatpush1.bf16.msra.mxu1 %v10219_v30  ;;  %v10284_v30 = vcombine.high %v4832_v58, %v4836_v51 }
 0x3c9   : > { %8099 = vmatprep.subr.bf16.mxu1 %v10212_v35 }
 0x3cc   : > { %8100 = vmatpush1.bf16.msra.mxu1 %v10211_v27  ;;  %v4589_v27 = vadd.f32 %v4588_v52, %v12336_v6  ;;  %v10275_v52 = vcombine.low %v4824_v37, %v4828_v9  ;;  %v10523_v37 = vcombine.low %v5072_v39, %v5076_v10 }
 0x3cd   : > { %8101 = vmatprep.subr.bf16.mxu1 %v10332_v26 }
 0x3d0   : > { %8102 = vmatpush2.bf16.msra.mxu1 %v10331_v45  ;;  %v10283_v45 = vcombine.low %v4832_v58, %v4836_v51  ;;  %v4599_v51 = vadd.f32 %v4598_v22, %v12336_v6 }
 0x3d1   : > { %8103 = vmatprep.subr.bf16.mxu1 %v10324_v17  ;;  %v4591_v17 = vadd.f32 %v4590_v57, %v2142_v60  ;;  %v10524_v57 = vcombine.high %v5072_v39, %v5076_v10 }
 0x3d4   : > { %8104 = vmatpush2.bf16.msra.mxu1 %v10323_v4 }
 0x3d5   : > { %8105 = vmatprep.subr.bf16.mxu1 %v10316_v23 }
 0x3d8   : > { %8106 = vmatpush2.bf16.msra.mxu1 %v10315_v34  ;;  %v4593_v34 = vadd.f32 %v4592_v3, %v12336_v6  ;;  %v4597_v3 = vadd.f32 %v12329_v63, %v2142_v60  ;;  %v4603_v63 = vadd.f32 %v4602_v2, %v12336_v6 }
 0x3d9   : > { %8107 = vmatprep.subr.bf16.mxu1 %v10308_v43 }
 0x3dc   : > { %8108 = vmatpush2.bf16.msra.mxu1 %v10307_v12 }
 0x3dd   : > { %8109 = vmatprep.subr.bf16.mxu1 %v10300_v19 }
 0x3e0   : > { %8110 = vmatpush2.bf16.msra.mxu1 %v10299_v61  ;;  %v5068_v61 = vld [vmem:[#allocation11 + $0x9a8] sm:$0xff] }
 0x3e1   : > { %8111 = vmatprep.subr.bf16.mxu1 %v10292_v29  ;;  %v10516_v9 = vcombine.high %v5064_v56, %v5068_v61 }
 0x3e2   : > { %v4639_v35 = vpop.f32.mrf.mxu1 }
 0x3e3   : > { %v4692_v26 = vpop.f32.mrf.mxu0  ;;  %v4640_v4 = vadd.f32 %v4639_v35, %v4587_v15  ;;  %v4936_v15 = vld [vmem:[#allocation11 + $0x588] sm:$0xff] }
 0x3e4   : > { %v4641_v5 = vpop.f32.mrf.mxu1  ;;  %8112 = vmatpush2.bf16.msra.mxu1 %v10291_v20 }
 0x3e5   : > { %v4642_v62 = vadd.f32 %v4641_v5, %v4589_v27  ;;  %v4694_v41 = vpop.f32.mrf.mxu0  ;;  %8113 = vmatprep.subr.bf16.mxu1 %v10284_v30  ;;  %v4693_v29 = vadd.f32 %v4692_v26, %v4640_v4  ;;  %v4601_v5 = vadd.f32 %v4600_v25, %v2142_v60  ;;  %v4940_v26 = vld [vmem:[#allocation11 + $0x5a8] sm:$0xff]  ;;  %v10515_v25 = vcombine.low %v5064_v56, %v5068_v61 }
 0x3e6   : > { %v4643_v23 = vpop.f32.mrf.mxu1  ;;  %v5060_v4 = vld [vmem:[#allocation11 + $0x968] sm:$0xff]  ;;  %v10387_v61 = vcombine.low %v4936_v15, %v4940_v26 }
 0x3e7   : > { %v4644_v43 = vadd.f32 %v4643_v23, %v4591_v17  ;;  %v4696_v40 = vpop.f32.mrf.mxu0  ;;  %v4695_v18 = vadd.f32 %v4694_v41, %v4642_v62  ;;  %v4717_v22 = vmax.f32 %v4693_v29, 0.0  ;;  %v5048_v29 = vld [vmem:[#allocation11 + $0x908] sm:$0xff] }
 0x3e8   : > { %v4645_v42 = vpop.f32.mrf.mxu1  ;;  %8114 = vmatpush2.bf16.msra.mxu1 %v10283_v45 }
 0x3e9   : > { %v4697_v12 = vadd.f32 %v4696_v40, %v4644_v43  ;;  %v4646_v19 = vadd.f32 %v4645_v42, %v4593_v34  ;;  %v4698_v16 = vpop.f32.mrf.mxu0  ;;  %8115 = vmatprep.subr.bf16.mxu1 %v10276_v28  ;;  %v4718_v45 = vmax.f32 %v4695_v18, 0.0  ;;  %v5056_v28 = vld [vmem:[#allocation11 + $0x948] sm:$0xff]  ;;  %v10388_v42 = vcombine.high %v4936_v15, %v4940_v26 }
 0x3ea   : > { %v4649_v58 = vpop.f32.mrf.mxu1  ;;  %v4912_v26 = vld [vmem:[#allocation11 + $0x4c8] sm:$0xff] }
 0x3eb   : > { %v4699_v20 = vadd.f32 %v4698_v16, %v4646_v19  ;;  %v4702_v30 = vpop.f32.mrf.mxu0  ;;  %v4725_v35 = vmax.f32 %v4697_v12, 0.0  ;;  %v4650_v23 = vadd.f32 %v4649_v58, %v4597_v3  ;;  %v4928_v16 = vld [vmem:[#allocation11 + $0x548] sm:$0xff] }
 0x3ec   : > { %v4651_v27 = vpop.f32.mrf.mxu1  ;;  %8116 = vmatpush2.bf16.msra.mxu1 %v10275_v52  ;;  %v10508_v52 = vcombine.high %v5056_v28, %v5060_v4  ;;  %v5052_v58 = vld [vmem:[#allocation11 + $0x928] sm:$0xff] }
 0x3ed   : > { %v4726_v17 = vmax.f32 %v4699_v20, 0.0  ;;  %v4652_v62 = vadd.f32 %v4651_v27, %v4599_v51  ;;  %v4704_v41 = vpop.f32.mrf.mxu0  ;;  %8191 = vmatprep.subr.bf16.mxu1 %v10524_v57  ;;  %v12349_v60 = vpack.c.bf16 %v4725_v35, %v4717_v22  ;;  %v4703_v6 = vadd.f32 %v4702_v30, %v4650_v23  ;;  %v4932_v57 = vld [vmem:[#allocation11 + $0x568] sm:$0xff] }
 0x3ee   : > { %v4653_v34 = vpop.f32.mrf.mxu1  ;;  %v10507_v20 = vcombine.low %v5056_v28, %v5060_v4  ;;  %v10380_v30 = vcombine.high %v4928_v16, %v4932_v57  ;;  %v4920_v27 = vld [vmem:[#allocation11 + $0x508] sm:$0xff]  ;;  %v10379_v0 = vcombine.low %v4928_v16, %v4932_v57 }
 0x3ef   : > { %v12346_v43 = vpack.c.bf16 %v4726_v17, %v4718_v45  ;;  %v4654_v40 = vadd.f32 %v4653_v34, %v4601_v5  ;;  %v4706_v39 = vpop.f32.mrf.mxu0  ;;  %8118 = vmatmul.mubr.bf16.vlgmr.msra.gmra.mxu1 %v12154_v1  ;;  %v4705_v18 = vadd.f32 %v4704_v41, %v4652_v62  ;;  %v10500_v5 = vcombine.high %v5048_v29, %v5052_v58  ;;  %v5040_v45 = vld [vmem:[#allocation11 + $0x8c8] sm:$0xff] }
 0x3f0   : > { %v4655_v10 = vpop.f32.mrf.mxu1  ;;  %8127 = vmatprep.mubr.bf16.mxu1 %v12266_v33  ;;  %8192 = vmatpush1.bf16.msra.mxu1 %v10523_v37  ;;  %v4924_v37 = vld [vmem:[#allocation11 + $0x528] sm:$0xff] }
 0x3f1   : > { %v4707_v12 = vadd.f32 %v4706_v39, %v4654_v40  ;;  %v4656_v19 = vadd.f32 %v4655_v10, %v4603_v63  ;;  %8064 = vmatprep.mubr.bf16.mxu0 %v12346_v43  ;;  %8193 = vmatprep.subr.bf16.mxu1 %v10516_v9  ;;  %v4708_v2 = vpop.f32.mrf.mxu0  ;;  %v4734_v3 = vmax.f32 %v4705_v18, 0.0  ;;  %v4733_v9 = vmax.f32 %v4703_v6, 0.0  ;;  %v5044_v17 = vld [vmem:[#allocation11 + $0x8e8] sm:$0xff] }
 0x3f2   : > { %8065 = vmatmul.mubr.bf16.vlgmr.msra.gmra.mxu0 %v12349_v60  ;;  %v10372_v15 = vcombine.high %v4920_v27, %v4924_v37  ;;  %v10492_v41 = vcombine.high %v5040_v45, %v5044_v17  ;;  %v4916_v28 = vld [vmem:[#allocation11 + $0x4e8] sm:$0xff]  ;;  %v10371_v23 = vcombine.low %v4920_v27, %v4924_v37  ;;  %v10491_v34 = vcombine.low %v5040_v45, %v5044_v17 }
 0x3f3   : > { %v4709_v56 = vadd.f32 %v4708_v2, %v4656_v19  ;;  %8139 = vmatpush1.bf16.msra.mxu0 %v10395_v11  ;;  %v4741_v51 = vmax.f32 %v4707_v12, 0.0  ;;  %v10499_v11 = vcombine.low %v5048_v29, %v5052_v58  ;;  %v5032_v4 = vld [vmem:[#allocation11 + $0x888] sm:$0xff]  ;;  %v10364_v63 = vcombine.high %v4912_v26, %v4916_v28 }
 0x3f4   : > { %8194 = vmatpush1.bf16.msra.mxu1 %v10515_v25  ;;  %8140 = vmatprep.subr.bf16.mxu0 %v10388_v42  ;;  %v5036_v22 = vld [vmem:[#allocation11 + $0x8a8] sm:$0xff] }
 0x3f5   : > { %v4742_v35 = vmax.f32 %v4709_v56, 0.0  ;;  %8195 = vmatprep.subr.bf16.mxu1 %v10508_v52  ;;  %v12360_v8 = vpack.c.bf16 %v4741_v51, %v4733_v9  ;;  %v10484_v40 = vcombine.high %v5032_v4, %v5036_v22  ;;  %v4904_v39 = vld [vmem:[#allocation11 + $0x488] sm:$0xff]  ;;  %v10363_v52 = vcombine.low %v4912_v26, %v4916_v28 }
 0x3f6   : > { %v4908_v25 = vld [vmem:[#allocation11 + $0x4a8] sm:$0xff]  ;;  %v10483_v18 = vcombine.low %v5032_v4, %v5036_v22 }
 0x3f7   : > { %v12357_v62 = vpack.c.bf16 %v4742_v35, %v4734_v3  ;;  %8141 = vmatpush1.bf16.msra.mxu0 %v10387_v61  ;;  %8128 = vmatmul.mubr.bf16.gmra.mxu1 %v12165_v13  ;;  %v5024_v10 = vld [vmem:[#allocation11 + $0x848] sm:$0xff]  ;;  %v10356_v12 = vcombine.high %v4904_v39, %v4908_v25  ;;  %v10355_v56 = vcombine.low %v4904_v39, %v4908_v25 }
 0x3f8   : > { %8196 = vmatpush1.bf16.msra.mxu1 %v10507_v20  ;;  %8223 = vmatprep.mubr.bf16.mxu1 %v12314_v59  ;;  %v5028_v42 = vld [vmem:[#allocation11 + $0x868] sm:$0xff] }
 0x3f9   : > { %8074 = vmatprep.mubr.bf16.mxu0 %v12357_v62  ;;  %8142 = vmatprep.subr.bf16.mxu0 %v10380_v30  ;;  %v10476_v19 = vcombine.high %v5024_v10, %v5028_v42  ;;  %v4896_v6 = vld [vmem:[#allocation11 + $0x448] sm:$0xff]  ;;  %v10475_v61 = vcombine.low %v5024_v10, %v5028_v42 }
 0x3fa   : > { %8075 = vmatmul.mubr.bf16.gmra.mxu0 %v12360_v8  ;;  %8197 = vmatprep.subr.bf16.mxu1 %v10500_v5  ;;  %v4900_v2 = vld [vmem:[#allocation11 + $0x468] sm:$0xff] }
 0x3fb   : > { %8143 = vmatpush1.bf16.msra.mxu0 %v10379_v0  ;;  %8170 = vmatprep.mubr.bf16.mxu0 %v12250_v32  ;;  %v5016_v16 = vld [vmem:[#allocation11 + $0x808] sm:$0xff]  ;;  %v10348_v29 = vcombine.high %v4896_v6, %v4900_v2  ;;  %v10347_v30 = vcombine.low %v4896_v6, %v4900_v2 }
 0x3fc   : > { %8198 = vmatpush1.bf16.msra.mxu1 %v10499_v11  ;;  %8144 = vmatprep.subr.bf16.mxu0 %v10372_v15  ;;  %v5020_v57 = vld [vmem:[#allocation11 + $0x828] sm:$0xff] }
 0x3fd   : > { %8199 = vmatprep.subr.bf16.mxu1 %v10492_v41  ;;  %v10468_v58 = vcombine.high %v5016_v16, %v5020_v57  ;;  %v4888_v51 = vld [vmem:[#allocation11 + $0x408] sm:$0xff]  ;;  %v10467_v27 = vcombine.low %v5016_v16, %v5020_v57 }
 0x3fe   : > { %v4892_v20 = vld [vmem:[#allocation11 + $0x428] sm:$0xff] }
 0x3ff   : > { %8145 = vmatpush1.bf16.msra.mxu0 %v10371_v23  ;;  %v5136_v3 = vld [vmem:[#allocation11 + $0xbc8] sm:$0xff]  ;;  %v10340_v37 = vcombine.high %v4888_v51, %v4892_v20  ;;  %v10339_v11 = vcombine.low %v4888_v51, %v4892_v20 }
 0x400   : > { %8200 = vmatpush1.bf16.msra.mxu1 %v10491_v34  ;;  %8146 = vmatprep.subr.bf16.mxu0 %v10364_v63  ;;  %v5140_v35 = vld [vmem:[#allocation11 + $0xbe8] sm:$0xff] }
 0x401   : > { %8201 = vmatprep.subr.bf16.mxu1 %v10484_v40  ;;  %v10588_v9 = vcombine.high %v5136_v3, %v5140_v35  ;;  %v5008_v5 = vld [vmem:[#allocation11 + $0x7c8] sm:$0xff]  ;;  %v10587_v15 = vcombine.low %v5136_v3, %v5140_v35 }
 0x402   : > { %v5012_v45 = vld [vmem:[#allocation11 + $0x7e8] sm:$0xff] }
 0x403   : > { %8147 = vmatpush1.bf16.msra.mxu0 %v10363_v52  ;;  %v5128_v17 = vld [vmem:[#allocation11 + $0xb88] sm:$0xff]  ;;  %v10460_v41 = vcombine.high %v5008_v5, %v5012_v45  ;;  %v10459_v34 = vcombine.low %v5008_v5, %v5012_v45 }
 0x404   : > { %8202 = vmatpush1.bf16.msra.mxu1 %v10483_v18  ;;  %8148 = vmatprep.subr.bf16.mxu0 %v10356_v12  ;;  %v5132_v0 = vld [vmem:[#allocation11 + $0xba8] sm:$0xff] }
 0x405   : > { %8203 = vmatprep.subr.bf16.mxu1 %v10476_v19  ;;  %v10580_v26 = vcombine.high %v5128_v17, %v5132_v0  ;;  %v5000_v28 = vld [vmem:[#allocation11 + $0x788] sm:$0xff]  ;;  %v10579_v63 = vcombine.low %v5128_v17, %v5132_v0 }
 0x406   : > { %v5004_v4 = vld [vmem:[#allocation11 + $0x7a8] sm:$0xff] }
 0x407   : > { %8149 = vmatpush1.bf16.msra.mxu0 %v10355_v56  ;;  %v5120_v22 = vld [vmem:[#allocation11 + $0xb48] sm:$0xff]  ;;  %v10452_v40 = vcombine.high %v5000_v28, %v5004_v4  ;;  %v10451_v18 = vcombine.low %v5000_v28, %v5004_v4 }
 0x408   : > { %8204 = vmatpush1.bf16.msra.mxu1 %v10475_v61  ;;  %8150 = vmatprep.subr.bf16.mxu0 %v10348_v29  ;;  %v5124_v23 = vld [vmem:[#allocation11 + $0xb68] sm:$0xff] }
 0x409   : > { %8205 = vmatprep.subr.bf16.mxu1 %v10468_v58  ;;  %v10572_v39 = vcombine.high %v5120_v22, %v5124_v23  ;;  %v4992_v25 = vld [vmem:[#allocation11 + $0x748] sm:$0xff]  ;;  %v10571_v12 = vcombine.low %v5120_v22, %v5124_v23 }
 0x40a   : > { %v4996_v10 = vld [vmem:[#allocation11 + $0x768] sm:$0xff] }
 0x40b   : > { %8151 = vmatpush1.bf16.msra.mxu0 %v10347_v30  ;;  %v5112_v42 = vld [vmem:[#allocation11 + $0xb08] sm:$0xff]  ;;  %v10444_v19 = vcombine.high %v4992_v25, %v4996_v10  ;;  %v10443_v61 = vcombine.low %v4992_v25, %v4996_v10 }
 0x40c   : > { %8206 = vmatpush1.bf16.msra.mxu1 %v10467_v27  ;;  %8152 = vmatprep.subr.bf16.mxu0 %v10340_v37  ;;  %v5116_v52 = vld [vmem:[#allocation11 + $0xb28] sm:$0xff] }
 0x40d   : > { %8207 = vmatprep.subr.bf16.mxu1 %v10588_v9  ;;  %v10564_v6 = vcombine.high %v5112_v42, %v5116_v52  ;;  %v4984_v2 = vld [vmem:[#allocation11 + $0x708] sm:$0xff]  ;;  %v10563_v29 = vcombine.low %v5112_v42, %v5116_v52  ;;  %v4817_v52 = vld [vmem:[#allocation11 + $0x1d0] sm:$0xff] }
 0x40e   : > { %v4988_v16 = vld [vmem:[#allocation11 + $0x728] sm:$0xff] }
 0x40f   : > { %8153 = vmatpush1.bf16.msra.mxu0 %v10339_v11  ;;  %v5104_v57 = vld [vmem:[#allocation11 + $0xac8] sm:$0xff]  ;;  %v10436_v58 = vcombine.high %v4984_v2, %v4988_v16  ;;  %v10435_v27 = vcombine.low %v4984_v2, %v4988_v16 }
 0x410   : > { %8208 = vmatpush2.bf16.msra.mxu1 %v10587_v15  ;;  %8154 = vmatprep.subr.bf16.mxu0 %v10460_v41  ;;  %v5108_v56 = vld [vmem:[#allocation11 + $0xae8] sm:$0xff] }
 0x411   : > { %8209 = vmatprep.subr.bf16.mxu1 %v10580_v26  ;;  %v10556_v51 = vcombine.high %v5104_v57, %v5108_v56  ;;  %v4976_v20 = vld [vmem:[#allocation11 + $0x6c8] sm:$0xff]  ;;  %v10555_v37 = vcombine.low %v5104_v57, %v5108_v56  ;;  %v4809_v56 = vld [vmem:[#allocation11 + $0x190] sm:$0xff] }
 0x412   : > { %v4980_v3 = vld [vmem:[#allocation11 + $0x6e8] sm:$0xff] }
 0x413   : > { %8155 = vmatpush2.bf16.msra.mxu0 %v10459_v34  ;;  %v5096_v35 = vld [vmem:[#allocation11 + $0xa88] sm:$0xff]  ;;  %v10428_v9 = vcombine.high %v4976_v20, %v4980_v3  ;;  %v10427_v15 = vcombine.low %v4976_v20, %v4980_v3 }
 0x414   : > { %8210 = vmatpush2.bf16.msra.mxu1 %v10579_v63  ;;  %8156 = vmatprep.subr.bf16.mxu0 %v10452_v40  ;;  %v5100_v30 = vld [vmem:[#allocation11 + $0xaa8] sm:$0xff] }
 0x415   : > { %8211 = vmatprep.subr.bf16.mxu1 %v10572_v39  ;;  %v10548_v5 = vcombine.high %v5096_v35, %v5100_v30  ;;  %v4968_v45 = vld [vmem:[#allocation11 + $0x688] sm:$0xff]  ;;  %v10547_v41 = vcombine.low %v5096_v35, %v5100_v30  ;;  %v4801_v30 = vld [vmem:[#allocation11 + $0x150] sm:$0xff] }
 0x416   : > { %v4972_v17 = vld [vmem:[#allocation11 + $0x6a8] sm:$0xff] }
 0x417   : > { %8157 = vmatpush2.bf16.msra.mxu0 %v10451_v18  ;;  %v5088_v0 = vld [vmem:[#allocation11 + $0xa48] sm:$0xff]  ;;  %v10420_v26 = vcombine.high %v4968_v45, %v4972_v17  ;;  %v10419_v63 = vcombine.low %v4968_v45, %v4972_v17  ;;  %v4821_v18 = vld [vmem:[#allocation11 + $0x1f0] sm:$0xff] }
 0x418   : > { %8212 = vmatpush2.bf16.msra.mxu1 %v10571_v12  ;;  %8158 = vmatprep.subr.bf16.mxu0 %v10444_v19  ;;  %v5092_v11 = vld [vmem:[#allocation11 + $0xa68] sm:$0xff]  ;;  %v10270_v2 = vcombine.high %v4817_v52, %v4821_v18 }
 0x419   : > { %8213 = vmatprep.subr.bf16.mxu1 %v10564_v6  ;;  %v10540_v28 = vcombine.high %v5088_v0, %v5092_v11  ;;  %v4960_v4 = vld [vmem:[#allocation11 + $0x648] sm:$0xff]  ;;  %v10539_v40 = vcombine.low %v5088_v0, %v5092_v11  ;;  %v4793_v11 = vld [vmem:[#allocation11 + $0x110] sm:$0xff] }
 0x41a   : > { %v4964_v22 = vld [vmem:[#allocation11 + $0x668] sm:$0xff] }
 0x41b   : > { %8159 = vmatpush2.bf16.msra.mxu0 %v10443_v61  ;;  %v5080_v23 = vld [vmem:[#allocation11 + $0xa08] sm:$0xff]  ;;  %v10412_v39 = vcombine.high %v4960_v4, %v4964_v22  ;;  %v10411_v12 = vcombine.low %v4960_v4, %v4964_v22  ;;  %v4813_v61 = vld [vmem:[#allocation11 + $0x1b0] sm:$0xff] }
 0x41c   : > { %8214 = vmatpush2.bf16.msra.mxu1 %v10563_v29  ;;  %8160 = vmatprep.subr.bf16.mxu0 %v10436_v58  ;;  %v5084_v34 = vld [vmem:[#allocation11 + $0xa28] sm:$0xff]  ;;  %v10269_v58 = vcombine.low %v4817_v52, %v4821_v18  ;;  %v10262_v20 = vcombine.high %v4809_v56, %v4813_v61  ;;  %v4777_v18 = vld [vmem:[#allocation11 + $0x90] sm:$0xff] }
 0x41d   : > { %8215 = vmatprep.subr.bf16.mxu1 %v10556_v51  ;;  %v10532_v25 = vcombine.high %v5080_v23, %v5084_v34  ;;  %v4952_v10 = vld [vmem:[#allocation11 + $0x608] sm:$0xff]  ;;  %v10531_v19 = vcombine.low %v5080_v23, %v5084_v34  ;;  %v4785_v34 = vld [vmem:[#allocation11 + $0xd0] sm:$0xff] }
 0x41e   : > { %v4956_v42 = vld [vmem:[#allocation11 + $0x628] sm:$0xff] }
 0x41f   : > { %8161 = vmatpush2.bf16.msra.mxu0 %v10435_v27  ;;  %v10404_v6 = vcombine.high %v4952_v10, %v4956_v42  ;;  %v5200_v16 = vld [vmem:[#allocation11 + $0xdc8] sm:$0xff]  ;;  %v10403_v29 = vcombine.low %v4952_v10, %v4956_v42  ;;  %v4805_v27 = vld [vmem:[#allocation11 + $0x170] sm:$0xff] }
 0x420   : > { %8216 = vmatpush2.bf16.msra.mxu1 %v10555_v37  ;;  %8162 = vmatprep.subr.bf16.mxu0 %v10428_v9  ;;  %v5204_v57 = vld [vmem:[#allocation11 + $0xde8] sm:$0xff]  ;;  %v10261_v9 = vcombine.low %v4809_v56, %v4813_v61  ;;  %v10254_v45 = vcombine.high %v4801_v30, %v4805_v27  ;;  %v4769_v61 = vld [vmem:[#allocation11 + $0x50] sm:$0xff] }
 0x421   : > { %8217 = vmatprep.subr.bf16.mxu1 %v10548_v5  ;;  %v10652_v51 = vcombine.high %v5200_v16, %v5204_v57  ;;  %v5192_v3 = vld [vmem:[#allocation11 + $0xd88] sm:$0xff]  ;;  %v10651_v37 = vcombine.low %v5200_v16, %v5204_v57 }
 0x422   : > { %v5196_v35 = vld [vmem:[#allocation11 + $0xda8] sm:$0xff] }
 0x423   : > { %8163 = vmatpush2.bf16.msra.mxu0 %v10427_v15  ;;  %v10644_v5 = vcombine.high %v5192_v3, %v5196_v35  ;;  %v5184_v17 = vld [vmem:[#allocation11 + $0xd48] sm:$0xff]  ;;  %v4797_v15 = vld [vmem:[#allocation11 + $0x130] sm:$0xff] }
 0x424   : > { %8218 = vmatpush2.bf16.msra.mxu1 %v10547_v41  ;;  %8164 = vmatprep.subr.bf16.mxu0 %v10420_v26  ;;  %v5188_v0 = vld [vmem:[#allocation11 + $0xd68] sm:$0xff]  ;;  %v10643_v41 = vcombine.low %v5192_v3, %v5196_v35  ;;  %v10253_v26 = vcombine.low %v4801_v30, %v4805_v27  ;;  %v10246_v4 = vcombine.high %v4793_v11, %v4797_v15  ;;  %v4761_v27 = vld [vmem:[#allocation11 + $0x10] sm:$0xff] }
 0x425   : > { %8219 = vmatprep.subr.bf16.mxu1 %v10540_v28  ;;  %v10636_v28 = vcombine.high %v5184_v17, %v5188_v0  ;;  %v5176_v22 = vld [vmem:[#allocation11 + $0xd08] sm:$0xff] }
 0x426   : > { %v5180_v23 = vld [vmem:[#allocation11 + $0xd28] sm:$0xff] }
 0x427   : > { %8165 = vmatpush2.bf16.msra.mxu0 %v10419_v63  ;;  %v4789_v63 = vld [vmem:[#allocation11 + $0xf0] sm:$0xff]  ;;  %v5168_v42 = vld [vmem:[#allocation11 + $0xcc8] sm:$0xff] }
 0x428   : > { %8220 = vmatpush2.bf16.msra.mxu1 %v10539_v40  ;;  %8166 = vmatprep.subr.bf16.mxu0 %v10412_v39  ;;  %v10635_v40 = vcombine.low %v5184_v17, %v5188_v0  ;;  %v10245_v39 = vcombine.low %v4793_v11, %v4797_v15  ;;  %v10238_v10 = vcombine.high %v4785_v34, %v4789_v63  ;;  %v5172_v52 = vld [vmem:[#allocation11 + $0xce8] sm:$0xff]  ;;  %v4881_v15 = vld [vmem:[#allocation11 + $0x3d0] sm:$0xff] }
 0x429   : > { %8221 = vmatprep.subr.bf16.mxu1 %v10532_v25  ;;  %v10628_v25 = vcombine.high %v5176_v22, %v5180_v23  ;;  %v5160_v57 = vld [vmem:[#allocation11 + $0xc88] sm:$0xff] }
 0x42a   : > { %v5164_v56 = vld [vmem:[#allocation11 + $0xca8] sm:$0xff] }
 0x42b   : > { %8167 = vmatpush2.bf16.msra.mxu0 %v10411_v12  ;;  %v4781_v12 = vld [vmem:[#allocation11 + $0xb0] sm:$0xff]  ;;  %v5152_v35 = vld [vmem:[#allocation11 + $0xc48] sm:$0xff] }
 0x42c   : > { %8222 = vmatpush2.bf16.msra.mxu1 %v10531_v19  ;;  %8168 = vmatprep.subr.bf16.mxu0 %v10404_v6  ;;  %v10627_v19 = vcombine.low %v5176_v22, %v5180_v23  ;;  %v10237_v6 = vcombine.low %v4785_v34, %v4789_v63  ;;  %v10230_v16 = vcombine.high %v4777_v18, %v4781_v12  ;;  %v5156_v30 = vld [vmem:[#allocation11 + $0xc68] sm:$0xff]  ;;  %v4873_v63 = vld [vmem:[#allocation11 + $0x390] sm:$0xff] }
 0x42d   : > { %8297 = vmatprep.subr.bf16.mxu1 %v10270_v2  ;;  %v10620_v2 = vcombine.high %v5168_v42, %v5172_v52  ;;  %v5144_v0 = vld [vmem:[#allocation11 + $0xc08] sm:$0xff] }
 0x42e   : > { %v5148_v11 = vld [vmem:[#allocation11 + $0xc28] sm:$0xff] }
 0x42f   : > { %8169 = vmatpush2.bf16.msra.mxu0 %v10403_v29  ;;  %8224 = vmatmul.mubr.bf16.vlgmr.msra.gmra.mxu1 %v12318_v38  ;;  %v4773_v29 = vld [vmem:[#allocation11 + $0x70] sm:$0xff]  ;;  %v5264_v23 = vld [vmem:[#allocation11 + $0xfc8] sm:$0xff] }
 0x430   : > { %8233 = vmatprep.mubr.bf16.mxu1 %v12322_v55  ;;  %8298 = vmatpush1.bf16.msra.mxu1 %v10269_v58  ;;  %v10619_v58 = vcombine.low %v5168_v42, %v5172_v52  ;;  %v10222_v3 = vcombine.high %v4769_v61, %v4773_v29  ;;  %v5268_v34 = vld [vmem:[#allocation11 + $0xfe8] sm:$0xff] }
 0x431   : > { %8244 = vmatprep.subr.bf16.mxu0 %v10652_v51  ;;  %8299 = vmatprep.subr.bf16.mxu1 %v10262_v20  ;;  %v10229_v51 = vcombine.low %v4777_v18, %v4781_v12  ;;  %v10612_v20 = vcombine.high %v5160_v57, %v5164_v56  ;;  %v5256_v52 = vld [vmem:[#allocation11 + $0xf88] sm:$0xff]  ;;  %v4865_v12 = vld [vmem:[#allocation11 + $0x350] sm:$0xff] }
 0x432   : > { %8171 = vmatmul.mubr.bf16.vlgmr.msra.gmra.mxu0 %v12243_v47  ;;  %v5260_v18 = vld [vmem:[#allocation11 + $0xfa8] sm:$0xff] }
 0x433   : > { %8180 = vmatprep.mubr.bf16.mxu0 %v12268_v54  ;;  %8245 = vmatpush1.bf16.msra.mxu0 %v10651_v37  ;;  %v4765_v37 = vld [vmem:[#allocation11 + $0x30] sm:$0xff] }
 0x434   : > { %8300 = vmatpush1.bf16.msra.mxu1 %v10261_v9  ;;  %8246 = vmatprep.subr.bf16.mxu0 %v10644_v5  ;;  %v10611_v9 = vcombine.low %v5160_v57, %v5164_v56  ;;  %v10221_v5 = vcombine.low %v4769_v61, %v4773_v29  ;;  %v10214_v17 = vcombine.high %v4761_v27, %v4765_v37  ;;  %v5248_v56 = vld [vmem:[#allocation11 + $0xf48] sm:$0xff]  ;;  %v4857_v29 = vld [vmem:[#allocation11 + $0x310] sm:$0xff] }
 0x435   : > { %8301 = vmatprep.subr.bf16.mxu1 %v10254_v45  ;;  %v10604_v45 = vcombine.high %v5152_v35, %v5156_v30  ;;  %v5252_v61 = vld [vmem:[#allocation11 + $0xf68] sm:$0xff] }
 0x437   : > { %8247 = vmatpush1.bf16.msra.mxu0 %v10643_v41  ;;  %8234 = vmatmul.mubr.bf16.gmra.mxu1 %v12324_v14  ;;  %v4885_v41 = vld [vmem:[#allocation11 + $0x3f0] sm:$0xff] }
 0x438   : > { %8302 = vmatpush1.bf16.msra.mxu1 %v10253_v26  ;;  %8329 = vmatprep.mubr.bf16.mxu1 %v12237_v36  ;;  %v10603_v26 = vcombine.low %v5152_v35, %v5156_v30  ;;  %v10334_v22 = vcombine.high %v4881_v15, %v4885_v41  ;;  %v5240_v30 = vld [vmem:[#allocation11 + $0xf08] sm:$0xff] }
 0x439   : > { %8248 = vmatprep.subr.bf16.mxu0 %v10636_v28  ;;  %8303 = vmatprep.subr.bf16.mxu1 %v10246_v4  ;;  %v10213_v28 = vcombine.low %v4761_v27, %v4765_v37  ;;  %v10596_v4 = vcombine.high %v5144_v0, %v5148_v11  ;;  %v5244_v27 = vld [vmem:[#allocation11 + $0xf28] sm:$0xff]  ;;  %v4849_v37 = vld [vmem:[#allocation11 + $0x2d0] sm:$0xff] }
 0x43a   : > { %8181 = vmatmul.mubr.bf16.gmra.mxu0 %v12253_v53 }
 0x43b   : > { %8249 = vmatpush1.bf16.msra.mxu0 %v10635_v40  ;;  %8276 = vmatprep.mubr.bf16.mxu0 %v12346_v43  ;;  %v4877_v40 = vld [vmem:[#allocation11 + $0x3b0] sm:$0xff] }
 0x43c   : > { %8304 = vmatpush1.bf16.msra.mxu1 %v10245_v39  ;;  %8250 = vmatprep.subr.bf16.mxu0 %v10628_v25  ;;  %v10595_v39 = vcombine.low %v5144_v0, %v5148_v11  ;;  %v10333_v25 = vcombine.low %v4881_v15, %v4885_v41  ;;  %v10326_v42 = vcombine.high %v4873_v63, %v4877_v40  ;;  %v5232_v11 = vld [vmem:[#allocation11 + $0xec8] sm:$0xff]  ;;  %v4841_v41 = vld [vmem:[#allocation11 + $0x290] sm:$0xff] }
 0x43d   : > { %8305 = vmatprep.subr.bf16.mxu1 %v10238_v10  ;;  %v10716_v10 = vcombine.high %v5264_v23, %v5268_v34  ;;  %v5236_v15 = vld [vmem:[#allocation11 + $0xee8] sm:$0xff] }
 0x43f   : > { %8251 = vmatpush1.bf16.msra.mxu0 %v10627_v19  ;;  %v4869_v19 = vld [vmem:[#allocation11 + $0x370] sm:$0xff] }
 0x440   : > { %8306 = vmatpush1.bf16.msra.mxu1 %v10237_v6  ;;  %8252 = vmatprep.subr.bf16.mxu0 %v10620_v2  ;;  %v10715_v6 = vcombine.low %v5264_v23, %v5268_v34  ;;  %v10325_v2 = vcombine.low %v4873_v63, %v4877_v40  ;;  %v10318_v57 = vcombine.high %v4865_v12, %v4869_v19  ;;  %v5224_v34 = vld [vmem:[#allocation11 + $0xe88] sm:$0xff]  ;;  %v4833_v40 = vld [vmem:[#allocation11 + $0x250] sm:$0xff] }
 0x441   : > { %8307 = vmatprep.subr.bf16.mxu1 %v10230_v16  ;;  %v10708_v16 = vcombine.high %v5256_v52, %v5260_v18  ;;  %v5228_v63 = vld [vmem:[#allocation11 + $0xea8] sm:$0xff] }
 0x443   : > { %8253 = vmatpush1.bf16.msra.mxu0 %v10619_v58  ;;  %v4861_v58 = vld [vmem:[#allocation11 + $0x330] sm:$0xff] }
 0x444   : > { %8308 = vmatpush1.bf16.msra.mxu1 %v10229_v51  ;;  %8254 = vmatprep.subr.bf16.mxu0 %v10612_v20  ;;  %v10707_v51 = vcombine.low %v5256_v52, %v5260_v18  ;;  %v10317_v20 = vcombine.low %v4865_v12, %v4869_v19  ;;  %v10310_v35 = vcombine.high %v4857_v29, %v4861_v58  ;;  %v5216_v18 = vld [vmem:[#allocation11 + $0xe48] sm:$0xff]  ;;  %v4825_v19 = vld [vmem:[#allocation11 + $0x210] sm:$0xff] }
 0x445   : > { %8309 = vmatprep.subr.bf16.mxu1 %v10222_v3  ;;  %v10700_v3 = vcombine.high %v5248_v56, %v5252_v61  ;;  %v5220_v12 = vld [vmem:[#allocation11 + $0xe68] sm:$0xff] }
 0x447   : > { %8255 = vmatpush1.bf16.msra.mxu0 %v10611_v9  ;;  %v4853_v9 = vld [vmem:[#allocation11 + $0x2f0] sm:$0xff] }
 0x448   : > { %8310 = vmatpush1.bf16.msra.mxu1 %v10221_v5  ;;  %8256 = vmatprep.subr.bf16.mxu0 %v10604_v45  ;;  %v10699_v5 = vcombine.low %v5248_v56, %v5252_v61  ;;  %v10309_v45 = vcombine.low %v4857_v29, %v4861_v58  ;;  %v10302_v0 = vcombine.high %v4849_v37, %v4853_v9  ;;  %v5208_v61 = vld [vmem:[#allocation11 + $0xe08] sm:$0xff]  ;;  %v5073_v58 = vld [vmem:[#allocation11 + $0x9d0] sm:$0xff] }
 0x449   : > { %8311 = vmatprep.subr.bf16.mxu1 %v10214_v17  ;;  %v10692_v17 = vcombine.high %v5240_v30, %v5244_v27  ;;  %v5212_v29 = vld [vmem:[#allocation11 + $0xe28] sm:$0xff] }
 0x44b   : > { %8257 = vmatpush1.bf16.msra.mxu0 %v10603_v26  ;;  %v4845_v26 = vld [vmem:[#allocation11 + $0x2b0] sm:$0xff] }
 0x44c   : > { %8312 = vmatpush1.bf16.msra.mxu1 %v10213_v28  ;;  %8258 = vmatprep.subr.bf16.mxu0 %v10596_v4  ;;  %v10691_v28 = vcombine.low %v5240_v30, %v5244_v27  ;;  %v10301_v4 = vcombine.low %v4849_v37, %v4853_v9  ;;  %v10294_v23 = vcombine.high %v4841_v41, %v4845_v26  ;;  %v4945_v27 = vld [vmem:[#allocation11 + $0x5d0] sm:$0xff] }
 0x44d   : > { %8313 = vmatprep.subr.bf16.mxu1 %v10334_v22  ;;  %v10684_v22 = vcombine.high %v5232_v11, %v5236_v15  ;;  %v4949_v37 = vld [vmem:[#allocation11 + $0x5f0] sm:$0xff] }
 0x44e   : > { %v5065_v9 = vld [vmem:[#allocation11 + $0x990] sm:$0xff] }
 0x44f   : > { %8259 = vmatpush1.bf16.msra.mxu0 %v10595_v39  ;;  %v4837_v39 = vld [vmem:[#allocation11 + $0x270] sm:$0xff] }
 0x450   : > { %8314 = vmatpush2.bf16.msra.mxu1 %v10333_v25  ;;  %8260 = vmatprep.subr.bf16.mxu0 %v10716_v10  ;;  %v10683_v25 = vcombine.low %v5232_v11, %v5236_v15  ;;  %v10293_v10 = vcombine.low %v4841_v41, %v4845_v26  ;;  %v10286_v52 = vcombine.high %v4833_v40, %v4837_v39  ;;  %v4937_v15 = vld [vmem:[#allocation11 + $0x590] sm:$0xff] }
 0x451   : > { %8315 = vmatprep.subr.bf16.mxu1 %v10326_v42  ;;  %v10676_v42 = vcombine.high %v5224_v34, %v5228_v63  ;;  %v4941_v41 = vld [vmem:[#allocation11 + $0x5b0] sm:$0xff] }
 0x452   : > { %v5057_v26 = vld [vmem:[#allocation11 + $0x950] sm:$0xff] }
 0x453   : > { %8261 = vmatpush2.bf16.msra.mxu0 %v10715_v6  ;;  %v4829_v6 = vld [vmem:[#allocation11 + $0x230] sm:$0xff] }
 0x454   : > { %8316 = vmatpush2.bf16.msra.mxu1 %v10325_v2  ;;  %8262 = vmatprep.subr.bf16.mxu0 %v10708_v16  ;;  %v10675_v2 = vcombine.low %v5224_v34, %v5228_v63  ;;  %v10285_v16 = vcombine.low %v4833_v40, %v4837_v39  ;;  %v10278_v56 = vcombine.high %v4825_v19, %v4829_v6  ;;  %v4929_v63 = vld [vmem:[#allocation11 + $0x550] sm:$0xff] }
 0x455   : > { %8317 = vmatprep.subr.bf16.mxu1 %v10318_v57  ;;  %v10668_v57 = vcombine.high %v5216_v18, %v5220_v12  ;;  %v4933_v40 = vld [vmem:[#allocation11 + $0x570] sm:$0xff] }
 0x456   : > { %v5049_v39 = vld [vmem:[#allocation11 + $0x910] sm:$0xff] }
 0x457   : > { %8263 = vmatpush2.bf16.msra.mxu0 %v10707_v51  ;;  %v5077_v51 = vld [vmem:[#allocation11 + $0x9f0] sm:$0xff] }
 0x458   : > { %8318 = vmatpush2.bf16.msra.mxu1 %v10317_v20  ;;  %8264 = vmatprep.subr.bf16.mxu0 %v10700_v3  ;;  %v10667_v20 = vcombine.low %v5216_v18, %v5220_v12  ;;  %v10277_v3 = vcombine.low %v4825_v19, %v4829_v6  ;;  %v10526_v30 = vcombine.high %v5073_v58, %v5077_v51  ;;  %v4921_v12 = vld [vmem:[#allocation11 + $0x510] sm:$0xff] }
 0x459   : > { %8319 = vmatprep.subr.bf16.mxu1 %v10310_v35  ;;  %v10660_v35 = vcombine.high %v5208_v61, %v5212_v29  ;;  %v4925_v19 = vld [vmem:[#allocation11 + $0x530] sm:$0xff] }
 0x45a   : > { %v5041_v6 = vld [vmem:[#allocation11 + $0x8d0] sm:$0xff] }
 0x45b   : > { %8265 = vmatpush2.bf16.msra.mxu0 %v10699_v5  ;;  %v5069_v5 = vld [vmem:[#allocation11 + $0x9b0] sm:$0xff] }
 0x45c   : > { %8320 = vmatpush2.bf16.msra.mxu1 %v10309_v45  ;;  %8266 = vmatprep.subr.bf16.mxu0 %v10692_v17  ;;  %v10659_v45 = vcombine.low %v5208_v61, %v5212_v29  ;;  %v10525_v17 = vcombine.low %v5073_v58, %v5077_v51  ;;  %v10518_v11 = vcombine.high %v5065_v9, %v5069_v5  ;;  %v4913_v29 = vld [vmem:[#allocation11 + $0x4d0] sm:$0xff] }
 0x45d   : > { %8321 = vmatprep.subr.bf16.mxu1 %v10302_v0  ;;  %v10398_v0 = vcombine.high %v4945_v27, %v4949_v37  ;;  %v4917_v58 = vld [vmem:[#allocation11 + $0x4f0] sm:$0xff] }
 0x45e   : > { %v5033_v51 = vld [vmem:[#allocation11 + $0x890] sm:$0xff] }
 0x45f   : > { %8267 = vmatpush2.bf16.msra.mxu0 %v10691_v28  ;;  %v5061_v28 = vld [vmem:[#allocation11 + $0x970] sm:$0xff] }
 0x460   : > { %8322 = vmatpush2.bf16.msra.mxu1 %v10301_v4  ;;  %8268 = vmatprep.subr.bf16.mxu0 %v10684_v22  ;;  %v10397_v4 = vcombine.low %v4945_v27, %v4949_v37  ;;  %v10517_v22 = vcombine.low %v5065_v9, %v5069_v5  ;;  %v10510_v34 = vcombine.high %v5057_v26, %v5061_v28  ;;  %v4905_v37 = vld [vmem:[#allocation11 + $0x490] sm:$0xff] }
 0x461   : > { %8323 = vmatprep.subr.bf16.mxu1 %v10294_v23  ;;  %v10390_v23 = vcombine.high %v4937_v15, %v4941_v41  ;;  %v4909_v9 = vld [vmem:[#allocation11 + $0x4b0] sm:$0xff] }
 0x462   : > { %v5025_v5 = vld [vmem:[#allocation11 + $0x850] sm:$0xff] }
 0x463   : > { %8269 = vmatpush2.bf16.msra.mxu0 %v10683_v25  ;;  %v5053_v25 = vld [vmem:[#allocation11 + $0x930] sm:$0xff] }
 0x464   : > { %8324 = vmatpush2.bf16.msra.mxu1 %v10293_v10  ;;  %8270 = vmatprep.subr.bf16.mxu0 %v10676_v42  ;;  %v10389_v10 = vcombine.low %v4937_v15, %v4941_v41  ;;  %v10509_v42 = vcombine.low %v5057_v26, %v5061_v28  ;;  %v10502_v18 = vcombine.high %v5049_v39, %v5053_v25  ;;  %v4897_v41 = vld [vmem:[#allocation11 + $0x450] sm:$0xff] }
 0x465   : > { %8325 = vmatprep.subr.bf16.mxu1 %v10286_v52  ;;  %v10382_v52 = vcombine.high %v4929_v63, %v4933_v40  ;;  %v4901_v26 = vld [vmem:[#allocation11 + $0x470] sm:$0xff] }
 0x466   : > { %v5017_v28 = vld [vmem:[#allocation11 + $0x810] sm:$0xff] }
 0x467   : > { %8271 = vmatpush2.bf16.msra.mxu0 %v10675_v2  ;;  %v5045_v2 = vld [vmem:[#allocation11 + $0x8f0] sm:$0xff] }
 0x468   : > { %8326 = vmatpush2.bf16.msra.mxu1 %v10285_v16  ;;  %8272 = vmatprep.subr.bf16.mxu0 %v10668_v57  ;;  %v10381_v16 = vcombine.low %v4929_v63, %v4933_v40  ;;  %v10501_v57 = vcombine.low %v5049_v39, %v5053_v25  ;;  %v10494_v61 = vcombine.high %v5041_v6, %v5045_v2  ;;  %v4889_v40 = vld [vmem:[#allocation11 + $0x410] sm:$0xff] }
 0x469   : > { %8327 = vmatprep.subr.bf16.mxu1 %v10278_v56  ;;  %v10374_v56 = vcombine.high %v4921_v12, %v4925_v19  ;;  %v4893_v39 = vld [vmem:[#allocation11 + $0x430] sm:$0xff] }
 0x46a   : > { %v5137_v25 = vld [vmem:[#allocation11 + $0xbd0] sm:$0xff] }
 0x46b   : > { %8273 = vmatpush2.bf16.msra.mxu0 %v10667_v20  ;;  %v5037_v20 = vld [vmem:[#allocation11 + $0x8b0] sm:$0xff] }
 0x46c   : > { %8328 = vmatpush2.bf16.msra.mxu1 %v10277_v3  ;;  %8274 = vmatprep.subr.bf16.mxu0 %v10660_v35  ;;  %v10373_v3 = vcombine.low %v4921_v12, %v4925_v19  ;;  %v10493_v35 = vcombine.low %v5041_v6, %v5045_v2  ;;  %v10486_v27 = vcombine.high %v5033_v51, %v5037_v20  ;;  %v5009_v19 = vld [vmem:[#allocation11 + $0x7d0] sm:$0xff] }
 0x46d   : > { %8403 = vmatprep.subr.bf16.mxu1 %v10526_v30  ;;  %v10366_v30 = vcombine.high %v4913_v29, %v4917_v58  ;;  %v5013_v6 = vld [vmem:[#allocation11 + $0x7f0] sm:$0xff] }
 0x46e   : > { %v5129_v2 = vld [vmem:[#allocation11 + $0xb90] sm:$0xff] }
 0x46f   : > { %8275 = vmatpush2.bf16.msra.mxu0 %v10659_v45  ;;  %8330 = vmatmul.mubr.bf16.vlgmr.msra.gmra.mxu1 %v12154_v1  ;;  %v5029_v45 = vld [vmem:[#allocation11 + $0x870] sm:$0xff] }
 0x470   : > { %8339 = vmatprep.mubr.bf16.mxu1 %v12266_v33  ;;  %8404 = vmatpush1.bf16.msra.mxu1 %v10525_v17  ;;  %v10365_v17 = vcombine.low %v4913_v29, %v4917_v58  ;;  %v10478_v15 = vcombine.high %v5025_v5, %v5029_v45  ;;  %v5001_v58 = vld [vmem:[#allocation11 + $0x790] sm:$0xff] }
 0x471   : > { %8350 = vmatprep.subr.bf16.mxu0 %v10398_v0  ;;  %8405 = vmatprep.subr.bf16.mxu1 %v10518_v11  ;;  %v10485_v0 = vcombine.low %v5033_v51, %v5037_v20  ;;  %v10358_v11 = vcombine.high %v4905_v37, %v4909_v9  ;;  %v5005_v51 = vld [vmem:[#allocation11 + $0x7b0] sm:$0xff] }
 0x472   : > { %8277 = vmatmul.mubr.bf16.vlgmr.msra.gmra.mxu0 %v12349_v60  ;;  %v5121_v20 = vld [vmem:[#allocation11 + $0xb50] sm:$0xff] }
 0x473   : > { %8286 = vmatprep.mubr.bf16.mxu0 %v12357_v62  ;;  %8351 = vmatpush1.bf16.msra.mxu0 %v10397_v4  ;;  %v5021_v4 = vld [vmem:[#allocation11 + $0x830] sm:$0xff] }
 0x474   : > { %8406 = vmatpush1.bf16.msra.mxu1 %v10517_v22  ;;  %8352 = vmatprep.subr.bf16.mxu0 %v10390_v23  ;;  %v10357_v22 = vcombine.low %v4905_v37, %v4909_v9  ;;  %v10477_v23 = vcombine.low %v5025_v5, %v5029_v45  ;;  %v10470_v63 = vcombine.high %v5017_v28, %v5021_v4  ;;  %v4993_v9 = vld [vmem:[#allocation11 + $0x750] sm:$0xff] }
 0x475   : > { %8407 = vmatprep.subr.bf16.mxu1 %v10510_v34  ;;  %v10350_v34 = vcombine.high %v4897_v41, %v4901_v26  ;;  %v4997_v5 = vld [vmem:[#allocation11 + $0x770] sm:$0xff] }
 0x476   : > { %v5113_v45 = vld [vmem:[#allocation11 + $0xb10] sm:$0xff] }
 0x477   : > { %8353 = vmatpush1.bf16.msra.mxu0 %v10389_v10  ;;  %8340 = vmatmul.mubr.bf16.gmra.mxu1 %v12165_v13  ;;  %v5141_v10 = vld [vmem:[#allocation11 + $0xbf0] sm:$0xff] }
 0x478   : > { %8408 = vmatpush1.bf16.msra.mxu1 %v10509_v42  ;;  %8435 = vmatprep.mubr.bf16.mxu1 %v12314_v59  ;;  %v10349_v42 = vcombine.low %v4897_v41, %v4901_v26  ;;  %v10590_v12 = vcombine.high %v5137_v25, %v5141_v10  ;;  %v4985_v26 = vld [vmem:[#allocation11 + $0x710] sm:$0xff] }
 0x479   : > { %8354 = vmatprep.subr.bf16.mxu0 %v10382_v52  ;;  %8409 = vmatprep.subr.bf16.mxu1 %v10502_v18  ;;  %v10469_v52 = vcombine.low %v5017_v28, %v5021_v4  ;;  %v10342_v18 = vcombine.high %v4889_v40, %v4893_v39  ;;  %v4989_v28 = vld [vmem:[#allocation11 + $0x730] sm:$0xff] }
 0x47a   : > { %8287 = vmatmul.mubr.bf16.gmra.mxu0 %v12360_v8  ;;  %v5105_v4 = vld [vmem:[#allocation11 + $0xad0] sm:$0xff] }
 0x47b   : > { %8355 = vmatpush1.bf16.msra.mxu0 %v10381_v16  ;;  %8382 = vmatprep.mubr.bf16.mxu0 %v12250_v32  ;;  %v5133_v16 = vld [vmem:[#allocation11 + $0xbb0] sm:$0xff] }
 0x47c   : > { %8410 = vmatpush1.bf16.msra.mxu1 %v10501_v57  ;;  %8356 = vmatprep.subr.bf16.mxu0 %v10374_v56  ;;  %v10341_v57 = vcombine.low %v4889_v40, %v4893_v39  ;;  %v10589_v56 = vcombine.low %v5137_v25, %v5141_v10  ;;  %v10582_v29 = vcombine.high %v5129_v2, %v5133_v16  ;;  %v4977_v39 = vld [vmem:[#allocation11 + $0x6d0] sm:$0xff] }
 0x47d   : > { %8411 = vmatprep.subr.bf16.mxu1 %v10494_v61  ;;  %v10462_v61 = vcombine.high %v5009_v19, %v5013_v6  ;;  %v4981_v25 = vld [vmem:[#allocation11 + $0x6f0] sm:$0xff] }
 0x47e   : > { %v5097_v10 = vld [vmem:[#allocation11 + $0xa90] sm:$0xff] }
 0x47f   : > { %8357 = vmatpush1.bf16.msra.mxu0 %v10373_v3  ;;  %v5125_v3 = vld [vmem:[#allocation11 + $0xb70] sm:$0xff] }
 0x480   : > { %8412 = vmatpush1.bf16.msra.mxu1 %v10493_v35  ;;  %8358 = vmatprep.subr.bf16.mxu0 %v10366_v30  ;;  %v10461_v35 = vcombine.low %v5009_v19, %v5013_v6  ;;  %v10581_v30 = vcombine.low %v5129_v2, %v5133_v16  ;;  %v10574_v37 = vcombine.high %v5121_v20, %v5125_v3  ;;  %v4969_v6 = vld [vmem:[#allocation11 + $0x690] sm:$0xff] }
 0x481   : > { %8413 = vmatprep.subr.bf16.mxu1 %v10486_v27  ;;  %v10454_v27 = vcombine.high %v5001_v58, %v5005_v51  ;;  %v4973_v2 = vld [vmem:[#allocation11 + $0x6b0] sm:$0xff] }
 0x482   : > { %v5089_v16 = vld [vmem:[#allocation11 + $0xa50] sm:$0xff] }
 0x483   : > { %8359 = vmatpush1.bf16.msra.mxu0 %v10365_v17  ;;  %v5117_v17 = vld [vmem:[#allocation11 + $0xb30] sm:$0xff] }
 0x484   : > { %8414 = vmatpush1.bf16.msra.mxu1 %v10485_v0  ;;  %8360 = vmatprep.subr.bf16.mxu0 %v10358_v11  ;;  %v10453_v0 = vcombine.low %v5001_v58, %v5005_v51  ;;  %v10573_v11 = vcombine.low %v5121_v20, %v5125_v3  ;;  %v10566_v41 = vcombine.high %v5113_v45, %v5117_v17  ;;  %v4961_v51 = vld [vmem:[#allocation11 + $0x650] sm:$0xff] }
 0x485   : > { %8415 = vmatprep.subr.bf16.mxu1 %v10478_v15  ;;  %v10446_v15 = vcombine.high %v4993_v9, %v4997_v5  ;;  %v4965_v20 = vld [vmem:[#allocation11 + $0x670] sm:$0xff] }
 0x486   : > { %v5081_v3 = vld [vmem:[#allocation11 + $0xa10] sm:$0xff] }
 0x487   : > { %8361 = vmatpush1.bf16.msra.mxu0 %v10357_v22  ;;  %v5109_v22 = vld [vmem:[#allocation11 + $0xaf0] sm:$0xff] }
 0x488   : > { %8416 = vmatpush1.bf16.msra.mxu1 %v10477_v23  ;;  %8362 = vmatprep.subr.bf16.mxu0 %v10350_v34  ;;  %v10445_v23 = vcombine.low %v4993_v9, %v4997_v5  ;;  %v10565_v34 = vcombine.low %v5113_v45, %v5117_v17  ;;  %v10558_v40 = vcombine.high %v5105_v4, %v5109_v22  ;;  %v4953_v5 = vld [vmem:[#allocation11 + $0x610] sm:$0xff]  ;;  %v4818_v17 = vld [vmem:[#allocation11 + $0x1d8] sm:$0xff] }
 0x489   : > { %8417 = vmatprep.subr.bf16.mxu1 %v10470_v63  ;;  %v10438_v63 = vcombine.high %v4985_v26, %v4989_v28  ;;  %v4957_v45 = vld [vmem:[#allocation11 + $0x630] sm:$0xff] }
 0x48b   : > { %8363 = vmatpush1.bf16.msra.mxu0 %v10349_v42  ;;  %v5101_v42 = vld [vmem:[#allocation11 + $0xab0] sm:$0xff] }
 0x48c   : > { %8418 = vmatpush1.bf16.msra.mxu1 %v10469_v52  ;;  %8364 = vmatprep.subr.bf16.mxu0 %v10342_v18  ;;  %v10437_v52 = vcombine.low %v4985_v26, %v4989_v28  ;;  %v10557_v18 = vcombine.low %v5105_v4, %v5109_v22  ;;  %v10550_v19 = vcombine.high %v5097_v10, %v5101_v42  ;;  %v5201_v28 = vld [vmem:[#allocation11 + $0xdd0] sm:$0xff]  ;;  %v4810_v22 = vld [vmem:[#allocation11 + $0x198] sm:$0xff] }
 0x48d   : > { %8419 = vmatprep.subr.bf16.mxu1 %v10590_v12  ;;  %v10430_v12 = vcombine.high %v4977_v39, %v4981_v25  ;;  %v5205_v4 = vld [vmem:[#allocation11 + $0xdf0] sm:$0xff] }
 0x48f   : > { %8365 = vmatpush1.bf16.msra.mxu0 %v10341_v57  ;;  %v5093_v57 = vld [vmem:[#allocation11 + $0xa70] sm:$0xff] }
 0x490   : > { %8420 = vmatpush2.bf16.msra.mxu1 %v10589_v56  ;;  %8366 = vmatprep.subr.bf16.mxu0 %v10462_v61  ;;  %v10429_v56 = vcombine.low %v4977_v39, %v4981_v25  ;;  %v10549_v61 = vcombine.low %v5097_v10, %v5101_v42  ;;  %v10542_v58 = vcombine.high %v5089_v16, %v5093_v57  ;;  %v5193_v25 = vld [vmem:[#allocation11 + $0xd90] sm:$0xff]  ;;  %v4802_v42 = vld [vmem:[#allocation11 + $0x158] sm:$0xff] }
 0x491   : > { %8421 = vmatprep.subr.bf16.mxu1 %v10582_v29  ;;  %v10422_v29 = vcombine.high %v4969_v6, %v4973_v2  ;;  %v5197_v10 = vld [vmem:[#allocation11 + $0xdb0] sm:$0xff] }
 0x493   : > { %8367 = vmatpush2.bf16.msra.mxu0 %v10461_v35  ;;  %v5085_v35 = vld [vmem:[#allocation11 + $0xa30] sm:$0xff] }
 0x494   : > { %8422 = vmatpush2.bf16.msra.mxu1 %v10581_v30  ;;  %8368 = vmatprep.subr.bf16.mxu0 %v10454_v27  ;;  %v10421_v30 = vcombine.low %v4969_v6, %v4973_v2  ;;  %v10541_v27 = vcombine.low %v5089_v16, %v5093_v57  ;;  %v10534_v9 = vcombine.high %v5081_v3, %v5085_v35  ;;  %v5185_v2 = vld [vmem:[#allocation11 + $0xd50] sm:$0xff]  ;;  %v4794_v57 = vld [vmem:[#allocation11 + $0x118] sm:$0xff] }
 0x495   : > { %8423 = vmatprep.subr.bf16.mxu1 %v10574_v37  ;;  %v10414_v37 = vcombine.high %v4961_v51, %v4965_v20  ;;  %v5189_v16 = vld [vmem:[#allocation11 + $0xd70] sm:$0xff] }
 0x497   : > { %8369 = vmatpush2.bf16.msra.mxu0 %v10453_v0  ;;  %v4822_v0 = vld [vmem:[#allocation11 + $0x1f8] sm:$0xff] }
 0x498   : > { %8424 = vmatpush2.bf16.msra.mxu1 %v10573_v11  ;;  %8370 = vmatprep.subr.bf16.mxu0 %v10446_v15  ;;  %v10413_v11 = vcombine.low %v4961_v51, %v4965_v20  ;;  %v10533_v15 = vcombine.low %v5081_v3, %v5085_v35  ;;  %v10272_v26 = vcombine.high %v4818_v17, %v4822_v0  ;;  %v5177_v20 = vld [vmem:[#allocation11 + $0xd10] sm:$0xff]  ;;  %v4786_v35 = vld [vmem:[#allocation11 + $0xd8] sm:$0xff] }
 0x499   : > { %8425 = vmatprep.subr.bf16.mxu1 %v10566_v41  ;;  %v10406_v41 = vcombine.high %v4953_v5, %v4957_v45  ;;  %v5181_v3 = vld [vmem:[#allocation11 + $0xd30] sm:$0xff] }
 0x49b   : > { %8371 = vmatpush2.bf16.msra.mxu0 %v10445_v23  ;;  %v4814_v23 = vld [vmem:[#allocation11 + $0x1b8] sm:$0xff] }
 0x49c   : > { %8426 = vmatpush2.bf16.msra.mxu1 %v10565_v34  ;;  %8372 = vmatprep.subr.bf16.mxu0 %v10438_v63  ;;  %v10405_v34 = vcombine.low %v4953_v5, %v4957_v45  ;;  %v10271_v63 = vcombine.low %v4818_v17, %v4822_v0  ;;  %v10264_v39 = vcombine.high %v4810_v22, %v4814_v23  ;;  %v5169_v45 = vld [vmem:[#allocation11 + $0xcd0] sm:$0xff]  ;;  %v4778_v0 = vld [vmem:[#allocation11 + $0x98] sm:$0xff] }
 0x49d   : > { %8427 = vmatprep.subr.bf16.mxu1 %v10558_v40  ;;  %v10654_v40 = vcombine.high %v5201_v28, %v5205_v4  ;;  %v5173_v17 = vld [vmem:[#allocation11 + $0xcf0] sm:$0xff] }
 0x49f   : > { %8373 = vmatpush2.bf16.msra.mxu0 %v10437_v52  ;;  %v4806_v52 = vld [vmem:[#allocation11 + $0x178] sm:$0xff] }
 0x4a0   : > { %8428 = vmatpush2.bf16.msra.mxu1 %v10557_v18  ;;  %8374 = vmatprep.subr.bf16.mxu0 %v10430_v12  ;;  %v10653_v18 = vcombine.low %v5201_v28, %v5205_v4  ;;  %v10263_v12 = vcombine.low %v4810_v22, %v4814_v23  ;;  %v10256_v6 = vcombine.high %v4802_v42, %v4806_v52  ;;  %v5161_v28 = vld [vmem:[#allocation11 + $0xc90] sm:$0xff]  ;;  %v4770_v22 = vld [vmem:[#allocation11 + $0x58] sm:$0xff] }
 0x4a1   : > { %8429 = vmatprep.subr.bf16.mxu1 %v10550_v19  ;;  %v10646_v19 = vcombine.high %v5193_v25, %v5197_v10  ;;  %v5165_v4 = vld [vmem:[#allocation11 + $0xcb0] sm:$0xff]  ;;  %v4774_v23 = vld [vmem:[#allocation11 + $0x78] sm:$0xff] }
 0x4a3   : > { %8375 = vmatpush2.bf16.msra.mxu0 %v10429_v56  ;;  %v4798_v56 = vld [vmem:[#allocation11 + $0x138] sm:$0xff] }
 0x4a4   : > { %8430 = vmatpush2.bf16.msra.mxu1 %v10549_v61  ;;  %8376 = vmatprep.subr.bf16.mxu0 %v10422_v29  ;;  %v10645_v61 = vcombine.low %v5193_v25, %v5197_v10  ;;  %v10255_v29 = vcombine.low %v4802_v42, %v4806_v52  ;;  %v10248_v51 = vcombine.high %v4794_v57, %v4798_v56  ;;  %v5153_v25 = vld [vmem:[#allocation11 + $0xc50] sm:$0xff]  ;;  %v4762_v42 = vld [vmem:[#allocation11 + $0x18] sm:$0xff] }
 0x4a5   : > { %8431 = vmatprep.subr.bf16.mxu1 %v10542_v58  ;;  %v10638_v58 = vcombine.high %v5185_v2, %v5189_v16  ;;  %v5157_v10 = vld [vmem:[#allocation11 + $0xc70] sm:$0xff]  ;;  %v4766_v52 = vld [vmem:[#allocation11 + $0x38] sm:$0xff] }
 0x4a7   : > { %8377 = vmatpush2.bf16.msra.mxu0 %v10421_v30  ;;  %v4790_v30 = vld [vmem:[#allocation11 + $0xf8] sm:$0xff] }
 0x4a8   : > { %8432 = vmatpush2.bf16.msra.mxu1 %v10541_v27  ;;  %8378 = vmatprep.subr.bf16.mxu0 %v10414_v37  ;;  %v10637_v27 = vcombine.low %v5185_v2, %v5189_v16  ;;  %v10247_v37 = vcombine.low %v4794_v57, %v4798_v56  ;;  %v10240_v5 = vcombine.high %v4786_v35, %v4790_v30  ;;  %v5145_v2 = vld [vmem:[#allocation11 + $0xc10] sm:$0xff]  ;;  %v4882_v57 = vld [vmem:[#allocation11 + $0x3d8] sm:$0xff] }
 0x4a9   : > { %8433 = vmatprep.subr.bf16.mxu1 %v10534_v9  ;;  %v10630_v9 = vcombine.high %v5177_v20, %v5181_v3  ;;  %v5149_v16 = vld [vmem:[#allocation11 + $0xc30] sm:$0xff]  ;;  %v4886_v56 = vld [vmem:[#allocation11 + $0x3f8] sm:$0xff] }
 0x4ab   : > { %8379 = vmatpush2.bf16.msra.mxu0 %v10413_v11  ;;  %v4782_v11 = vld [vmem:[#allocation11 + $0xb8] sm:$0xff] }
 0x4ac   : > { %8434 = vmatpush2.bf16.msra.mxu1 %v10533_v15  ;;  %8380 = vmatprep.subr.bf16.mxu0 %v10406_v41  ;;  %v10629_v15 = vcombine.low %v5177_v20, %v5181_v3  ;;  %v10239_v41 = vcombine.low %v4786_v35, %v4790_v30  ;;  %v5265_v20 = vld [vmem:[#allocation11 + $0xfd0] sm:$0xff]  ;;  %v4874_v35 = vld [vmem:[#allocation11 + $0x398] sm:$0xff] }
 0x4ad   : > { %8509 = vmatprep.subr.bf16.mxu1 %v10272_v26  ;;  %v10622_v26 = vcombine.high %v5169_v45, %v5173_v17  ;;  %v5269_v3 = vld [vmem:[#allocation11 + $0xff0] sm:$0xff]  ;;  %v4878_v30 = vld [vmem:[#allocation11 + $0x3b8] sm:$0xff] }
 0x4af   : > { %8381 = vmatpush2.bf16.msra.mxu0 %v10405_v34  ;;  %8436 = vmatmul.mubr.bf16.vlgmr.msra.gmra.mxu1 %v12318_v38  ;;  %v10621_v34 = vcombine.low %v5169_v45, %v5173_v17  ;;  %v5257_v45 = vld [vmem:[#allocation11 + $0xf90] sm:$0xff] }
 0x4b0   : > { %8445 = vmatprep.mubr.bf16.mxu1 %v12322_v55  ;;  %8510 = vmatpush1.bf16.msra.mxu1 %v10271_v63  ;;  %v10231_v63 = vcombine.low %v4778_v0, %v4782_v11  ;;  %v5261_v17 = vld [vmem:[#allocation11 + $0xfb0] sm:$0xff] }
 0x4b1   : > { %8456 = vmatprep.subr.bf16.mxu0 %v10654_v40  ;;  %8511 = vmatprep.subr.bf16.mxu1 %v10264_v39  ;;  %v10614_v40 = vcombine.high %v5161_v28, %v5165_v4  ;;  %v10224_v39 = vcombine.high %v4770_v22, %v4774_v23 }
 0x4b2   : > { %8383 = vmatmul.mubr.bf16.vlgmr.msra.gmra.mxu0 %v12243_v47 }
 0x4b3   : > { %8392 = vmatprep.mubr.bf16.mxu0 %v12268_v54  ;;  %8457 = vmatpush1.bf16.msra.mxu0 %v10653_v18  ;;  %v10613_v18 = vcombine.low %v5161_v28, %v5165_v4  ;;  %v5249_v28 = vld [vmem:[#allocation11 + $0xf50] sm:$0xff] }
 0x4b4   : > { %8512 = vmatpush1.bf16.msra.mxu1 %v10263_v12  ;;  %8458 = vmatprep.subr.bf16.mxu0 %v10646_v19  ;;  %v10223_v12 = vcombine.low %v4770_v22, %v4774_v23  ;;  %v10606_v19 = vcombine.high %v5153_v25, %v5157_v10  ;;  %v5253_v4 = vld [vmem:[#allocation11 + $0xf70] sm:$0xff]  ;;  %v4858_v22 = vld [vmem:[#allocation11 + $0x318] sm:$0xff] }
 0x4b5   : > { %8513 = vmatprep.subr.bf16.mxu1 %v10256_v6  ;;  %v10216_v6 = vcombine.high %v4762_v42, %v4766_v52  ;;  %v4862_v23 = vld [vmem:[#allocation11 + $0x338] sm:$0xff] }
 0x4b7   : > { %8459 = vmatpush1.bf16.msra.mxu0 %v10645_v61  ;;  %8446 = vmatmul.mubr.bf16.gmra.mxu1 %v12324_v14  ;;  %v10605_v61 = vcombine.low %v5153_v25, %v5157_v10  ;;  %v5241_v25 = vld [vmem:[#allocation11 + $0xf10] sm:$0xff] }
 0x4b8   : > { %8514 = vmatpush1.bf16.msra.mxu1 %v10255_v29  ;;  %8541 = vmatprep.mubr.bf16.mxu1 %v12237_v36  ;;  %v10232_v36 = vcombine.high %v4778_v0, %v4782_v11  ;;  %v10215_v29 = vcombine.low %v4762_v42, %v4766_v52  ;;  %v4866_v0 = vld [vmem:[#allocation11 + $0x358] sm:$0xff]  ;;  %v5245_v10 = vld [vmem:[#allocation11 + $0xf30] sm:$0xff] }
 0x4b9   : > { %8460 = vmatprep.subr.bf16.mxu0 %v10638_v58  ;;  %8515 = vmatprep.subr.bf16.mxu1 %v10248_v51  ;;  %v10598_v58 = vcombine.high %v5145_v2, %v5149_v16  ;;  %v10336_v51 = vcombine.high %v4882_v57, %v4886_v56  ;;  %v4870_v11 = vld [vmem:[#allocation11 + $0x378] sm:$0xff] }
 0x4ba   : > { %8393 = vmatmul.mubr.bf16.gmra.mxu0 %v12253_v53  ;;  %v4850_v42 = vld [vmem:[#allocation11 + $0x2d8] sm:$0xff] }
 0x4bb   : > { %8461 = vmatpush1.bf16.msra.mxu0 %v10637_v27  ;;  %8488 = vmatprep.mubr.bf16.mxu0 %v12346_v43  ;;  %v10597_v27 = vcombine.low %v5145_v2, %v5149_v16  ;;  %v4854_v52 = vld [vmem:[#allocation11 + $0x2f8] sm:$0xff]  ;;  %v5233_v2 = vld [vmem:[#allocation11 + $0xed0] sm:$0xff] }
 0x4bc   : > { %8516 = vmatpush1.bf16.msra.mxu1 %v10247_v37  ;;  %8462 = vmatprep.subr.bf16.mxu0 %v10630_v9  ;;  %v10335_v37 = vcombine.low %v4882_v57, %v4886_v56  ;;  %v10718_v9 = vcombine.high %v5265_v20, %v5269_v3  ;;  %v5237_v16 = vld [vmem:[#allocation11 + $0xef0] sm:$0xff]  ;;  %v4842_v57 = vld [vmem:[#allocation11 + $0x298] sm:$0xff] }
 0x4bd   : > { %8517 = vmatprep.subr.bf16.mxu1 %v10240_v5  ;;  %v10328_v5 = vcombine.high %v4874_v35, %v4878_v30  ;;  %v4846_v56 = vld [vmem:[#allocation11 + $0x2b8] sm:$0xff] }
 0x4bf   : > { %8463 = vmatpush1.bf16.msra.mxu0 %v10629_v15  ;;  %v10717_v15 = vcombine.low %v5265_v20, %v5269_v3  ;;  %v5225_v20 = vld [vmem:[#allocation11 + $0xe90] sm:$0xff] }
 0x4c0   : > { %8518 = vmatpush1.bf16.msra.mxu1 %v10239_v41  ;;  %8464 = vmatprep.subr.bf16.mxu0 %v10622_v26  ;;  %v10327_v41 = vcombine.low %v4874_v35, %v4878_v30  ;;  %v10710_v26 = vcombine.high %v5257_v45, %v5261_v17  ;;  %v5229_v3 = vld [vmem:[#allocation11 + $0xeb0] sm:$0xff]  ;;  %v4834_v35 = vld [vmem:[#allocation11 + $0x258] sm:$0xff] }
 0x4c1   : > { %8519 = vmatprep.subr.bf16.mxu1 %v10232_v36  ;;  %v10320_v36 = vcombine.high %v4866_v0, %v4870_v11  ;;  %v4838_v30 = vld [vmem:[#allocation11 + $0x278] sm:$0xff] }
 0x4c3   : > { %8465 = vmatpush1.bf16.msra.mxu0 %v10621_v34  ;;  %v10709_v34 = vcombine.low %v5257_v45, %v5261_v17  ;;  %v5217_v45 = vld [vmem:[#allocation11 + $0xe50] sm:$0xff] }
 0x4c4   : > { %8520 = vmatpush1.bf16.msra.mxu1 %v10231_v63  ;;  %8466 = vmatprep.subr.bf16.mxu0 %v10614_v40  ;;  %v10319_v63 = vcombine.low %v4866_v0, %v4870_v11  ;;  %v10702_v40 = vcombine.high %v5249_v28, %v5253_v4  ;;  %v5221_v17 = vld [vmem:[#allocation11 + $0xe70] sm:$0xff]  ;;  %v4826_v0 = vld [vmem:[#allocation11 + $0x218] sm:$0xff] }
 0x4c5   : > { %8521 = vmatprep.subr.bf16.mxu1 %v10224_v39  ;;  %v10312_v39 = vcombine.high %v4858_v22, %v4862_v23  ;;  %v4830_v11 = vld [vmem:[#allocation11 + $0x238] sm:$0xff] }
 0x4c7   : > { %8467 = vmatpush1.bf16.msra.mxu0 %v10613_v18  ;;  %v10701_v18 = vcombine.low %v5249_v28, %v5253_v4  ;;  %v5209_v28 = vld [vmem:[#allocation11 + $0xe10] sm:$0xff] }
 0x4c8   : > { %8522 = vmatpush1.bf16.msra.mxu1 %v10223_v12  ;;  %8468 = vmatprep.subr.bf16.mxu0 %v10606_v19  ;;  %v10311_v12 = vcombine.low %v4858_v22, %v4862_v23  ;;  %v10694_v19 = vcombine.high %v5241_v25, %v5245_v10  ;;  %v5213_v4 = vld [vmem:[#allocation11 + $0xe30] sm:$0xff]  ;;  %v5074_v22 = vld [vmem:[#allocation11 + $0x9d8] sm:$0xff] }
 0x4c9   : > { %8523 = vmatprep.subr.bf16.mxu1 %v10216_v6  ;;  %v10304_v6 = vcombine.high %v4850_v42, %v4854_v52  ;;  %v5078_v23 = vld [vmem:[#allocation11 + $0x9f8] sm:$0xff] }
 0x4cb   : > { %8469 = vmatpush1.bf16.msra.mxu0 %v10605_v61  ;;  %v10693_v61 = vcombine.low %v5241_v25, %v5245_v10  ;;  %v4946_v25 = vld [vmem:[#allocation11 + $0x5d8] sm:$0xff] }
 0x4cc   : > { %8524 = vmatpush1.bf16.msra.mxu1 %v10215_v29  ;;  %8470 = vmatprep.subr.bf16.mxu0 %v10598_v58  ;;  %v10303_v29 = vcombine.low %v4850_v42, %v4854_v52  ;;  %v10686_v58 = vcombine.high %v5233_v2, %v5237_v16  ;;  %v4950_v10 = vld [vmem:[#allocation11 + $0x5f8] sm:$0xff] }
 0x4cd   : > { %8525 = vmatprep.subr.bf16.mxu1 %v10336_v51  ;;  %v10296_v51 = vcombine.high %v4842_v57, %v4846_v56  ;;  %v5066_v42 = vld [vmem:[#allocation11 + $0x998] sm:$0xff] }
 0x4ce   : > { %v5070_v52 = vld [vmem:[#allocation11 + $0x9b8] sm:$0xff] }
 0x4cf   : > { %8471 = vmatpush1.bf16.msra.mxu0 %v10597_v27  ;;  %v10685_v27 = vcombine.low %v5233_v2, %v5237_v16  ;;  %v4938_v2 = vld [vmem:[#allocation11 + $0x598] sm:$0xff] }
 0x4d0   : > { %8526 = vmatpush2.bf16.msra.mxu1 %v10335_v37  ;;  %8472 = vmatprep.subr.bf16.mxu0 %v10718_v9  ;;  %v10295_v37 = vcombine.low %v4842_v57, %v4846_v56  ;;  %v10678_v9 = vcombine.high %v5225_v20, %v5229_v3  ;;  %v4942_v16 = vld [vmem:[#allocation11 + $0x5b8] sm:$0xff] }
 0x4d1   : > { %8527 = vmatprep.subr.bf16.mxu1 %v10328_v5  ;;  %v10288_v5 = vcombine.high %v4834_v35, %v4838_v30  ;;  %v5058_v57 = vld [vmem:[#allocation11 + $0x958] sm:$0xff] }
 0x4d2   : > { %v5062_v56 = vld [vmem:[#allocation11 + $0x978] sm:$0xff] }
 0x4d3   : > { %8473 = vmatpush2.bf16.msra.mxu0 %v10717_v15  ;;  %v10677_v15 = vcombine.low %v5225_v20, %v5229_v3  ;;  %v4930_v20 = vld [vmem:[#allocation11 + $0x558] sm:$0xff] }
 0x4d4   : > { %8528 = vmatpush2.bf16.msra.mxu1 %v10327_v41  ;;  %8474 = vmatprep.subr.bf16.mxu0 %v10710_v26  ;;  %v10287_v41 = vcombine.low %v4834_v35, %v4838_v30  ;;  %v10670_v26 = vcombine.high %v5217_v45, %v5221_v17  ;;  %v4934_v3 = vld [vmem:[#allocation11 + $0x578] sm:$0xff] }
 0x4d5   : > { %8529 = vmatprep.subr.bf16.mxu1 %v10320_v36  ;;  %v10280_v36 = vcombine.high %v4826_v0, %v4830_v11  ;;  %v5050_v35 = vld [vmem:[#allocation11 + $0x918] sm:$0xff] }
 0x4d6   : > { %v5054_v30 = vld [vmem:[#allocation11 + $0x938] sm:$0xff] }
 0x4d7   : > { %8475 = vmatpush2.bf16.msra.mxu0 %v10709_v34  ;;  %v10669_v34 = vcombine.low %v5217_v45, %v5221_v17  ;;  %v5042_v45 = vld [vmem:[#allocation11 + $0x8d8] sm:$0xff] }
 0x4d8   : > { %8530 = vmatpush2.bf16.msra.mxu1 %v10319_v63  ;;  %8476 = vmatprep.subr.bf16.mxu0 %v10702_v40  ;;  %v10279_v63 = vcombine.low %v4826_v0, %v4830_v11  ;;  %v10662_v40 = vcombine.high %v5209_v28, %v5213_v4  ;;  %v5046_v17 = vld [vmem:[#allocation11 + $0x8f8] sm:$0xff]  ;;  %v10383_v0 = vcombine.low %v4930_v20, %v4934_v3 }
 0x4d9   : > { %8531 = vmatprep.subr.bf16.mxu1 %v10312_v39  ;;  %v10528_v39 = vcombine.high %v5074_v22, %v5078_v23  ;;  %v10503_v11 = vcombine.low %v5050_v35, %v5054_v30 }
 0x4db   : > { %8477 = vmatpush2.bf16.msra.mxu0 %v10701_v18  ;;  %v10661_v18 = vcombine.low %v5209_v28, %v5213_v4  ;;  %v5034_v28 = vld [vmem:[#allocation11 + $0x898] sm:$0xff] }
 0x4dc   : > { %8532 = vmatpush2.bf16.msra.mxu1 %v10311_v12  ;;  %8478 = vmatprep.subr.bf16.mxu0 %v10694_v19  ;;  %v10527_v12 = vcombine.low %v5074_v22, %v5078_v23  ;;  %v10400_v19 = vcombine.high %v4946_v25, %v4950_v10  ;;  %v5038_v4 = vld [vmem:[#allocation11 + $0x8b8] sm:$0xff] }
 0x4dd   : > { %8533 = vmatprep.subr.bf16.mxu1 %v10304_v6  ;;  %v10520_v6 = vcombine.high %v5066_v42, %v5070_v52 }
 0x4df   : > { %8479 = vmatpush2.bf16.msra.mxu0 %v10693_v61  ;;  %v10399_v61 = vcombine.low %v4946_v25, %v4950_v10  ;;  %v12398_v25 = vpop.f32.mrf.mxu1 }
 0x4e0   : > { %8534 = vmatpush2.bf16.msra.mxu1 %v10303_v29  ;;  %8480 = vmatprep.subr.bf16.mxu0 %v10686_v58  ;;  %v10519_v29 = vcombine.low %v5066_v42, %v5070_v52  ;;  %v10392_v58 = vcombine.high %v4938_v2, %v4942_v16  ;;  %v10487_v42 = vcombine.low %v5034_v28, %v5038_v4 }
 0x4e1   : > { %8535 = vmatprep.subr.bf16.mxu1 %v10296_v51  ;;  %v10512_v51 = vcombine.high %v5058_v57, %v5062_v56 }
 0x4e3   : > { %8481 = vmatpush2.bf16.msra.mxu0 %v10685_v27  ;;  %v10391_v27 = vcombine.low %v4938_v2, %v4942_v16  ;;  %v5022_v2 = vld [vmem:[#allocation11 + $0x838] sm:$0xff]  ;;  %v12402_v16 = vpop.f32.mrf.mxu1 }
 0x4e4   : > { %8536 = vmatpush2.bf16.msra.mxu1 %v10295_v37  ;;  %8482 = vmatprep.subr.bf16.mxu0 %v10678_v9  ;;  %v10504_v37 = vcombine.high %v5050_v35, %v5054_v30  ;;  %v4922_v9 = vld [vmem:[#allocation11 + $0x518] sm:$0xff] }
 0x4e5   : > { %8537 = vmatprep.subr.bf16.mxu1 %v10288_v5  ;;  %v4926_v5 = vld [vmem:[#allocation11 + $0x538] sm:$0xff]  ;;  %v12406_v30 = vpop.f32.mrf.mxu1 }
 0x4e6   : > { %v10375_v22 = vcombine.low %v4922_v9, %v4926_v5  ;;  %v5142_v35 = vld [vmem:[#allocation11 + $0xbf8] sm:$0xff] }
 0x4e7   : > { %8483 = vmatpush2.bf16.msra.mxu0 %v10677_v15  ;;  %v10376_v15 = vcombine.high %v4922_v9, %v4926_v5  ;;  %v5010_v5 = vld [vmem:[#allocation11 + $0x7d8] sm:$0xff] }
 0x4e8   : > { %8538 = vmatpush2.bf16.msra.mxu1 %v10287_v41  ;;  %8484 = vmatprep.subr.bf16.mxu0 %v10670_v26  ;;  %v10496_v41 = vcombine.high %v5042_v45, %v5046_v17  ;;  %v4914_v26 = vld [vmem:[#allocation11 + $0x4d8] sm:$0xff] }
 0x4e9   : > { %8539 = vmatprep.subr.bf16.mxu1 %v10280_v36  ;;  %v4918_v36 = vld [vmem:[#allocation11 + $0x4f8] sm:$0xff] }
 0x4ea   : > { %v10368_v23 = vcombine.high %v4914_v26, %v4918_v36  ;;  %v10367_v10 = vcombine.low %v4914_v26, %v4918_v36 }
 0x4eb   : > { %8485 = vmatpush2.bf16.msra.mxu0 %v10669_v34  ;;  %v4906_v34 = vld [vmem:[#allocation11 + $0x498] sm:$0xff] }
 0x4ec   : > { %8540 = vmatpush2.bf16.msra.mxu1 %v10279_v63  ;;  %8486 = vmatprep.subr.bf16.mxu0 %v10662_v40  ;;  %v4910_v63 = vld [vmem:[#allocation11 + $0x4b8] sm:$0xff] }
 0x4ed   : > { %8615 = vmatprep.subr.bf16.mxu1 %v10528_v39  ;;  %v5026_v40 = vld [vmem:[#allocation11 + $0x858] sm:$0xff]  ;;  %v10360_v52 = vcombine.high %v4906_v34, %v4910_v63 }
 0x4ee   : > { %v5030_v39 = vld [vmem:[#allocation11 + $0x878] sm:$0xff] }
 0x4ef   : > { %8487 = vmatpush2.bf16.msra.mxu0 %v10661_v18  ;;  %8542 = vmatmul.mubr.bf16.vlgmr.msra.gmra.mxu1 %v12154_v1  ;;  %v10511_v1 = vcombine.low %v5058_v57, %v5062_v56  ;;  %v10480_v18 = vcombine.high %v5026_v40, %v5030_v39  ;;  %v10359_v57 = vcombine.low %v4906_v34, %v4910_v63 }
 0x4f0   : > { %8551 = vmatprep.mubr.bf16.mxu1 %v12266_v33  ;;  %8616 = vmatpush1.bf16.msra.mxu1 %v10527_v12  ;;  %v10384_v33 = vcombine.high %v4930_v20, %v4934_v3  ;;  %v4898_v12 = vld [vmem:[#allocation11 + $0x458] sm:$0xff]  ;;  %v10479_v56 = vcombine.low %v5026_v40, %v5030_v39 }
 0x4f1   : > { %8562 = vmatprep.subr.bf16.mxu0 %v10400_v19  ;;  %8617 = vmatprep.subr.bf16.mxu1 %v10520_v6  ;;  %v4902_v19 = vld [vmem:[#allocation11 + $0x478] sm:$0xff] }
 0x4f2   : > { %8489 = vmatmul.mubr.bf16.vlgmr.msra.gmra.mxu0 %v12349_v60  ;;  %v5018_v6 = vld [vmem:[#allocation11 + $0x818] sm:$0xff] }
 0x4f3   : > { %8498 = vmatprep.mubr.bf16.mxu0 %v12357_v62  ;;  %8563 = vmatpush1.bf16.msra.mxu0 %v10399_v61  ;;  %v10352_v61 = vcombine.high %v4898_v12, %v4902_v19  ;;  %v4894_v20 = vld [vmem:[#allocation11 + $0x438] sm:$0xff] }
 0x4f4   : > { %8618 = vmatpush1.bf16.msra.mxu1 %v10519_v29  ;;  %8564 = vmatprep.subr.bf16.mxu0 %v10392_v58  ;;  %v10472_v58 = vcombine.high %v5018_v6, %v5022_v2  ;;  %v5138_v3 = vld [vmem:[#allocation11 + $0xbd8] sm:$0xff] }
 0x4f5   : > { %8619 = vmatprep.subr.bf16.mxu1 %v10512_v51  ;;  %v4890_v51 = vld [vmem:[#allocation11 + $0x418] sm:$0xff]  ;;  %v10592_v9 = vcombine.high %v5138_v3, %v5142_v35 }
 0x4f7   : > { %8565 = vmatpush1.bf16.msra.mxu0 %v10391_v27  ;;  %8552 = vmatmul.mubr.bf16.gmra.mxu1 %v12165_v13  ;;  %v10495_v13 = vcombine.low %v5042_v45, %v5046_v17  ;;  %v10351_v27 = vcombine.low %v4898_v12, %v4902_v19  ;;  %v5014_v45 = vld [vmem:[#allocation11 + $0x7f8] sm:$0xff] }
 0x4f8   : > { %8620 = vmatpush1.bf16.msra.mxu1 %v10511_v1  ;;  %8647 = vmatprep.mubr.bf16.mxu1 %v12314_v59  ;;  %v10488_v59 = vcombine.high %v5034_v28, %v5038_v4  ;;  %v10471_v1 = vcombine.low %v5018_v6, %v5022_v2  ;;  %v5130_v17 = vld [vmem:[#allocation11 + $0xb98] sm:$0xff]  ;;  %v10464_v26 = vcombine.high %v5010_v5, %v5014_v45 }
 0x4f9   : > { %8566 = vmatprep.subr.bf16.mxu0 %v10384_v33  ;;  %8621 = vmatprep.subr.bf16.mxu1 %v10504_v37  ;;  %v10344_v33 = vcombine.high %v4890_v51, %v4894_v20  ;;  %v5002_v4 = vld [vmem:[#allocation11 + $0x798] sm:$0xff]  ;;  %v10463_v34 = vcombine.low %v5010_v5, %v5014_v45 }
 0x4fa   : > { %8499 = vmatmul.mubr.bf16.gmra.mxu0 %v12360_v8  ;;  %v5118_v12 = vld [vmem:[#allocation11 + $0xb38] sm:$0xff] }
 0x4fb   : > { %8567 = vmatpush1.bf16.msra.mxu0 %v10383_v0  ;;  %8594 = vmatprep.mubr.bf16.mxu0 %v12250_v32  ;;  %v12400_v32 = vpop.f32.mrf.mxu0  ;;  %v5134_v0 = vld [vmem:[#allocation11 + $0xbb8] sm:$0xff] }
 0x4fc   : > { %8622 = vmatpush1.bf16.msra.mxu1 %v10503_v11  ;;  %8568 = vmatprep.subr.bf16.mxu0 %v10376_v15  ;;  %v12410_v11 = vpop.f32.mrf.mxu1  ;;  %v10343_v15 = vcombine.low %v4890_v51, %v4894_v20  ;;  %v10584_v28 = vcombine.high %v5130_v17, %v5134_v0  ;;  %v10583_v63 = vcombine.low %v5130_v17, %v5134_v0  ;;  %v4990_v51 = vld [vmem:[#allocation11 + $0x738] sm:$0xff] }
 0x4fd   : > { %8623 = vmatprep.subr.bf16.mxu1 %v10496_v41  ;;  %v12404_v29 = vpop.f32.mrf.mxu0  ;;  %v10591_v41 = vcombine.low %v5138_v3, %v5142_v35  ;;  %v5106_v20 = vld [vmem:[#allocation11 + $0xad8] sm:$0xff] }
 0x4fe   : > { %v5110_v3 = vld [vmem:[#allocation11 + $0xaf8] sm:$0xff] }
 0x4ff   : > { %8569 = vmatpush1.bf16.msra.mxu0 %v10375_v22  ;;  %v12408_v37 = vpop.f32.mrf.mxu0  ;;  %v5006_v22 = vld [vmem:[#allocation11 + $0x7b8] sm:$0xff]  ;;  %v10560_v5 = vcombine.high %v5106_v20, %v5110_v3 }
 0x500   : > { %8624 = vmatpush1.bf16.msra.mxu1 %v10495_v13  ;;  %8570 = vmatprep.subr.bf16.mxu0 %v10368_v23  ;;  %v5122_v13 = vld [vmem:[#allocation11 + $0xb58] sm:$0xff]  ;;  %v10456_v40 = vcombine.high %v5002_v4, %v5006_v22  ;;  %v10455_v6 = vcombine.low %v5002_v4, %v5006_v22 }
 0x501   : > { %8625 = vmatprep.subr.bf16.mxu1 %v10488_v59  ;;  %v12412_v36 = vpop.f32.mrf.mxu0  ;;  %v5126_v23 = vld [vmem:[#allocation11 + $0xb78] sm:$0xff]  ;;  %v12414_v59 = vpop.f32.mrf.mxu1 }
 0x502   : > { %v10575_v2 = vcombine.low %v5122_v13, %v5126_v23  ;;  %v4978_v45 = vld [vmem:[#allocation11 + $0x6d8] sm:$0xff] }
 0x503   : > { %8571 = vmatpush1.bf16.msra.mxu0 %v10367_v10  ;;  %v12416_v39 = vpop.f32.mrf.mxu0  ;;  %v10576_v10 = vcombine.high %v5122_v13, %v5126_v23  ;;  %v12418_v19 = vpop.f32.mrf.mxu1  ;;  %v4982_v17 = vld [vmem:[#allocation11 + $0x6f8] sm:$0xff] }
 0x504   : > { %8626 = vmatpush1.bf16.msra.mxu1 %v10487_v42  ;;  %8572 = vmatprep.subr.bf16.mxu0 %v10360_v52  ;;  %v4994_v42 = vld [vmem:[#allocation11 + $0x758] sm:$0xff]  ;;  %v10432_v4 = vcombine.high %v4978_v45, %v4982_v17 }
 0x505   : > { %8627 = vmatprep.subr.bf16.mxu1 %v10480_v18  ;;  %v4998_v52 = vld [vmem:[#allocation11 + $0x778] sm:$0xff]  ;;  %v12422_v35 = vpop.f32.mrf.mxu1 }
 0x506   : > { %v5114_v18 = vld [vmem:[#allocation11 + $0xb18] sm:$0xff] }
 0x507   : > { %8573 = vmatpush1.bf16.msra.mxu0 %v10359_v57  ;;  %v10448_v57 = vcombine.high %v4994_v42, %v4998_v52  ;;  %v5098_v0 = vld [vmem:[#allocation11 + $0xa98] sm:$0xff] }
 0x508   : > { %8628 = vmatpush1.bf16.msra.mxu1 %v10479_v56  ;;  %8574 = vmatprep.subr.bf16.mxu0 %v10352_v61  ;;  %v12420_v56 = vpop.f32.mrf.mxu0  ;;  %v10568_v61 = vcombine.high %v5114_v18, %v5118_v12 }
 0x509   : > { %8629 = vmatprep.subr.bf16.mxu1 %v10472_v58  ;;  %v4986_v58 = vld [vmem:[#allocation11 + $0x718] sm:$0xff] }
 0x50b   : > { %8575 = vmatpush1.bf16.msra.mxu0 %v10351_v27  ;;  %v10447_v27 = vcombine.low %v4994_v42, %v4998_v52  ;;  %v10431_v52 = vcombine.low %v4978_v45, %v4982_v17 }
 0x50c   : > { %8630 = vmatpush1.bf16.msra.mxu1 %v10471_v1  ;;  %8576 = vmatprep.subr.bf16.mxu0 %v10344_v33  ;;  %v10567_v1 = vcombine.low %v5114_v18, %v5118_v12  ;;  %v10440_v33 = vcombine.high %v4986_v58, %v4990_v51 }
 0x50d   : > { %8631 = vmatprep.subr.bf16.mxu1 %v10592_v9  ;;  %v12424_v9 = vpop.f32.mrf.mxu0 }
 0x50f   : > { %8577 = vmatpush1.bf16.msra.mxu0 %v10343_v15  ;;  %v5102_v15 = vld [vmem:[#allocation11 + $0xab8] sm:$0xff]  ;;  %v12428_v22 = vpop.f32.mrf.mxu0 }
 0x510   : > { %8632 = vmatpush2.bf16.msra.mxu1 %v10591_v41  ;;  %8578 = vmatprep.subr.bf16.mxu0 %v10464_v26  ;;  %v12426_v41 = vpop.f32.mrf.mxu1  ;;  %v10439_v26 = vcombine.low %v4986_v58, %v4990_v51  ;;  %v10552_v23 = vcombine.high %v5098_v0, %v5102_v15  ;;  %v10551_v18 = vcombine.low %v5098_v0, %v5102_v15  ;;  %v5082_v58 = vld [vmem:[#allocation11 + $0xa18] sm:$0xff] }
 0x511   : > { %8633 = vmatprep.subr.bf16.mxu1 %v10584_v28  ;;  %v10559_v28 = vcombine.low %v5106_v20, %v5110_v3  ;;  %v12432_v42 = vpop.f32.mrf.mxu0  ;;  %v5086_v51 = vld [vmem:[#allocation11 + $0xa38] sm:$0xff]  ;;  %v12434_v20 = vld [vmem:[#allocation13] sm:$0xff] }
 0x512   : > { %v12430_v13 = vpop.f32.mrf.mxu1  ;;  %v10536_v17 = vcombine.high %v5082_v58, %v5086_v51  ;;  %v4954_v0 = vld [vmem:[#allocation11 + $0x618] sm:$0xff] }
 0x513   : > { %8579 = vmatpush2.bf16.msra.mxu0 %v10463_v34  ;;  %v4970_v34 = vld [vmem:[#allocation11 + $0x698] sm:$0xff]  ;;  %v8068_v3 = vpop.f32.mrf.mxu0 }
 0x514   : > { %8634 = vmatpush2.bf16.msra.mxu1 %v10583_v63  ;;  %8580 = vmatprep.subr.bf16.mxu0 %v10456_v40  ;;  %v4974_v63 = vld [vmem:[#allocation11 + $0x6b8] sm:$0xff] }
 0x515   : > { %8635 = vmatprep.subr.bf16.mxu1 %v10576_v10  ;;  %v5090_v40 = vld [vmem:[#allocation11 + $0xa58] sm:$0xff]  ;;  %v10424_v12 = vcombine.high %v4970_v34, %v4974_v63 }
 0x516   : > { %v5094_v10 = vld [vmem:[#allocation11 + $0xa78] sm:$0xff] }
 0x517   : > { %8581 = vmatpush2.bf16.msra.mxu0 %v10455_v6  ;;  %v8015_v6 = vpop.f32.mrf.mxu1  ;;  %v4958_v15 = vld [vmem:[#allocation11 + $0x638] sm:$0xff] }
 0x518   : > { %8636 = vmatpush2.bf16.msra.mxu1 %v10575_v2  ;;  %8582 = vmatprep.subr.bf16.mxu0 %v10448_v57  ;;  %v10544_v2 = vcombine.high %v5090_v40, %v5094_v10  ;;  %v4962_v57 = vld [vmem:[#allocation11 + $0x658] sm:$0xff] }
 0x519   : > { %8637 = vmatprep.subr.bf16.mxu1 %v10568_v61  ;;  %v4966_v61 = vld [vmem:[#allocation11 + $0x678] sm:$0xff]  ;;  %v12440_v45 = vpop.f32.mrf.mxu1 }
 0x51b   : > { %8583 = vmatpush2.bf16.msra.mxu0 %v10447_v27  ;;  %v10423_v27 = vcombine.low %v4970_v34, %v4974_v63  ;;  %v10408_v34 = vcombine.high %v4954_v0, %v4958_v15  ;;  %v8019_v63 = vpop.f32.mrf.mxu1 }
 0x51c   : > { %8638 = vmatpush2.bf16.msra.mxu1 %v10567_v1  ;;  %8584 = vmatprep.subr.bf16.mxu0 %v10440_v33  ;;  %v12438_v1 = vrot.slane %v12434_v20, %v12006_v48  ;;  %v10543_v33 = vcombine.low %v5090_v40, %v5094_v10  ;;  %v11285_v40 = vld [vmem:[#allocation14 + $0x78] sm:$0xff]  }
 0x51d   : > { %8639 = vmatprep.subr.bf16.mxu1 %v10560_v5  ;;  %v10416_v5 = vcombine.high %v4962_v57, %v4966_v61 }
 0x51e   : > { %v7910_v48 = vadd.f32 %v12402_v16, %v12438_v1  ;;  %v11286_v16 = vld [vmem:[#allocation14 + $0x38] sm:$0xff]  }
 0x51f   : > { %8585 = vmatpush2.bf16.msra.mxu0 %v10439_v26  ;;  %v7914_v26 = vadd.f32 %v12410_v11, %v12438_v1  ;;  %v10407_v11 = vcombine.low %v4954_v0, %v4958_v15  ;;  %v11289_v15 = vld [vmem:[#allocation14 + $0x68] sm:$0xff]  }
 0x520   : > { %8640 = vmatpush2.bf16.msra.mxu1 %v10559_v28  ;;  %8586 = vmatprep.subr.bf16.mxu0 %v10432_v4  ;;  %v12444_v28 = vpop.f32.mrf.mxu0  ;;  %v10415_v4 = vcombine.low %v4962_v57, %v4966_v61 }
 0x521   : > { %8641 = vmatprep.subr.bf16.mxu1 %v10552_v23  ;;  %v10535_v23 = vcombine.low %v5082_v58, %v5086_v51  ;;  %v7967_v10 = vadd.f32 %v12412_v36, %v7914_v26  ;;  %v11287_v58 = vld [vmem:[#allocation14 + $0x70] sm:$0xff]  }
 0x522   : > { %v5194_v51 = vld [vmem:[#allocation11 + $0xd98] sm:$0xff] }
 0x523   : > { %8587 = vmatpush2.bf16.msra.mxu0 %v10431_v52  ;;  %v5202_v52 = vld [vmem:[#allocation11 + $0xdd8] sm:$0xff]  ;;  %v8020_v57 = vadd.f32 %v8019_v63, %v7967_v10 }
 0x524   : > { %8642 = vmatpush2.bf16.msra.mxu1 %v10551_v18  ;;  %8588 = vmatprep.subr.bf16.mxu0 %v10424_v12  ;;  %v5206_v18 = vld [vmem:[#allocation11 + $0xdf8] sm:$0xff]  ;;  %v8072_v12 = vpop.f32.mrf.mxu0 }
 0x525   : > { %8643 = vmatprep.subr.bf16.mxu1 %v10544_v2  ;;  %v7963_v2 = vadd.f32 %v12404_v29, %v7910_v48  ;;  %v10656_v61 = vcombine.high %v5202_v52, %v5206_v18  ;;  %v10655_v36 = vcombine.low %v5202_v52, %v5206_v18  ;;  %v11288_v29 = vld [vmem:[#allocation14 + $0x30] sm:$0xff]  }
 0x526   : > { %v5190_v48 = vld [vmem:[#allocation11 + $0xd78] sm:$0xff]  ;;  %v12456_v52 = vpop.f32.mrf.mxu0 }
 0x527   : > { %8589 = vmatpush2.bf16.msra.mxu0 %v10423_v27  ;;  %v5198_v27 = vld [vmem:[#allocation11 + $0xdb8] sm:$0xff] }
 0x528   : > { %8644 = vmatpush2.bf16.msra.mxu1 %v10543_v33  ;;  %8590 = vmatprep.subr.bf16.mxu0 %v10416_v5  ;;  %v8016_v33 = vadd.f32 %v8015_v6, %v7963_v2  ;;  %v8073_v5 = vadd.f32 %v8072_v12, %v8020_v57  ;;  %v10648_v0 = vcombine.high %v5194_v51, %v5198_v27  ;;  %v5178_v63 = vld [vmem:[#allocation11 + $0xd18] sm:$0xff] }
 0x529   : > { %8645 = vmatprep.subr.bf16.mxu1 %v10536_v17  ;;  %v10647_v6 = vcombine.low %v5194_v51, %v5198_v27  ;;  %v5170_v2 = vld [vmem:[#allocation11 + $0xcd8] sm:$0xff] }
 0x52a   : > { %v8069_v17 = vadd.f32 %v8068_v3, %v8016_v33  ;;  %v8730_v26 = vmax.f32 %v8073_v5, 0.0  ;;  %v11290_v3 = vld [vmem:[#allocation14 + $0x28] sm:$0xff]   ;;  %v5174_v57 = vld [vmem:[#allocation11 + $0xcf8] sm:$0xff] }
 0x52b   : > { %8591 = vmatpush2.bf16.msra.mxu0 %v10415_v4  ;;  %v5186_v4 = vld [vmem:[#allocation11 + $0xd58] sm:$0xff]  ;;  %v10624_v51 = vcombine.high %v5170_v2, %v5174_v57 }
 0x52c   : > { %8646 = vmatpush2.bf16.msra.mxu1 %v10535_v23  ;;  %8592 = vmatprep.subr.bf16.mxu0 %v10408_v34  ;;  %v10640_v23 = vcombine.high %v5186_v4, %v5190_v48  ;;  %v11291_v34 = vld [vmem:[#allocation14 + $0x60] sm:$0xff]   ;;  %v11295_v5 = vld [vmem:[#allocation14 + $0x50] sm:$0xff]  }
 0x52d   : > { %10792 = vmatprep.subr.bf16.mxu1 %v11285_v40  ;;  %v5182_v40 = vld [vmem:[#allocation11 + $0xd38] sm:$0xff] }
 0x52e   : > { %v10632_v18 = vcombine.high %v5178_v63, %v5182_v40 }
 0x52f   : > { %8593 = vmatpush2.bf16.msra.mxu0 %v10407_v11  ;;  %8648 = vmatmul.mubr.bf16.vlgmr.msra.gmra.mxu1 %v12318_v38  ;;  %v8722_v38 = vmax.f32 %v8069_v17, 0.0  ;;  %v11293_v11 = vld [vmem:[#allocation14 + $0x58] sm:$0xff]   ;;  %v5166_v17 = vld [vmem:[#allocation11 + $0xcb8] sm:$0xff] }
 0x530   : > { %8657 = vmatprep.mubr.bf16.mxu1 %v12322_v55  ;;  %10793 = vmatpush3.bf16.msra.mxu1 %v11286_v16  ;;  %v12454_v55 = vpop.f32.mrf.mxu1  ;;  %v8078_v16 = vpop.f32.mrf.mxu0 }
 0x531   : > { %8668 = vmatprep.subr.bf16.mxu0 %v10656_v61  ;;  %10794 = vmatprep.subr.bf16.mxu1 %v11287_v58  ;;  %v8754_v10 = vpack.c.bf16 %v8730_v26, %v8722_v38  ;;  %v5276_v61 = vrot.slane %v12434_v20, %v12009_v49  ;;  %v11294_v58 = vld [vmem:[#allocation14 + $0x18] sm:$0xff]  }
 0x532   : > { %8595 = vmatmul.mubr.bf16.vlgmr.msra.gmra.mxu0 %v12243_v47  ;;  %v10639_v47 = vcombine.low %v5186_v4, %v5190_v48  ;;  %v8025_v12 = vpop.f32.mrf.mxu1  ;;  %v12468_v49 = vpop.f32.mrf.mxu0  ;;  %v11297_v48 = vld [vmem:[#allocation14 + $0x48] sm:$0xff]  }
 0x533   : > { %8604 = vmatprep.mubr.bf16.mxu0 %v12268_v54  ;;  %8669 = vmatpush1.bf16.msra.mxu0 %v10655_v36  ;;  %v11292_v54 = vld [vmem:[#allocation14 + $0x20] sm:$0xff]   ;;  %v7912_v27 = vadd.f32 %v12406_v30, %v5276_v61  ;;  %v5162_v36 = vld [vmem:[#allocation11 + $0xc98] sm:$0xff] }
 0x534   : > { %10795 = vmatpush3.bf16.msra.mxu1 %v11288_v29  ;;  %8670 = vmatprep.subr.bf16.mxu0 %v10648_v0  ;;  %v12464_v33 = vpop.f32.mrf.mxu1  ;;  %v10623_v29 = vcombine.low %v5170_v2, %v5174_v57  ;;  %v7920_v0 = vadd.f32 %v12418_v19, %v12438_v1  ;;  %v11296_v30 = vld [vmem:[#allocation14 + $0x10] sm:$0xff]   ;;  %v10615_v19 = vcombine.low %v5162_v36, %v5166_v17 }
 0x535   : > { %10796 = vmatprep.subr.bf16.mxu1 %v11289_v15  ;;  %v10616_v15 = vcombine.high %v5162_v36, %v5166_v17  ;;  %v7965_v26 = vadd.f32 %v12408_v37, %v7912_v27  ;;  %v7918_v2 = vadd.f32 %v12414_v59, %v5276_v61  ;;  %v5270_v36 = vld [vmem:[#allocation11 + $0xff8] sm:$0xff]  ;;  %v11317_v59 = vld [vmem:[#allocation14 + $0x178] sm:$0xff]  }
 0x536   : > { %v8029_v4 = vpop.f32.mrf.mxu1 }
 0x537   : > { %8671 = vmatpush1.bf16.msra.mxu0 %v10647_v6  ;;  %8658 = vmatmul.mubr.bf16.gmra.mxu1 %v12324_v14  ;;  %v10631_v14 = vcombine.low %v5178_v63, %v5182_v40  ;;  %v5154_v6 = vld [vmem:[#allocation11 + $0xc58] sm:$0xff]  ;;  %v11298_v40 = vld [vmem:[#allocation14 + $0x8] sm:$0xff]  }
 0x538   : > { %10797 = vmatpush3.bf16.msra.mxu1 %v11290_v3  ;;  %9320 = vmatprep.mubr.bf16.mxu1 %v8754_v10  ;;  %v8082_v3 = vpop.f32.mrf.mxu0  ;;  %v12478_v63 = vpop.f32.mrf.mxu1 }
 0x539   : > { %8672 = vmatprep.subr.bf16.mxu0 %v10640_v23  ;;  %10798 = vmatprep.subr.bf16.mxu1 %v11291_v34  ;;  %v8018_v23 = vadd.f32 %v12440_v45, %v7965_v26  ;;  %v11299_v45 = vld [vmem:[#allocation14 + $0x40] sm:$0xff]  }
 0x53a   : > { %8605 = vmatmul.mubr.bf16.gmra.mxu0 %v12253_v53  ;;  %v7924_v53 = vadd.f32 %v12426_v41, %v12438_v1  ;;  %v5158_v41 = vld [vmem:[#allocation11 + $0xc78] sm:$0xff]  ;;  %v7973_v1 = vadd.f32 %v12420_v56, %v7920_v0  ;;  %v12480_v37 = vpop.f32.mrf.mxu0 }
 0x53b   : > { %8673 = vmatpush1.bf16.msra.mxu0 %v10639_v47  ;;  %8700 = vmatprep.mubr.bf16.mxu0 %v12346_v43  ;;  %v7908_v43 = vadd.f32 %v12398_v25, %v5276_v61  ;;  %v10608_v10 = vcombine.high %v5154_v6, %v5158_v41 }
 0x53c   : > { %10799 = vmatpush3.bf16.msra.mxu1 %v11292_v54  ;;  %8674 = vmatprep.subr.bf16.mxu0 %v10632_v18  ;;  %v7977_v38 = vadd.f32 %v12428_v22, %v7924_v53  ;;  %v7922_v22 = vadd.f32 %v12422_v35, %v5276_v61  ;;  %v5146_v54 = vld [vmem:[#allocation11 + $0xc18] sm:$0xff]  ;;  %v8026_v56 = vadd.f32 %v8025_v12, %v7973_v1  ;;  %v12489_v35 = vpop.f32.mrf.mxu0 }
 0x53d   : > { %10800 = vmatprep.subr.bf16.mxu1 %v11293_v11  ;;  %v7961_v25 = vadd.f32 %v12400_v32, %v7908_v43  ;;  %v8071_v32 = vadd.f32 %v12444_v28, %v8018_v23  ;;  %v5150_v18 = vld [vmem:[#allocation11 + $0xc38] sm:$0xff] }
 0x53e   : > { %v8030_v34 = vadd.f32 %v8029_v4, %v7977_v38  ;;  %v10600_v28 = vcombine.high %v5146_v54, %v5150_v18  ;;  %v7975_v27 = vadd.f32 %v12424_v9, %v7922_v22  ;;  %v5266_v12 = vld [vmem:[#allocation11 + $0xfd8] sm:$0xff]  ;;  %v12496_v0 = vpop.f32.mrf.mxu0 }
 0x53f   : > { %8675 = vmatpush1.bf16.msra.mxu0 %v10631_v14  ;;  %v8014_v47 = vadd.f32 %v12430_v13, %v7961_v25  ;;  %v10607_v14 = vcombine.low %v5154_v6, %v5158_v41  ;;  %v11300_v13 = vld [vmem:[#allocation14] sm:$0xff]   ;;  %v10720_v9 = vcombine.high %v5266_v12, %v5270_v36  ;;  %v5258_v4 = vld [vmem:[#allocation11 + $0xf98] sm:$0xff]  ;;  %v10719_v38 = vcombine.low %v5266_v12, %v5270_v36 }
 0x540   : > { %10801 = vmatpush3.bf16.msra.mxu1 %v11294_v58  ;;  %8676 = vmatprep.subr.bf16.mxu0 %v10624_v51  ;;  %v8083_v11 = vadd.f32 %v8082_v3, %v8030_v34  ;;  %v12487_v58 = vpop.f32.mrf.mxu1  ;;  %v8079_v51 = vadd.f32 %v8078_v16, %v8026_v56  ;;  %v8028_v17 = vadd.f32 %v12464_v33, %v7975_v27  ;;  %v11318_v33 = vld [vmem:[#allocation14 + $0x138] sm:$0xff]   ;;  %v11319_v6 = vld [vmem:[#allocation14 + $0x170] sm:$0xff]   ;;  %v12503_v25 = vpop.f32.mrf.mxu0  ;;  %v11321_v34 = vld [vmem:[#allocation14 + $0x168] sm:$0xff]  }
 0x541   : > { %10802 = vmatprep.subr.bf16.mxu1 %v11295_v5  ;;  %v8067_v57 = vadd.f32 %v12432_v42, %v8014_v47  ;;  %v8729_v5 = vmax.f32 %v8071_v32, 0.0  ;;  %v7971_v42 = vadd.f32 %v12416_v39, %v7918_v2  ;;  %v10599_v16 = vcombine.low %v5146_v54, %v5150_v18  ;;  %v5262_v39 = vld [vmem:[#allocation11 + $0xfb8] sm:$0xff]  ;;  %v11322_v18 = vld [vmem:[#allocation14 + $0x128] sm:$0xff]   ;;  %v11323_v56 = vld [vmem:[#allocation14 + $0x160] sm:$0xff]  }
 0x542   : > { %v8746_v61 = vmax.f32 %v8083_v11, 0.0  ;;  %v12494_v43 = vpop.f32.mrf.mxu1  ;;  %v8081_v26 = vadd.f32 %v12468_v49, %v8028_v17  ;;  %v5250_v49 = vld [vmem:[#allocation11 + $0xf58] sm:$0xff]  ;;  %v12507_v22 = vpop.f32.mrf.mxu0  ;;  %v11325_v27 = vld [vmem:[#allocation14 + $0x158] sm:$0xff]  }
 0x543   : > { %8677 = vmatpush1.bf16.msra.mxu0 %v10623_v29  ;;  %v8721_v53 = vmax.f32 %v8067_v57, 0.0  ;;  %v8738_v29 = vmax.f32 %v8079_v51, 0.0  ;;  %v11320_v1 = vld [vmem:[#allocation14 + $0x130] sm:$0xff]   ;;  %v11326_v17 = vld [vmem:[#allocation14 + $0x118] sm:$0xff]  }
 0x544   : > { %10803 = vmatpush3.bf16.msra.mxu1 %v11296_v30  ;;  %8678 = vmatprep.subr.bf16.mxu0 %v10616_v15  ;;  %v8024_v30 = vadd.f32 %v12454_v55, %v7971_v42  ;;  %v12501_v3 = vpop.f32.mrf.mxu1  ;;  %v10712_v55 = vcombine.high %v5258_v4, %v5262_v39  ;;  %v8745_v23 = vmax.f32 %v8081_v26, 0.0  ;;  %v5246_v54 = vld [vmem:[#allocation11 + $0xf38] sm:$0xff]  ;;  %v12511_v57 = vpop.f32.mrf.mxu0 }
 0x545   : > { %10804 = vmatprep.subr.bf16.mxu1 %v11297_v48  ;;  %v8753_v15 = vpack.c.bf16 %v8729_v5, %v8721_v53  ;;  %v8762_v48 = vpack.c.bf16 %v8746_v61, %v8738_v29  ;;  %v5234_v51 = vld [vmem:[#allocation11 + $0xed8] sm:$0xff] }
 0x546   : > { %v8077_v41 = vadd.f32 %v12456_v52, %v8024_v30  ;;  %v10711_v52 = vcombine.low %v5258_v4, %v5262_v39  ;;  %v12515_v36 = vpop.f32.mrf.mxu0  ;;  %v5226_v61 = vld [vmem:[#allocation11 + $0xe98] sm:$0xff] }
 0x547   : > { %8679 = vmatpush1.bf16.msra.mxu0 %v10615_v19  ;;  %v5254_v19 = vld [vmem:[#allocation11 + $0xf78] sm:$0xff] }
 0x548   : > { %10805 = vmatpush3.bf16.msra.mxu1 %v11298_v40  ;;  %8680 = vmatprep.subr.bf16.mxu0 %v10608_v10  ;;  %v8737_v40 = vmax.f32 %v8077_v41, 0.0  ;;  %v12505_v10 = vpop.f32.mrf.mxu1  ;;  %v10704_v47 = vcombine.high %v5250_v49, %v5254_v19  ;;  %v10703_v11 = vcombine.low %v5250_v49, %v5254_v19  ;;  %v5230_v42 = vld [vmem:[#allocation11 + $0xeb8] sm:$0xff] }
 0x549   : > { %10806 = vmatprep.subr.bf16.mxu1 %v11299_v45  ;;  %v5242_v45 = vld [vmem:[#allocation11 + $0xf18] sm:$0xff]  ;;  %v10680_v30 = vcombine.high %v5226_v61, %v5230_v42 }
 0x54a   : > { %v8761_v32 = vpack.c.bf16 %v8745_v23, %v8737_v40  ;;  %v12509_v2 = vpop.f32.mrf.mxu1  ;;  %v10695_v5 = vcombine.low %v5242_v45, %v5246_v54  ;;  %v11327_v53 = vld [vmem:[#allocation14 + $0x150] sm:$0xff]   ;;  %v11330_v23 = vld [vmem:[#allocation14 + $0x108] sm:$0xff]  }
 0x54b   : > { %8681 = vmatpush1.bf16.msra.mxu0 %v10607_v14  ;;  %v10696_v14 = vcombine.high %v5242_v45, %v5246_v54  ;;  %v5222_v26 = vld [vmem:[#allocation11 + $0xe78] sm:$0xff] }
 0x54c   : > { %10807 = vmatpush3.bf16.msra.mxu1 %v11300_v13  ;;  %8682 = vmatprep.subr.bf16.mxu0 %v10600_v28  ;;  %v5238_v13 = vld [vmem:[#allocation11 + $0xef8] sm:$0xff]  ;;  %v11324_v28 = vld [vmem:[#allocation14 + $0x120] sm:$0xff]   ;;  %v12513_v12 = vpop.f32.mrf.mxu1 }
 0x54d   : > { %10848 = vmatprep.subr.bf16.mxu1 %v11317_v59  ;;  %v10688_v59 = vcombine.high %v5234_v51, %v5238_v13  ;;  %v11328_v4 = vld [vmem:[#allocation14 + $0x110] sm:$0xff]  }
 0x54e   : > { %v12517_v29 = vpop.f32.mrf.mxu1 }
 0x54f   : > { %8683 = vmatpush1.bf16.msra.mxu0 %v10599_v16  ;;  %9321 = vmatmul.mubr.bf16.vlgmr.msra.gmra.mxu1 %v8753_v15  ;;  %v10687_v16 = vcombine.low %v5234_v51, %v5238_v13  ;;  %v5218_v15 = vld [vmem:[#allocation11 + $0xe58] sm:$0xff] }
 0x550   : > { %9328 = vmatprep.mubr.bf16.mxu1 %v8762_v48  ;;  %8684 = vmatprep.subr.bf16.mxu0 %v10720_v9  ;;  %v12519_v9 = vpop.f32.mrf.mxu0  ;;  %v12521_v39 = vpop.f32.mrf.mxu1  ;;  %v11329_v48 = vld [vmem:[#allocation14 + $0x148] sm:$0xff]   ;;  %v10672_v41 = vcombine.high %v5218_v15, %v5222_v26  ;;  %v10671_v40 = vcombine.low %v5218_v15, %v5222_v26 }
 0x551   : > { %10849 = vmatpush3.bf16.msra.mxu1 %v11318_v33 }
 0x552   : > { %10850 = vmatprep.subr.bf16.mxu1 %v11319_v6  ;;  %v12523_v33 = vpop.f32.mrf.mxu0  ;;  %v10679_v6 = vcombine.low %v5226_v61, %v5230_v42  ;;  %v8227_v49 = vpop.f32.mrf.mxu1  ;;  %v11305_v61 = vld [vmem:[#allocation14 + $0xe8] sm:$0xff]  }
 0x553   : > { %8685 = vmatpush2.bf16.msra.mxu0 %v10719_v38  ;;  %v5210_v38 = vld [vmem:[#allocation11 + $0xe18] sm:$0xff] }
 0x554   : > { %8686 = vmatprep.subr.bf16.mxu0 %v10712_v55  ;;  %v5214_v55 = vld [vmem:[#allocation11 + $0xe38] sm:$0xff]  ;;  %v8280_v19 = vpop.f32.mrf.mxu0  ;;  %v12531_v45 = vpop.f32.mrf.mxu1 }
 0x555   : > { %10851 = vmatpush3.bf16.msra.mxu1 %v11320_v1  ;;  %v11331_v1 = vld [vmem:[#allocation14 + $0x140] sm:$0xff]  }
 0x556   : > { %10852 = vmatprep.subr.bf16.mxu1 %v11321_v34  ;;  %v12527_v34 = vrot.slane %v12434_v20, %v12033_v44  ;;  %v12533_v54 = vpop.f32.mrf.mxu0 }
 0x557   : > { %8687 = vmatpush2.bf16.msra.mxu0 %v10711_v52  ;;  %9329 = vmatmul.mubr.bf16.gmra.mxu1 %v8761_v32  ;;  %v10664_v52 = vcombine.high %v5210_v38, %v5214_v55  ;;  %v11332_v32 = vld [vmem:[#allocation14 + $0x100] sm:$0xff]  }
 0x558   : > { %8688 = vmatprep.subr.bf16.mxu0 %v10704_v47  ;;  %v8126_v47 = vadd.f32 %v12501_v3, %v12527_v34  ;;  %v8231_v3 = vpop.f32.mrf.mxu1  ;;  %v8284_v51 = vpop.f32.mrf.mxu0 }
 0x559   : > { %10853 = vmatpush3.bf16.msra.mxu1 %v11322_v18  ;;  %v8122_v18 = vadd.f32 %v12487_v58, %v12527_v34 }
 0x55a   : > { %10854 = vmatprep.subr.bf16.mxu1 %v11323_v56  ;;  %v8179_v44 = vadd.f32 %v12503_v25, %v8126_v47  ;;  %v10663_v56 = vcombine.low %v5210_v38, %v5214_v55  ;;  %v11304_v25 = vld [vmem:[#allocation14 + $0xb0] sm:$0xff]   ;;  %v12541_v42 = vpop.f32.mrf.mxu1  ;;  %v8288_v26 = vpop.f32.mrf.mxu0 }
 0x55b   : > { %8689 = vmatpush2.bf16.msra.mxu0 %v10703_v11  ;;  %v11301_v11 = vld [vmem:[#allocation14 + $0xf8] sm:$0xff]   ;;  %v11311_v55 = vld [vmem:[#allocation14 + $0xd0] sm:$0xff]  }
 0x55c   : > { %8690 = vmatprep.subr.bf16.mxu0 %v10696_v14  ;;  %v8175_v14 = vadd.f32 %v12489_v35, %v8122_v18  ;;  %v8232_v13 = vadd.f32 %v8231_v3, %v8179_v44  ;;  %v8237_v15 = vpop.f32.mrf.mxu1  ;;  %v11314_v44 = vld [vmem:[#allocation14 + $0x88] sm:$0xff]  }
 0x55d   : > { %10855 = vmatpush3.bf16.msra.mxu1 %v11324_v28  ;;  %v11302_v28 = vld [vmem:[#allocation14 + $0xb8] sm:$0xff]  }
 0x55e   : > { %10856 = vmatprep.subr.bf16.mxu1 %v11325_v27  ;;  %v11303_v27 = vld [vmem:[#allocation14 + $0xf0] sm:$0xff]  }
 0x55f   : > { %8691 = vmatpush2.bf16.msra.mxu0 %v10695_v5  ;;  %v8228_v5 = vadd.f32 %v8227_v49, %v8175_v14 }
 0x560   : > { %8692 = vmatprep.subr.bf16.mxu0 %v10688_v59  ;;  %v8285_v59 = vadd.f32 %v8284_v51, %v8232_v13  ;;  %v11316_v13 = vld [vmem:[#allocation14 + $0x80] sm:$0xff]  }
 0x561   : > { %10857 = vmatpush3.bf16.msra.mxu1 %v11326_v17  ;;  %v8281_v58 = vadd.f32 %v8280_v19, %v8228_v5 }
 0x562   : > { %10858 = vmatprep.subr.bf16.mxu1 %v11327_v53  ;;  %v8732_v35 = vmax.f32 %v8285_v59, 0.0  ;;  %v11306_v53 = vld [vmem:[#allocation14 + $0xa8] sm:$0xff]  }
 0x563   : > { %8693 = vmatpush2.bf16.msra.mxu0 %v10687_v16  ;;  %v8724_v17 = vmax.f32 %v8281_v58, 0.0  ;;  %v11307_v16 = vld [vmem:[#allocation14 + $0xe0] sm:$0xff]  }
 0x564   : > { %8694 = vmatprep.subr.bf16.mxu0 %v10680_v30 }
 0x565   : > { %10859 = vmatpush3.bf16.msra.mxu1 %v11328_v4  ;;  %v8756_v30 = vpack.c.bf16 %v8732_v35, %v8724_v17  ;;  %v5284_v4 = vrot.slane %v12434_v20, %v12036_v50  ;;  %v8132_v50 = vadd.f32 %v12509_v2, %v12527_v34 }
 0x566   : > { %10860 = vmatprep.subr.bf16.mxu1 %v11329_v48  ;;  %v8239_v48 = vpop.f32.mrf.mxu1 }
 0x567   : > { %8695 = vmatpush2.bf16.msra.mxu0 %v10679_v6  ;;  %v8290_v6 = vpop.f32.mrf.mxu0  ;;  %v8124_v38 = vadd.f32 %v12494_v43, %v5284_v4  ;;  %v8134_v2 = vadd.f32 %v12513_v12, %v5284_v4 }
 0x568   : > { %8696 = vmatprep.subr.bf16.mxu0 %v10672_v41  ;;  %v11310_v41 = vld [vmem:[#allocation14 + $0x98] sm:$0xff]   ;;  %v8241_v19 = vpop.f32.mrf.mxu1 }
 0x569   : > { %10861 = vmatpush3.bf16.msra.mxu1 %v11330_v23  ;;  %v8136_v23 = vadd.f32 %v12517_v29, %v12527_v34  ;;  %v8177_v49 = vadd.f32 %v12496_v0, %v8124_v38  ;;  %v8185_v29 = vadd.f32 %v12511_v57, %v8132_v50  ;;  %v8130_v57 = vadd.f32 %v12505_v10, %v5284_v4  ;;  %v12576_v38 = vld [vmem:[#allocation14 + $0x1b0] sm:$0xff]  }
 0x56a   : > { %10862 = vmatprep.subr.bf16.mxu1 %v11331_v1  ;;  %v8292_v1 = vpop.f32.mrf.mxu0  ;;  %v12555_v47 = vpop.f32.mrf.mxu1 }
 0x56b   : > { %8697 = vmatpush2.bf16.msra.mxu0 %v10671_v40  ;;  %v8189_v40 = vadd.f32 %v12519_v9, %v8136_v23  ;;  %v8183_v12 = vadd.f32 %v12507_v22, %v8130_v57  ;;  %v12604_v57 = vld [vmem:[#allocation14 + $0x1d0] sm:$0xff]  }
 0x56c   : > { %8698 = vmatprep.subr.bf16.mxu0 %v10664_v52  ;;  %v11312_v52 = vld [vmem:[#allocation14 + $0x90] sm:$0xff]   ;;  %v8294_v0 = vpop.f32.mrf.mxu0  ;;  %v12561_v34 = vpop.f32.mrf.mxu1 }
 0x56d   : > { %10863 = vmatpush3.bf16.msra.mxu1 %v11332_v32  ;;  %v11313_v32 = vld [vmem:[#allocation14 + $0xc8] sm:$0xff]   ;;  %v8242_v18 = vadd.f32 %v8241_v19, %v8189_v40  ;;  %v8236_v10 = vadd.f32 %v12541_v42, %v8183_v12  ;;  %v12571_v42 = vld [vmem:[#allocation14 + $0x1b8] sm:$0xff]   ;;  %v12585_v19 = vld [vmem:[#allocation14 + $0x1e0] sm:$0xff]  }
 0x56e   : > { %v12588_v40 = vld [vmem:[#allocation14 + $0x1a0] sm:$0xff]  }
 0x56f   : > { %8699 = vmatpush2.bf16.msra.mxu0 %v10663_v56  ;;  %v11315_v56 = vld [vmem:[#allocation14 + $0xc0] sm:$0xff]   ;;  %v8295_v14 = vadd.f32 %v8294_v0, %v8242_v18  ;;  %v12598_v0 = vld [vmem:[#allocation14 + $0x198] sm:$0xff]  }
 0x570   : > { %10820 = vmatprep.subr.bf16.mxu0 %v11301_v11  ;;  %v8238_v11 = vadd.f32 %v8237_v15, %v8185_v29 }
 0x572   : > { %8701 = vmatmul.mubr.bf16.vlgmr.msra.gmra.mxu0 %v12349_v60  ;;  %v11308_v60 = vld [vmem:[#allocation14 + $0xa0] sm:$0xff]   ;;  %v8291_v51 = vadd.f32 %v8290_v6, %v8238_v11  ;;  %v8384_v17 = vpop.f32.mrf.mxu0 }
 0x573   : > { %8710 = vmatprep.mubr.bf16.mxu0 %v12357_v62  ;;  %10821 = vmatpush3.bf16.msra.mxu0 %v11302_v28  ;;  %v11309_v62 = vld [vmem:[#allocation14 + $0xd8] sm:$0xff]  }
 0x574   : > { %10822 = vmatprep.subr.bf16.mxu0 %v11303_v27  ;;  %v8748_v27 = vmax.f32 %v8295_v14, 0.0  ;;  %v8740_v59 = vmax.f32 %v8291_v51, 0.0  ;;  %v8386_v15 = vpop.f32.mrf.mxu0 }
 0x577   : > { %10823 = vmatpush3.bf16.msra.mxu0 %v11304_v25 }
 0x578   : > { %10824 = vmatprep.subr.bf16.mxu0 %v11305_v61  ;;  %v8764_v61 = vpack.c.bf16 %v8748_v27, %v8740_v59  ;;  %v11345_v59 = vld [vmem:[#allocation14 + $0x1c8] sm:$0xff]  }
 0x57a   : > { %8711 = vmatmul.mubr.bf16.gmra.mxu0 %v12360_v8  ;;  %v8120_v8 = vadd.f32 %v12478_v63, %v5284_v4  ;;  %v8230_v63 = vadd.f32 %v12531_v45, %v8177_v49  ;;  %v8187_v45 = vadd.f32 %v12515_v36, %v8134_v2  ;;  %v11333_v4 = vld [vmem:[#allocation14 + $0x1f8] sm:$0xff]   ;;  %v12582_v49 = vld [vmem:[#allocation14 + $0x1a8] sm:$0xff]  }
 0x57b   : > { %10825 = vmatpush3.bf16.msra.mxu0 %v11306_v53  ;;  %9369 = vmatprep.mubr.bf16.mxu0 %v8756_v30 }
 0x57c   : > { %10826 = vmatprep.subr.bf16.mxu0 %v11307_v16  ;;  %v8173_v43 = vadd.f32 %v12480_v37, %v8120_v8  ;;  %v8283_v37 = vadd.f32 %v12533_v54, %v8230_v63  ;;  %v8240_v5 = vadd.f32 %v8239_v48, %v8187_v45  ;;  %10904 = vmatprep.subr.bf16.mxu1 %v11333_v4 }
 0x57e   : > { %v8226_v9 = vadd.f32 %v12521_v39, %v8173_v43  ;;  %v8335_v39 = vpop.f32.mrf.mxu1  ;;  %v8731_v28 = vmax.f32 %v8283_v37, 0.0  ;;  %v8293_v36 = vadd.f32 %v8292_v1, %v8240_v5  ;;  %v12593_v43 = vld [vmem:[#allocation14 + $0x1d8] sm:$0xff]  }
 0x57f   : > { %10827 = vmatpush3.bf16.msra.mxu0 %v11308_v60 }
 0x580   : > { %10828 = vmatprep.subr.bf16.mxu0 %v11309_v62  ;;  %v8279_v3 = vadd.f32 %v12523_v33, %v8226_v9  ;;  %v8337_v25 = vpop.f32.mrf.mxu1  ;;  %v8289_v33 = vadd.f32 %v8288_v26, %v8236_v10  ;;  %v8747_v22 = vmax.f32 %v8293_v36, 0.0  ;;  %v8388_v62 = vpop.f32.mrf.mxu0  ;;  %v11346_v36 = vld [vmem:[#allocation14 + $0x188] sm:$0xff]  }
 0x582   : > { %v8723_v54 = vmax.f32 %v8279_v3, 0.0  ;;  %v12569_v35 = vpop.f32.mrf.mxu1  ;;  %v8739_v53 = vmax.f32 %v8289_v33, 0.0  ;;  %v8390_v6 = vpop.f32.mrf.mxu0  ;;  %v12606_v3 = vld [vmem:[#allocation14 + $0x190] sm:$0xff]  }
 0x583   : > { %10829 = vmatpush3.bf16.msra.mxu0 %v11310_v41  ;;  %v12573_v41 = vld [vmem:[#allocation14 + $0x1f0] sm:$0xff]  }
 0x584   : > { %10830 = vmatprep.subr.bf16.mxu0 %v11311_v55  ;;  %v8755_v58 = vpack.c.bf16 %v8731_v28, %v8723_v54  ;;  %v8343_v16 = vpop.f32.mrf.mxu1  ;;  %v8763_v30 = vpack.c.bf16 %v8747_v22, %v8739_v53  ;;  %v12579_v55 = vld [vmem:[#allocation14 + $0x1e8] sm:$0xff]   ;;  %v8394_v23 = vpop.f32.mrf.mxu0 }
 0x586   : > { %v8345_v60 = vpop.f32.mrf.mxu1  ;;  %v8396_v1 = vpop.f32.mrf.mxu0 }
 0x587   : > { %10831 = vmatpush3.bf16.msra.mxu0 %v11312_v52  ;;  %v5296_v52 = vrot.slane %v12434_v20, %v12065_v24 }
 0x588   : > { %10832 = vmatprep.subr.bf16.mxu0 %v11313_v32  ;;  %v8347_v48 = vpop.f32.mrf.mxu1  ;;  %v5292_v32 = vrot.slane %v12434_v20, %v12068_v7  ;;  %v8398_v29 = vpop.f32.mrf.mxu0 }
 0x589   : > { %v8334_v18 = vadd.f32 %v12561_v34, %v5296_v52  ;;  %v8338_v9 = vadd.f32 %v8337_v25, %v5296_v52 }
 0x58a   : > { %v8437_v26 = vpop.f32.mrf.mxu1  ;;  %v8332_v24 = vadd.f32 %v12555_v47, %v5292_v32  ;;  %v8400_v2 = vpop.f32.mrf.mxu0  ;;  %v8344_v47 = vadd.f32 %v8343_v16, %v5296_v52  ;;  %v8346_v28 = vadd.f32 %v8345_v60, %v5292_v32 }
 0x58b   : > { %10833 = vmatpush3.bf16.msra.mxu0 %v11314_v44  ;;  %v8336_v44 = vadd.f32 %v8335_v39, %v5292_v32  ;;  %v8387_v37 = vadd.f32 %v8386_v15, %v8334_v18  ;;  %v8391_v20 = vadd.f32 %v8390_v6, %v8338_v9  ;;  %v11347_v6 = vld [vmem:[#allocation14 + $0x1c0] sm:$0xff]  }
 0x58c   : > { %10834 = vmatprep.subr.bf16.mxu0 %v11315_v56  ;;  %v8439_v8 = vpop.f32.mrf.mxu1  ;;  %v8385_v11 = vadd.f32 %v8384_v17, %v8332_v24  ;;  %v8397_v33 = vadd.f32 %v8396_v1, %v8344_v47  ;;  %v8399_v22 = vadd.f32 %v8398_v29, %v8346_v28 }
 0x58d   : > { %v8389_v56 = vadd.f32 %v8388_v62, %v8336_v44  ;;  %v8440_v34 = vadd.f32 %v8439_v8, %v8387_v37 }
 0x58e   : > { %v8441_v50 = vpop.f32.mrf.mxu1  ;;  %v8438_v12 = vadd.f32 %v8437_v26, %v8385_v11 }
 0x58f   : > { %10835 = vmatpush3.bf16.msra.mxu0 %v11316_v13  ;;  %v8442_v51 = vadd.f32 %v8441_v50, %v8389_v56 }
 0x590   : > { %10876 = vmatprep.subr.bf16.mxu0 %v11333_v4  ;;  %v8443_v63 = vpop.f32.mrf.mxu1 }
 0x591   : > { %v8444_v5 = vadd.f32 %v8443_v63, %v8391_v20 }
 0x592   : > { %9370 = vmatmul.mubr.bf16.vlgmr.msra.gmra.mxu0 %v8755_v58  ;;  %v8447_v14 = vpop.f32.mrf.mxu1  ;;  %v8342_v58 = vadd.f32 %v12569_v35, %v5292_v32  ;;  %v11348_v35 = vld [vmem:[#allocation14 + $0x180] sm:$0xff]  }
 0x593   : > { %9377 = vmatprep.mubr.bf16.mxu0 %v8764_v61  ;;  %10877 = vmatpush3.bf16.msra.mxu0 %v12571_v42  ;;  %v8348_v61 = vadd.f32 %v8347_v48, %v5296_v52 }
 0x594   : > { %10878 = vmatprep.subr.bf16.mxu0 %v12573_v41  ;;  %v8449_v13 = vpop.f32.mrf.mxu1  ;;  %v8395_v53 = vadd.f32 %v8394_v23, %v8342_v58 }
 0x595   : > { %v8401_v60 = vadd.f32 %v8400_v2, %v8348_v61  ;;  %v8450_v32 = vadd.f32 %v8449_v13, %v8397_v33 }
 0x596   : > { %v8451_v16 = vpop.f32.mrf.mxu1  ;;  %v8448_v52 = vadd.f32 %v8447_v14, %v8395_v53 }
 0x597   : > { %10879 = vmatpush3.bf16.msra.mxu0 %v12576_v38  ;;  %v8452_v63 = vadd.f32 %v8451_v16, %v8399_v22 }
 0x598   : > { %10880 = vmatprep.subr.bf16.mxu0 %v12579_v55  ;;  %v8453_v48 = vpop.f32.mrf.mxu1 }
 0x599   : > { %v8454_v44 = vadd.f32 %v8453_v48, %v8401_v60 }
 0x59a   : > { %9378 = vmatmul.mubr.bf16.gmra.mxu0 %v8763_v30 }
 0x59b   : > { %10881 = vmatpush3.bf16.msra.mxu0 %v12582_v49 }
 0x59c   : > { %10882 = vmatprep.subr.bf16.mxu0 %v12585_v19 }
 0x59f   : > { %10883 = vmatpush3.bf16.msra.mxu0 %v12588_v40 }
 0x5a0   : > { %10884 = vmatprep.subr.bf16.mxu0 %v12593_v43 }
 0x5a3   : > { %10885 = vmatpush3.bf16.msra.mxu0 %v12598_v0 }
 0x5a4   : > { %10886 = vmatprep.subr.bf16.mxu0 %v12604_v57 }
 0x5a7   : > { %10887 = vmatpush3.bf16.msra.mxu0 %v12606_v3 }
 0x5a8   : > { %10888 = vmatprep.subr.bf16.mxu0 %v11345_v59 }
 0x5ab   : > { %10889 = vmatpush3.bf16.msra.mxu0 %v11346_v36 }
 0x5ac   : > { %10890 = vmatprep.subr.bf16.mxu0 %v11347_v6 }
 0x5af   : > { %10891 = vmatpush3.bf16.msra.mxu0 %v11348_v35 }
 0x5b2   : > { %v8490_v7 = vpop.f32.mrf.mxu0 }
 0x5b3   : > { %v8491_v25 = vadd.f32 %v8490_v7, %v8438_v12 }
 0x5b4   : > { %v8492_v45 = vpop.f32.mrf.mxu0 }
 0x5b5   : > { %v8493_v27 = vadd.f32 %v8492_v45, %v8440_v34  ;;  %v8725_v26 = vmax.f32 %v8491_v25, 0.0 }
 0x5b6   : > { %v8494_v39 = vpop.f32.mrf.mxu0 }
 0x5b7   : > { %v8495_v54 = vadd.f32 %v8494_v39, %v8442_v51  ;;  %v8726_v62 = vmax.f32 %v8493_v27, 0.0  ;;  %v11350_v39 = vld [vmem:[#allocation13] sm:$0xff] }
 0x5b8   : > { %v8496_v10 = vpop.f32.mrf.mxu0  ;;  %v5304_v28 = vrot.slane %v11350_v39, %v2145_v21  ;;  %v5300_v27 = vrot.slane %v11350_v39, %v2141_v31 }
 0x5b9   : > { %v8497_v17 = vadd.f32 %v8496_v10, %v8444_v5  ;;  %v8733_v30 = vmax.f32 %v8495_v54, 0.0 }
 0x5ba   : > { %v8500_v15 = vpop.f32.mrf.mxu0 }
 0x5bb   : > { %v8734_v4 = vmax.f32 %v8497_v17, 0.0  ;;  %v8757_v1 = vpack.c.bf16 %v8733_v30, %v8725_v26  ;;  %v8501_v24 = vadd.f32 %v8500_v15, %v8448_v52 }
 0x5bc   : > { %v8502_v8 = vpop.f32.mrf.mxu0 }
 0x5bd   : > { %v8758_v50 = vpack.c.bf16 %v8734_v4, %v8726_v62  ;;  %v8503_v23 = vadd.f32 %v8502_v8, %v8450_v32  ;;  %v8741_v7 = vmax.f32 %v8501_v24, 0.0 }
 0x5be   : > { %v8504_v29 = vpop.f32.mrf.mxu0 }
 0x5bf   : > { %v8505_v18 = vadd.f32 %v8504_v29, %v8452_v63  ;;  %9418 = vmatprep.mubr.bf16.mxu1 %v8758_v50  ;;  %v8742_v56 = vmax.f32 %v8503_v23, 0.0 }
 0x5c0   : > { %v8506_v2 = vpop.f32.mrf.mxu0  ;;  %9419 = vmatmul.mubr.bf16.vlgmr.msra.gmra.mxu1 %v8757_v1 }
 0x5c1   : > { %v8507_v9 = vadd.f32 %v8506_v2, %v8454_v44  ;;  %10912 = vmatpush3.bf16.msra.mxu1 %v12571_v42  ;;  %v8749_v37 = vmax.f32 %v8505_v18, 0.0  ;;  %v8543_v42 = vpop.f32.mrf.mxu1 }
 0x5c2   : > { %10905 = vmatprep.subr.bf16.mxu1 %v12573_v41  ;;  %v8544_v25 = vadd.f32 %v8543_v42, %v5300_v27 }
 0x5c3   : > { %v8750_v11 = vmax.f32 %v8507_v9, 0.0  ;;  %v8765_v14 = vpack.c.bf16 %v8749_v37, %v8741_v7  ;;  %v8545_v41 = vpop.f32.mrf.mxu1 }
 0x5c5   : > { %v8766_v20 = vpack.c.bf16 %v8750_v11, %v8742_v56  ;;  %10913 = vmatpush3.bf16.msra.mxu1 %v12576_v38  ;;  %v8547_v38 = vpop.f32.mrf.mxu1 }
 0x5c6   : > { %10906 = vmatprep.subr.bf16.mxu1 %v12579_v55  ;;  %v8548_v58 = vadd.f32 %v8547_v38, %v5300_v27 }
 0x5c7   : > { %9426 = vmatprep.mubr.bf16.mxu1 %v8766_v20  ;;  %v8549_v55 = vpop.f32.mrf.mxu1 }
 0x5c8   : > { %9427 = vmatmul.mubr.bf16.gmra.mxu1 %v8765_v14 }
 0x5c9   : > { %10914 = vmatpush3.bf16.msra.mxu1 %v12582_v49  ;;  %v8553_v49 = vpop.f32.mrf.mxu1 }
 0x5ca   : > { %10907 = vmatprep.subr.bf16.mxu1 %v12585_v19 }
 0x5cb   : > { %v8555_v45 = vpop.f32.mrf.mxu1 }
 0x5cc   : > { %v8556_v21 = vadd.f32 %v8555_v45, %v5304_v28 }
 0x5cd   : > { %10915 = vmatpush3.bf16.msra.mxu1 %v12588_v40  ;;  %v8557_v34 = vpop.f32.mrf.mxu1 }
 0x5ce   : > { %10908 = vmatprep.subr.bf16.mxu1 %v12593_v43  ;;  %v8558_v4 = vadd.f32 %v8557_v34, %v5300_v27 }
 0x5cf   : > { %v8559_v51 = vpop.f32.mrf.mxu1 }
 0x5d0   : > { %v8560_v63 = vadd.f32 %v8559_v51, %v5304_v28 }
 0x5d1   : > { %10916 = vmatpush3.bf16.msra.mxu1 %v12598_v0 }
 0x5d2   : > { %10909 = vmatprep.subr.bf16.mxu1 %v12604_v57 }
 0x5d5   : > { %10917 = vmatpush3.bf16.msra.mxu1 %v12606_v3 }
 0x5d6   : > { %10910 = vmatprep.subr.bf16.mxu1 %v11345_v59  ;;  %v8546_v59 = vadd.f32 %v8545_v41, %v5304_v28 }
 0x5d9   : > { %10918 = vmatpush3.bf16.msra.mxu1 %v11346_v36  ;;  %v8550_v36 = vadd.f32 %v8549_v55, %v5304_v28 }
 0x5da   : > { %10911 = vmatprep.subr.bf16.mxu1 %v11347_v6 }
 0x5dd   : > { %10919 = vmatpush3.bf16.msra.mxu1 %v11348_v35  ;;  %v8554_v35 = vadd.f32 %v8553_v49, %v5300_v27 }
 0x5ef   : > { %v8649_v47 = vpop.f32.mrf.mxu1 }
 0x5f1   : > { %v8651_v13 = vpop.f32.mrf.mxu1 }
 0x5f2   : > { %v8596_v19 = vpop.f32.mrf.mxu0 }
 0x5f3   : > { %v8653_v12 = vpop.f32.mrf.mxu1  ;;  %v8597_v22 = vadd.f32 %v8596_v19, %v8544_v25 }
 0x5f4   : > { %v8598_v40 = vpop.f32.mrf.mxu0 }
 0x5f5   : > { %v8655_v5 = vpop.f32.mrf.mxu1  ;;  %v8599_v61 = vadd.f32 %v8598_v40, %v8546_v59  ;;  %v8650_v46 = vadd.f32 %v8649_v47, %v8597_v22 }
 0x5f6   : > { %v8600_v43 = vpop.f32.mrf.mxu0 }
 0x5f7   : > { %v8601_v33 = vadd.f32 %v8600_v43, %v8548_v58  ;;  %v8659_v17 = vpop.f32.mrf.mxu1  ;;  %v8652_v15 = vadd.f32 %v8651_v13, %v8599_v61 }
 0x5f8   : > { %v8602_v0 = vpop.f32.mrf.mxu0 }
 0x5f9   : > { %v8603_v16 = vadd.f32 %v8602_v0, %v8550_v36  ;;  %v8654_v60 = vadd.f32 %v8653_v12, %v8601_v33  ;;  %v8661_v62 = vpop.f32.mrf.mxu1 }
 0x5fa   : > { %v8606_v57 = vpop.f32.mrf.mxu0 }
 0x5fb   : > { %v8656_v8 = vadd.f32 %v8655_v5, %v8603_v16  ;;  %v8607_v29 = vadd.f32 %v8606_v57, %v8554_v35  ;;  %v8663_v23 = vpop.f32.mrf.mxu1 }
 0x5fc   : > { %v8608_v3 = vpop.f32.mrf.mxu0 }
 0x5fd   : > { %v8609_v48 = vadd.f32 %v8608_v3, %v8556_v21  ;;  %v8665_v14 = vpop.f32.mrf.mxu1  ;;  %v8660_v41 = vadd.f32 %v8659_v17, %v8607_v29  ;;  %v10721_v21 = vld [vmem:[#allocation16] ss:$0 sm:$0xff] }
 0x5fe   : > { %v8610_v54 = vpop.f32.mrf.mxu0 }
 0x5ff   : > { %v8611_v1 = vadd.f32 %v8610_v54, %v8558_v4  ;;  %v8662_v7 = vadd.f32 %v8661_v62, %v8609_v48 }
 0x600   : > { %v8612_v10 = vpop.f32.mrf.mxu0 }
 0x601   : > { %v8613_v24 = vadd.f32 %v8612_v10, %v8560_v63  ;;  %v8664_v20 = vadd.f32 %v8663_v23, %v8611_v1 }
 0x603   : > { %v8666_v19 = vadd.f32 %v8665_v14, %v8613_v24 }
 0x60f   : > { %v10808_v3 = vpop.f32.mrf.mxu1 }
 0x611   : > { %v10809_v12 = vpop.f32.mrf.mxu1 }
 0x613   : > { %v10811_v39 = vpop.f32.mrf.mxu1 }
 0x615   : > { %v10812_v28 = vpop.f32.mrf.mxu1 }
 0x617   : > { %v10814_v27 = vpop.f32.mrf.mxu1 }
 0x619   : > { %v10815_v54 = vpop.f32.mrf.mxu1 }
 0x61b   : > { %v10817_v59 = vpop.f32.mrf.mxu1 }
 0x61d   : > { %v10818_v25 = vpop.f32.mrf.mxu1 }
 0x632   : > { %v8702_v53 = vpop.f32.mrf.mxu0 }
 0x633   : > { %v8703_v50 = vadd.f32 %v8702_v53, %v8650_v46 }
 0x634   : > { %v8704_v30 = vpop.f32.mrf.mxu0 }
 0x635   : > { %v8705_v6 = vadd.f32 %v8704_v30, %v8652_v15  ;;  %v8727_v37 = vmax.f32 %v8703_v50, 0.0 }
 0x636   : > { %v8706_v31 = vpop.f32.mrf.mxu0 }
 0x637   : > { %v8707_v26 = vadd.f32 %v8706_v31, %v8654_v60  ;;  %v8728_v2 = vmax.f32 %v8705_v6, 0.0  ;;  %v10810_v60 = vadd.f32 %v10809_v12, %v10808_v3  ;;  %v10813_v6 = vadd.f32 %v10812_v28, %v10811_v39 }
 0x638   : > { %v8708_v32 = vpop.f32.mrf.mxu0 }
 0x639   : > { %v8709_v52 = vadd.f32 %v8708_v32, %v8656_v8  ;;  %v8735_v18 = vmax.f32 %v8707_v26, 0.0  ;;  %v9323_v4 = vadd.f32 %v10810_v60, %v10721_v21  ;;  %v10816_v32 = vadd.f32 %v10815_v54, %v10814_v27 }
 0x63a   : > { %v8712_v44 = vpop.f32.mrf.mxu0  ;;  %v9326_v1 = vadd.f32 %v10813_v6, %v10721_v21 }
 0x63b   : > { %v8736_v9 = vmax.f32 %v8709_v52, 0.0  ;;  %v8759_v42 = vpack.c.bf16 %v8735_v18, %v8727_v37  ;;  %v8713_v45 = vadd.f32 %v8712_v44, %v8660_v41 }
 0x63c   : > { %v8714_v56 = vpop.f32.mrf.mxu0 }
 0x63d   : > { %v8760_v11 = vpack.c.bf16 %v8736_v9, %v8728_v2  ;;  %v8715_v55 = vadd.f32 %v8714_v56, %v8662_v7  ;;  %v8743_v47 = vmax.f32 %v8713_v45, 0.0  ;;  %v9331_v9 = vadd.f32 %v10816_v32, %v10721_v21 }
 0x63e   : > { %v8716_v38 = vpop.f32.mrf.mxu0 }
 0x63f   : > { %v8717_v49 = vadd.f32 %v8716_v38, %v8664_v20  ;;  %9467 = vmatprep.mubr.bf16.mxu0 %v8760_v11  ;;  %v8744_v51 = vmax.f32 %v8715_v55, 0.0  ;;  %v10819_v11 = vadd.f32 %v10818_v25, %v10817_v59 }
 0x640   : > { %v8718_v40 = vpop.f32.mrf.mxu0  ;;  %9468 = vmatmul.mubr.bf16.vlgmr.msra.gmra.mxu0 %v8759_v42 }
 0x641   : > { %v8719_v34 = vadd.f32 %v8718_v40, %v8666_v19  ;;  %v8751_v43 = vmax.f32 %v8717_v49, 0.0  ;;  %v9334_v19 = vadd.f32 %v10819_v11, %v10721_v21 }
 0x643   : > { %v8752_v0 = vmax.f32 %v8719_v34, 0.0  ;;  %v8767_v13 = vpack.c.bf16 %v8751_v43, %v8743_v47 }
 0x645   : > { %v8768_v57 = vpack.c.bf16 %v8752_v0, %v8744_v51 }
 0x647   : > { %9475 = vmatprep.mubr.bf16.mxu1 %v8768_v57 }
 0x648   : > { %9476 = vmatmul.mubr.bf16.vlgmr.msra.gmra.mxu1 %v8767_v13 }
 0x652   : > { %v10836_v5 = vpop.f32.mrf.mxu0 }
 0x654   : > { %v10837_v58 = vpop.f32.mrf.mxu0 }
 0x655   : > { %v10838_v62 = vadd.f32 %v10837_v58, %v10836_v5 }
 0x656   : > { %v10839_v10 = vpop.f32.mrf.mxu0 }
 0x657   : > { %v9372_v35 = vadd.f32 %v10838_v62, %v9323_v4 }
 0x658   : > { %v10840_v61 = vpop.f32.mrf.mxu0 }
 0x659   : > { %v10841_v50 = vadd.f32 %v10840_v61, %v10839_v10 }
 0x65a   : > { %v10842_v22 = vpop.f32.mrf.mxu0 }
 0x65b   : > { %v9375_v44 = vadd.f32 %v10841_v50, %v9326_v1 }
 0x65c   : > { %v10843_v53 = vpop.f32.mrf.mxu0 }
 0x65d   : > { %v10844_v24 = vadd.f32 %v10843_v53, %v10842_v22 }
 0x65e   : > { %v10845_v30 = vpop.f32.mrf.mxu0 }
 0x65f   : > { %v9380_v41 = vadd.f32 %v10844_v24, %v9331_v9 }
 0x660   : > { %v10846_v46 = vpop.f32.mrf.mxu0 }
 0x661   : > { %v10847_v38 = vadd.f32 %v10846_v46, %v10845_v30 }
 0x663   : > { %v9383_v51 = vadd.f32 %v10847_v38, %v9334_v19 }
 0x680   : > { %v10864_v36 = vpop.f32.mrf.mxu1 }
 0x682   : > { %v10865_v33 = vpop.f32.mrf.mxu1 }
 0x683   : > { %v10866_v26 = vadd.f32 %v10865_v33, %v10864_v36 }
 0x684   : > { %v10867_v17 = vpop.f32.mrf.mxu1 }
 0x685   : > { %v9421_v52 = vadd.f32 %v10866_v26, %v9372_v35 }
 0x686   : > { %v10868_v16 = vpop.f32.mrf.mxu1 }
 0x687   : > { %v10869_v29 = vadd.f32 %v10868_v16, %v10867_v17 }
 0x688   : > { %v10870_v15 = vpop.f32.mrf.mxu1 }
 0x689   : > { %v9424_v7 = vadd.f32 %v10869_v29, %v9375_v44 }
 0x68a   : > { %v10871_v31 = vpop.f32.mrf.mxu1 }
 0x68b   : > { %v10872_v20 = vadd.f32 %v10871_v31, %v10870_v15 }
 0x68c   : > { %v10873_v63 = vpop.f32.mrf.mxu1 }
 0x68d   : > { %v9429_v45 = vadd.f32 %v10872_v20, %v9380_v41 }
 0x68e   : > { %v10874_v37 = vpop.f32.mrf.mxu1 }
 0x68f   : > { %v10875_v40 = vadd.f32 %v10874_v37, %v10873_v63 }
 0x691   : > { %v9432_v57 = vadd.f32 %v10875_v40, %v9383_v51 }
 0x700   : > { %v10892_v8 = vpop.f32.mrf.mxu0 }
 0x702   : > { %v10893_v48 = vpop.f32.mrf.mxu0 }
 0x703   : > { %v10894_v23 = vadd.f32 %v10893_v48, %v10892_v8 }
 0x704   : > { %v10895_v18 = vpop.f32.mrf.mxu0 }
 0x705   : > { %v9470_v2 = vadd.f32 %v10894_v23, %v9421_v52 }
 0x706   : > { %v10896_v56 = vpop.f32.mrf.mxu0 }
 0x707   : > { %9484 = vst [vmem:[%s459_s17] sm:$0xff] %v9470_v2  ;;  %v10897_v14 = vadd.f32 %v10896_v56, %v10895_v18 }
 0x708   : > { %v10898_v42 = vpop.f32.mrf.mxu1 }
 0x709   : > { %v9473_v55 = vadd.f32 %v10897_v14, %v9424_v7 }
 0x70a   : > { %v10899_v49 = vpop.f32.mrf.mxu1 }
 0x70b   : > { %9485 = vst [vmem:[%s459_s17 + $0x8] sm:$0xff] %v9473_v55  ;;  %v10900_v34 = vadd.f32 %v10899_v49, %v10898_v42 }
 0x70c   : > { %v10901_v43 = vpop.f32.mrf.mxu1 }
 0x70d   : > { %v9478_v0 = vadd.f32 %v10900_v34, %v9429_v45 }
 0x70e   : > { %v10902_v47 = vpop.f32.mrf.mxu1 }
 0x70f   : > { %9486 = vst [vmem:[%s459_s17 + $0x10] sm:$0xff] %v9478_v0  ;;  %v10903_v13 = vadd.f32 %v10902_v47, %v10901_v43 }
 0x711   : > { %v9481_v3 = vadd.f32 %v10903_v13, %v9432_v57 }
 0x713   : > { %9487 = vst [vmem:[%s459_s17 + $0x18] sm:$0xff] %v9481_v3 }
 0x714   : > { %11600 = shalt.err (!%p11597_p4)
}
 0x715   : > { %s11601_s20 = scalar_lea.hbm %s12633_s14, 512  ;;  %s11605_s16 = scalar_lea.hbm %s12685_s9, 1024 }
 0x716   : > { %p11602_p9 = scmp.ne.s32.totalorder %s12633_s14, %s11601_s20  ;;  %p11606_p12 = scmp.lt.s32.totalorder %s12633_s14, %s12685_s9 }
 0x717   : > { %p11607_p13 = scmp.lt.s32.totalorder %s11605_s16, %s11601_s20 }
 0x718   : > { %p11603_p11 = pnand %p11602_p9, %p12714_p2 }
 0x719   : > { %p11608_p6 = por %p11607_p13, %p11606_p12 }
 0x71a   : > { %p11604_p3 = pneg %p11603_p11 }
 0x71c   : > { %p11609_p5 = pnand %p11608_p6, %p11604_p3 }
 0x71e   : > { %11612 = shalt.err (!%p11609_p5)
}
 0x71f   : > { %s11688_s26 = smov 128   ;;  %s11689_s27 = smov 8  }
 0x720   : > { %10957 = dma.vmem_to_hbm [thread:$0]  (%p12714_p2), %s12628_s23, 512, %s12633_s14, %s9489_s22, %s11688_s26, %s11688_s26, %s11689_s27  }
 0x721 PF: > { %s9517_s2 = sand.u32 1, %s11655_s30   ;;  %p12715_p10 = scmp.ne.s32.totalorder %s12702_s13, 0 }
 0x722   : > { %p12716_p1 = scmp.ge.s32.totalorder %s11667_s12, 2  ;;  %s9518_s15 = scalar_lea.sflag [#allocation4], %s9517_s2 }
 0x724   : > { %p10989_p7 = pnand %p12716_p1, %p12715_p10 }
 0x726   : > { %p10990_p0 = pneg %p10989_p7 }
 0x728   : > { %11650 = dma.done.wait (%p10990_p0), %s9518_s15, 512  }
 0x729   : > { %11652 = vsyncadd (%p10990_p0), %s9518_s15, 4294966784  ;;  %p26_p8 = scmp.ge.s32.totalorder %s11853_s19, 4   ;;  %s12717_s30 = smov %s11659_s10 }
 0x72a   : > { %s12718_s10 = smov %s11663_s11  ;;  %s12719_s11 = smov %s11864_s28 }
 0x72b   : > { %s12720_s12 = smov %s11853_s19  ;;  %28 = sbr.rel (!%p26_p8) target bundleno = 13 (0xd), region = 133 }
 0x730   :  { %9523 = vsyncpa [#allocation3], 1 }
 0x731   :  { %9525 = vsyncpa [#allocation3 + $0x1], 1 }
 0x732   :  { %9526 = vsyncpa [#allocation6], 1 }
 0x733   :  { %9527 = vsyncpa [#allocation9], 1 }
 0x734   :  { %9528 = vsyncpa [#allocation12], 1 }
 0x735   :  { %9529 = vsyncpa [#allocation15], 1 }
 0x736   :  { %9530 = vsyncpa [#allocation4], 1 }
 0x737   :  { %9532 = vsyncpa [#allocation4 + $0x1], 1 }

</bundles_post_ra>
